<compile_context>
chip_gen: v7x
topology: tpu7x:2x2x1
jax: 0.10.0
libtpu: 0.0.40
codegen_flags: <defaults>
</compile_context>

<pallas_src>
import numpy as np
import jax
import jax.numpy as jnp
from jax.experimental import pallas as pl
from jax.experimental.pallas import tpu as pltpu

# ----------------------------- problem sizes (small) -----------------------------
B, T = 2, 8          # batch, encoder sequence length
KV = 32              # key_value_size (d_k == d_v)
E = 32               # embed_dim
H = 64               # decoder_hidden_dim
V = 40               # vocab_size
MAX_LEN = 6          # decoded sequence length (train mode: y.shape[1])
SOS = 1              # letter2index['<sos>']
TF_RATE = 0.95

# ----------------------------- padded (lane-aligned) sizes -----------------------------
LANE = 128
GP = LANE            # per-gate padded width (H=64 and KV=32 both pad to 128)
VP = LANE            # padded vocab width
KP = LANE            # padded feature width (embed / context / hidden lanes)


# ----------------------------- Pallas kernel -----------------------------
def make_decoder_kernel(tf_flags):
    """Build the decoder kernel specialized on the (static, host-side) teacher-forcing flags."""
    tf_flags = tuple(bool(f) for f in tf_flags)
    assert len(tf_flags) == MAX_LEN

    def kernel(key_ref, value_ref, mask_ref,            # (B,T,KP), (B,T,KP), (B,T)
               sos_ref, ce_ref, emb_ref,                # (B,KP), (MAX_LEN,B,KP), (VP,KP)
               w1_ref, b1_ref,                          # (3*128, 4*GP), (1, 4*GP)
               w2_ref, b2_ref,                          # (2*128, 4*GP), (1, 4*GP)
               wout_ref, bout_ref,                      # (2*128, VP),   (1, VP)
               pred_ref, attn_ref):                     # (MAX_LEN,B,VP), (MAX_LEN,1,T)
        f32 = jnp.float32

        # Load weights / encoder tensors once; they stay live across the unrolled recurrence.
        w1 = w1_ref[...]
        b1 = b1_ref[...]
        w2 = w2_ref[...]
        b2 = b2_ref[...]
        wout = wout_ref[...]
        bout = bout_ref[...]
        key = key_ref[...]          # (B, T, KP)  zero in lanes KV..KP-1
        value = value_ref[...]      # (B, T, KP)  zero in lanes KV..KP-1
        mask = mask_ref[...]        # (B, T)
        emb = emb_ref[...]          # (VP, KP)    zero-padded embedding table

        def lstm_cell(z, c, w, b):
            # Fused W_ih/W_hh matmul; gate blocks aligned to 128-lane boundaries.
            gates = jnp.dot(z, w, preferred_element_type=f32) + b
            i_g = jax.nn.sigmoid(gates[:, 0 * GP:1 * GP])
            f_g = jax.nn.sigmoid(gates[:, 1 * GP:2 * GP])
            g_g = jnp.tanh(gates[:, 2 * GP:3 * GP])
            o_g = jax.nn.sigmoid(gates[:, 3 * GP:4 * GP])
            c_new = f_g * c + i_g * g_g              # padded lanes: 0.5*0 + 0.5*0 = 0
            h_new = o_g * jnp.tanh(c_new)            # padded lanes: 0.5*tanh(0)    = 0
            return h_new, c_new

        # Recurrent state carried as plain values (no scratch); padded lanes stay exactly 0.
        h1 = jnp.zeros((B, GP), f32)
        c1 = jnp.zeros((B, GP), f32)
        h2 = jnp.zeros((B, GP), f32)
        c2 = jnp.zeros((B, GP), f32)
        ctx = jnp.zeros((B, KP), f32)
        prev = jnp.zeros((B, VP), f32)               # previous logits (padded lanes -> -1e9 later)

        for i in range(MAX_LEN):
            # ---- select char embedding for this step (statically specialized per step) ----
            if i == 0:
                char_embed = sos_ref[...]                                  # (B, KP)
            elif tf_flags[i]:
                char_embed = ce_ref[i - 1]                                 # embed(y[:, i-1])
            else:
                # greedy path: embedding(argmax(prev_logits)) via one-hot matmul on the MXU
                iota_v = jax.lax.broadcasted_iota(jnp.int32, (B, VP), 1)
                mx = jnp.max(prev, axis=1, keepdims=True)
                cand = jnp.where(prev == mx, iota_v, VP)
                amax = jnp.min(cand, axis=1, keepdims=True)                # first-max index
                onehot = (iota_v == amax).astype(f32)
                char_embed = jnp.dot(onehot, emb, preferred_element_type=f32)   # (B, KP)

            # ---- two fused LSTM cells ----
            z1 = jnp.concatenate([char_embed, ctx, h1], axis=1)            # (B, 3*128)
            h1, c1 = lstm_cell(z1, c1, w1, b1)
            z2 = jnp.concatenate([h1, h2], axis=1)                         # (B, 2*128)
            h2, c2 = lstm_cell(z2, c2, w2, b2)

            # ---- attention: masked softmax over encoder positions ----
            query = h2                                                     # (B, KP), zeros past KV
            energy = jnp.sum(key * query[:, None, :], axis=2)              # (B, T)
            energy = jnp.where(mask > 0.5, energy, -1e9)
            energy = energy - jnp.max(energy, axis=1, keepdims=True)
            p = jnp.exp(energy)
            attn = p / jnp.sum(p, axis=1, keepdims=True)                   # (B, T)
            ctx = jnp.sum(attn[:, :, None] * value, axis=1)                # (B, KP)

            # ---- output projection (vocab lanes padded to 128; pad bias = -1e9) ----
            out_cat = jnp.concatenate([query, ctx], axis=1)                # (B, 2*128)
            logits = jnp.dot(out_cat, wout, preferred_element_type=f32) + bout   # (B, VP)

            # lane-dense (128-wide) store of this step's predictions; output stays in VMEM
            pred_ref[i] = logits
            attn_ref[i] = attn[0:1]                                        # (1, T) attention_plot
            prev = logits

    return kernel


# ----------------------------- parameter packing (padding / fusion) -----------------------------
def prepare_kernel_params(params):
    """Build lane-aligned, gate-padded, fused weight matrices for the kernel."""
    def pad_gate_cols(w, hid):
        # w: (in, 4*hid) -> (in, 4*GP), each gate block zero-padded to GP lanes
        out = jnp.zeros((w.shape[0], 4 * GP), jnp.float32)
        for g in range(4):
            out = out.at[:, g * GP:g * GP + hid].set(w[:, g * hid:(g + 1) * hid])
        return out

    # --- LSTM1: input = [char_embed | ctx | h1], each padded to 128 lanes ---
    wih1 = params["wih1"]            # (E+KV, 4H), rows 0..E-1 = embed, rows E..E+KV-1 = ctx
    whh1 = params["whh1"]            # (H, 4H)
    W1 = jnp.zeros((3 * LANE, 4 * GP), jnp.float32)
    W1 = W1.at[0:E, :].set(pad_gate_cols(wih1[0:E], H))
    W1 = W1.at[LANE:LANE + KV, :].set(pad_gate_cols(wih1[E:E + KV], H))
    W1 = W1.at[2 * LANE:2 * LANE + H, :].set(pad_gate_cols(whh1, H))
    b1 = pad_gate_cols(params["b1"], H)                                   # (1, 4*GP)

    # --- LSTM2: input = [h1 | h2], each padded to 128 lanes ---
    wih2 = params["wih2"]            # (H, 4KV)
    whh2 = params["whh2"]            # (KV, 4KV)
    W2 = jnp.zeros((2 * LANE, 4 * GP), jnp.float32)
    W2 = W2.at[0:H, :].set(pad_gate_cols(wih2, KV))
    W2 = W2.at[LANE:LANE + KV, :].set(pad_gate_cols(whh2, KV))
    b2 = pad_gate_cols(params["b2"], KV)                                  # (1, 4*GP)

    # --- output projection: input = [query | ctx], vocab padded to 128 lanes ---
    wout = params["wout"]            # (2KV, V)
    Wout = jnp.zeros((2 * LANE, VP), jnp.float32)
    Wout = Wout.at[0:KV, 0:V].set(wout[0:KV])
    Wout = Wout.at[LANE:LANE + KV, 0:V].set(wout[KV:2 * KV])
    bout = jnp.full((1, VP), -1e9, jnp.float32)                           # pad lanes never win argmax
    bout = bout.at[:, 0:V].set(params["bout"])

    # --- embedding table padded to (VP, KP) for the greedy one-hot matmul ---
    emb_vp = jnp.zeros((VP, KP), jnp.float32)
    emb_vp = emb_vp.at[0:V, 0:E].set(params["emb"])

    return dict(W1=W1, b1=b1, W2=W2, b2=b2, Wout=Wout, bout=bout, emb_vp=emb_vp)


# ----------------------------- wrapper -----------------------------
def decoder_forward(params, key_arr, value_arr, encoder_len, y, tf_flags):
    """Train-mode forward of Decoder (teacher forcing decided by host-side tf_flags)."""
    kp = prepare_kernel_params(params)

    mask = (jnp.arange(T)[None, :] < encoder_len[:, None]).astype(jnp.float32)     # (B, T)
    key_pad = jnp.zeros((B, T, KP), jnp.float32).at[:, :, :KV].set(key_arr)
    value_pad = jnp.zeros((B, T, KP), jnp.float32).at[:, :, :KV].set(value_arr)

    emb_vp = kp["emb_vp"]
    ce_all = jnp.transpose(emb_vp[y], (1, 0, 2))                                   # (MAX_LEN, B, KP)
    sos_emb = jnp.broadcast_to(emb_vp[SOS], (B, KP))                               # (B, KP)

    kernel = make_decoder_kernel(tf_flags)

    preds_tm, attn_tm = pl.pallas_call(
        kernel,
        out_shape=(jax.ShapeDtypeStruct((MAX_LEN, B, VP), jnp.float32),
                   jax.ShapeDtypeStruct((MAX_LEN, 1, T), jnp.float32)),
    )(key_pad, value_pad, mask, sos_emb, ce_all, emb_vp,
      kp["W1"], kp["b1"], kp["W2"], kp["b2"], kp["Wout"], kp["bout"])

    predictions = jnp.transpose(preds_tm, (1, 0, 2))[:, :, :V]     # (B, MAX_LEN, V)
    attentions = attn_tm[:, 0, :]                                  # (MAX_LEN, T)
    return predictions, attentions


# ----------------------------- pure-JAX reference (for verification) -----------------------------
def decoder_reference(params, key_arr, value_arr, encoder_len, y, tf_flags):
    emb = params["emb"]
    mask = (jnp.arange(T)[None, :] < encoder_len[:, None]).astype(jnp.float32)
    char_emb = emb[y]
    sos_emb = jnp.broadcast_to(emb[SOS], (B, E))

    def lstm_cell(x, h, c, wih, whh, bias, hid):
        g = x @ wih + h @ whh + bias
        i_g = jax.nn.sigmoid(g[:, 0 * hid:1 * hid])
        f_g = jax.nn.sigmoid(g[:, 1 * hid:2 * hid])
        g_g = jnp.tanh(g[:, 2 * hid:3 * hid])
        o_g = jax.nn.sigmoid(g[:, 3 * hid:4 * hid])
        c_new = f_g * c + i_g * g_g
        return o_g * jnp.tanh(c_new), c_new

    h1 = jnp.zeros((B, H)); c1 = jnp.zeros((B, H))
    h2 = jnp.zeros((B, KV)); c2 = jnp.zeros((B, KV))
    ctx = jnp.zeros((B, KV))
    logits = None
    preds, attns = [], []
    for i in range(MAX_LEN):
        if i == 0:
            ce = sos_emb
        elif tf_flags[i]:
            ce = char_emb[:, i - 1, :]
        else:
            ce = emb[jnp.argmax(logits, axis=1)]
        x1 = jnp.concatenate([ce, ctx], axis=1)
        h1, c1 = lstm_cell(x1, h1, c1, params["wih1"], params["whh1"], params["b1"], H)
        h2, c2 = lstm_cell(h1, h2, c2, params["wih2"], params["whh2"], params["b2"], KV)
        query = h2
        energy = jnp.einsum("btd,bd->bt", key_arr, query)
        energy = jnp.where(mask > 0.5, energy, -1e9)
        attn = jax.nn.softmax(energy, axis=1)
        ctx = jnp.einsum("bt,btd->bd", attn, value_arr)
        logits = jnp.concatenate([query, ctx], axis=1) @ params["wout"] + params["bout"]
        preds.append(logits[:, None, :])
        attns.append(attn[0])
    return jnp.concatenate(preds, axis=1), jnp.stack(attns, axis=0)


# ----------------------------- deterministic parameter init -----------------------------
def init_params(rng):
    keys = jax.random.split(rng, 12)

    def uni(k, shape, bound):
        return jax.random.uniform(k, shape, jnp.float32, -bound, bound)

    emb = 0.1 * jax.random.normal(keys[0], (V, E), jnp.float32)
    emb = emb.at[0].set(0.0)                                   # padding_idx=0

    k1 = 1.0 / np.sqrt(H)
    wih1 = uni(keys[1], (4 * H, KV + E), k1)                   # torch layout (4H, in)
    whh1 = uni(keys[2], (4 * H, H), k1)
    b1 = uni(keys[3], (4 * H,), k1) + uni(keys[4], (4 * H,), k1)

    k2 = 1.0 / np.sqrt(KV)
    wih2 = uni(keys[5], (4 * KV, H), k2)
    whh2 = uni(keys[6], (4 * KV, KV), k2)
    b2 = uni(keys[7], (4 * KV,), k2) + uni(keys[8], (4 * KV,), k2)

    k3 = 1.0 / np.sqrt(2 * KV)
    wout = uni(keys[9], (V, 2 * KV), k3)
    bout = uni(keys[10], (V,), k3)

    return {
        "emb": emb,
        "wih1": wih1.T, "whh1": whh1.T, "b1": b1[None, :],     # pre-transposed for x @ W
        "wih2": wih2.T, "whh2": whh2.T, "b2": b2[None, :],
        "wout": wout.T, "bout": bout[None, :],
    }


if __name__ == "__main__":
    rng = jax.random.PRNGKey(0)
    r_param, r_key, r_val, r_y, r_tf = jax.random.split(rng, 5)

    params = init_params(r_param)
    key_arr = jax.random.normal(r_key, (B, T, KV), jnp.float32)
    value_arr = jax.random.normal(r_val, (B, T, KV), jnp.float32)
    encoder_len = jnp.array([T, 5], dtype=jnp.int32)
    y = jax.random.randint(r_y, (B, MAX_LEN), 1, V, dtype=jnp.int32)   # teacher tokens

    # deterministic host-side teacher-forcing decisions (stand-in for random.random() <= TF_rate)
    tf_host = (np.asarray(jax.random.uniform(r_tf, (MAX_LEN,))) <= TF_RATE)
    tf_host[3] = False                       # exercise the greedy (non-TF) path deterministically
    tf_flags = [bool(x) for x in tf_host]

    preds, attns = decoder_forward(params, key_arr, value_arr, encoder_len, y, tf_flags)
    preds = jax.block_until_ready(preds)
    attns = jax.block_until_ready(attns)

    preds_ref, attns_ref = decoder_reference(params, key_arr, value_arr, encoder_len, y, tf_flags)

    assert preds.shape == (B, MAX_LEN, V) and attns.shape == (MAX_LEN, T)
    np.testing.assert_allclose(np.asarray(preds), np.asarray(preds_ref), rtol=2e-3, atol=2e-3)
    np.testing.assert_allclose(np.asarray(attns), np.asarray(attns_ref), rtol=2e-3, atol=2e-3)

    print("KERNEL_OK")
</pallas_src>

<mosaic_0001>
module attributes {stable_mosaic.version = 11 : i64} {
  func.func @kernel(%arg0: memref<2x8x128xf32, #tpu.memory_space<vmem>>, %arg1: memref<2x8x128xf32, #tpu.memory_space<vmem>>, %arg2: memref<2x8xf32, #tpu.memory_space<vmem>>, %arg3: memref<2x128xf32, #tpu.memory_space<vmem>>, %arg4: memref<6x2x128xf32, #tpu.memory_space<vmem>>, %arg5: memref<128x128xf32, #tpu.memory_space<vmem>>, %arg6: memref<384x512xf32, #tpu.memory_space<vmem>>, %arg7: memref<1x512xf32, #tpu.memory_space<vmem>>, %arg8: memref<256x512xf32, #tpu.memory_space<vmem>>, %arg9: memref<1x512xf32, #tpu.memory_space<vmem>>, %arg10: memref<256x128xf32, #tpu.memory_space<vmem>>, %arg11: memref<1x128xf32, #tpu.memory_space<vmem>>, %arg12: memref<6x2x128xf32, #tpu.memory_space<vmem>>, %arg13: memref<6x1x8xf32, #tpu.memory_space<vmem>>) attributes {dimension_semantics = [], scalar_prefetch = 0 : i64, scratch_operands = 0 : i64, tpu.core_type = #tpu.core_type<tc>} {
    %c0 = arith.constant 0 : index
    %c0_0 = arith.constant 0 : index
    %0 = vector.load %arg6[%c0, %c0_0] : memref<384x512xf32, #tpu.memory_space<vmem>>, vector<384x512xf32>
    %c0_1 = arith.constant 0 : index
    %c0_2 = arith.constant 0 : index
    %1 = vector.load %arg7[%c0_1, %c0_2] : memref<1x512xf32, #tpu.memory_space<vmem>>, vector<1x512xf32>
    %c0_3 = arith.constant 0 : index
    %c0_4 = arith.constant 0 : index
    %2 = vector.load %arg8[%c0_3, %c0_4] : memref<256x512xf32, #tpu.memory_space<vmem>>, vector<256x512xf32>
    %c0_5 = arith.constant 0 : index
    %c0_6 = arith.constant 0 : index
    %3 = vector.load %arg9[%c0_5, %c0_6] : memref<1x512xf32, #tpu.memory_space<vmem>>, vector<1x512xf32>
    %c0_7 = arith.constant 0 : index
    %c0_8 = arith.constant 0 : index
    %4 = vector.load %arg10[%c0_7, %c0_8] : memref<256x128xf32, #tpu.memory_space<vmem>>, vector<256x128xf32>
    %c0_9 = arith.constant 0 : index
    %c0_10 = arith.constant 0 : index
    %5 = vector.load %arg11[%c0_9, %c0_10] : memref<1x128xf32, #tpu.memory_space<vmem>>, vector<1x128xf32>
    %c0_11 = arith.constant 0 : index
    %c0_12 = arith.constant 0 : index
    %c0_13 = arith.constant 0 : index
    %6 = vector.load %arg0[%c0_11, %c0_12, %c0_13] : memref<2x8x128xf32, #tpu.memory_space<vmem>>, vector<2x8x128xf32>
    %c0_14 = arith.constant 0 : index
    %c0_15 = arith.constant 0 : index
    %c0_16 = arith.constant 0 : index
    %7 = vector.load %arg1[%c0_14, %c0_15, %c0_16] : memref<2x8x128xf32, #tpu.memory_space<vmem>>, vector<2x8x128xf32>
    %c0_17 = arith.constant 0 : index
    %c0_18 = arith.constant 0 : index
    %8 = vector.load %arg2[%c0_17, %c0_18] : memref<2x8xf32, #tpu.memory_space<vmem>>, vector<2x8xf32>
    %c0_19 = arith.constant 0 : index
    %c0_20 = arith.constant 0 : index
    %9 = vector.load %arg5[%c0_19, %c0_20] : memref<128x128xf32, #tpu.memory_space<vmem>>, vector<128x128xf32>
    %cst = arith.constant 0.000000e+00 : f32
    %10 = vector.broadcast %cst : f32 to vector<2x128xf32>
    %cst_21 = arith.constant 0.000000e+00 : f32
    %11 = vector.broadcast %cst_21 : f32 to vector<2x128xf32>
    %cst_22 = arith.constant 0.000000e+00 : f32
    %12 = vector.broadcast %cst_22 : f32 to vector<2x128xf32>
    %cst_23 = arith.constant 0.000000e+00 : f32
    %13 = vector.broadcast %cst_23 : f32 to vector<2x128xf32>
    %cst_24 = arith.constant 0.000000e+00 : f32
    %14 = vector.broadcast %cst_24 : f32 to vector<2x128xf32>
    %c0_25 = arith.constant 0 : index
    %c0_26 = arith.constant 0 : index
    %15 = vector.load %arg3[%c0_25, %c0_26] : memref<2x128xf32, #tpu.memory_space<vmem>>, vector<2x128xf32>
    %16 = tpu.concatenate %15, %14, %10 in 1 : vector<2x128xf32>, vector<2x128xf32>, vector<2x128xf32> -> vector<2x384xf32>
    %cst_27 = arith.constant dense<0.000000e+00> : vector<2x512xf32>
    %17 = tpu.matmul %16, %0, %cst_27 {dimension_numbers = #tpu.dot_dimension_numbers<[1], [0], [0], [1], [0, 0, 1, 1], [], []>} : vector<2x384xf32>, vector<384x512xf32>, vector<2x512xf32> -> vector<2x512xf32>
    %18 = vector.broadcast %1 : vector<1x512xf32> to vector<2x512xf32>
    %19 = arith.addf %17, %18 : vector<2x512xf32>
    %20 = vector.extract_strided_slice %19 {offsets = [0, 0], sizes = [2, 128], strides = [1, 1]} : vector<2x512xf32> to vector<2x128xf32>
    %21 = arith.negf %20 : vector<2x128xf32>
    %22 = math.exp %21 : vector<2x128xf32>
    %cst_28 = arith.constant 1.000000e+00 : f32
    %23 = vector.broadcast %cst_28 : f32 to vector<2x128xf32>
    %24 = arith.addf %23, %22 : vector<2x128xf32>
    %25 = arith.divf %23, %24 : vector<2x128xf32>
    %26 = vector.extract_strided_slice %19 {offsets = [0, 128], sizes = [2, 128], strides = [1, 1]} : vector<2x512xf32> to vector<2x128xf32>
    %27 = arith.negf %26 : vector<2x128xf32>
    %28 = math.exp %27 : vector<2x128xf32>
    %cst_29 = arith.constant 1.000000e+00 : f32
    %29 = vector.broadcast %cst_29 : f32 to vector<2x128xf32>
    %30 = arith.addf %29, %28 : vector<2x128xf32>
    %31 = arith.divf %29, %30 : vector<2x128xf32>
    %32 = vector.extract_strided_slice %19 {offsets = [0, 256], sizes = [2, 128], strides = [1, 1]} : vector<2x512xf32> to vector<2x128xf32>
    %33 = math.tanh %32 : vector<2x128xf32>
    %34 = vector.extract_strided_slice %19 {offsets = [0, 384], sizes = [2, 128], strides = [1, 1]} : vector<2x512xf32> to vector<2x128xf32>
    %35 = arith.negf %34 : vector<2x128xf32>
    %36 = math.exp %35 : vector<2x128xf32>
    %cst_30 = arith.constant 1.000000e+00 : f32
    %37 = vector.broadcast %cst_30 : f32 to vector<2x128xf32>
    %38 = arith.addf %37, %36 : vector<2x128xf32>
    %39 = arith.divf %37, %38 : vector<2x128xf32>
    %40 = arith.mulf %31, %11 : vector<2x128xf32>
    %41 = arith.mulf %25, %33 : vector<2x128xf32>
    %42 = arith.addf %40, %41 : vector<2x128xf32>
    %43 = math.tanh %42 : vector<2x128xf32>
    %44 = arith.mulf %39, %43 : vector<2x128xf32>
    %45 = tpu.concatenate %44, %12 in 1 : vector<2x128xf32>, vector<2x128xf32> -> vector<2x256xf32>
    %cst_31 = arith.constant dense<0.000000e+00> : vector<2x512xf32>
    %46 = tpu.matmul %45, %2, %cst_31 {dimension_numbers = #tpu.dot_dimension_numbers<[1], [0], [0], [1], [0, 0, 1, 1], [], []>} : vector<2x256xf32>, vector<256x512xf32>, vector<2x512xf32> -> vector<2x512xf32>
    %47 = vector.broadcast %3 : vector<1x512xf32> to vector<2x512xf32>
    %48 = arith.addf %46, %47 : vector<2x512xf32>
    %49 = vector.extract_strided_slice %48 {offsets = [0, 0], sizes = [2, 128], strides = [1, 1]} : vector<2x512xf32> to vector<2x128xf32>
    %50 = arith.negf %49 : vector<2x128xf32>
    %51 = math.exp %50 : vector<2x128xf32>
    %cst_32 = arith.constant 1.000000e+00 : f32
    %52 = vector.broadcast %cst_32 : f32 to vector<2x128xf32>
    %53 = arith.addf %52, %51 : vector<2x128xf32>
    %54 = arith.divf %52, %53 : vector<2x128xf32>
    %55 = vector.extract_strided_slice %48 {offsets = [0, 128], sizes = [2, 128], strides = [1, 1]} : vector<2x512xf32> to vector<2x128xf32>
    %56 = arith.negf %55 : vector<2x128xf32>
    %57 = math.exp %56 : vector<2x128xf32>
    %cst_33 = arith.constant 1.000000e+00 : f32
    %58 = vector.broadcast %cst_33 : f32 to vector<2x128xf32>
    %59 = arith.addf %58, %57 : vector<2x128xf32>
    %60 = arith.divf %58, %59 : vector<2x128xf32>
    %61 = vector.extract_strided_slice %48 {offsets = [0, 256], sizes = [2, 128], strides = [1, 1]} : vector<2x512xf32> to vector<2x128xf32>
    %62 = math.tanh %61 : vector<2x128xf32>
    %63 = vector.extract_strided_slice %48 {offsets = [0, 384], sizes = [2, 128], strides = [1, 1]} : vector<2x512xf32> to vector<2x128xf32>
    %64 = arith.negf %63 : vector<2x128xf32>
    %65 = math.exp %64 : vector<2x128xf32>
    %cst_34 = arith.constant 1.000000e+00 : f32
    %66 = vector.broadcast %cst_34 : f32 to vector<2x128xf32>
    %67 = arith.addf %66, %65 : vector<2x128xf32>
    %68 = arith.divf %66, %67 : vector<2x128xf32>
    %69 = arith.mulf %60, %13 : vector<2x128xf32>
    %70 = arith.mulf %54, %62 : vector<2x128xf32>
    %71 = arith.addf %69, %70 : vector<2x128xf32>
    %72 = math.tanh %71 : vector<2x128xf32>
    %73 = arith.mulf %68, %72 : vector<2x128xf32>
    %74 = vector.shape_cast %73 : vector<2x128xf32> to vector<2x1x128xf32>
    %75 = vector.broadcast %74 : vector<2x1x128xf32> to vector<2x8x128xf32>
    %76 = arith.mulf %6, %75 : vector<2x8x128xf32>
    %cst_35 = arith.constant dense<0.000000e+00> : vector<2x8xf32>
    %77 = vector.multi_reduction <add>, %76, %cst_35 [2] : vector<2x8x128xf32> to vector<2x8xf32>
    %cst_36 = arith.constant 5.000000e-01 : f32
    %78 = vector.broadcast %cst_36 : f32 to vector<2x8xf32>
    %79 = arith.cmpf ogt, %8, %78 : vector<2x8xf32>
    %cst_37 = arith.constant -1.000000e+09 : f32
    %80 = vector.broadcast %cst_37 : f32 to vector<2x8xf32>
    %81 = arith.select %79, %77, %80 : vector<2x8xi1>, vector<2x8xf32>
    %cst_38 = arith.constant dense<0xFF800000> : vector<2xf32>
    %82 = vector.multi_reduction <maximumf>, %81, %cst_38 [1] : vector<2x8xf32> to vector<2xf32>
    %83 = vector.shape_cast %82 : vector<2xf32> to vector<2x1xf32>
    %84 = vector.broadcast %83 : vector<2x1xf32> to vector<2x8xf32>
    %85 = arith.subf %81, %84 : vector<2x8xf32>
    %86 = math.exp %85 : vector<2x8xf32>
    %cst_39 = arith.constant dense<0.000000e+00> : vector<2xf32>
    %87 = vector.multi_reduction <add>, %86, %cst_39 [1] : vector<2x8xf32> to vector<2xf32>
    %88 = vector.shape_cast %87 : vector<2xf32> to vector<2x1xf32>
    %89 = vector.broadcast %88 : vector<2x1xf32> to vector<2x8xf32>
    %90 = arith.divf %86, %89 : vector<2x8xf32>
    %91 = vector.shape_cast %90 : vector<2x8xf32> to vector<2x8x1xf32>
    %92 = vector.broadcast %91 : vector<2x8x1xf32> to vector<2x8x128xf32>
    %93 = arith.mulf %92, %7 : vector<2x8x128xf32>
    %cst_40 = arith.constant dense<0.000000e+00> : vector<2x128xf32>
    %94 = vector.multi_reduction <add>, %93, %cst_40 [1] : vector<2x8x128xf32> to vector<2x128xf32>
    %95 = tpu.concatenate %73, %94 in 1 : vector<2x128xf32>, vector<2x128xf32> -> vector<2x256xf32>
    %cst_41 = arith.constant dense<0.000000e+00> : vector<2x128xf32>
    %96 = tpu.matmul %95, %4, %cst_41 {dimension_numbers = #tpu.dot_dimension_numbers<[1], [0], [0], [1], [0, 0, 1, 1], [], []>} : vector<2x256xf32>, vector<256x128xf32>, vector<2x128xf32> -> vector<2x128xf32>
    %97 = vector.broadcast %5 : vector<1x128xf32> to vector<2x128xf32>
    %98 = arith.addf %96, %97 : vector<2x128xf32>
    %c0_42 = arith.constant 0 : index
    %c0_43 = arith.constant 0 : index
    %c0_44 = arith.constant 0 : index
    %99 = vector.load %arg12[%c0_42, %c0_43, %c0_44] : memref<6x2x128xf32, #tpu.memory_space<vmem>>, vector<1x2x128xf32>
    %100 = vector.shape_cast %99 : vector<1x2x128xf32> to vector<2x128xf32>
    %101 = vector.shape_cast %98 : vector<2x128xf32> to vector<1x2x128xf32>
    tpu.vector_store %arg12[%c0_42, %c0_43, %c0_44], %101 {strides = array<i32>} : memref<6x2x128xf32, #tpu.memory_space<vmem>>, vector<1x2x128xf32>,
    %102 = vector.extract_strided_slice %90 {offsets = [0, 0], sizes = [1, 8], strides = [1, 1]} : vector<2x8xf32> to vector<1x8xf32>
    %c0_45 = arith.constant 0 : index
    %c0_46 = arith.constant 0 : index
    %c0_47 = arith.constant 0 : index
    %103 = vector.load %arg13[%c0_45, %c0_46, %c0_47] : memref<6x1x8xf32, #tpu.memory_space<vmem>>, vector<1x1x8xf32>
    %104 = vector.shape_cast %103 : vector<1x1x8xf32> to vector<1x8xf32>
    %105 = vector.shape_cast %102 : vector<1x8xf32> to vector<1x1x8xf32>
    tpu.vector_store %arg13[%c0_45, %c0_46, %c0_47], %105 {strides = array<i32>} : memref<6x1x8xf32, #tpu.memory_space<vmem>>, vector<1x1x8xf32>,
    %c0_48 = arith.constant 0 : index
    %c0_49 = arith.constant 0 : index
    %c0_50 = arith.constant 0 : index
    %106 = vector.load %arg4[%c0_48, %c0_49, %c0_50] : memref<6x2x128xf32, #tpu.memory_space<vmem>>, vector<1x2x128xf32>
    %107 = vector.shape_cast %106 : vector<1x2x128xf32> to vector<2x128xf32>
    %108 = tpu.concatenate %107, %94, %44 in 1 : vector<2x128xf32>, vector<2x128xf32>, vector<2x128xf32> -> vector<2x384xf32>
    %cst_51 = arith.constant dense<0.000000e+00> : vector<2x512xf32>
    %109 = tpu.matmul %108, %0, %cst_51 {dimension_numbers = #tpu.dot_dimension_numbers<[1], [0], [0], [1], [0, 0, 1, 1], [], []>} : vector<2x384xf32>, vector<384x512xf32>, vector<2x512xf32> -> vector<2x512xf32>
    %110 = vector.broadcast %1 : vector<1x512xf32> to vector<2x512xf32>
    %111 = arith.addf %109, %110 : vector<2x512xf32>
    %112 = vector.extract_strided_slice %111 {offsets = [0, 0], sizes = [2, 128], strides = [1, 1]} : vector<2x512xf32> to vector<2x128xf32>
    %113 = arith.negf %112 : vector<2x128xf32>
    %114 = math.exp %113 : vector<2x128xf32>
    %cst_52 = arith.constant 1.000000e+00 : f32
    %115 = vector.broadcast %cst_52 : f32 to vector<2x128xf32>
    %116 = arith.addf %115, %114 : vector<2x128xf32>
    %117 = arith.divf %115, %116 : vector<2x128xf32>
    %118 = vector.extract_strided_slice %111 {offsets = [0, 128], sizes = [2, 128], strides = [1, 1]} : vector<2x512xf32> to vector<2x128xf32>
    %119 = arith.negf %118 : vector<2x128xf32>
    %120 = math.exp %119 : vector<2x128xf32>
    %cst_53 = arith.constant 1.000000e+00 : f32
    %121 = vector.broadcast %cst_53 : f32 to vector<2x128xf32>
    %122 = arith.addf %121, %120 : vector<2x128xf32>
    %123 = arith.divf %121, %122 : vector<2x128xf32>
    %124 = vector.extract_strided_slice %111 {offsets = [0, 256], sizes = [2, 128], strides = [1, 1]} : vector<2x512xf32> to vector<2x128xf32>
    %125 = math.tanh %124 : vector<2x128xf32>
    %126 = vector.extract_strided_slice %111 {offsets = [0, 384], sizes = [2, 128], strides = [1, 1]} : vector<2x512xf32> to vector<2x128xf32>
    %127 = arith.negf %126 : vector<2x128xf32>
    %128 = math.exp %127 : vector<2x128xf32>
    %cst_54 = arith.constant 1.000000e+00 : f32
    %129 = vector.broadcast %cst_54 : f32 to vector<2x128xf32>
    %130 = arith.addf %129, %128 : vector<2x128xf32>
    %131 = arith.divf %129, %130 : vector<2x128xf32>
    %132 = arith.mulf %123, %42 : vector<2x128xf32>
    %133 = arith.mulf %117, %125 : vector<2x128xf32>
    %134 = arith.addf %132, %133 : vector<2x128xf32>
    %135 = math.tanh %134 : vector<2x128xf32>
    %136 = arith.mulf %131, %135 : vector<2x128xf32>
    %137 = tpu.concatenate %136, %73 in 1 : vector<2x128xf32>, vector<2x128xf32> -> vector<2x256xf32>
    %cst_55 = arith.constant dense<0.000000e+00> : vector<2x512xf32>
    %138 = tpu.matmul %137, %2, %cst_55 {dimension_numbers = #tpu.dot_dimension_numbers<[1], [0], [0], [1], [0, 0, 1, 1], [], []>} : vector<2x256xf32>, vector<256x512xf32>, vector<2x512xf32> -> vector<2x512xf32>
    %139 = vector.broadcast %3 : vector<1x512xf32> to vector<2x512xf32>
    %140 = arith.addf %138, %139 : vector<2x512xf32>
    %141 = vector.extract_strided_slice %140 {offsets = [0, 0], sizes = [2, 128], strides = [1, 1]} : vector<2x512xf32> to vector<2x128xf32>
    %142 = arith.negf %141 : vector<2x128xf32>
    %143 = math.exp %142 : vector<2x128xf32>
    %cst_56 = arith.constant 1.000000e+00 : f32
    %144 = vector.broadcast %cst_56 : f32 to vector<2x128xf32>
    %145 = arith.addf %144, %143 : vector<2x128xf32>
    %146 = arith.divf %144, %145 : vector<2x128xf32>
    %147 = vector.extract_strided_slice %140 {offsets = [0, 128], sizes = [2, 128], strides = [1, 1]} : vector<2x512xf32> to vector<2x128xf32>
    %148 = arith.negf %147 : vector<2x128xf32>
    %149 = math.exp %148 : vector<2x128xf32>
    %cst_57 = arith.constant 1.000000e+00 : f32
    %150 = vector.broadcast %cst_57 : f32 to vector<2x128xf32>
    %151 = arith.addf %150, %149 : vector<2x128xf32>
    %152 = arith.divf %150, %151 : vector<2x128xf32>
    %153 = vector.extract_strided_slice %140 {offsets = [0, 256], sizes = [2, 128], strides = [1, 1]} : vector<2x512xf32> to vector<2x128xf32>
    %154 = math.tanh %153 : vector<2x128xf32>
    %155 = vector.extract_strided_slice %140 {offsets = [0, 384], sizes = [2, 128], strides = [1, 1]} : vector<2x512xf32> to vector<2x128xf32>
    %156 = arith.negf %155 : vector<2x128xf32>
    %157 = math.exp %156 : vector<2x128xf32>
    %cst_58 = arith.constant 1.000000e+00 : f32
    %158 = vector.broadcast %cst_58 : f32 to vector<2x128xf32>
    %159 = arith.addf %158, %157 : vector<2x128xf32>
    %160 = arith.divf %158, %159 : vector<2x128xf32>
    %161 = arith.mulf %152, %71 : vector<2x128xf32>
    %162 = arith.mulf %146, %154 : vector<2x128xf32>
    %163 = arith.addf %161, %162 : vector<2x128xf32>
    %164 = math.tanh %163 : vector<2x128xf32>
    %165 = arith.mulf %160, %164 : vector<2x128xf32>
    %166 = vector.shape_cast %165 : vector<2x128xf32> to vector<2x1x128xf32>
    %167 = vector.broadcast %166 : vector<2x1x128xf32> to vector<2x8x128xf32>
    %168 = arith.mulf %6, %167 : vector<2x8x128xf32>
    %cst_59 = arith.constant dense<0.000000e+00> : vector<2x8xf32>
    %169 = vector.multi_reduction <add>, %168, %cst_59 [2] : vector<2x8x128xf32> to vector<2x8xf32>
    %cst_60 = arith.constant 5.000000e-01 : f32
    %170 = vector.broadcast %cst_60 : f32 to vector<2x8xf32>
    %171 = arith.cmpf ogt, %8, %170 : vector<2x8xf32>
    %cst_61 = arith.constant -1.000000e+09 : f32
    %172 = vector.broadcast %cst_61 : f32 to vector<2x8xf32>
    %173 = arith.select %171, %169, %172 : vector<2x8xi1>, vector<2x8xf32>
    %cst_62 = arith.constant dense<0xFF800000> : vector<2xf32>
    %174 = vector.multi_reduction <maximumf>, %173, %cst_62 [1] : vector<2x8xf32> to vector<2xf32>
    %175 = vector.shape_cast %174 : vector<2xf32> to vector<2x1xf32>
    %176 = vector.broadcast %175 : vector<2x1xf32> to vector<2x8xf32>
    %177 = arith.subf %173, %176 : vector<2x8xf32>
    %178 = math.exp %177 : vector<2x8xf32>
    %cst_63 = arith.constant dense<0.000000e+00> : vector<2xf32>
    %179 = vector.multi_reduction <add>, %178, %cst_63 [1] : vector<2x8xf32> to vector<2xf32>
    %180 = vector.shape_cast %179 : vector<2xf32> to vector<2x1xf32>
    %181 = vector.broadcast %180 : vector<2x1xf32> to vector<2x8xf32>
    %182 = arith.divf %178, %181 : vector<2x8xf32>
    %183 = vector.shape_cast %182 : vector<2x8xf32> to vector<2x8x1xf32>
    %184 = vector.broadcast %183 : vector<2x8x1xf32> to vector<2x8x128xf32>
    %185 = arith.mulf %184, %7 : vector<2x8x128xf32>
    %cst_64 = arith.constant dense<0.000000e+00> : vector<2x128xf32>
    %186 = vector.multi_reduction <add>, %185, %cst_64 [1] : vector<2x8x128xf32> to vector<2x128xf32>
    %187 = tpu.concatenate %165, %186 in 1 : vector<2x128xf32>, vector<2x128xf32> -> vector<2x256xf32>
    %cst_65 = arith.constant dense<0.000000e+00> : vector<2x128xf32>
    %188 = tpu.matmul %187, %4, %cst_65 {dimension_numbers = #tpu.dot_dimension_numbers<[1], [0], [0], [1], [0, 0, 1, 1], [], []>} : vector<2x256xf32>, vector<256x128xf32>, vector<2x128xf32> -> vector<2x128xf32>
    %189 = vector.broadcast %5 : vector<1x128xf32> to vector<2x128xf32>
    %190 = arith.addf %188, %189 : vector<2x128xf32>
    %c1 = arith.constant 1 : index
    %c0_66 = arith.constant 0 : index
    %c0_67 = arith.constant 0 : index
    %191 = vector.load %arg12[%c1, %c0_66, %c0_67] : memref<6x2x128xf32, #tpu.memory_space<vmem>>, vector<1x2x128xf32>
    %192 = vector.shape_cast %191 : vector<1x2x128xf32> to vector<2x128xf32>
    %193 = vector.shape_cast %190 : vector<2x128xf32> to vector<1x2x128xf32>
    tpu.vector_store %arg12[%c1, %c0_66, %c0_67], %193 {strides = array<i32>} : memref<6x2x128xf32, #tpu.memory_space<vmem>>, vector<1x2x128xf32>,
    %194 = vector.extract_strided_slice %182 {offsets = [0, 0], sizes = [1, 8], strides = [1, 1]} : vector<2x8xf32> to vector<1x8xf32>
    %c1_68 = arith.constant 1 : index
    %c0_69 = arith.constant 0 : index
    %c0_70 = arith.constant 0 : index
    %195 = vector.load %arg13[%c1_68, %c0_69, %c0_70] : memref<6x1x8xf32, #tpu.memory_space<vmem>>, vector<1x1x8xf32>
    %196 = vector.shape_cast %195 : vector<1x1x8xf32> to vector<1x8xf32>
    %197 = vector.shape_cast %194 : vector<1x8xf32> to vector<1x1x8xf32>
    tpu.vector_store %arg13[%c1_68, %c0_69, %c0_70], %197 {strides = array<i32>} : memref<6x1x8xf32, #tpu.memory_space<vmem>>, vector<1x1x8xf32>,
    %c1_71 = arith.constant 1 : index
    %c0_72 = arith.constant 0 : index
    %c0_73 = arith.constant 0 : index
    %198 = vector.load %arg4[%c1_71, %c0_72, %c0_73] : memref<6x2x128xf32, #tpu.memory_space<vmem>>, vector<1x2x128xf32>
    %199 = vector.shape_cast %198 : vector<1x2x128xf32> to vector<2x128xf32>
    %200 = tpu.concatenate %199, %186, %136 in 1 : vector<2x128xf32>, vector<2x128xf32>, vector<2x128xf32> -> vector<2x384xf32>
    %cst_74 = arith.constant dense<0.000000e+00> : vector<2x512xf32>
    %201 = tpu.matmul %200, %0, %cst_74 {dimension_numbers = #tpu.dot_dimension_numbers<[1], [0], [0], [1], [0, 0, 1, 1], [], []>} : vector<2x384xf32>, vector<384x512xf32>, vector<2x512xf32> -> vector<2x512xf32>
    %202 = vector.broadcast %1 : vector<1x512xf32> to vector<2x512xf32>
    %203 = arith.addf %201, %202 : vector<2x512xf32>
    %204 = vector.extract_strided_slice %203 {offsets = [0, 0], sizes = [2, 128], strides = [1, 1]} : vector<2x512xf32> to vector<2x128xf32>
    %205 = arith.negf %204 : vector<2x128xf32>
    %206 = math.exp %205 : vector<2x128xf32>
    %cst_75 = arith.constant 1.000000e+00 : f32
    %207 = vector.broadcast %cst_75 : f32 to vector<2x128xf32>
    %208 = arith.addf %207, %206 : vector<2x128xf32>
    %209 = arith.divf %207, %208 : vector<2x128xf32>
    %210 = vector.extract_strided_slice %203 {offsets = [0, 128], sizes = [2, 128], strides = [1, 1]} : vector<2x512xf32> to vector<2x128xf32>
    %211 = arith.negf %210 : vector<2x128xf32>
    %212 = math.exp %211 : vector<2x128xf32>
    %cst_76 = arith.constant 1.000000e+00 : f32
    %213 = vector.broadcast %cst_76 : f32 to vector<2x128xf32>
    %214 = arith.addf %213, %212 : vector<2x128xf32>
    %215 = arith.divf %213, %214 : vector<2x128xf32>
    %216 = vector.extract_strided_slice %203 {offsets = [0, 256], sizes = [2, 128], strides = [1, 1]} : vector<2x512xf32> to vector<2x128xf32>
    %217 = math.tanh %216 : vector<2x128xf32>
    %218 = vector.extract_strided_slice %203 {offsets = [0, 384], sizes = [2, 128], strides = [1, 1]} : vector<2x512xf32> to vector<2x128xf32>
    %219 = arith.negf %218 : vector<2x128xf32>
    %220 = math.exp %219 : vector<2x128xf32>
    %cst_77 = arith.constant 1.000000e+00 : f32
    %221 = vector.broadcast %cst_77 : f32 to vector<2x128xf32>
    %222 = arith.addf %221, %220 : vector<2x128xf32>
    %223 = arith.divf %221, %222 : vector<2x128xf32>
    %224 = arith.mulf %215, %134 : vector<2x128xf32>
    %225 = arith.mulf %209, %217 : vector<2x128xf32>
    %226 = arith.addf %224, %225 : vector<2x128xf32>
    %227 = math.tanh %226 : vector<2x128xf32>
    %228 = arith.mulf %223, %227 : vector<2x128xf32>
    %229 = tpu.concatenate %228, %165 in 1 : vector<2x128xf32>, vector<2x128xf32> -> vector<2x256xf32>
    %cst_78 = arith.constant dense<0.000000e+00> : vector<2x512xf32>
    %230 = tpu.matmul %229, %2, %cst_78 {dimension_numbers = #tpu.dot_dimension_numbers<[1], [0], [0], [1], [0, 0, 1, 1], [], []>} : vector<2x256xf32>, vector<256x512xf32>, vector<2x512xf32> -> vector<2x512xf32>
    %231 = vector.broadcast %3 : vector<1x512xf32> to vector<2x512xf32>
    %232 = arith.addf %230, %231 : vector<2x512xf32>
    %233 = vector.extract_strided_slice %232 {offsets = [0, 0], sizes = [2, 128], strides = [1, 1]} : vector<2x512xf32> to vector<2x128xf32>
    %234 = arith.negf %233 : vector<2x128xf32>
    %235 = math.exp %234 : vector<2x128xf32>
    %cst_79 = arith.constant 1.000000e+00 : f32
    %236 = vector.broadcast %cst_79 : f32 to vector<2x128xf32>
    %237 = arith.addf %236, %235 : vector<2x128xf32>
    %238 = arith.divf %236, %237 : vector<2x128xf32>
    %239 = vector.extract_strided_slice %232 {offsets = [0, 128], sizes = [2, 128], strides = [1, 1]} : vector<2x512xf32> to vector<2x128xf32>
    %240 = arith.negf %239 : vector<2x128xf32>
    %241 = math.exp %240 : vector<2x128xf32>
    %cst_80 = arith.constant 1.000000e+00 : f32
    %242 = vector.broadcast %cst_80 : f32 to vector<2x128xf32>
    %243 = arith.addf %242, %241 : vector<2x128xf32>
    %244 = arith.divf %242, %243 : vector<2x128xf32>
    %245 = vector.extract_strided_slice %232 {offsets = [0, 256], sizes = [2, 128], strides = [1, 1]} : vector<2x512xf32> to vector<2x128xf32>
    %246 = math.tanh %245 : vector<2x128xf32>
    %247 = vector.extract_strided_slice %232 {offsets = [0, 384], sizes = [2, 128], strides = [1, 1]} : vector<2x512xf32> to vector<2x128xf32>
    %248 = arith.negf %247 : vector<2x128xf32>
    %249 = math.exp %248 : vector<2x128xf32>
    %cst_81 = arith.constant 1.000000e+00 : f32
    %250 = vector.broadcast %cst_81 : f32 to vector<2x128xf32>
    %251 = arith.addf %250, %249 : vector<2x128xf32>
    %252 = arith.divf %250, %251 : vector<2x128xf32>
    %253 = arith.mulf %244, %163 : vector<2x128xf32>
    %254 = arith.mulf %238, %246 : vector<2x128xf32>
    %255 = arith.addf %253, %254 : vector<2x128xf32>
    %256 = math.tanh %255 : vector<2x128xf32>
    %257 = arith.mulf %252, %256 : vector<2x128xf32>
    %258 = vector.shape_cast %257 : vector<2x128xf32> to vector<2x1x128xf32>
    %259 = vector.broadcast %258 : vector<2x1x128xf32> to vector<2x8x128xf32>
    %260 = arith.mulf %6, %259 : vector<2x8x128xf32>
    %cst_82 = arith.constant dense<0.000000e+00> : vector<2x8xf32>
    %261 = vector.multi_reduction <add>, %260, %cst_82 [2] : vector<2x8x128xf32> to vector<2x8xf32>
    %cst_83 = arith.constant 5.000000e-01 : f32
    %262 = vector.broadcast %cst_83 : f32 to vector<2x8xf32>
    %263 = arith.cmpf ogt, %8, %262 : vector<2x8xf32>
    %cst_84 = arith.constant -1.000000e+09 : f32
    %264 = vector.broadcast %cst_84 : f32 to vector<2x8xf32>
    %265 = arith.select %263, %261, %264 : vector<2x8xi1>, vector<2x8xf32>
    %cst_85 = arith.constant dense<0xFF800000> : vector<2xf32>
    %266 = vector.multi_reduction <maximumf>, %265, %cst_85 [1] : vector<2x8xf32> to vector<2xf32>
    %267 = vector.shape_cast %266 : vector<2xf32> to vector<2x1xf32>
    %268 = vector.broadcast %267 : vector<2x1xf32> to vector<2x8xf32>
    %269 = arith.subf %265, %268 : vector<2x8xf32>
    %270 = math.exp %269 : vector<2x8xf32>
    %cst_86 = arith.constant dense<0.000000e+00> : vector<2xf32>
    %271 = vector.multi_reduction <add>, %270, %cst_86 [1] : vector<2x8xf32> to vector<2xf32>
    %272 = vector.shape_cast %271 : vector<2xf32> to vector<2x1xf32>
    %273 = vector.broadcast %272 : vector<2x1xf32> to vector<2x8xf32>
    %274 = arith.divf %270, %273 : vector<2x8xf32>
    %275 = vector.shape_cast %274 : vector<2x8xf32> to vector<2x8x1xf32>
    %276 = vector.broadcast %275 : vector<2x8x1xf32> to vector<2x8x128xf32>
    %277 = arith.mulf %276, %7 : vector<2x8x128xf32>
    %cst_87 = arith.constant dense<0.000000e+00> : vector<2x128xf32>
    %278 = vector.multi_reduction <add>, %277, %cst_87 [1] : vector<2x8x128xf32> to vector<2x128xf32>
    %279 = tpu.concatenate %257, %278 in 1 : vector<2x128xf32>, vector<2x128xf32> -> vector<2x256xf32>
    %cst_88 = arith.constant dense<0.000000e+00> : vector<2x128xf32>
    %280 = tpu.matmul %279, %4, %cst_88 {dimension_numbers = #tpu.dot_dimension_numbers<[1], [0], [0], [1], [0, 0, 1, 1], [], []>} : vector<2x256xf32>, vector<256x128xf32>, vector<2x128xf32> -> vector<2x128xf32>
    %281 = vector.broadcast %5 : vector<1x128xf32> to vector<2x128xf32>
    %282 = arith.addf %280, %281 : vector<2x128xf32>
    %c2 = arith.constant 2 : index
    %c0_89 = arith.constant 0 : index
    %c0_90 = arith.constant 0 : index
    %283 = vector.load %arg12[%c2, %c0_89, %c0_90] : memref<6x2x128xf32, #tpu.memory_space<vmem>>, vector<1x2x128xf32>
    %284 = vector.shape_cast %283 : vector<1x2x128xf32> to vector<2x128xf32>
    %285 = vector.shape_cast %282 : vector<2x128xf32> to vector<1x2x128xf32>
    tpu.vector_store %arg12[%c2, %c0_89, %c0_90], %285 {strides = array<i32>} : memref<6x2x128xf32, #tpu.memory_space<vmem>>, vector<1x2x128xf32>,
    %286 = vector.extract_strided_slice %274 {offsets = [0, 0], sizes = [1, 8], strides = [1, 1]} : vector<2x8xf32> to vector<1x8xf32>
    %c2_91 = arith.constant 2 : index
    %c0_92 = arith.constant 0 : index
    %c0_93 = arith.constant 0 : index
    %287 = vector.load %arg13[%c2_91, %c0_92, %c0_93] : memref<6x1x8xf32, #tpu.memory_space<vmem>>, vector<1x1x8xf32>
    %288 = vector.shape_cast %287 : vector<1x1x8xf32> to vector<1x8xf32>
    %289 = vector.shape_cast %286 : vector<1x8xf32> to vector<1x1x8xf32>
    tpu.vector_store %arg13[%c2_91, %c0_92, %c0_93], %289 {strides = array<i32>} : memref<6x1x8xf32, #tpu.memory_space<vmem>>, vector<1x1x8xf32>,
    %290 = tpu.iota {dimensions = array<i32: 1>} : vector<2x128xi32>
    %cst_94 = arith.constant dense<0xFF800000> : vector<2xf32>
    %291 = vector.multi_reduction <maximumf>, %282, %cst_94 [1] : vector<2x128xf32> to vector<2xf32>
    %292 = vector.shape_cast %291 : vector<2xf32> to vector<2x1xf32>
    %293 = vector.broadcast %292 : vector<2x1xf32> to vector<2x128xf32>
    %294 = arith.cmpf oeq, %282, %293 : vector<2x128xf32>
    %c128_i32 = arith.constant 128 : i32
    %295 = vector.broadcast %c128_i32 : i32 to vector<2x128xi32>
    %296 = arith.select %294, %290, %295 : vector<2x128xi1>, vector<2x128xi32>
    %cst_95 = arith.constant dense<2147483647> : vector<2xi32>
    %297 = vector.multi_reduction <minsi>, %296, %cst_95 [1] : vector<2x128xi32> to vector<2xi32>
    %298 = vector.shape_cast %297 : vector<2xi32> to vector<2x1xi32>
    %299 = vector.broadcast %298 : vector<2x1xi32> to vector<2x128xi32>
    %300 = arith.cmpi eq, %290, %299 : vector<2x128xi32>
    %301 = arith.extui %300 : vector<2x128xi1> to vector<2x128xi32>
    %302 = arith.sitofp %301 : vector<2x128xi32> to vector<2x128xf32>
    %cst_96 = arith.constant dense<0.000000e+00> : vector<2x128xf32>
    %303 = tpu.matmul %302, %9, %cst_96 {dimension_numbers = #tpu.dot_dimension_numbers<[1], [0], [0], [1], [0, 0, 1, 1], [], []>} : vector<2x128xf32>, vector<128x128xf32>, vector<2x128xf32> -> vector<2x128xf32>
    %304 = tpu.concatenate %303, %278, %228 in 1 : vector<2x128xf32>, vector<2x128xf32>, vector<2x128xf32> -> vector<2x384xf32>
    %cst_97 = arith.constant dense<0.000000e+00> : vector<2x512xf32>
    %305 = tpu.matmul %304, %0, %cst_97 {dimension_numbers = #tpu.dot_dimension_numbers<[1], [0], [0], [1], [0, 0, 1, 1], [], []>} : vector<2x384xf32>, vector<384x512xf32>, vector<2x512xf32> -> vector<2x512xf32>
    %306 = vector.broadcast %1 : vector<1x512xf32> to vector<2x512xf32>
    %307 = arith.addf %305, %306 : vector<2x512xf32>
    %308 = vector.extract_strided_slice %307 {offsets = [0, 0], sizes = [2, 128], strides = [1, 1]} : vector<2x512xf32> to vector<2x128xf32>
    %309 = arith.negf %308 : vector<2x128xf32>
    %310 = math.exp %309 : vector<2x128xf32>
    %cst_98 = arith.constant 1.000000e+00 : f32
    %311 = vector.broadcast %cst_98 : f32 to vector<2x128xf32>
    %312 = arith.addf %311, %310 : vector<2x128xf32>
    %313 = arith.divf %311, %312 : vector<2x128xf32>
    %314 = vector.extract_strided_slice %307 {offsets = [0, 128], sizes = [2, 128], strides = [1, 1]} : vector<2x512xf32> to vector<2x128xf32>
    %315 = arith.negf %314 : vector<2x128xf32>
    %316 = math.exp %315 : vector<2x128xf32>
    %cst_99 = arith.constant 1.000000e+00 : f32
    %317 = vector.broadcast %cst_99 : f32 to vector<2x128xf32>
    %318 = arith.addf %317, %316 : vector<2x128xf32>
    %319 = arith.divf %317, %318 : vector<2x128xf32>
    %320 = vector.extract_strided_slice %307 {offsets = [0, 256], sizes = [2, 128], strides = [1, 1]} : vector<2x512xf32> to vector<2x128xf32>
    %321 = math.tanh %320 : vector<2x128xf32>
    %322 = vector.extract_strided_slice %307 {offsets = [0, 384], sizes = [2, 128], strides = [1, 1]} : vector<2x512xf32> to vector<2x128xf32>
    %323 = arith.negf %322 : vector<2x128xf32>
    %324 = math.exp %323 : vector<2x128xf32>
    %cst_100 = arith.constant 1.000000e+00 : f32
    %325 = vector.broadcast %cst_100 : f32 to vector<2x128xf32>
    %326 = arith.addf %325, %324 : vector<2x128xf32>
    %327 = arith.divf %325, %326 : vector<2x128xf32>
    %328 = arith.mulf %319, %226 : vector<2x128xf32>
    %329 = arith.mulf %313, %321 : vector<2x128xf32>
    %330 = arith.addf %328, %329 : vector<2x128xf32>
    %331 = math.tanh %330 : vector<2x128xf32>
    %332 = arith.mulf %327, %331 : vector<2x128xf32>
    %333 = tpu.concatenate %332, %257 in 1 : vector<2x128xf32>, vector<2x128xf32> -> vector<2x256xf32>
    %cst_101 = arith.constant dense<0.000000e+00> : vector<2x512xf32>
    %334 = tpu.matmul %333, %2, %cst_101 {dimension_numbers = #tpu.dot_dimension_numbers<[1], [0], [0], [1], [0, 0, 1, 1], [], []>} : vector<2x256xf32>, vector<256x512xf32>, vector<2x512xf32> -> vector<2x512xf32>
    %335 = vector.broadcast %3 : vector<1x512xf32> to vector<2x512xf32>
    %336 = arith.addf %334, %335 : vector<2x512xf32>
    %337 = vector.extract_strided_slice %336 {offsets = [0, 0], sizes = [2, 128], strides = [1, 1]} : vector<2x512xf32> to vector<2x128xf32>
    %338 = arith.negf %337 : vector<2x128xf32>
    %339 = math.exp %338 : vector<2x128xf32>
    %cst_102 = arith.constant 1.000000e+00 : f32
    %340 = vector.broadcast %cst_102 : f32 to vector<2x128xf32>
    %341 = arith.addf %340, %339 : vector<2x128xf32>
    %342 = arith.divf %340, %341 : vector<2x128xf32>
    %343 = vector.extract_strided_slice %336 {offsets = [0, 128], sizes = [2, 128], strides = [1, 1]} : vector<2x512xf32> to vector<2x128xf32>
    %344 = arith.negf %343 : vector<2x128xf32>
    %345 = math.exp %344 : vector<2x128xf32>
    %cst_103 = arith.constant 1.000000e+00 : f32
    %346 = vector.broadcast %cst_103 : f32 to vector<2x128xf32>
    %347 = arith.addf %346, %345 : vector<2x128xf32>
    %348 = arith.divf %346, %347 : vector<2x128xf32>
    %349 = vector.extract_strided_slice %336 {offsets = [0, 256], sizes = [2, 128], strides = [1, 1]} : vector<2x512xf32> to vector<2x128xf32>
    %350 = math.tanh %349 : vector<2x128xf32>
    %351 = vector.extract_strided_slice %336 {offsets = [0, 384], sizes = [2, 128], strides = [1, 1]} : vector<2x512xf32> to vector<2x128xf32>
    %352 = arith.negf %351 : vector<2x128xf32>
    %353 = math.exp %352 : vector<2x128xf32>
    %cst_104 = arith.constant 1.000000e+00 : f32
    %354 = vector.broadcast %cst_104 : f32 to vector<2x128xf32>
    %355 = arith.addf %354, %353 : vector<2x128xf32>
    %356 = arith.divf %354, %355 : vector<2x128xf32>
    %357 = arith.mulf %348, %255 : vector<2x128xf32>
    %358 = arith.mulf %342, %350 : vector<2x128xf32>
    %359 = arith.addf %357, %358 : vector<2x128xf32>
    %360 = math.tanh %359 : vector<2x128xf32>
    %361 = arith.mulf %356, %360 : vector<2x128xf32>
    %362 = vector.shape_cast %361 : vector<2x128xf32> to vector<2x1x128xf32>
    %363 = vector.broadcast %362 : vector<2x1x128xf32> to vector<2x8x128xf32>
    %364 = arith.mulf %6, %363 : vector<2x8x128xf32>
    %cst_105 = arith.constant dense<0.000000e+00> : vector<2x8xf32>
    %365 = vector.multi_reduction <add>, %364, %cst_105 [2] : vector<2x8x128xf32> to vector<2x8xf32>
    %cst_106 = arith.constant 5.000000e-01 : f32
    %366 = vector.broadcast %cst_106 : f32 to vector<2x8xf32>
    %367 = arith.cmpf ogt, %8, %366 : vector<2x8xf32>
    %cst_107 = arith.constant -1.000000e+09 : f32
    %368 = vector.broadcast %cst_107 : f32 to vector<2x8xf32>
    %369 = arith.select %367, %365, %368 : vector<2x8xi1>, vector<2x8xf32>
    %cst_108 = arith.constant dense<0xFF800000> : vector<2xf32>
    %370 = vector.multi_reduction <maximumf>, %369, %cst_108 [1] : vector<2x8xf32> to vector<2xf32>
    %371 = vector.shape_cast %370 : vector<2xf32> to vector<2x1xf32>
    %372 = vector.broadcast %371 : vector<2x1xf32> to vector<2x8xf32>
    %373 = arith.subf %369, %372 : vector<2x8xf32>
    %374 = math.exp %373 : vector<2x8xf32>
    %cst_109 = arith.constant dense<0.000000e+00> : vector<2xf32>
    %375 = vector.multi_reduction <add>, %374, %cst_109 [1] : vector<2x8xf32> to vector<2xf32>
    %376 = vector.shape_cast %375 : vector<2xf32> to vector<2x1xf32>
    %377 = vector.broadcast %376 : vector<2x1xf32> to vector<2x8xf32>
    %378 = arith.divf %374, %377 : vector<2x8xf32>
    %379 = vector.shape_cast %378 : vector<2x8xf32> to vector<2x8x1xf32>
    %380 = vector.broadcast %379 : vector<2x8x1xf32> to vector<2x8x128xf32>
    %381 = arith.mulf %380, %7 : vector<2x8x128xf32>
    %cst_110 = arith.constant dense<0.000000e+00> : vector<2x128xf32>
    %382 = vector.multi_reduction <add>, %381, %cst_110 [1] : vector<2x8x128xf32> to vector<2x128xf32>
    %383 = tpu.concatenate %361, %382 in 1 : vector<2x128xf32>, vector<2x128xf32> -> vector<2x256xf32>
    %cst_111 = arith.constant dense<0.000000e+00> : vector<2x128xf32>
    %384 = tpu.matmul %383, %4, %cst_111 {dimension_numbers = #tpu.dot_dimension_numbers<[1], [0], [0], [1], [0, 0, 1, 1], [], []>} : vector<2x256xf32>, vector<256x128xf32>, vector<2x128xf32> -> vector<2x128xf32>
    %385 = vector.broadcast %5 : vector<1x128xf32> to vector<2x128xf32>
    %386 = arith.addf %384, %385 : vector<2x128xf32>
    %c3 = arith.constant 3 : index
    %c0_112 = arith.constant 0 : index
    %c0_113 = arith.constant 0 : index
    %387 = vector.load %arg12[%c3, %c0_112, %c0_113] : memref<6x2x128xf32, #tpu.memory_space<vmem>>, vector<1x2x128xf32>
    %388 = vector.shape_cast %387 : vector<1x2x128xf32> to vector<2x128xf32>
    %389 = vector.shape_cast %386 : vector<2x128xf32> to vector<1x2x128xf32>
    tpu.vector_store %arg12[%c3, %c0_112, %c0_113], %389 {strides = array<i32>} : memref<6x2x128xf32, #tpu.memory_space<vmem>>, vector<1x2x128xf32>,
    %390 = vector.extract_strided_slice %378 {offsets = [0, 0], sizes = [1, 8], strides = [1, 1]} : vector<2x8xf32> to vector<1x8xf32>
    %c3_114 = arith.constant 3 : index
    %c0_115 = arith.constant 0 : index
    %c0_116 = arith.constant 0 : index
    %391 = vector.load %arg13[%c3_114, %c0_115, %c0_116] : memref<6x1x8xf32, #tpu.memory_space<vmem>>, vector<1x1x8xf32>
    %392 = vector.shape_cast %391 : vector<1x1x8xf32> to vector<1x8xf32>
    %393 = vector.shape_cast %390 : vector<1x8xf32> to vector<1x1x8xf32>
    tpu.vector_store %arg13[%c3_114, %c0_115, %c0_116], %393 {strides = array<i32>} : memref<6x1x8xf32, #tpu.memory_space<vmem>>, vector<1x1x8xf32>,
    %c3_117 = arith.constant 3 : index
    %c0_118 = arith.constant 0 : index
    %c0_119 = arith.constant 0 : index
    %394 = vector.load %arg4[%c3_117, %c0_118, %c0_119] : memref<6x2x128xf32, #tpu.memory_space<vmem>>, vector<1x2x128xf32>
    %395 = vector.shape_cast %394 : vector<1x2x128xf32> to vector<2x128xf32>
    %396 = tpu.concatenate %395, %382, %332 in 1 : vector<2x128xf32>, vector<2x128xf32>, vector<2x128xf32> -> vector<2x384xf32>
    %cst_120 = arith.constant dense<0.000000e+00> : vector<2x512xf32>
    %397 = tpu.matmul %396, %0, %cst_120 {dimension_numbers = #tpu.dot_dimension_numbers<[1], [0], [0], [1], [0, 0, 1, 1], [], []>} : vector<2x384xf32>, vector<384x512xf32>, vector<2x512xf32> -> vector<2x512xf32>
    %398 = vector.broadcast %1 : vector<1x512xf32> to vector<2x512xf32>
    %399 = arith.addf %397, %398 : vector<2x512xf32>
    %400 = vector.extract_strided_slice %399 {offsets = [0, 0], sizes = [2, 128], strides = [1, 1]} : vector<2x512xf32> to vector<2x128xf32>
    %401 = arith.negf %400 : vector<2x128xf32>
    %402 = math.exp %401 : vector<2x128xf32>
    %cst_121 = arith.constant 1.000000e+00 : f32
    %403 = vector.broadcast %cst_121 : f32 to vector<2x128xf32>
    %404 = arith.addf %403, %402 : vector<2x128xf32>
    %405 = arith.divf %403, %404 : vector<2x128xf32>
    %406 = vector.extract_strided_slice %399 {offsets = [0, 128], sizes = [2, 128], strides = [1, 1]} : vector<2x512xf32> to vector<2x128xf32>
    %407 = arith.negf %406 : vector<2x128xf32>
    %408 = math.exp %407 : vector<2x128xf32>
    %cst_122 = arith.constant 1.000000e+00 : f32
    %409 = vector.broadcast %cst_122 : f32 to vector<2x128xf32>
    %410 = arith.addf %409, %408 : vector<2x128xf32>
    %411 = arith.divf %409, %410 : vector<2x128xf32>
    %412 = vector.extract_strided_slice %399 {offsets = [0, 256], sizes = [2, 128], strides = [1, 1]} : vector<2x512xf32> to vector<2x128xf32>
    %413 = math.tanh %412 : vector<2x128xf32>
    %414 = vector.extract_strided_slice %399 {offsets = [0, 384], sizes = [2, 128], strides = [1, 1]} : vector<2x512xf32> to vector<2x128xf32>
    %415 = arith.negf %414 : vector<2x128xf32>
    %416 = math.exp %415 : vector<2x128xf32>
    %cst_123 = arith.constant 1.000000e+00 : f32
    %417 = vector.broadcast %cst_123 : f32 to vector<2x128xf32>
    %418 = arith.addf %417, %416 : vector<2x128xf32>
    %419 = arith.divf %417, %418 : vector<2x128xf32>
    %420 = arith.mulf %411, %330 : vector<2x128xf32>
    %421 = arith.mulf %405, %413 : vector<2x128xf32>
    %422 = arith.addf %420, %421 : vector<2x128xf32>
    %423 = math.tanh %422 : vector<2x128xf32>
    %424 = arith.mulf %419, %423 : vector<2x128xf32>
    %425 = tpu.concatenate %424, %361 in 1 : vector<2x128xf32>, vector<2x128xf32> -> vector<2x256xf32>
    %cst_124 = arith.constant dense<0.000000e+00> : vector<2x512xf32>
    %426 = tpu.matmul %425, %2, %cst_124 {dimension_numbers = #tpu.dot_dimension_numbers<[1], [0], [0], [1], [0, 0, 1, 1], [], []>} : vector<2x256xf32>, vector<256x512xf32>, vector<2x512xf32> -> vector<2x512xf32>
    %427 = vector.broadcast %3 : vector<1x512xf32> to vector<2x512xf32>
    %428 = arith.addf %426, %427 : vector<2x512xf32>
    %429 = vector.extract_strided_slice %428 {offsets = [0, 0], sizes = [2, 128], strides = [1, 1]} : vector<2x512xf32> to vector<2x128xf32>
    %430 = arith.negf %429 : vector<2x128xf32>
    %431 = math.exp %430 : vector<2x128xf32>
    %cst_125 = arith.constant 1.000000e+00 : f32
    %432 = vector.broadcast %cst_125 : f32 to vector<2x128xf32>
    %433 = arith.addf %432, %431 : vector<2x128xf32>
    %434 = arith.divf %432, %433 : vector<2x128xf32>
    %435 = vector.extract_strided_slice %428 {offsets = [0, 128], sizes = [2, 128], strides = [1, 1]} : vector<2x512xf32> to vector<2x128xf32>
    %436 = arith.negf %435 : vector<2x128xf32>
    %437 = math.exp %436 : vector<2x128xf32>
    %cst_126 = arith.constant 1.000000e+00 : f32
    %438 = vector.broadcast %cst_126 : f32 to vector<2x128xf32>
    %439 = arith.addf %438, %437 : vector<2x128xf32>
    %440 = arith.divf %438, %439 : vector<2x128xf32>
    %441 = vector.extract_strided_slice %428 {offsets = [0, 256], sizes = [2, 128], strides = [1, 1]} : vector<2x512xf32> to vector<2x128xf32>
    %442 = math.tanh %441 : vector<2x128xf32>
    %443 = vector.extract_strided_slice %428 {offsets = [0, 384], sizes = [2, 128], strides = [1, 1]} : vector<2x512xf32> to vector<2x128xf32>
    %444 = arith.negf %443 : vector<2x128xf32>
    %445 = math.exp %444 : vector<2x128xf32>
    %cst_127 = arith.constant 1.000000e+00 : f32
    %446 = vector.broadcast %cst_127 : f32 to vector<2x128xf32>
    %447 = arith.addf %446, %445 : vector<2x128xf32>
    %448 = arith.divf %446, %447 : vector<2x128xf32>
    %449 = arith.mulf %440, %359 : vector<2x128xf32>
    %450 = arith.mulf %434, %442 : vector<2x128xf32>
    %451 = arith.addf %449, %450 : vector<2x128xf32>
    %452 = math.tanh %451 : vector<2x128xf32>
    %453 = arith.mulf %448, %452 : vector<2x128xf32>
    %454 = vector.shape_cast %453 : vector<2x128xf32> to vector<2x1x128xf32>
    %455 = vector.broadcast %454 : vector<2x1x128xf32> to vector<2x8x128xf32>
    %456 = arith.mulf %6, %455 : vector<2x8x128xf32>
    %cst_128 = arith.constant dense<0.000000e+00> : vector<2x8xf32>
    %457 = vector.multi_reduction <add>, %456, %cst_128 [2] : vector<2x8x128xf32> to vector<2x8xf32>
    %cst_129 = arith.constant 5.000000e-01 : f32
    %458 = vector.broadcast %cst_129 : f32 to vector<2x8xf32>
    %459 = arith.cmpf ogt, %8, %458 : vector<2x8xf32>
    %cst_130 = arith.constant -1.000000e+09 : f32
    %460 = vector.broadcast %cst_130 : f32 to vector<2x8xf32>
    %461 = arith.select %459, %457, %460 : vector<2x8xi1>, vector<2x8xf32>
    %cst_131 = arith.constant dense<0xFF800000> : vector<2xf32>
    %462 = vector.multi_reduction <maximumf>, %461, %cst_131 [1] : vector<2x8xf32> to vector<2xf32>
    %463 = vector.shape_cast %462 : vector<2xf32> to vector<2x1xf32>
    %464 = vector.broadcast %463 : vector<2x1xf32> to vector<2x8xf32>
    %465 = arith.subf %461, %464 : vector<2x8xf32>
    %466 = math.exp %465 : vector<2x8xf32>
    %cst_132 = arith.constant dense<0.000000e+00> : vector<2xf32>
    %467 = vector.multi_reduction <add>, %466, %cst_132 [1] : vector<2x8xf32> to vector<2xf32>
    %468 = vector.shape_cast %467 : vector<2xf32> to vector<2x1xf32>
    %469 = vector.broadcast %468 : vector<2x1xf32> to vector<2x8xf32>
    %470 = arith.divf %466, %469 : vector<2x8xf32>
    %471 = vector.shape_cast %470 : vector<2x8xf32> to vector<2x8x1xf32>
    %472 = vector.broadcast %471 : vector<2x8x1xf32> to vector<2x8x128xf32>
    %473 = arith.mulf %472, %7 : vector<2x8x128xf32>
    %cst_133 = arith.constant dense<0.000000e+00> : vector<2x128xf32>
    %474 = vector.multi_reduction <add>, %473, %cst_133 [1] : vector<2x8x128xf32> to vector<2x128xf32>
    %475 = tpu.concatenate %453, %474 in 1 : vector<2x128xf32>, vector<2x128xf32> -> vector<2x256xf32>
    %cst_134 = arith.constant dense<0.000000e+00> : vector<2x128xf32>
    %476 = tpu.matmul %475, %4, %cst_134 {dimension_numbers = #tpu.dot_dimension_numbers<[1], [0], [0], [1], [0, 0, 1, 1], [], []>} : vector<2x256xf32>, vector<256x128xf32>, vector<2x128xf32> -> vector<2x128xf32>
    %477 = vector.broadcast %5 : vector<1x128xf32> to vector<2x128xf32>
    %478 = arith.addf %476, %477 : vector<2x128xf32>
    %c4 = arith.constant 4 : index
    %c0_135 = arith.constant 0 : index
    %c0_136 = arith.constant 0 : index
    %479 = vector.load %arg12[%c4, %c0_135, %c0_136] : memref<6x2x128xf32, #tpu.memory_space<vmem>>, vector<1x2x128xf32>
    %480 = vector.shape_cast %479 : vector<1x2x128xf32> to vector<2x128xf32>
    %481 = vector.shape_cast %478 : vector<2x128xf32> to vector<1x2x128xf32>
    tpu.vector_store %arg12[%c4, %c0_135, %c0_136], %481 {strides = array<i32>} : memref<6x2x128xf32, #tpu.memory_space<vmem>>, vector<1x2x128xf32>,
    %482 = vector.extract_strided_slice %470 {offsets = [0, 0], sizes = [1, 8], strides = [1, 1]} : vector<2x8xf32> to vector<1x8xf32>
    %c4_137 = arith.constant 4 : index
    %c0_138 = arith.constant 0 : index
    %c0_139 = arith.constant 0 : index
    %483 = vector.load %arg13[%c4_137, %c0_138, %c0_139] : memref<6x1x8xf32, #tpu.memory_space<vmem>>, vector<1x1x8xf32>
    %484 = vector.shape_cast %483 : vector<1x1x8xf32> to vector<1x8xf32>
    %485 = vector.shape_cast %482 : vector<1x8xf32> to vector<1x1x8xf32>
    tpu.vector_store %arg13[%c4_137, %c0_138, %c0_139], %485 {strides = array<i32>} : memref<6x1x8xf32, #tpu.memory_space<vmem>>, vector<1x1x8xf32>,
    %c4_140 = arith.constant 4 : index
    %c0_141 = arith.constant 0 : index
    %c0_142 = arith.constant 0 : index
    %486 = vector.load %arg4[%c4_140, %c0_141, %c0_142] : memref<6x2x128xf32, #tpu.memory_space<vmem>>, vector<1x2x128xf32>
    %487 = vector.shape_cast %486 : vector<1x2x128xf32> to vector<2x128xf32>
    %488 = tpu.concatenate %487, %474, %424 in 1 : vector<2x128xf32>, vector<2x128xf32>, vector<2x128xf32> -> vector<2x384xf32>
    %cst_143 = arith.constant dense<0.000000e+00> : vector<2x512xf32>
    %489 = tpu.matmul %488, %0, %cst_143 {dimension_numbers = #tpu.dot_dimension_numbers<[1], [0], [0], [1], [0, 0, 1, 1], [], []>} : vector<2x384xf32>, vector<384x512xf32>, vector<2x512xf32> -> vector<2x512xf32>
    %490 = vector.broadcast %1 : vector<1x512xf32> to vector<2x512xf32>
    %491 = arith.addf %489, %490 : vector<2x512xf32>
    %492 = vector.extract_strided_slice %491 {offsets = [0, 0], sizes = [2, 128], strides = [1, 1]} : vector<2x512xf32> to vector<2x128xf32>
    %493 = arith.negf %492 : vector<2x128xf32>
    %494 = math.exp %493 : vector<2x128xf32>
    %cst_144 = arith.constant 1.000000e+00 : f32
    %495 = vector.broadcast %cst_144 : f32 to vector<2x128xf32>
    %496 = arith.addf %495, %494 : vector<2x128xf32>
    %497 = arith.divf %495, %496 : vector<2x128xf32>
    %498 = vector.extract_strided_slice %491 {offsets = [0, 128], sizes = [2, 128], strides = [1, 1]} : vector<2x512xf32> to vector<2x128xf32>
    %499 = arith.negf %498 : vector<2x128xf32>
    %500 = math.exp %499 : vector<2x128xf32>
    %cst_145 = arith.constant 1.000000e+00 : f32
    %501 = vector.broadcast %cst_145 : f32 to vector<2x128xf32>
    %502 = arith.addf %501, %500 : vector<2x128xf32>
    %503 = arith.divf %501, %502 : vector<2x128xf32>
    %504 = vector.extract_strided_slice %491 {offsets = [0, 256], sizes = [2, 128], strides = [1, 1]} : vector<2x512xf32> to vector<2x128xf32>
    %505 = math.tanh %504 : vector<2x128xf32>
    %506 = vector.extract_strided_slice %491 {offsets = [0, 384], sizes = [2, 128], strides = [1, 1]} : vector<2x512xf32> to vector<2x128xf32>
    %507 = arith.negf %506 : vector<2x128xf32>
    %508 = math.exp %507 : vector<2x128xf32>
    %cst_146 = arith.constant 1.000000e+00 : f32
    %509 = vector.broadcast %cst_146 : f32 to vector<2x128xf32>
    %510 = arith.addf %509, %508 : vector<2x128xf32>
    %511 = arith.divf %509, %510 : vector<2x128xf32>
    %512 = arith.mulf %503, %422 : vector<2x128xf32>
    %513 = arith.mulf %497, %505 : vector<2x128xf32>
    %514 = arith.addf %512, %513 : vector<2x128xf32>
    %515 = math.tanh %514 : vector<2x128xf32>
    %516 = arith.mulf %511, %515 : vector<2x128xf32>
    %517 = tpu.concatenate %516, %453 in 1 : vector<2x128xf32>, vector<2x128xf32> -> vector<2x256xf32>
    %cst_147 = arith.constant dense<0.000000e+00> : vector<2x512xf32>
    %518 = tpu.matmul %517, %2, %cst_147 {dimension_numbers = #tpu.dot_dimension_numbers<[1], [0], [0], [1], [0, 0, 1, 1], [], []>} : vector<2x256xf32>, vector<256x512xf32>, vector<2x512xf32> -> vector<2x512xf32>
    %519 = vector.broadcast %3 : vector<1x512xf32> to vector<2x512xf32>
    %520 = arith.addf %518, %519 : vector<2x512xf32>
    %521 = vector.extract_strided_slice %520 {offsets = [0, 0], sizes = [2, 128], strides = [1, 1]} : vector<2x512xf32> to vector<2x128xf32>
    %522 = arith.negf %521 : vector<2x128xf32>
    %523 = math.exp %522 : vector<2x128xf32>
    %cst_148 = arith.constant 1.000000e+00 : f32
    %524 = vector.broadcast %cst_148 : f32 to vector<2x128xf32>
    %525 = arith.addf %524, %523 : vector<2x128xf32>
    %526 = arith.divf %524, %525 : vector<2x128xf32>
    %527 = vector.extract_strided_slice %520 {offsets = [0, 128], sizes = [2, 128], strides = [1, 1]} : vector<2x512xf32> to vector<2x128xf32>
    %528 = arith.negf %527 : vector<2x128xf32>
    %529 = math.exp %528 : vector<2x128xf32>
    %cst_149 = arith.constant 1.000000e+00 : f32
    %530 = vector.broadcast %cst_149 : f32 to vector<2x128xf32>
    %531 = arith.addf %530, %529 : vector<2x128xf32>
    %532 = arith.divf %530, %531 : vector<2x128xf32>
    %533 = vector.extract_strided_slice %520 {offsets = [0, 256], sizes = [2, 128], strides = [1, 1]} : vector<2x512xf32> to vector<2x128xf32>
    %534 = math.tanh %533 : vector<2x128xf32>
    %535 = vector.extract_strided_slice %520 {offsets = [0, 384], sizes = [2, 128], strides = [1, 1]} : vector<2x512xf32> to vector<2x128xf32>
    %536 = arith.negf %535 : vector<2x128xf32>
    %537 = math.exp %536 : vector<2x128xf32>
    %cst_150 = arith.constant 1.000000e+00 : f32
    %538 = vector.broadcast %cst_150 : f32 to vector<2x128xf32>
    %539 = arith.addf %538, %537 : vector<2x128xf32>
    %540 = arith.divf %538, %539 : vector<2x128xf32>
    %541 = arith.mulf %532, %451 : vector<2x128xf32>
    %542 = arith.mulf %526, %534 : vector<2x128xf32>
    %543 = arith.addf %541, %542 : vector<2x128xf32>
    %544 = math.tanh %543 : vector<2x128xf32>
    %545 = arith.mulf %540, %544 : vector<2x128xf32>
    %546 = vector.shape_cast %545 : vector<2x128xf32> to vector<2x1x128xf32>
    %547 = vector.broadcast %546 : vector<2x1x128xf32> to vector<2x8x128xf32>
    %548 = arith.mulf %6, %547 : vector<2x8x128xf32>
    %cst_151 = arith.constant dense<0.000000e+00> : vector<2x8xf32>
    %549 = vector.multi_reduction <add>, %548, %cst_151 [2] : vector<2x8x128xf32> to vector<2x8xf32>
    %cst_152 = arith.constant 5.000000e-01 : f32
    %550 = vector.broadcast %cst_152 : f32 to vector<2x8xf32>
    %551 = arith.cmpf ogt, %8, %550 : vector<2x8xf32>
    %cst_153 = arith.constant -1.000000e+09 : f32
    %552 = vector.broadcast %cst_153 : f32 to vector<2x8xf32>
    %553 = arith.select %551, %549, %552 : vector<2x8xi1>, vector<2x8xf32>
    %cst_154 = arith.constant dense<0xFF800000> : vector<2xf32>
    %554 = vector.multi_reduction <maximumf>, %553, %cst_154 [1] : vector<2x8xf32> to vector<2xf32>
    %555 = vector.shape_cast %554 : vector<2xf32> to vector<2x1xf32>
    %556 = vector.broadcast %555 : vector<2x1xf32> to vector<2x8xf32>
    %557 = arith.subf %553, %556 : vector<2x8xf32>
    %558 = math.exp %557 : vector<2x8xf32>
    %cst_155 = arith.constant dense<0.000000e+00> : vector<2xf32>
    %559 = vector.multi_reduction <add>, %558, %cst_155 [1] : vector<2x8xf32> to vector<2xf32>
    %560 = vector.shape_cast %559 : vector<2xf32> to vector<2x1xf32>
    %561 = vector.broadcast %560 : vector<2x1xf32> to vector<2x8xf32>
    %562 = arith.divf %558, %561 : vector<2x8xf32>
    %563 = vector.shape_cast %562 : vector<2x8xf32> to vector<2x8x1xf32>
    %564 = vector.broadcast %563 : vector<2x8x1xf32> to vector<2x8x128xf32>
    %565 = arith.mulf %564, %7 : vector<2x8x128xf32>
    %cst_156 = arith.constant dense<0.000000e+00> : vector<2x128xf32>
    %566 = vector.multi_reduction <add>, %565, %cst_156 [1] : vector<2x8x128xf32> to vector<2x128xf32>
    %567 = tpu.concatenate %545, %566 in 1 : vector<2x128xf32>, vector<2x128xf32> -> vector<2x256xf32>
    %cst_157 = arith.constant dense<0.000000e+00> : vector<2x128xf32>
    %568 = tpu.matmul %567, %4, %cst_157 {dimension_numbers = #tpu.dot_dimension_numbers<[1], [0], [0], [1], [0, 0, 1, 1], [], []>} : vector<2x256xf32>, vector<256x128xf32>, vector<2x128xf32> -> vector<2x128xf32>
    %569 = vector.broadcast %5 : vector<1x128xf32> to vector<2x128xf32>
    %570 = arith.addf %568, %569 : vector<2x128xf32>
    %c5 = arith.constant 5 : index
    %c0_158 = arith.constant 0 : index
    %c0_159 = arith.constant 0 : index
    %571 = vector.load %arg12[%c5, %c0_158, %c0_159] : memref<6x2x128xf32, #tpu.memory_space<vmem>>, vector<1x2x128xf32>
    %572 = vector.shape_cast %571 : vector<1x2x128xf32> to vector<2x128xf32>
    %573 = vector.shape_cast %570 : vector<2x128xf32> to vector<1x2x128xf32>
    tpu.vector_store %arg12[%c5, %c0_158, %c0_159], %573 {strides = array<i32>} : memref<6x2x128xf32, #tpu.memory_space<vmem>>, vector<1x2x128xf32>,
    %574 = vector.extract_strided_slice %562 {offsets = [0, 0], sizes = [1, 8], strides = [1, 1]} : vector<2x8xf32> to vector<1x8xf32>
    %c5_160 = arith.constant 5 : index
    %c0_161 = arith.constant 0 : index
    %c0_162 = arith.constant 0 : index
    %575 = vector.load %arg13[%c5_160, %c0_161, %c0_162] : memref<6x1x8xf32, #tpu.memory_space<vmem>>, vector<1x1x8xf32>
    %576 = vector.shape_cast %575 : vector<1x1x8xf32> to vector<1x8xf32>
    %577 = vector.shape_cast %574 : vector<1x8xf32> to vector<1x1x8xf32>
    tpu.vector_store %arg13[%c5_160, %c0_161, %c0_162], %577 {strides = array<i32>} : memref<6x1x8xf32, #tpu.memory_space<vmem>>, vector<1x1x8xf32>,
    return
  }
}

</mosaic_0001>

<bundles_post_ra>
// kernel: tpu_custom_call.1
= control target key start
LH: loop header
LB: loop body
LE: loop exit
PB: predicated region body
PF: predicated region fallthrough
CT: control target
= control target key end

     0   :  { %19 = vsyncpa [#allocation3], 0  ;;  %s9577_s0 = inlined_call_operand.hbm [shape: f32[2,8,128], index: 0, kind: input, shape index: {}]   ;;  %s9578_s1 = inlined_call_operand.hbm [shape: f32[2,8,128], index: 1, kind: input, shape index: {}]   ;;  %s9579_s2 = inlined_call_operand.vmem [shape: f32[2,8], index: 2, kind: input, shape index: {}]   ;;  %s9580_s3 = inlined_call_operand.hbm [shape: f32[2,128], index: 3, kind: input, shape index: {}]   ;;  %s9581_s4 = inlined_call_operand.vmem [shape: f32[6,2,128], index: 4, kind: input, shape index: {}]   ;;  %s9582_s5 = inlined_call_operand.hbm [shape: f32[128,128], index: 5, kind: input, shape index: {}]   ;;  %s9583_s6 = inlined_call_operand.hbm [shape: f32[384,512], index: 6, kind: input, shape index: {}]   ;;  %s9584_s7 = inlined_call_operand.vmem [shape: f32[1,512], index: 7, kind: input, shape index: {}]   ;;  %s9585_s8 = inlined_call_operand.hbm [shape: f32[256,512], index: 8, kind: input, shape index: {}]   ;;  %s9586_s9 = inlined_call_operand.vmem [shape: f32[1,512], index: 9, kind: input, shape index: {}]   ;;  %s9587_s10 = inlined_call_operand.hbm [shape: f32[256,128], index: 10, kind: input, shape index: {}]   ;;  %s9588_s11 = inlined_call_operand.vmem [shape: f32[1,128], index: 11, kind: input, shape index: {}]   ;;  %s9589_s12 = inlined_call_operand.hbm [shape: f32[6,2,128], index: 12, kind: output, shape index: {0}]   ;;  %s9590_s13 = inlined_call_operand.hbm [shape: f32[6,1,8], index: 13, kind: output, shape index: {1}]  }
   0x1   :  { %20 = vsyncpa [#allocation6], 0 }
   0x2   :  { %21 = vsyncpa [#allocation9], 0 }
   0x3   :  { %22 = vsyncpa [#allocation12], 0 }
   0x4   :  { %23 = vsyncpa [#allocation4], 0 }
   0x5   :  { %24 = vsyncpa [#allocation16], 0  ;;  %s7506_s25 = smov [#allocation5]   ;;  %s7507_s27 = smov [#allocation8]  }
   0x6   :  { %s42_s26 = sshll.u32 %s7506_s25, 4  ;;  %s68_s28 = sshll.u32 %s7507_s27, 4  ;;  %s43_s26 = int_to_ptr.vmem [resolvable:$true] %s42_s26  ;;  %s7597_s28 = int_to_ptr.vmem [resolvable:$true] %s68_s28 }
   0x7   :  { %s7296_s14 = scalar_lea.hbm %s9578_s1, 256 }
   0x8   :  { %p7297_p0 = scmp.ne.s32.totalorder %s9578_s1, %s7296_s14  ;;  %p7300_p1 = scmp.lt.u32.totalorder %s7296_s14, %s9578_s1 }
   0xa   :  { %p7302_p2 = pnand %p7300_p1, %p7297_p0 }
   0xc   :  { %7305 = shalt.err (!%p7302_p2)
}
   0xd   :  { %s7306_s19 = scalar_lea.vmem %s43_s26, 256  ;;  %p7311_p4 = scmp.lt.s32.totalorder %s43_s26, %s43_s26 }
   0xe   :  { %p7307_p3 = scmp.ne.s32.totalorder %s43_s26, %s7306_s19  ;;  %p7312_p5 = scmp.lt.s32.totalorder %s7306_s19, %s7306_s19 }
  0x10   :  { %p7313_p6 = por %p7312_p5, %p7311_p4 }
  0x12   :  { %p7314_p7 = pnand %p7313_p6, %p7307_p3 }
  0x14   :  { %7317 = shalt.err (!%p7314_p7)
}
  0x15   :  { %s7508_s20 = smov 128   ;;  %s7509_s21 = smov 8  }
  0x16   :  { %48 = dma.hbm_to_vmem [thread:$0]  %s9578_s1, 256, %s43_s26, [#allocation6], %s7508_s20, %s7508_s20, %s7509_s21  }
  0x17   :  { %s7318_s27 = scalar_lea.hbm %s9582_s5, 2048 }
  0x18   :  { %p7319_p8 = scmp.ne.s32.totalorder %s9582_s5, %s7318_s27  ;;  %p7322_p9 = scmp.lt.u32.totalorder %s7318_s27, %s9582_s5 }
  0x1a   :  { %p7324_p10 = pnand %p7322_p9, %p7319_p8 }
  0x1c   :  { %7327 = shalt.err (!%p7324_p10)
}
  0x1d   :  { %s7328_s16 = scalar_lea.vmem %s7597_s28, 2048  ;;  %p7333_p12 = scmp.lt.s32.totalorder %s7597_s28, %s7597_s28 }
  0x1e   :  { %p7329_p11 = scmp.ne.s32.totalorder %s7597_s28, %s7328_s16  ;;  %p7334_p13 = scmp.lt.s32.totalorder %s7328_s16, %s7328_s16 }
  0x20   :  { %p7335_p0 = por %p7334_p13, %p7333_p12 }
  0x22   :  { %p7336_p1 = pnand %p7335_p0, %p7329_p11 }
  0x24   :  { %7339 = shalt.err (!%p7336_p1)
}
  0x25   :  { %74 = dma.hbm_to_vmem [thread:$0]  %s9582_s5, 2048, %s7597_s28, [#allocation9], %s7508_s20, %s7508_s20, %s7509_s21  }
  0x26   :  { %s7510_s17 = smov [#allocation11]   ;;  %s7511_s19 = smov [#allocation2]  }
  0x27   :  { %s94_s18 = sshll.u32 %s7510_s17, 4  ;;  %s30_s22 = sshll.u32 %s7511_s19, 4  ;;  %s95_s18 = int_to_ptr.vmem [resolvable:$true] %s94_s18  ;;  %s7634_s22 = int_to_ptr.vmem [resolvable:$true] %s30_s22 }
  0x28   :  { %s7340_s25 = scalar_lea.hbm %s9585_s8, 16384 }
  0x29   :  { %p7341_p2 = scmp.ne.s32.totalorder %s9585_s8, %s7340_s25  ;;  %p7344_p3 = scmp.lt.u32.totalorder %s7340_s25, %s9585_s8 }
  0x2b   :  { %p7346_p4 = pnand %p7344_p3, %p7341_p2 }
  0x2d   :  { %7349 = shalt.err (!%p7346_p4)
}
  0x2e   :  { %s7350_s5 = scalar_lea.vmem %s95_s18, 16384  ;;  %p7355_p6 = scmp.lt.s32.totalorder %s95_s18, %s95_s18 }
  0x2f   :  { %p7351_p5 = scmp.ne.s32.totalorder %s95_s18, %s7350_s5  ;;  %p7356_p7 = scmp.lt.s32.totalorder %s7350_s5, %s7350_s5 }
  0x31   :  { %p7357_p8 = por %p7356_p7, %p7355_p6 }
  0x33   :  { %p7358_p9 = pnand %p7357_p8, %p7351_p5 }
  0x35   :  { %7361 = shalt.err (!%p7358_p9)
}
  0x36   :  { %s7512_s28 = smov 512   ;;  %s7513_s15 = smov 32  }
  0x37   :  { %100 = dma.hbm_to_vmem [thread:$0]  %s9585_s8, 16384, %s95_s18, [#allocation12], %s7512_s28, %s7512_s28, %s7513_s15  }
  0x38   :  { %s7362_s19 = scalar_lea.hbm %s9577_s0, 256 }
  0x39   :  { %p7363_p10 = scmp.ne.s32.totalorder %s9577_s0, %s7362_s19  ;;  %p7366_p11 = scmp.lt.u32.totalorder %s7362_s19, %s9577_s0 }
  0x3b   :  { %p7368_p12 = pnand %p7366_p11, %p7363_p10 }
  0x3d   :  { %7371 = shalt.err (!%p7368_p12)
}
  0x3e   :  { %s7372_s29 = scalar_lea.vmem %s7634_s22, 256  ;;  %p7377_p0 = scmp.lt.s32.totalorder %s7634_s22, %s7634_s22 }
  0x3f   :  { %p7373_p13 = scmp.ne.s32.totalorder %s7634_s22, %s7372_s29  ;;  %p7378_p1 = scmp.lt.s32.totalorder %s7372_s29, %s7372_s29 }
  0x41   :  { %p7379_p2 = por %p7378_p1, %p7377_p0 }
  0x43   :  { %p7380_p3 = pnand %p7379_p2, %p7373_p13 }
  0x45   :  { %7383 = shalt.err (!%p7380_p3)
}
  0x46   :  { %36 = dma.hbm_to_vmem [thread:$0]  %s9577_s0, 256, %s7634_s22, [#allocation3], %s7508_s20, %s7508_s20, %s7509_s21  }
  0x47   :  { %s7514_s30 = smov [#allocation7]   ;;  %s7515_s5 = smov [#allocation10]  }
  0x48   :  { %s57_s14 = sshll.u32 %s7514_s30, 4  ;;  %s80_s16 = sshll.u32 %s7515_s5, 4  ;;  %s58_s14 = int_to_ptr.vmem [resolvable:$true] %s57_s14  ;;  %s7671_s16 = int_to_ptr.vmem [resolvable:$true] %s80_s16 }
  0x49   :  { %s7384_s17 = scalar_lea.hbm %s9580_s3, 32 }
  0x4a   :  { %p7385_p4 = scmp.ne.s32.totalorder %s9580_s3, %s7384_s17  ;;  %p7388_p5 = scmp.lt.u32.totalorder %s7384_s17, %s9580_s3 }
  0x4c   :  { %p7390_p6 = pnand %p7388_p5, %p7385_p4 }
  0x4e   :  { %7393 = shalt.err (!%p7390_p6)
}
  0x4f   :  { %s7394_s0 = scalar_lea.vmem %s58_s14, 32  ;;  %p7399_p8 = scmp.lt.s32.totalorder %s58_s14, %s58_s14 }
  0x50   :  { %p7395_p7 = scmp.ne.s32.totalorder %s58_s14, %s7394_s0  ;;  %p7400_p9 = scmp.lt.s32.totalorder %s7394_s0, %s7394_s0 }
  0x52   :  { %p7401_p10 = por %p7400_p9, %p7399_p8 }
  0x54   :  { %p7402_p11 = pnand %p7401_p10, %p7395_p7 }
  0x56   :  { %7405 = shalt.err (!%p7402_p11)
}
  0x57   :  { %60 = dma.hbm_to_vmem [thread:$0]  %s9580_s3, 32, %s58_s14, [#allocation6]  }
  0x58   :  { %s7406_s18 = scalar_lea.hbm %s9583_s6, 24576 }
  0x59   :  { %p7407_p12 = scmp.ne.s32.totalorder %s9583_s6, %s7406_s18  ;;  %p7410_p13 = scmp.lt.u32.totalorder %s7406_s18, %s9583_s6 }
  0x5b   :  { %p7412_p0 = pnand %p7410_p13, %p7407_p12 }
  0x5d   :  { %7415 = shalt.err (!%p7412_p0)
}
  0x5e   :  { %s7416_s17 = scalar_lea.vmem %s7671_s16, 24576  ;;  %p7421_p2 = scmp.lt.s32.totalorder %s7671_s16, %s7671_s16 }
  0x5f   :  { %p7417_p1 = scmp.ne.s32.totalorder %s7671_s16, %s7416_s17  ;;  %p7422_p3 = scmp.lt.s32.totalorder %s7416_s17, %s7416_s17 }
  0x61   :  { %p7423_p4 = por %p7422_p3, %p7421_p2 }
  0x63   :  { %p7424_p5 = pnand %p7423_p4, %p7417_p1 }
  0x65   :  { %7427 = shalt.err (!%p7424_p5)
}
  0x66   :  { %86 = dma.hbm_to_vmem [thread:$0]  %s9583_s6, 24576, %s7671_s16, [#allocation9], %s7512_s28, %s7512_s28, %s7513_s15  }
  0x67   :  { %s7516_s19 = smov [#allocation13]   ;;  %s7428_s0 = scalar_lea.hbm %s9587_s10, 4096 }
  0x68   :  { %s108_s23 = sshll.u32 %s7516_s19, 4  ;;  %p7429_p6 = scmp.ne.s32.totalorder %s9587_s10, %s7428_s0  ;;  %s109_s23 = int_to_ptr.vmem [resolvable:$true] %s108_s23 }
  0x69   :  { %p7432_p7 = scmp.lt.u32.totalorder %s7428_s0, %s9587_s10 }
  0x6b   :  { %p7434_p8 = pnand %p7432_p7, %p7429_p6 }
  0x6d   :  { %7437 = shalt.err (!%p7434_p8)
}
  0x6e   :  { %s7438_s18 = scalar_lea.vmem %s109_s23, 4096  ;;  %p7443_p10 = scmp.lt.s32.totalorder %s109_s23, %s109_s23 }
  0x6f   :  { %p7439_p9 = scmp.ne.s32.totalorder %s109_s23, %s7438_s18  ;;  %p7444_p11 = scmp.lt.s32.totalorder %s7438_s18, %s7438_s18 }
  0x71   :  { %p7445_p12 = por %p7444_p11, %p7443_p10 }
  0x73   :  { %p7446_p13 = pnand %p7445_p12, %p7439_p9 }
  0x75   :  { %7449 = shalt.err (!%p7446_p13)
}
  0x76   :  { %114 = dma.hbm_to_vmem [thread:$0]  %s9587_s10, 4096, %s109_s23, [#allocation12], %s7508_s20, %s7508_s20, %s7509_s21  }
  0x77   :  { %7494 = dma.done.wait [#allocation3], 256  }
  0x78   :  { %7495 = vsyncadd [#allocation3], 4294967040 }
  0x79   :  { %7496 = dma.done.wait [#allocation6], 288  }
  0x7a   :  { %7497 = vsyncadd [#allocation6], 4294967008 }
  0x7b   :  { %7498 = dma.done.wait [#allocation9], 26624  }
  0x7c   :  { %7499 = vsyncadd [#allocation9], 4294940672 }
  0x7d   :  { %7500 = dma.done.wait [#allocation12], 20480  }
  0x7e   :  { %7501 = vsyncadd [#allocation12], 4294946816  ;;  %v9591_v0 = vmov 0.0   ;;  %v139_v1 = vld [vmem:[#allocation10 + $0x8] sm:$0xff]  ;;  %v141_v3 = vld [vmem:[#allocation10 + $0x18] sm:$0xff]  ;;  %vm1083_vm0 = vcmask 1041409  }
  0x7f   :  { %600 = vmatprep.mubr.f32.mxu0 %v9591_v0  ;;  %742 = vmatprep.mubr.f32.mxu1 %v9591_v0  ;;  %v143_v2 = vld [vmem:[#allocation10 + $0x28] sm:$0xff]  ;;  %v145_v5 = vld [vmem:[#allocation10 + $0x38] sm:$0xff]  ;;  %v138_v6 = vld [vmem:[#allocation10] sm:$0xff]  ;;  %vm1087_vm2 = vcmask 58368   ;;  %vm1208_vm3 = vcmask 57344   ;;  %vm2499_vm4 = vcmask 1041408  }
  0x80   :  { %v7722_v4 = vpack.c.bf16 %v143_v2, %v139_v1  ;;  %v142_v7 = vld [vmem:[#allocation10 + $0x20] sm:$0xff]  ;;  %v7724_v8 = vpack.c.bf16 %v145_v5, %v141_v3  ;;  %v140_v10 = vld [vmem:[#allocation10 + $0x10] sm:$0xff]  ;;  %v147_v12 = vld [vmem:[#allocation10 + $0x48] sm:$0xff]  ;;  %vm7520_vm7 = vmmov 0  }
  0x81   :  { %v7726_v9 = vpack.c.bf16 %v142_v7, %v138_v6  ;;  %v144_v11 = vld [vmem:[#allocation10 + $0x30] sm:$0xff]  ;;  %v151_v14 = vld [vmem:[#allocation10 + $0x68] sm:$0xff]  ;;  %v149_v15 = vld [vmem:[#allocation10 + $0x58] sm:$0xff] }
  0x82   :  { %9993 = vst [vmem:[#allocation23_spill] sm:$0xff] %v7722_v4  ;;  %9994 = vst [vmem:[#allocation24_spill] sm:$0xff] %v7724_v8  ;;  %4867 = vmatprep.subr.bf16.mxu0 %v7722_v4  ;;  %v7729_v13 = vpack.c.bf16 %v144_v11, %v140_v10  ;;  %v153_v16 = vld [vmem:[#allocation10 + $0x78] sm:$0xff]  ;;  %4963 = vmatprep.subr.bf16.mxu1 %v7724_v8  ;;  %v7733_v17 = vpack.c.bf16 %v151_v14, %v147_v12  ;;  %v146_v19 = vld [vmem:[#allocation10 + $0x40] sm:$0xff] }
  0x83   :  { %9995 = vst [vmem:[#allocation25_spill] sm:$0xff] %v7726_v9  ;;  %4869 = vmatpush1.bf16.msra.mxu0 %v7726_v9  ;;  %v7735_v18 = vpack.c.bf16 %v153_v16, %v149_v15  ;;  %v150_v20 = vld [vmem:[#allocation10 + $0x60] sm:$0xff]  ;;  %v148_v21 = vld [vmem:[#allocation10 + $0x50] sm:$0xff]  ;;  %v155_v24 = vld [vmem:[#allocation10 + $0x88] sm:$0xff] }
  0x84   :  { %9996 = vst [vmem:[#allocation26_spill] sm:$0xff] %v7733_v17  ;;  %4965 = vmatpush1.bf16.msra.mxu1 %v7729_v13  ;;  %v7738_v22 = vpack.c.bf16 %v150_v20, %v146_v19  ;;  %v152_v23 = vld [vmem:[#allocation10 + $0x70] sm:$0xff]  ;;  %v159_v25 = vld [vmem:[#allocation10 + $0xa8] sm:$0xff]  ;;  %4871 = vmatprep.subr.bf16.mxu0 %v7733_v17  ;;  %v157_v28 = vld [vmem:[#allocation10 + $0x98] sm:$0xff] }
  0x85   :  { %4967 = vmatprep.subr.bf16.mxu1 %v7735_v18  ;;  %v7742_v26 = vpack.c.bf16 %v152_v23, %v148_v21  ;;  %v7744_v27 = vpack.c.bf16 %v159_v25, %v155_v24  ;;  %v161_v29 = vld [vmem:[#allocation10 + $0xb8] sm:$0xff]  ;;  %v154_v30 = vld [vmem:[#allocation10 + $0x80] sm:$0xff]  ;;  %v156_v33 = vld [vmem:[#allocation10 + $0x90] sm:$0xff] }
  0x86   :  { %9997 = vst [vmem:[#allocation27_spill] sm:$0xff] %v7738_v22  ;;  %v7746_v31 = vpack.c.bf16 %v161_v29, %v157_v28  ;;  %v158_v32 = vld [vmem:[#allocation10 + $0xa0] sm:$0xff]  ;;  %v160_v34 = vld [vmem:[#allocation10 + $0xb0] sm:$0xff]  ;;  %v163_v36 = vld [vmem:[#allocation10 + $0xc8] sm:$0xff] }
  0x87   :  { %9998 = vst [vmem:[#allocation28_spill] sm:$0xff] %v7744_v27  ;;  %4873 = vmatpush1.bf16.msra.mxu0 %v7738_v22  ;;  %v7749_v35 = vpack.c.bf16 %v158_v32, %v154_v30  ;;  %v167_v37 = vld [vmem:[#allocation10 + $0xe8] sm:$0xff]  ;;  %v165_v38 = vld [vmem:[#allocation10 + $0xd8] sm:$0xff]  ;;  %v7753_v39 = vpack.c.bf16 %v160_v34, %v156_v33  ;;  %v162_v42 = vld [vmem:[#allocation10 + $0xc0] sm:$0xff] }
  0x88   :  { %4969 = vmatpush1.bf16.msra.mxu1 %v7742_v26  ;;  %4875 = vmatprep.subr.bf16.mxu0 %v7744_v27  ;;  %v7755_v40 = vpack.c.bf16 %v167_v37, %v163_v36  ;;  %v169_v41 = vld [vmem:[#allocation10 + $0xf8] sm:$0xff]  ;;  %v166_v43 = vld [vmem:[#allocation10 + $0xe0] sm:$0xff]  ;;  %v164_v45 = vld [vmem:[#allocation10 + $0xd0] sm:$0xff] }
  0x89   :  { %9999 = vst [vmem:[#allocation29_spill] sm:$0xff] %v7749_v35  ;;  %10000 = vst [vmem:[#allocation30_spill] sm:$0xff] %v7753_v39  ;;  %4971 = vmatprep.subr.bf16.mxu1 %v7746_v31  ;;  %v7758_v44 = vpack.c.bf16 %v169_v41, %v165_v38  ;;  %v168_v46 = vld [vmem:[#allocation10 + $0xf0] sm:$0xff]  ;;  %v171_v47 = vld [vmem:[#allocation10 + $0x108] sm:$0xff]  ;;  %v7761_v51 = vpack.c.bf16 %v166_v43, %v162_v42 }
  0x8a   :  { %10001 = vst [vmem:[#allocation31_spill] sm:$0xff] %v7755_v40  ;;  %v175_v48 = vld [vmem:[#allocation10 + $0x128] sm:$0xff]  ;;  %v173_v49 = vld [vmem:[#allocation10 + $0x118] sm:$0xff]  ;;  %v7765_v52 = vpack.c.bf16 %v168_v46, %v164_v45  ;;  %v170_v54 = vld [vmem:[#allocation10 + $0x100] sm:$0xff] }
  0x8b   :  { %10002 = vst [vmem:[#allocation32_spill] sm:$0xff] %v7758_v44  ;;  %v177_v50 = vld [vmem:[#allocation10 + $0x138] sm:$0xff]  ;;  %4877 = vmatpush1.bf16.msra.mxu0 %v7749_v35  ;;  %10003 = vst [vmem:[#allocation33_spill] sm:$0xff] %v7761_v51  ;;  %v7767_v53 = vpack.c.bf16 %v175_v48, %v171_v47  ;;  %v174_v55 = vld [vmem:[#allocation10 + $0x120] sm:$0xff] }
  0x8c   :  { %4973 = vmatpush1.bf16.msra.mxu1 %v7753_v39  ;;  %4879 = vmatprep.subr.bf16.mxu0 %v7755_v40  ;;  %10004 = vst [vmem:[#allocation34_spill] sm:$0xff] %v7765_v52  ;;  %v172_v56 = vld [vmem:[#allocation10 + $0x110] sm:$0xff]  ;;  %v7770_v57 = vpack.c.bf16 %v177_v50, %v173_v49  ;;  %v179_v59 = vld [vmem:[#allocation10 + $0x148] sm:$0xff]  ;;  %v181_v61 = vld [vmem:[#allocation10 + $0x158] sm:$0xff]  ;;  %v7773_v63 = vpack.c.bf16 %v174_v55, %v170_v54 }
  0x8d   :  { %10005 = vst [vmem:[#allocation35_spill] sm:$0xff] %v7767_v53  ;;  %4975 = vmatprep.subr.bf16.mxu1 %v7758_v44  ;;  %v176_v58 = vld [vmem:[#allocation10 + $0x130] sm:$0xff]  ;;  %v183_v60 = vld [vmem:[#allocation10 + $0x168] sm:$0xff]  ;;  %v185_v62 = vld [vmem:[#allocation10 + $0x178] sm:$0xff] }
  0x8e   :  { %10006 = vst [vmem:[#allocation36_spill] sm:$0xff] %v7770_v57  ;;  %10007 = vst [vmem:[#allocation37_spill] sm:$0xff] %v7773_v63  ;;  %v7777_v1 = vpack.c.bf16 %v176_v58, %v172_v56  ;;  %v7779_v2 = vpack.c.bf16 %v183_v60, %v179_v59  ;;  %v178_v3 = vld [vmem:[#allocation10 + $0x140] sm:$0xff]  ;;  %v180_v6 = vld [vmem:[#allocation10 + $0x150] sm:$0xff]  ;;  %v7782_v7 = vpack.c.bf16 %v185_v62, %v181_v61 }
  0x8f   :  { %4881 = vmatpush1.bf16.msra.mxu0 %v7761_v51  ;;  %v182_v5 = vld [vmem:[#allocation10 + $0x160] sm:$0xff]  ;;  %v184_v10 = vld [vmem:[#allocation10 + $0x170] sm:$0xff]  ;;  %v187_v11 = vld [vmem:[#allocation10 + $0x188] sm:$0xff] }
  0x90   :  { %4977 = vmatpush1.bf16.msra.mxu1 %v7765_v52  ;;  %4883 = vmatprep.subr.bf16.mxu0 %v7767_v53  ;;  %10008 = vst [vmem:[#allocation38_spill] sm:$0xff] %v7777_v1  ;;  %10009 = vst [vmem:[#allocation39_spill] sm:$0xff] %v7779_v2  ;;  %v191_v12 = vld [vmem:[#allocation10 + $0x1a8] sm:$0xff]  ;;  %v189_v14 = vld [vmem:[#allocation10 + $0x198] sm:$0xff]  ;;  %v7785_v16 = vpack.c.bf16 %v182_v5, %v178_v3  ;;  %v7789_v19 = vpack.c.bf16 %v184_v10, %v180_v6 }
  0x91   :  { %4979 = vmatprep.subr.bf16.mxu1 %v7770_v57  ;;  %10010 = vst [vmem:[#allocation40_spill] sm:$0xff] %v7782_v7  ;;  %v193_v15 = vld [vmem:[#allocation10 + $0x1b8] sm:$0xff]  ;;  %v7791_v20 = vpack.c.bf16 %v191_v12, %v187_v11  ;;  %v186_v21 = vld [vmem:[#allocation10 + $0x180] sm:$0xff]  ;;  %v188_v24 = vld [vmem:[#allocation10 + $0x190] sm:$0xff] }
  0x92   :  { %10011 = vst [vmem:[#allocation41_spill] sm:$0xff] %v7785_v16  ;;  %10012 = vst [vmem:[#allocation42_spill] sm:$0xff] %v7789_v19  ;;  %v190_v23 = vld [vmem:[#allocation10 + $0x1a0] sm:$0xff]  ;;  %v7794_v25 = vpack.c.bf16 %v193_v15, %v189_v14  ;;  %v192_v28 = vld [vmem:[#allocation10 + $0x1b0] sm:$0xff] }
  0x93   :  { %4885 = vmatpush1.bf16.msra.mxu0 %v7773_v63  ;;  %10013 = vst [vmem:[#allocation43_spill] sm:$0xff] %v7791_v20  ;;  %v195_v29 = vld [vmem:[#allocation10 + $0x1c8] sm:$0xff]  ;;  %v197_v32 = vld [vmem:[#allocation10 + $0x1d8] sm:$0xff]  ;;  %v7797_v34 = vpack.c.bf16 %v190_v23, %v186_v21  ;;  %v7801_v36 = vpack.c.bf16 %v192_v28, %v188_v24  ;;  %v194_v38 = vld [vmem:[#allocation10 + $0x1c0] sm:$0xff] }
  0x94   :  { %4981 = vmatpush1.bf16.msra.mxu1 %v7777_v1  ;;  %4887 = vmatprep.subr.bf16.mxu0 %v7779_v2  ;;  %10014 = vst [vmem:[#allocation44_spill] sm:$0xff] %v7794_v25  ;;  %v199_v30 = vld [vmem:[#allocation10 + $0x1e8] sm:$0xff]  ;;  %v201_v33 = vld [vmem:[#allocation10 + $0x1f8] sm:$0xff]  ;;  %v198_v41 = vld [vmem:[#allocation10 + $0x1e0] sm:$0xff] }
  0x95   :  { %4983 = vmatprep.subr.bf16.mxu1 %v7782_v7  ;;  %10015 = vst [vmem:[#allocation45_spill] sm:$0xff] %v7797_v34  ;;  %10016 = vst [vmem:[#allocation46_spill] sm:$0xff] %v7801_v36  ;;  %v7803_v37 = vpack.c.bf16 %v199_v30, %v195_v29  ;;  %v196_v42 = vld [vmem:[#allocation10 + $0x1d0] sm:$0xff]  ;;  %v7806_v43 = vpack.c.bf16 %v201_v33, %v197_v32  ;;  %v203_v46 = vld [vmem:[#allocation10 + $0x208] sm:$0xff]  ;;  %v7809_v50 = vpack.c.bf16 %v198_v41, %v194_v38 }
  0x96   :  { %v200_v45 = vld [vmem:[#allocation10 + $0x1f0] sm:$0xff]  ;;  %v207_v47 = vld [vmem:[#allocation10 + $0x228] sm:$0xff]  ;;  %v205_v48 = vld [vmem:[#allocation10 + $0x218] sm:$0xff] }
  0x97   :  { %4889 = vmatpush1.bf16.msra.mxu0 %v7785_v16  ;;  %10017 = vst [vmem:[#allocation47_spill] sm:$0xff] %v7803_v37  ;;  %10018 = vst [vmem:[#allocation48_spill] sm:$0xff] %v7806_v43  ;;  %v209_v49 = vld [vmem:[#allocation10 + $0x238] sm:$0xff]  ;;  %v7813_v54 = vpack.c.bf16 %v200_v45, %v196_v42  ;;  %v7815_v55 = vpack.c.bf16 %v207_v47, %v203_v46  ;;  %v202_v56 = vld [vmem:[#allocation10 + $0x200] sm:$0xff] }
  0x98   :  { %4985 = vmatpush1.bf16.msra.mxu1 %v7789_v19  ;;  %4891 = vmatprep.subr.bf16.mxu0 %v7791_v20  ;;  %10019 = vst [vmem:[#allocation49_spill] sm:$0xff] %v7809_v50  ;;  %v206_v58 = vld [vmem:[#allocation10 + $0x220] sm:$0xff]  ;;  %v204_v59 = vld [vmem:[#allocation10 + $0x210] sm:$0xff]  ;;  %v7818_v60 = vpack.c.bf16 %v209_v49, %v205_v48  ;;  %v211_v62 = vld [vmem:[#allocation10 + $0x248] sm:$0xff] }
  0x99   :  { %4987 = vmatprep.subr.bf16.mxu1 %v7794_v25  ;;  %10020 = vst [vmem:[#allocation50_spill] sm:$0xff] %v7813_v54  ;;  %10021 = vst [vmem:[#allocation51_spill] sm:$0xff] %v7815_v55  ;;  %v208_v61 = vld [vmem:[#allocation10 + $0x230] sm:$0xff]  ;;  %v215_v3 = vld [vmem:[#allocation10 + $0x268] sm:$0xff]  ;;  %v7821_v10 = vpack.c.bf16 %v206_v58, %v202_v56 }
  0x9a   :  { %10022 = vst [vmem:[#allocation52_spill] sm:$0xff] %v7818_v60  ;;  %v213_v5 = vld [vmem:[#allocation10 + $0x258] sm:$0xff]  ;;  %v7825_v11 = vpack.c.bf16 %v208_v61, %v204_v59  ;;  %v7827_v12 = vpack.c.bf16 %v215_v3, %v211_v62  ;;  %v210_v14 = vld [vmem:[#allocation10 + $0x240] sm:$0xff]  ;;  %v212_v21 = vld [vmem:[#allocation10 + $0x250] sm:$0xff] }
  0x9b   :  { %4893 = vmatpush1.bf16.msra.mxu0 %v7797_v34  ;;  %v217_v6 = vld [vmem:[#allocation10 + $0x278] sm:$0xff]  ;;  %10023 = vst [vmem:[#allocation53_spill] sm:$0xff] %v7821_v10  ;;  %v214_v15 = vld [vmem:[#allocation10 + $0x260] sm:$0xff]  ;;  %v216_v24 = vld [vmem:[#allocation10 + $0x270] sm:$0xff] }
  0x9c   :  { %4989 = vmatpush1.bf16.msra.mxu1 %v7801_v36  ;;  %4895 = vmatprep.subr.bf16.mxu0 %v7803_v37  ;;  %10024 = vst [vmem:[#allocation54_spill] sm:$0xff] %v7825_v11  ;;  %10025 = vst [vmem:[#allocation55_spill] sm:$0xff] %v7827_v12  ;;  %v7830_v23 = vpack.c.bf16 %v217_v6, %v213_v5  ;;  %v219_v28 = vld [vmem:[#allocation10 + $0x288] sm:$0xff]  ;;  %v221_v30 = vld [vmem:[#allocation10 + $0x298] sm:$0xff]  ;;  %v7833_v33 = vpack.c.bf16 %v214_v15, %v210_v14 }
  0x9d   :  { %4991 = vmatprep.subr.bf16.mxu1 %v7806_v43  ;;  %v223_v29 = vld [vmem:[#allocation10 + $0x2a8] sm:$0xff]  ;;  %v225_v32 = vld [vmem:[#allocation10 + $0x2b8] sm:$0xff]  ;;  %v7837_v38 = vpack.c.bf16 %v216_v24, %v212_v21  ;;  %v218_v42 = vld [vmem:[#allocation10 + $0x280] sm:$0xff] }
  0x9e   :  { %10026 = vst [vmem:[#allocation56_spill] sm:$0xff] %v7830_v23  ;;  %10027 = vst [vmem:[#allocation57_spill] sm:$0xff] %v7833_v33  ;;  %v7839_v41 = vpack.c.bf16 %v223_v29, %v219_v28  ;;  %v222_v45 = vld [vmem:[#allocation10 + $0x2a0] sm:$0xff]  ;;  %v220_v46 = vld [vmem:[#allocation10 + $0x290] sm:$0xff]  ;;  %v7842_v47 = vpack.c.bf16 %v225_v32, %v221_v30 }
  0x9f   :  { %4897 = vmatpush1.bf16.msra.mxu0 %v7809_v50  ;;  %10028 = vst [vmem:[#allocation58_spill] sm:$0xff] %v7837_v38  ;;  %v224_v48 = vld [vmem:[#allocation10 + $0x2b0] sm:$0xff]  ;;  %v227_v49 = vld [vmem:[#allocation10 + $0x2c8] sm:$0xff]  ;;  %v229_v58 = vld [vmem:[#allocation10 + $0x2d8] sm:$0xff]  ;;  %v7845_v61 = vpack.c.bf16 %v222_v45, %v218_v42 }
  0xa0   :  { %4993 = vmatpush1.bf16.msra.mxu1 %v7813_v54  ;;  %4899 = vmatprep.subr.bf16.mxu0 %v7815_v55  ;;  %10029 = vst [vmem:[#allocation59_spill] sm:$0xff] %v7839_v41  ;;  %10030 = vst [vmem:[#allocation60_spill] sm:$0xff] %v7842_v47  ;;  %v231_v56 = vld [vmem:[#allocation10 + $0x2e8] sm:$0xff]  ;;  %v233_v59 = vld [vmem:[#allocation10 + $0x2f8] sm:$0xff]  ;;  %v7849_v62 = vpack.c.bf16 %v224_v48, %v220_v46 }
  0xa1   :  { %4995 = vmatprep.subr.bf16.mxu1 %v7818_v60  ;;  %10031 = vst [vmem:[#allocation61_spill] sm:$0xff] %v7845_v61  ;;  %v7851_v3 = vpack.c.bf16 %v231_v56, %v227_v49  ;;  %v226_v5 = vld [vmem:[#allocation10 + $0x2c0] sm:$0xff]  ;;  %v228_v14 = vld [vmem:[#allocation10 + $0x2d0] sm:$0xff]  ;;  %v7854_v15 = vpack.c.bf16 %v233_v59, %v229_v58  ;;  %v235_v24 = vld [vmem:[#allocation10 + $0x308] sm:$0xff] }
  0xa2   :  { %10032 = vst [vmem:[#allocation62_spill] sm:$0xff] %v7849_v62  ;;  %v230_v6 = vld [vmem:[#allocation10 + $0x2e0] sm:$0xff]  ;;  %v232_v21 = vld [vmem:[#allocation10 + $0x2f0] sm:$0xff]  ;;  %v239_v28 = vld [vmem:[#allocation10 + $0x328] sm:$0xff] }
  0xa3   :  { %4901 = vmatpush1.bf16.msra.mxu0 %v7821_v10  ;;  %10033 = vst [vmem:[#allocation63_spill] sm:$0xff] %v7851_v3  ;;  %10034 = vst [vmem:[#allocation64_spill] sm:$0xff] %v7854_v15  ;;  %v237_v29 = vld [vmem:[#allocation10 + $0x318] sm:$0xff]  ;;  %v7857_v32 = vpack.c.bf16 %v230_v6, %v226_v5  ;;  %v7861_v42 = vpack.c.bf16 %v232_v21, %v228_v14  ;;  %v7863_v45 = vpack.c.bf16 %v239_v28, %v235_v24  ;;  %v234_v46 = vld [vmem:[#allocation10 + $0x300] sm:$0xff] }
  0xa4   :  { %4997 = vmatpush1.bf16.msra.mxu1 %v7825_v11  ;;  %4903 = vmatprep.subr.bf16.mxu0 %v7827_v12  ;;  %v241_v30 = vld [vmem:[#allocation10 + $0x338] sm:$0xff]  ;;  %v238_v48 = vld [vmem:[#allocation10 + $0x320] sm:$0xff]  ;;  %v236_v49 = vld [vmem:[#allocation10 + $0x310] sm:$0xff] }
  0xa5   :  { %4999 = vmatprep.subr.bf16.mxu1 %v7830_v23  ;;  %10035 = vst [vmem:[#allocation65_spill] sm:$0xff] %v7857_v32  ;;  %10036 = vst [vmem:[#allocation66_spill] sm:$0xff] %v7861_v42  ;;  %v7866_v56 = vpack.c.bf16 %v241_v30, %v237_v29  ;;  %v240_v58 = vld [vmem:[#allocation10 + $0x330] sm:$0xff]  ;;  %v243_v59 = vld [vmem:[#allocation10 + $0x348] sm:$0xff] }
  0xa6   :  { %10037 = vst [vmem:[#allocation67_spill] sm:$0xff] %v7863_v45  ;;  %v247_v0 = vld [vmem:[#allocation10 + $0x368] sm:$0xff]  ;;  %v245_v5 = vld [vmem:[#allocation10 + $0x358] sm:$0xff]  ;;  %v7873_v14 = vpack.c.bf16 %v240_v58, %v236_v49  ;;  %v242_v24 = vld [vmem:[#allocation10 + $0x340] sm:$0xff] }
  0xa7   :  { %4905 = vmatpush1.bf16.msra.mxu0 %v7833_v33  ;;  %10038 = vst [vmem:[#allocation68_spill] sm:$0xff] %v7866_v56  ;;  %v249_v6 = vld [vmem:[#allocation10 + $0x378] sm:$0xff]  ;;  %v7875_v21 = vpack.c.bf16 %v247_v0, %v243_v59  ;;  %v246_v28 = vld [vmem:[#allocation10 + $0x360] sm:$0xff]  ;;  %v244_v29 = vld [vmem:[#allocation10 + $0x350] sm:$0xff] }
  0xa8   :  { %5001 = vmatpush1.bf16.msra.mxu1 %v7837_v38  ;;  %4907 = vmatprep.subr.bf16.mxu0 %v7839_v41  ;;  %10040 = vst [vmem:[#allocation70_spill] sm:$0xff] %v7873_v14  ;;  %v7878_v30 = vpack.c.bf16 %v249_v6, %v245_v5  ;;  %v255_v38 = vld [vmem:[#allocation10 + $0x3a8] sm:$0xff]  ;;  %v250_v58 = vld [vmem:[#allocation10 + $0x380] sm:$0xff]  ;;  %v252_v5 = vld [vmem:[#allocation10 + $0x390] sm:$0xff] }
  0xa9   :  { %5003 = vmatprep.subr.bf16.mxu1 %v7842_v47  ;;  %10041 = vst [vmem:[#allocation71_spill] sm:$0xff] %v7875_v21  ;;  %v251_v47 = vld [vmem:[#allocation10 + $0x388] sm:$0xff]  ;;  %v254_v59 = vld [vmem:[#allocation10 + $0x3a0] sm:$0xff]  ;;  %v296_v57 = vld [vmem:[#allocation10 + $0x4f0] sm:$0xff] }
  0xaa   :  { %10042 = vst [vmem:[#allocation72_spill] sm:$0xff] %v7878_v30  ;;  %v7887_v49 = vpack.c.bf16 %v255_v38, %v251_v47  ;;  %v259_v23 = vld [vmem:[#allocation10 + $0x3c8] sm:$0xff] }
  0xab   :  { %4909 = vmatpush1.bf16.msra.mxu0 %v7845_v61  ;;  %v263_v11 = vld [vmem:[#allocation10 + $0x3e8] sm:$0xff] }
  0xac   :  { %5005 = vmatpush1.bf16.msra.mxu1 %v7849_v62  ;;  %4911 = vmatprep.subr.bf16.mxu0 %v7851_v3  ;;  %v7869_v62 = vpack.c.bf16 %v238_v48, %v234_v46  ;;  %v253_v46 = vld [vmem:[#allocation10 + $0x398] sm:$0xff]  ;;  %10045 = vst [vmem:[#allocation75_spill] sm:$0xff] %v7887_v49  ;;  %v7899_v47 = vpack.c.bf16 %v263_v11, %v259_v23  ;;  %v267_v60 = vld [vmem:[#allocation10 + $0x408] sm:$0xff] }
  0xad   :  { %5007 = vmatprep.subr.bf16.mxu1 %v7854_v15  ;;  %v248_v15 = vld [vmem:[#allocation10 + $0x370] sm:$0xff]  ;;  %v257_v48 = vld [vmem:[#allocation10 + $0x3b8] sm:$0xff]  ;;  %v271_v54 = vld [vmem:[#allocation10 + $0x428] sm:$0xff] }
  0xae   :  { %10039 = vst [vmem:[#allocation69_spill] sm:$0xff] %v7869_v62  ;;  %v7885_v0 = vpack.c.bf16 %v248_v15, %v244_v29  ;;  %v7890_v6 = vpack.c.bf16 %v257_v48, %v253_v46  ;;  %10049 = vst [vmem:[#allocation79_spill] sm:$0xff] %v7899_v47  ;;  %v258_v15 = vld [vmem:[#allocation10 + $0x3c0] sm:$0xff]  ;;  %v260_v46 = vld [vmem:[#allocation10 + $0x3d0] sm:$0xff]  ;;  %v7911_v23 = vpack.c.bf16 %v271_v54, %v267_v60 }
  0xaf   :  { %4913 = vmatpush1.bf16.msra.mxu0 %v7857_v32  ;;  %v262_v29 = vld [vmem:[#allocation10 + $0x3e0] sm:$0xff]  ;;  %v275_v43 = vld [vmem:[#allocation10 + $0x448] sm:$0xff] }
  0xb0   :  { %5009 = vmatpush1.bf16.msra.mxu1 %v7861_v42  ;;  %4915 = vmatprep.subr.bf16.mxu0 %v7863_v45  ;;  %v7881_v42 = vpack.c.bf16 %v246_v28, %v242_v24  ;;  %10044 = vst [vmem:[#allocation74_spill] sm:$0xff] %v7885_v0  ;;  %10046 = vst [vmem:[#allocation76_spill] sm:$0xff] %v7890_v6  ;;  %v261_v24 = vld [vmem:[#allocation10 + $0x3d8] sm:$0xff]  ;;  %v279_v36 = vld [vmem:[#allocation10 + $0x468] sm:$0xff] }
  0xb1   :  { %5011 = vmatprep.subr.bf16.mxu1 %v7866_v56  ;;  %v256_v56 = vld [vmem:[#allocation10 + $0x3b0] sm:$0xff]  ;;  %v265_v28 = vld [vmem:[#allocation10 + $0x3f8] sm:$0xff]  ;;  %10053 = vst [vmem:[#allocation83_spill] sm:$0xff] %v7911_v23  ;;  %v7923_v60 = vpack.c.bf16 %v279_v36, %v275_v43  ;;  %v283_v19 = vld [vmem:[#allocation10 + $0x488] sm:$0xff] }
  0xb2   :  { %10043 = vst [vmem:[#allocation73_spill] sm:$0xff] %v7881_v42  ;;  %v7897_v38 = vpack.c.bf16 %v256_v56, %v252_v5  ;;  %v7902_v48 = vpack.c.bf16 %v265_v28, %v261_v24  ;;  %v266_v56 = vld [vmem:[#allocation10 + $0x400] sm:$0xff]  ;;  %v268_v24 = vld [vmem:[#allocation10 + $0x410] sm:$0xff]  ;;  %v287_v7 = vld [vmem:[#allocation10 + $0x4a8] sm:$0xff] }
  0xb3   :  { %4917 = vmatpush1.bf16.msra.mxu0 %v7869_v62  ;;  %v270_v5 = vld [vmem:[#allocation10 + $0x420] sm:$0xff]  ;;  %10057 = vst [vmem:[#allocation87_spill] sm:$0xff] %v7923_v60  ;;  %v7935_v43 = vpack.c.bf16 %v287_v7, %v283_v19  ;;  %v291_v1 = vld [vmem:[#allocation10 + $0x4c8] sm:$0xff] }
  0xb4   :  { %5013 = vmatpush1.bf16.msra.mxu1 %v7873_v14  ;;  %4919 = vmatprep.subr.bf16.mxu0 %v7875_v21  ;;  %v7893_v14 = vpack.c.bf16 %v254_v59, %v250_v58  ;;  %10048 = vst [vmem:[#allocation78_spill] sm:$0xff] %v7897_v38  ;;  %10050 = vst [vmem:[#allocation80_spill] sm:$0xff] %v7902_v48  ;;  %v269_v58 = vld [vmem:[#allocation10 + $0x418] sm:$0xff]  ;;  %v7917_v25 = vpack.c.bf16 %v270_v5, %v266_v56  ;;  %v299_v52 = vld [vmem:[#allocation10 + $0x508] sm:$0xff] }
  0xb5   :  { %5015 = vmatprep.subr.bf16.mxu1 %v7878_v30  ;;  %v264_v30 = vld [vmem:[#allocation10 + $0x3f0] sm:$0xff]  ;;  %v273_v59 = vld [vmem:[#allocation10 + $0x438] sm:$0xff]  ;;  %10061 = vst [vmem:[#allocation91_spill] sm:$0xff] %v7935_v43  ;;  %v303_v44 = vld [vmem:[#allocation10 + $0x528] sm:$0xff] }
  0xb6   :  { %10047 = vst [vmem:[#allocation77_spill] sm:$0xff] %v7893_v14  ;;  %v7909_v11 = vpack.c.bf16 %v264_v30, %v260_v46  ;;  %v7914_v28 = vpack.c.bf16 %v273_v59, %v269_v58  ;;  %10055 = vst [vmem:[#allocation85_spill] sm:$0xff] %v7917_v25  ;;  %v274_v30 = vld [vmem:[#allocation10 + $0x440] sm:$0xff]  ;;  %v276_v58 = vld [vmem:[#allocation10 + $0x450] sm:$0xff] }
  0xb7   :  { %4921 = vmatpush1.bf16.msra.mxu0 %v7881_v42  ;;  %v278_v46 = vld [vmem:[#allocation10 + $0x460] sm:$0xff]  ;;  %v285_v56 = vld [vmem:[#allocation10 + $0x498] sm:$0xff]  ;;  %v307_v39 = vld [vmem:[#allocation10 + $0x548] sm:$0xff] }
  0xb8   :  { %5017 = vmatpush1.bf16.msra.mxu1 %v7885_v0  ;;  %4923 = vmatprep.subr.bf16.mxu0 %v7887_v49  ;;  %v7905_v0 = vpack.c.bf16 %v262_v29, %v258_v15  ;;  %10052 = vst [vmem:[#allocation82_spill] sm:$0xff] %v7909_v11  ;;  %10054 = vst [vmem:[#allocation84_spill] sm:$0xff] %v7914_v28  ;;  %v277_v15 = vld [vmem:[#allocation10 + $0x458] sm:$0xff] }
  0xb9   :  { %5019 = vmatprep.subr.bf16.mxu1 %v7890_v6  ;;  %v272_v6 = vld [vmem:[#allocation10 + $0x430] sm:$0xff]  ;;  %v281_v29 = vld [vmem:[#allocation10 + $0x478] sm:$0xff] }
  0xba   :  { %10051 = vst [vmem:[#allocation81_spill] sm:$0xff] %v7905_v0  ;;  %v7921_v54 = vpack.c.bf16 %v272_v6, %v268_v24  ;;  %v7926_v59 = vpack.c.bf16 %v281_v29, %v277_v15  ;;  %v289_v5 = vld [vmem:[#allocation10 + $0x4b8] sm:$0xff]  ;;  %v7929_v6 = vpack.c.bf16 %v278_v46, %v274_v30  ;;  %v282_v24 = vld [vmem:[#allocation10 + $0x480] sm:$0xff]  ;;  %v284_v29 = vld [vmem:[#allocation10 + $0x490] sm:$0xff]  ;;  %v10063_v30 = vmov 0.0  }
  0xbb   :  { %4925 = vmatpush1.bf16.msra.mxu0 %v7893_v14  ;;  %v286_v15 = vld [vmem:[#allocation10 + $0x4a0] sm:$0xff]  ;;  %v293_v46 = vld [vmem:[#allocation10 + $0x4d8] sm:$0xff] }
  0xbc   :  { %5021 = vmatpush1.bf16.msra.mxu1 %v7897_v38  ;;  %4927 = vmatprep.subr.bf16.mxu0 %v7899_v47  ;;  %v514_v38 = vld [vmem:[#allocation7] sm:$0x3]  ;;  %10056 = vst [vmem:[#allocation86_spill] sm:$0xff] %v7921_v54  ;;  %10058 = vst [vmem:[#allocation88_spill] sm:$0xff] %v7926_v59  ;;  %v7943_v7 = vpack.c.bf16 %v286_v15, %v282_v24 }
  0xbd   :  { %5023 = vmatprep.subr.bf16.mxu1 %v7902_v48  ;;  %v280_v48 = vld [vmem:[#allocation10 + $0x470] sm:$0xff]  ;;  %10059 = vst [vmem:[#allocation89_spill] sm:$0xff] %v7929_v6  ;;  %v301_v24 = vld [vmem:[#allocation10 + $0x518] sm:$0xff] }
  0xbe   :  { %v7933_v36 = vpack.c.bf16 %v280_v48, %v276_v58  ;;  %10064 = vst [vmem:[#allocation93_spill] sm:$0xff] %v7943_v7  ;;  %v290_v58 = vld [vmem:[#allocation10 + $0x4c0] sm:$0xff]  ;;  %v305_v15 = vld [vmem:[#allocation10 + $0x538] sm:$0xff] }
  0xbf   :  { %4929 = vmatpush1.bf16.msra.mxu0 %v7905_v0 }
  0xc0   :  { %5025 = vmatpush1.bf16.msra.mxu1 %v7909_v11  ;;  %4931 = vmatprep.subr.bf16.mxu0 %v7911_v23  ;;  %10060 = vst [vmem:[#allocation90_spill] sm:$0xff] %v7933_v36  ;;  %v288_v11 = vld [vmem:[#allocation10 + $0x4b0] sm:$0xff] }
  0xc1   :  { %5027 = vmatprep.subr.bf16.mxu1 %v7914_v28  ;;  %v7938_v28 = vpack.c.bf16 %v289_v5, %v285_v56  ;;  %v7947_v19 = vpack.c.bf16 %v288_v11, %v284_v29  ;;  %v294_v56 = vld [vmem:[#allocation10 + $0x4e0] sm:$0xff]  ;;  %v292_v5 = vld [vmem:[#allocation10 + $0x4d0] sm:$0xff]  ;;  %v7961_v11 = vpack.c.bf16 %v303_v44, %v299_v52 }
  0xc2   :  { %601 = vmatmul.mubr.f32.vlgmr.msra.gmra.mrb[0].mxu0 %v514_v38  ;;  %v298_v29 = vld [vmem:[#allocation10 + $0x500] sm:$0xff] }
  0xc3   :  { %4933 = vmatpush1.bf16.msra.mxu0 %v7917_v25  ;;  %743 = vmatmul.mubr.f32.vlgmr.msra.gmra.mrb[0].mxu1 %v514_v38  ;;  %10062 = vst [vmem:[#allocation92_spill] sm:$0xff] %v7938_v28  ;;  %v295_v38 = vld [vmem:[#allocation10 + $0x4e8] sm:$0xff]  ;;  %10065 = vst [vmem:[#allocation94_spill] sm:$0xff] %v7947_v19 }
  0xc4   :  { %5029 = vmatpush1.bf16.msra.mxu1 %v7921_v54  ;;  %4935 = vmatprep.subr.bf16.mxu0 %v7923_v60  ;;  %v297_v54 = vld [vmem:[#allocation10 + $0x4f8] sm:$0xff]  ;;  %v7949_v48 = vpack.c.bf16 %v295_v38, %v291_v1  ;;  %v7959_v1 = vpack.c.bf16 %v296_v57, %v292_v5  ;;  %10070 = vst [vmem:[#allocation99_spill] sm:$0xff] %v7961_v11  ;;  %v300_v38 = vld [vmem:[#allocation10 + $0x510] sm:$0xff]  ;;  %v306_v57 = vld [vmem:[#allocation10 + $0x540] sm:$0xff] }
  0xc5   :  { %5031 = vmatprep.subr.bf16.mxu1 %v7926_v59  ;;  %671 = vmatprep.mubr.f32.mxu0 %v10063_v30  ;;  %v7952_v59 = vpack.c.bf16 %v297_v54, %v293_v46  ;;  %v302_v54 = vld [vmem:[#allocation10 + $0x520] sm:$0xff]  ;;  %v7964_v46 = vpack.c.bf16 %v305_v15, %v301_v24  ;;  %v308_v24 = vld [vmem:[#allocation10 + $0x550] sm:$0xff] }
  0xc6   :  { %813 = vmatprep.mubr.f32.mxu1 %v10063_v30  ;;  %10066 = vst [vmem:[#allocation95_spill] sm:$0xff] %v7949_v48  ;;  %10069 = vst [vmem:[#allocation98_spill] sm:$0xff] %v7959_v1  ;;  %v310_v5 = vld [vmem:[#allocation10 + $0x560] sm:$0xff] }
  0xc7   :  { %4937 = vmatpush1.bf16.msra.mxu0 %v7929_v6  ;;  %10067 = vst [vmem:[#allocation96_spill] sm:$0xff] %v7952_v59  ;;  %10071 = vst [vmem:[#allocation100_spill] sm:$0xff] %v7964_v46 }
  0xc8   :  { %5033 = vmatpush1.bf16.msra.mxu1 %v7933_v36  ;;  %4939 = vmatprep.subr.bf16.mxu0 %v7935_v43  ;;  %v7955_v36 = vpack.c.bf16 %v294_v56, %v290_v58  ;;  %v309_v58 = vld [vmem:[#allocation10 + $0x558] sm:$0xff] }
  0xc9   :  { %5035 = vmatprep.subr.bf16.mxu1 %v7938_v28  ;;  %v304_v28 = vld [vmem:[#allocation10 + $0x530] sm:$0xff]  ;;  %v313_v56 = vld [vmem:[#allocation10 + $0x578] sm:$0xff] }
  0xca   :  { %10068 = vst [vmem:[#allocation97_spill] sm:$0xff] %v7955_v36  ;;  %v7971_v44 = vpack.c.bf16 %v304_v28, %v300_v38  ;;  %v7976_v15 = vpack.c.bf16 %v313_v56, %v309_v58  ;;  %v318_v38 = vld [vmem:[#allocation10 + $0x5a0] sm:$0xff]  ;;  %v316_v58 = vld [vmem:[#allocation10 + $0x590] sm:$0xff] }
  0xcb   :  { %4941 = vmatpush1.bf16.msra.mxu0 %v7943_v7  ;;  %v311_v7 = vld [vmem:[#allocation10 + $0x568] sm:$0xff] }
  0xcc   :  { %5037 = vmatpush1.bf16.msra.mxu1 %v7947_v19  ;;  %4943 = vmatprep.subr.bf16.mxu0 %v7949_v48  ;;  %v7967_v19 = vpack.c.bf16 %v302_v54, %v298_v29  ;;  %10073 = vst [vmem:[#allocation102_spill] sm:$0xff] %v7971_v44  ;;  %v7973_v52 = vpack.c.bf16 %v311_v7, %v307_v39  ;;  %10075 = vst [vmem:[#allocation104_spill] sm:$0xff] %v7976_v15  ;;  %v315_v48 = vld [vmem:[#allocation10 + $0x588] sm:$0xff]  ;;  %v317_v29 = vld [vmem:[#allocation10 + $0x598] sm:$0xff] }
  0xcd   :  { %5039 = vmatprep.subr.bf16.mxu1 %v7952_v59  ;;  %v312_v59 = vld [vmem:[#allocation10 + $0x570] sm:$0xff]  ;;  %v321_v54 = vld [vmem:[#allocation10 + $0x5b8] sm:$0xff]  ;;  %v314_v7 = vld [vmem:[#allocation10 + $0x580] sm:$0xff] }
  0xce   :  { %10072 = vst [vmem:[#allocation101_spill] sm:$0xff] %v7967_v19  ;;  %10074 = vst [vmem:[#allocation103_spill] sm:$0xff] %v7973_v52  ;;  %v7983_v39 = vpack.c.bf16 %v312_v59, %v308_v24  ;;  %v7988_v56 = vpack.c.bf16 %v321_v54, %v317_v29  ;;  %v326_v24 = vld [vmem:[#allocation10 + $0x5e0] sm:$0xff]  ;;  %v324_v29 = vld [vmem:[#allocation10 + $0x5d0] sm:$0xff] }
  0xcf   :  { %4945 = vmatpush1.bf16.msra.mxu0 %v7955_v36  ;;  %v319_v36 = vld [vmem:[#allocation10 + $0x5a8] sm:$0xff] }
  0xd0   :  { %5041 = vmatpush1.bf16.msra.mxu1 %v7959_v1  ;;  %4947 = vmatprep.subr.bf16.mxu0 %v7961_v11  ;;  %v7979_v1 = vpack.c.bf16 %v310_v5, %v306_v57  ;;  %10077 = vst [vmem:[#allocation106_spill] sm:$0xff] %v7983_v39  ;;  %v7985_v28 = vpack.c.bf16 %v319_v36, %v315_v48  ;;  %10079 = vst [vmem:[#allocation108_spill] sm:$0xff] %v7988_v56  ;;  %v323_v11 = vld [vmem:[#allocation10 + $0x5c8] sm:$0xff]  ;;  %v325_v57 = vld [vmem:[#allocation10 + $0x5d8] sm:$0xff] }
  0xd1   :  { %5043 = vmatprep.subr.bf16.mxu1 %v7964_v46  ;;  %v320_v46 = vld [vmem:[#allocation10 + $0x5b0] sm:$0xff]  ;;  %v329_v5 = vld [vmem:[#allocation10 + $0x5f8] sm:$0xff]  ;;  %v322_v48 = vld [vmem:[#allocation10 + $0x5c0] sm:$0xff] }
  0xd2   :  { %10076 = vst [vmem:[#allocation105_spill] sm:$0xff] %v7979_v1  ;;  %10078 = vst [vmem:[#allocation107_spill] sm:$0xff] %v7985_v28  ;;  %v7995_v59 = vpack.c.bf16 %v320_v46, %v316_v58  ;;  %v8000_v54 = vpack.c.bf16 %v329_v5, %v325_v57  ;;  %v331_v46 = vld [vmem:[#allocation11] sm:$0xff]  ;;  %v333_v57 = vld [vmem:[#allocation11 + $0x10] sm:$0xff] }
  0xd3   :  { %4949 = vmatpush1.bf16.msra.mxu0 %v7967_v19  ;;  %v327_v19 = vld [vmem:[#allocation10 + $0x5e8] sm:$0xff]  ;;  %v335_v58 = vld [vmem:[#allocation11 + $0x20] sm:$0xff] }
  0xd4   :  { %5045 = vmatpush1.bf16.msra.mxu1 %v7971_v44  ;;  %4951 = vmatprep.subr.bf16.mxu0 %v7973_v52  ;;  %v7991_v44 = vpack.c.bf16 %v318_v38, %v314_v7  ;;  %10081 = vst [vmem:[#allocation110_spill] sm:$0xff] %v7995_v59  ;;  %v7997_v36 = vpack.c.bf16 %v327_v19, %v323_v11  ;;  %10083 = vst [vmem:[#allocation112_spill] sm:$0xff] %v8000_v54  ;;  %v332_v52 = vld [vmem:[#allocation11 + $0x8] sm:$0xff]  ;;  %v334_v7 = vld [vmem:[#allocation11 + $0x18] sm:$0xff] }
  0xd5   :  { %5047 = vmatprep.subr.bf16.mxu1 %v7976_v15  ;;  %v328_v15 = vld [vmem:[#allocation10 + $0x5f0] sm:$0xff]  ;;  %v338_v38 = vld [vmem:[#allocation11 + $0x38] sm:$0xff] }
  0xd6   :  { %10080 = vst [vmem:[#allocation109_spill] sm:$0xff] %v7991_v44  ;;  %10082 = vst [vmem:[#allocation111_spill] sm:$0xff] %v7997_v36  ;;  %v8007_v19 = vpack.c.bf16 %v328_v15, %v324_v29  ;;  %v8012_v5 = vpack.c.bf16 %v338_v38, %v334_v7  ;;  %v339_v15 = vld [vmem:[#allocation11 + $0x40] sm:$0xff]  ;;  %v341_v7 = vld [vmem:[#allocation11 + $0x50] sm:$0xff] }
  0xd7   :  { %4953 = vmatpush1.bf16.msra.mxu0 %v7979_v1  ;;  %v336_v1 = vld [vmem:[#allocation11 + $0x28] sm:$0xff]  ;;  %v343_v29 = vld [vmem:[#allocation11 + $0x60] sm:$0xff] }
  0xd8   :  { %5049 = vmatpush1.bf16.msra.mxu1 %v7983_v39  ;;  %4955 = vmatprep.subr.bf16.mxu0 %v7985_v28  ;;  %v8003_v39 = vpack.c.bf16 %v326_v24, %v322_v48  ;;  %10085 = vst [vmem:[#allocation114_spill] sm:$0xff] %v8007_v19  ;;  %v8009_v11 = vpack.c.bf16 %v336_v1, %v332_v52  ;;  %10087 = vst [vmem:[#allocation116_spill] sm:$0xff] %v8012_v5  ;;  %v340_v28 = vld [vmem:[#allocation11 + $0x48] sm:$0xff]  ;;  %v342_v48 = vld [vmem:[#allocation11 + $0x58] sm:$0xff] }
  0xd9   :  { %5051 = vmatprep.subr.bf16.mxu1 %v7988_v56  ;;  %v337_v56 = vld [vmem:[#allocation11 + $0x30] sm:$0xff]  ;;  %v346_v24 = vld [vmem:[#allocation11 + $0x78] sm:$0xff] }
  0xda   :  { %10084 = vst [vmem:[#allocation113_spill] sm:$0xff] %v8003_v39  ;;  %10086 = vst [vmem:[#allocation115_spill] sm:$0xff] %v8009_v11  ;;  %v8019_v1 = vpack.c.bf16 %v337_v56, %v333_v57  ;;  %v8024_v38 = vpack.c.bf16 %v346_v24, %v342_v48  ;;  %v347_v57 = vld [vmem:[#allocation11 + $0x80] sm:$0xff]  ;;  %v349_v24 = vld [vmem:[#allocation11 + $0x90] sm:$0xff] }
  0xdb   :  { %4957 = vmatpush1.bf16.msra.mxu0 %v7991_v44  ;;  %v344_v44 = vld [vmem:[#allocation11 + $0x68] sm:$0xff]  ;;  %v351_v48 = vld [vmem:[#allocation11 + $0xa0] sm:$0xff] }
  0xdc   :  { %5053 = vmatpush1.bf16.msra.mxu1 %v7995_v59  ;;  %4959 = vmatprep.subr.bf16.mxu0 %v7997_v36  ;;  %v8015_v59 = vpack.c.bf16 %v335_v58, %v331_v46  ;;  %10089 = vst [vmem:[#allocation118_spill] sm:$0xff] %v8019_v1  ;;  %v8021_v52 = vpack.c.bf16 %v344_v44, %v340_v28  ;;  %10091 = vst [vmem:[#allocation120_spill] sm:$0xff] %v8024_v38  ;;  %v348_v36 = vld [vmem:[#allocation11 + $0x88] sm:$0xff]  ;;  %v350_v46 = vld [vmem:[#allocation11 + $0x98] sm:$0xff] }
  0xdd   :  { %5055 = vmatprep.subr.bf16.mxu1 %v8000_v54  ;;  %v345_v54 = vld [vmem:[#allocation11 + $0x70] sm:$0xff]  ;;  %v354_v58 = vld [vmem:[#allocation11 + $0xb8] sm:$0xff]  ;;  %v8029_v44 = vpack.c.bf16 %v343_v29, %v339_v15 }
  0xde   :  { %10088 = vst [vmem:[#allocation117_spill] sm:$0xff] %v8015_v59  ;;  %10090 = vst [vmem:[#allocation119_spill] sm:$0xff] %v8021_v52  ;;  %v8033_v28 = vpack.c.bf16 %v345_v54, %v341_v7  ;;  %v358_v15 = vld [vmem:[#allocation11 + $0xd8] sm:$0xff]  ;;  %v355_v7 = vld [vmem:[#allocation11 + $0xc0] sm:$0xff] }
  0xdf   :  { %4961 = vmatpush1.bf16.msra.mxu0 %v8003_v39  ;;  %v352_v39 = vld [vmem:[#allocation11 + $0xa8] sm:$0xff]  ;;  %10092 = vst [vmem:[#allocation121_spill] sm:$0xff] %v8029_v44  ;;  %v362_v29 = vld [vmem:[#allocation11 + $0xf8] sm:$0xff] }
  0xe0   :  { %5057 = vmatpush1.bf16.msra.mxu1 %v8007_v19  ;;  %5059 = vmatprep.subr.bf16.mxu0 %v8009_v11  ;;  %10093 = vst [vmem:[#allocation122_spill] sm:$0xff] %v8033_v28  ;;  %v8035_v56 = vpack.c.bf16 %v352_v39, %v348_v36  ;;  %v353_v19 = vld [vmem:[#allocation11 + $0xb0] sm:$0xff]  ;;  %v356_v11 = vld [vmem:[#allocation11 + $0xc8] sm:$0xff]  ;;  %v8043_v39 = vpack.c.bf16 %v351_v48, %v347_v57  ;;  %v366_v57 = vld [vmem:[#allocation11 + $0x118] sm:$0xff] }
  0xe1   :  { %5123 = vmatprep.subr.bf16.mxu1 %v8012_v5  ;;  %v8038_v5 = vpack.c.bf16 %v354_v58, %v350_v46  ;;  %v8047_v36 = vpack.c.bf16 %v353_v19, %v349_v24  ;;  %v359_v46 = vld [vmem:[#allocation11 + $0xe0] sm:$0xff]  ;;  %v357_v58 = vld [vmem:[#allocation11 + $0xd0] sm:$0xff]  ;;  %v370_v48 = vld [vmem:[#allocation11 + $0x138] sm:$0xff] }
  0xe2   :  { %672 = vmatmul.mubr.f32.vlgmr.msra.gmra.mrb[0].mxu0 %v10063_v30  ;;  %10094 = vst [vmem:[#allocation123_spill] sm:$0xff] %v8035_v56  ;;  %10096 = vst [vmem:[#allocation125_spill] sm:$0xff] %v8043_v39  ;;  %v363_v24 = vld [vmem:[#allocation11 + $0x100] sm:$0xff] }
  0xe3   :  { %814 = vmatmul.mubr.f32.vlgmr.msra.gmra.mrb[0].mxu1 %v10063_v30  ;;  %5061 = vmatpush1.bf16.msra.mxu0 %v8015_v59  ;;  %10095 = vst [vmem:[#allocation124_spill] sm:$0xff] %v8038_v5  ;;  %v360_v59 = vld [vmem:[#allocation11 + $0xe8] sm:$0xff]  ;;  %10097 = vst [vmem:[#allocation126_spill] sm:$0xff] %v8047_v36 }
  0xe4   :  { %5125 = vmatpush1.bf16.msra.mxu1 %v8019_v1  ;;  %5063 = vmatprep.subr.bf16.mxu0 %v8021_v52  ;;  %v8049_v54 = vpack.c.bf16 %v360_v59, %v356_v11  ;;  %v361_v1 = vld [vmem:[#allocation11 + $0xf0] sm:$0xff]  ;;  %v364_v52 = vld [vmem:[#allocation11 + $0x108] sm:$0xff]  ;;  %v8064_v11 = vpack.c.bf16 %v370_v48, %v366_v57  ;;  %v378_v48 = vld [vmem:[#allocation11 + $0x178] sm:$0xff] }
  0xe5   :  { %5127 = vmatprep.subr.bf16.mxu1 %v8024_v38  ;;  %929 = vmatprep.mubr.f32.mxu0 %v10063_v30  ;;  %v8052_v38 = vpack.c.bf16 %v362_v29, %v358_v15  ;;  %v8059_v59 = vpack.c.bf16 %v361_v1, %v357_v58  ;;  %v367_v15 = vld [vmem:[#allocation11 + $0x120] sm:$0xff]  ;;  %v365_v29 = vld [vmem:[#allocation11 + $0x110] sm:$0xff]  ;;  %v374_v58 = vld [vmem:[#allocation11 + $0x158] sm:$0xff] }
  0xe6   :  { %1000 = vmatprep.mubr.f32.mxu1 %v10063_v30  ;;  %10098 = vst [vmem:[#allocation127_spill] sm:$0xff] %v8049_v54  ;;  %10103 = vst [vmem:[#allocation132_spill] sm:$0xff] %v8064_v11  ;;  %v369_v1 = vld [vmem:[#allocation11 + $0x130] sm:$0xff] }
  0xe7   :  { %5065 = vmatpush1.bf16.msra.mxu0 %v8029_v44  ;;  %10099 = vst [vmem:[#allocation128_spill] sm:$0xff] %v8052_v38  ;;  %v368_v44 = vld [vmem:[#allocation11 + $0x128] sm:$0xff]  ;;  %10101 = vst [vmem:[#allocation130_spill] sm:$0xff] %v8059_v59 }
  0xe8   :  { %5129 = vmatpush1.bf16.msra.mxu1 %v8033_v28  ;;  %5067 = vmatprep.subr.bf16.mxu0 %v8035_v56  ;;  %v8055_v28 = vpack.c.bf16 %v359_v46, %v355_v7  ;;  %v8061_v19 = vpack.c.bf16 %v368_v44, %v364_v52  ;;  %v8070_v7 = vpack.c.bf16 %v367_v15, %v363_v24  ;;  %v372_v44 = vld [vmem:[#allocation11 + $0x148] sm:$0xff]  ;;  %v373_v24 = vld [vmem:[#allocation11 + $0x150] sm:$0xff] }
  0xe9   :  { %5131 = vmatprep.subr.bf16.mxu1 %v8038_v5  ;;  %v8072_v52 = vpack.c.bf16 %v369_v1, %v365_v29  ;;  %v376_v46 = vld [vmem:[#allocation11 + $0x168] sm:$0xff]  ;;  %v377_v15 = vld [vmem:[#allocation11 + $0x170] sm:$0xff] }
  0xea   :  { %10100 = vst [vmem:[#allocation129_spill] sm:$0xff] %v8055_v28  ;;  %10102 = vst [vmem:[#allocation131_spill] sm:$0xff] %v8061_v19  ;;  %v8076_v57 = vpack.c.bf16 %v376_v46, %v372_v44  ;;  %v8083_v29 = vpack.c.bf16 %v377_v15, %v373_v24  ;;  %v380_v1 = vld [vmem:[#allocation11 + $0x188] sm:$0xff]  ;;  %v382_v46 = vld [vmem:[#allocation11 + $0x198] sm:$0xff] }
  0xeb   :  { %5069 = vmatpush1.bf16.msra.mxu0 %v8043_v39  ;;  %10104 = vst [vmem:[#allocation133_spill] sm:$0xff] %v8070_v7  ;;  %10105 = vst [vmem:[#allocation134_spill] sm:$0xff] %v8072_v52  ;;  %v384_v44 = vld [vmem:[#allocation11 + $0x1a8] sm:$0xff]  ;;  %v381_v24 = vld [vmem:[#allocation11 + $0x190] sm:$0xff] }
  0xec   :  { %5133 = vmatpush1.bf16.msra.mxu1 %v8047_v36  ;;  %5071 = vmatprep.subr.bf16.mxu0 %v8049_v54  ;;  %10106 = vst [vmem:[#allocation135_spill] sm:$0xff] %v8076_v57  ;;  %10109 = vst [vmem:[#allocation138_spill] sm:$0xff] %v8083_v29  ;;  %v385_v15 = vld [vmem:[#allocation11 + $0x1b0] sm:$0xff] }
  0xed   :  { %5135 = vmatprep.subr.bf16.mxu1 %v8052_v38  ;;  %v8078_v38 = vpack.c.bf16 %v378_v48, %v374_v58  ;;  %v386_v58 = vld [vmem:[#allocation11 + $0x1b8] sm:$0xff] }
  0xee   :  { %v8090_v48 = vpack.c.bf16 %v386_v58, %v382_v46  ;;  %v394_v46 = vld [vmem:[#allocation11 + $0x1f8] sm:$0xff]  ;;  %v387_v58 = vld [vmem:[#allocation11 + $0x1c0] sm:$0xff] }
  0xef   :  { %5073 = vmatpush1.bf16.msra.mxu0 %v8055_v28  ;;  %10107 = vst [vmem:[#allocation136_spill] sm:$0xff] %v8078_v38 }
  0xf0   :  { %5137 = vmatpush1.bf16.msra.mxu1 %v8059_v59  ;;  %5075 = vmatprep.subr.bf16.mxu0 %v8061_v19  ;;  %v371_v59 = vld [vmem:[#allocation11 + $0x140] sm:$0xff]  ;;  %10111 = vst [vmem:[#allocation140_spill] sm:$0xff] %v8090_v48  ;;  %v450_v19 = vld [vmem:[#allocation11 + $0x3b8] sm:$0xff] }
  0xf1   :  { %5139 = vmatprep.subr.bf16.mxu1 %v8064_v11  ;;  %v375_v11 = vld [vmem:[#allocation11 + $0x160] sm:$0xff] }
  0xf2   :  { %v8080_v36 = vpack.c.bf16 %v375_v11, %v371_v59  ;;  %v379_v59 = vld [vmem:[#allocation11 + $0x180] sm:$0xff] }
  0xf3   :  { %5077 = vmatpush1.bf16.msra.mxu0 %v8070_v7  ;;  %v383_v11 = vld [vmem:[#allocation11 + $0x1a0] sm:$0xff]  ;;  %v446_v7 = vld [vmem:[#allocation11 + $0x398] sm:$0xff] }
  0xf4   :  { %5141 = vmatpush1.bf16.msra.mxu1 %v8072_v52  ;;  %10108 = vst [vmem:[#allocation137_spill] sm:$0xff] %v8080_v36  ;;  %5079 = vmatprep.subr.bf16.mxu0 %v8076_v57  ;;  %v8088_v52 = vpack.c.bf16 %v384_v44, %v380_v1  ;;  %v8092_v5 = vpack.c.bf16 %v383_v11, %v379_v59  ;;  %v392_v1 = vld [vmem:[#allocation11 + $0x1e8] sm:$0xff]  ;;  %v390_v44 = vld [vmem:[#allocation11 + $0x1d8] sm:$0xff]  ;;  %v391_v59 = vld [vmem:[#allocation11 + $0x1e0] sm:$0xff] }
  0xf5   :  { %5143 = vmatprep.subr.bf16.mxu1 %v8078_v38  ;;  %v8095_v38 = vpack.c.bf16 %v385_v15, %v381_v24  ;;  %v8102_v11 = vpack.c.bf16 %v394_v46, %v390_v44  ;;  %v8104_v57 = vpack.c.bf16 %v391_v59, %v387_v58  ;;  %v389_v24 = vld [vmem:[#allocation11 + $0x1d0] sm:$0xff]  ;;  %v402_v44 = vld [vmem:[#allocation11 + $0x238] sm:$0xff]  ;;  %v395_v46 = vld [vmem:[#allocation11 + $0x200] sm:$0xff] }
  0xf6   :  { %10110 = vst [vmem:[#allocation139_spill] sm:$0xff] %v8088_v52  ;;  %10112 = vst [vmem:[#allocation141_spill] sm:$0xff] %v8092_v5  ;;  %v393_v15 = vld [vmem:[#allocation11 + $0x1f0] sm:$0xff]  ;;  %v399_v58 = vld [vmem:[#allocation11 + $0x220] sm:$0xff] }
  0xf7   :  { %5081 = vmatpush1.bf16.msra.mxu0 %v8080_v36  ;;  %10113 = vst [vmem:[#allocation142_spill] sm:$0xff] %v8095_v38  ;;  %10115 = vst [vmem:[#allocation144_spill] sm:$0xff] %v8102_v11 }
  0xf8   :  { %5145 = vmatpush1.bf16.msra.mxu1 %v8083_v29  ;;  %5083 = vmatprep.subr.bf16.mxu0 %v8088_v52  ;;  %v388_v29 = vld [vmem:[#allocation11 + $0x1c8] sm:$0xff]  ;;  %10116 = vst [vmem:[#allocation145_spill] sm:$0xff] %v8104_v57  ;;  %v8116_v52 = vpack.c.bf16 %v399_v58, %v395_v46  ;;  %v407_v46 = vld [vmem:[#allocation11 + $0x260] sm:$0xff] }
  0xf9   :  { %5147 = vmatprep.subr.bf16.mxu1 %v8090_v48  ;;  %v8100_v36 = vpack.c.bf16 %v392_v1, %v388_v29  ;;  %v8107_v48 = vpack.c.bf16 %v393_v15, %v389_v24  ;;  %v400_v29 = vld [vmem:[#allocation11 + $0x228] sm:$0xff]  ;;  %v398_v1 = vld [vmem:[#allocation11 + $0x218] sm:$0xff]  ;;  %v397_v24 = vld [vmem:[#allocation11 + $0x210] sm:$0xff] }
  0xfa   :  { %v8114_v59 = vpack.c.bf16 %v402_v44, %v398_v1  ;;  %10120 = vst [vmem:[#allocation149_spill] sm:$0xff] %v8116_v52  ;;  %v401_v15 = vld [vmem:[#allocation11 + $0x230] sm:$0xff]  ;;  %v410_v1 = vld [vmem:[#allocation11 + $0x278] sm:$0xff]  ;;  %v403_v44 = vld [vmem:[#allocation11 + $0x240] sm:$0xff] }
  0xfb   :  { %5085 = vmatpush1.bf16.msra.mxu0 %v8092_v5  ;;  %10114 = vst [vmem:[#allocation143_spill] sm:$0xff] %v8100_v36  ;;  %10117 = vst [vmem:[#allocation146_spill] sm:$0xff] %v8107_v48 }
  0xfc   :  { %5149 = vmatpush1.bf16.msra.mxu1 %v8095_v38  ;;  %5087 = vmatprep.subr.bf16.mxu0 %v8100_v36  ;;  %v396_v38 = vld [vmem:[#allocation11 + $0x208] sm:$0xff]  ;;  %10119 = vst [vmem:[#allocation148_spill] sm:$0xff] %v8114_v59  ;;  %v8128_v36 = vpack.c.bf16 %v407_v46, %v403_v44  ;;  %v415_v44 = vld [vmem:[#allocation11 + $0x2a0] sm:$0xff] }
  0xfd   :  { %5151 = vmatprep.subr.bf16.mxu1 %v8102_v11  ;;  %v8112_v5 = vpack.c.bf16 %v400_v29, %v396_v38  ;;  %v8119_v11 = vpack.c.bf16 %v401_v15, %v397_v24  ;;  %v408_v38 = vld [vmem:[#allocation11 + $0x268] sm:$0xff]  ;;  %v406_v29 = vld [vmem:[#allocation11 + $0x258] sm:$0xff]  ;;  %v405_v24 = vld [vmem:[#allocation11 + $0x250] sm:$0xff] }
  0xfe   :  { %v8126_v58 = vpack.c.bf16 %v410_v1, %v406_v29  ;;  %10124 = vst [vmem:[#allocation153_spill] sm:$0xff] %v8128_v36  ;;  %v409_v15 = vld [vmem:[#allocation11 + $0x270] sm:$0xff]  ;;  %v418_v29 = vld [vmem:[#allocation11 + $0x2b8] sm:$0xff]  ;;  %v411_v1 = vld [vmem:[#allocation11 + $0x280] sm:$0xff] }
  0xff   :  { %5089 = vmatpush1.bf16.msra.mxu0 %v8104_v57  ;;  %10118 = vst [vmem:[#allocation147_spill] sm:$0xff] %v8112_v5  ;;  %10121 = vst [vmem:[#allocation150_spill] sm:$0xff] %v8119_v11 }
 0x100   :  { %5153 = vmatpush1.bf16.msra.mxu1 %v8107_v48  ;;  %5091 = vmatprep.subr.bf16.mxu0 %v8112_v5  ;;  %v404_v48 = vld [vmem:[#allocation11 + $0x248] sm:$0xff]  ;;  %10123 = vst [vmem:[#allocation152_spill] sm:$0xff] %v8126_v58  ;;  %v8140_v5 = vpack.c.bf16 %v415_v44, %v411_v1  ;;  %v423_v1 = vld [vmem:[#allocation11 + $0x2e0] sm:$0xff] }
 0x101   :  { %5155 = vmatprep.subr.bf16.mxu1 %v8114_v59  ;;  %v8124_v57 = vpack.c.bf16 %v408_v38, %v404_v48  ;;  %v8131_v59 = vpack.c.bf16 %v409_v15, %v405_v24  ;;  %v416_v48 = vld [vmem:[#allocation11 + $0x2a8] sm:$0xff]  ;;  %v414_v38 = vld [vmem:[#allocation11 + $0x298] sm:$0xff]  ;;  %v413_v24 = vld [vmem:[#allocation11 + $0x290] sm:$0xff] }
 0x102   :  { %v8138_v46 = vpack.c.bf16 %v418_v29, %v414_v38  ;;  %10128 = vst [vmem:[#allocation157_spill] sm:$0xff] %v8140_v5  ;;  %v417_v15 = vld [vmem:[#allocation11 + $0x2b0] sm:$0xff]  ;;  %v426_v38 = vld [vmem:[#allocation11 + $0x2f8] sm:$0xff]  ;;  %v419_v29 = vld [vmem:[#allocation11 + $0x2c0] sm:$0xff] }
 0x103   :  { %5093 = vmatpush1.bf16.msra.mxu0 %v8116_v52  ;;  %10122 = vst [vmem:[#allocation151_spill] sm:$0xff] %v8124_v57  ;;  %10125 = vst [vmem:[#allocation154_spill] sm:$0xff] %v8131_v59 }
 0x104   :  { %5157 = vmatpush1.bf16.msra.mxu1 %v8119_v11  ;;  %5095 = vmatprep.subr.bf16.mxu0 %v8124_v57  ;;  %v412_v11 = vld [vmem:[#allocation11 + $0x288] sm:$0xff]  ;;  %10127 = vst [vmem:[#allocation156_spill] sm:$0xff] %v8138_v46  ;;  %v8152_v57 = vpack.c.bf16 %v423_v1, %v419_v29  ;;  %v431_v29 = vld [vmem:[#allocation11 + $0x320] sm:$0xff] }
 0x105   :  { %5159 = vmatprep.subr.bf16.mxu1 %v8126_v58  ;;  %v8136_v52 = vpack.c.bf16 %v416_v48, %v412_v11  ;;  %v8143_v58 = vpack.c.bf16 %v417_v15, %v413_v24  ;;  %v424_v11 = vld [vmem:[#allocation11 + $0x2e8] sm:$0xff]  ;;  %v422_v48 = vld [vmem:[#allocation11 + $0x2d8] sm:$0xff]  ;;  %v421_v24 = vld [vmem:[#allocation11 + $0x2d0] sm:$0xff] }
 0x106   :  { %v8150_v44 = vpack.c.bf16 %v426_v38, %v422_v48  ;;  %10132 = vst [vmem:[#allocation161_spill] sm:$0xff] %v8152_v57  ;;  %v425_v15 = vld [vmem:[#allocation11 + $0x2f0] sm:$0xff]  ;;  %v434_v48 = vld [vmem:[#allocation11 + $0x338] sm:$0xff]  ;;  %v427_v38 = vld [vmem:[#allocation11 + $0x300] sm:$0xff] }
 0x107   :  { %5097 = vmatpush1.bf16.msra.mxu0 %v8128_v36  ;;  %10126 = vst [vmem:[#allocation155_spill] sm:$0xff] %v8136_v52  ;;  %10129 = vst [vmem:[#allocation158_spill] sm:$0xff] %v8143_v58 }
 0x108   :  { %5161 = vmatpush1.bf16.msra.mxu1 %v8131_v59  ;;  %5099 = vmatprep.subr.bf16.mxu0 %v8136_v52  ;;  %v420_v59 = vld [vmem:[#allocation11 + $0x2c8] sm:$0xff]  ;;  %10131 = vst [vmem:[#allocation160_spill] sm:$0xff] %v8150_v44  ;;  %v8164_v52 = vpack.c.bf16 %v431_v29, %v427_v38  ;;  %v439_v38 = vld [vmem:[#allocation11 + $0x360] sm:$0xff] }
 0x109   :  { %5163 = vmatprep.subr.bf16.mxu1 %v8138_v46  ;;  %v8148_v36 = vpack.c.bf16 %v424_v11, %v420_v59  ;;  %v8155_v46 = vpack.c.bf16 %v425_v15, %v421_v24  ;;  %v432_v59 = vld [vmem:[#allocation11 + $0x328] sm:$0xff]  ;;  %v430_v11 = vld [vmem:[#allocation11 + $0x318] sm:$0xff]  ;;  %v429_v24 = vld [vmem:[#allocation11 + $0x310] sm:$0xff] }
 0x10a   :  { %v8162_v1 = vpack.c.bf16 %v434_v48, %v430_v11  ;;  %10136 = vst [vmem:[#allocation165_spill] sm:$0xff] %v8164_v52  ;;  %v433_v15 = vld [vmem:[#allocation11 + $0x330] sm:$0xff]  ;;  %v442_v11 = vld [vmem:[#allocation11 + $0x378] sm:$0xff]  ;;  %v435_v48 = vld [vmem:[#allocation11 + $0x340] sm:$0xff] }
 0x10b   :  { %5101 = vmatpush1.bf16.msra.mxu0 %v8140_v5  ;;  %10130 = vst [vmem:[#allocation159_spill] sm:$0xff] %v8148_v36  ;;  %10133 = vst [vmem:[#allocation162_spill] sm:$0xff] %v8155_v46 }
 0x10c   :  { %5165 = vmatpush1.bf16.msra.mxu1 %v8143_v58  ;;  %5103 = vmatprep.subr.bf16.mxu0 %v8148_v36  ;;  %v428_v58 = vld [vmem:[#allocation11 + $0x308] sm:$0xff]  ;;  %10135 = vst [vmem:[#allocation164_spill] sm:$0xff] %v8162_v1  ;;  %v8176_v36 = vpack.c.bf16 %v439_v38, %v435_v48  ;;  %v445_v48 = vld [vmem:[#allocation11 + $0x390] sm:$0xff] }
 0x10d   :  { %5167 = vmatprep.subr.bf16.mxu1 %v8150_v44  ;;  %v8160_v5 = vpack.c.bf16 %v432_v59, %v428_v58  ;;  %v8167_v44 = vpack.c.bf16 %v433_v15, %v429_v24  ;;  %v440_v58 = vld [vmem:[#allocation11 + $0x368] sm:$0xff]  ;;  %v438_v59 = vld [vmem:[#allocation11 + $0x358] sm:$0xff]  ;;  %v437_v24 = vld [vmem:[#allocation11 + $0x350] sm:$0xff] }
 0x10e   :  { %v8174_v29 = vpack.c.bf16 %v442_v11, %v438_v59  ;;  %10140 = vst [vmem:[#allocation169_spill] sm:$0xff] %v8176_v36  ;;  %v441_v15 = vld [vmem:[#allocation11 + $0x370] sm:$0xff]  ;;  %v443_v59 = vld [vmem:[#allocation11 + $0x380] sm:$0xff] }
 0x10f   :  { %5105 = vmatpush1.bf16.msra.mxu0 %v8152_v57  ;;  %10134 = vst [vmem:[#allocation163_spill] sm:$0xff] %v8160_v5  ;;  %10137 = vst [vmem:[#allocation166_spill] sm:$0xff] %v8167_v44  ;;  %v447_v11 = vld [vmem:[#allocation11 + $0x3a0] sm:$0xff] }
 0x110   :  { %5169 = vmatpush1.bf16.msra.mxu1 %v8155_v46  ;;  %5107 = vmatprep.subr.bf16.mxu0 %v8160_v5  ;;  %v436_v46 = vld [vmem:[#allocation11 + $0x348] sm:$0xff]  ;;  %10139 = vst [vmem:[#allocation168_spill] sm:$0xff] %v8174_v29  ;;  %v8188_v38 = vpack.c.bf16 %v447_v11, %v443_v59  ;;  %v457_v59 = vld [vmem:[#allocation11 + $0x3f0] sm:$0xff] }
 0x111   :  { %5171 = vmatprep.subr.bf16.mxu1 %v8162_v1  ;;  %v8172_v57 = vpack.c.bf16 %v440_v58, %v436_v46  ;;  %v444_v5 = vld [vmem:[#allocation11 + $0x388] sm:$0xff]  ;;  %v8179_v1 = vpack.c.bf16 %v441_v15, %v437_v24  ;;  %v8185_v58 = vpack.c.bf16 %v450_v19, %v446_v7  ;;  %v449_v24 = vld [vmem:[#allocation11 + $0x3b0] sm:$0xff]  ;;  %v454_v19 = vld [vmem:[#allocation11 + $0x3d8] sm:$0xff] }
 0x112   :  { %10144 = vst [vmem:[#allocation173_spill] sm:$0xff] %v8188_v38  ;;  %v452_v15 = vld [vmem:[#allocation11 + $0x3c8] sm:$0xff]  ;;  %v458_v7 = vld [vmem:[#allocation11 + $0x3f8] sm:$0xff] }
 0x113   :  { %5109 = vmatpush1.bf16.msra.mxu0 %v8164_v52  ;;  %10138 = vst [vmem:[#allocation167_spill] sm:$0xff] %v8172_v57  ;;  %10141 = vst [vmem:[#allocation170_spill] sm:$0xff] %v8179_v1  ;;  %v448_v52 = vld [vmem:[#allocation11 + $0x3a8] sm:$0xff] }
 0x114   :  { %5173 = vmatpush1.bf16.msra.mxu1 %v8167_v44  ;;  %5111 = vmatprep.subr.bf16.mxu0 %v8172_v57  ;;  %v8183_v46 = vpack.c.bf16 %v448_v52, %v444_v5  ;;  %10143 = vst [vmem:[#allocation172_spill] sm:$0xff] %v8185_v58  ;;  %v456_v44 = vld [vmem:[#allocation11 + $0x3e8] sm:$0xff]  ;;  %v451_v52 = vld [vmem:[#allocation11 + $0x3c0] sm:$0xff] }
 0x115   :  { %5175 = vmatprep.subr.bf16.mxu1 %v8174_v29  ;;  %v8192_v29 = vpack.c.bf16 %v449_v24, %v445_v48  ;;  %v8194_v5 = vpack.c.bf16 %v456_v44, %v452_v15  ;;  %v455_v57 = vld [vmem:[#allocation11 + $0x3e0] sm:$0xff]  ;;  %v9805_v44 = vlaneseq }
 0x116   :  { %10142 = vst [vmem:[#allocation171_spill] sm:$0xff] %v8183_v46  ;;  %v8199_v11 = vpack.c.bf16 %v455_v57, %v451_v52 }
 0x117   :  { %5113 = vmatpush1.bf16.msra.mxu0 %v8176_v36  ;;  %10145 = vst [vmem:[#allocation174_spill] sm:$0xff] %v8192_v29  ;;  %10146 = vst [vmem:[#allocation175_spill] sm:$0xff] %v8194_v5  ;;  %v8196_v36 = vpack.c.bf16 %v458_v7, %v454_v19  ;;  %v8210_v24 = vshrl.u32 %v9805_v44, 7 }
 0x118   :  { %5177 = vmatpush1.bf16.msra.mxu1 %v8179_v1  ;;  %5115 = vmatprep.subr.bf16.mxu0 %v8183_v46  ;;  %v453_v1 = vld [vmem:[#allocation11 + $0x3d0] sm:$0xff]  ;;  %10148 = vst [vmem:[#allocation177_spill] sm:$0xff] %v8199_v11 }
 0x119   :  { %5179 = vmatprep.subr.bf16.mxu1 %v8185_v58  ;;  %10147 = vst [vmem:[#allocation176_spill] sm:$0xff] %v8196_v36  ;;  %v8203_v48 = vpack.c.bf16 %v457_v59, %v453_v1  ;;  %v8213_v57 = vsub.s32 0, %v8210_v24  ;;  %v330_v1 = vld [vmem:[%s9584_s7] sm:$0xf]  ;;  %v8219_v15 = vsub.s32 1, %v8210_v24  ;;  %v9828_v59 = vsub.s32 3, %v8210_v24 }
 0x11b   :  { %5117 = vmatpush1.bf16.msra.mxu0 %v8188_v38  ;;  %10149 = vst [vmem:[#allocation178_spill] sm:$0xff] %v8203_v48  ;;  %10150 = vst [vmem:[#allocation179_spill] sm:$0xff] %v8213_v57  ;;  %v8222_v19 = vrot.slane %v330_v1, %v8213_v57  ;;  %v8225_v7 = vrot.slane %v330_v1, %v8219_v15  ;;  %v526_v38 = vsub.s32 2, %v8210_v24 }
 0x11c   :  { %5181 = vmatpush1.bf16.msra.mxu1 %v8192_v29  ;;  %5119 = vmatprep.subr.bf16.mxu0 %v8194_v5  ;;  %10151 = vst [vmem:[#allocation180_spill] sm:$0xff] %v8219_v15  ;;  %v8232_v5 = vrot.slane %v330_v1, %v9828_v59 }
 0x11d   :  { %5183 = vmatprep.subr.bf16.mxu1 %v8196_v36  ;;  %10152 = vst [vmem:[#allocation181_spill] sm:$0xff] %v8222_v19  ;;  %10153 = vst [vmem:[#allocation182_spill] sm:$0xff] %v8225_v7 }
 0x11e   :  { %10154 = vst [vmem:[#allocation183_spill] sm:$0xff] %v8232_v5 }
 0x11f   :  { %5121 = vmatpush1.bf16.msra.mxu0 %v8199_v11 }
 0x120   :  { %5185 = vmatpush1.bf16.msra.mxu1 %v8203_v48 }
 0x121   :  { %5219 = vmatprep.subr.bf16.mxu1 %v7722_v4 }
 0x1b5   :  { %v673_v52 = vpop.f32.mrb[0].mxu0 }
 0x1b6   :  { %v7002_v44 = vadd.f32 %v673_v52, %v8222_v19  ;;  %v815_v4 = vpop.f32.mrb[0].mxu1  ;;  %v675_v48 = vpop.f32.mrb[1].mxu0  ;;  %v8238_v52 = vrot.slane %v330_v1, %v526_v38 }
 0x1b7   :  { %v7003_v36 = vadd.f32 %v675_v48, %v8225_v7  ;;  %v817_v29 = vpop.f32.mrb[1].mxu1 }
 0x1b8   :  { %v4562_v58 = vmul.f32 -1.442695, %v7002_v44  ;;  %v7005_v46 = vadd.f32 %v817_v29, %v8232_v5  ;;  %v7004_v48 = vadd.f32 %v815_v4, %v8238_v52 }
 0x1b9   :  { %v4563_v11 = vmul.f32 -1.442695, %v7003_v36 }
 0x1ba   :  { %7071 = vpow2.f32 %v4562_v58  ;;  %v4564_v19 = vmul.f32 -1.442695, %v7005_v46 }
 0x1bb   :  { %7073 = vpow2.f32 %v4563_v11 }
 0x1bc   :  { %7075 = vpow2.f32 %v4564_v19 }
 0x1bd   :  { %7077 = vtanh.f32 %v7004_v48 }
 0x1c4   :  { %v7072_v7 = vpop.eup %7071 }
 0x1c5   :  { %v7074_v44 = vpop.eup %7073  ;;  %v823_v36 = vadd.f32 1.0, %v7072_v7 }
 0x1c6   :  { %v829_v59 = vadd.f32 1.0, %v7074_v44  ;;  %v7076_v58 = vpop.eup %7075 }
 0x1c7   :  { %7079 = vrcp.f32 %v823_v36  ;;  %v7078_v28 = vpop.eup %7077  ;;  %v836_v5 = vadd.f32 1.0, %v7076_v58 }
 0x1c8   :  { %7081 = vrcp.f32 %v829_v59 }
 0x1c9   :  { %7083 = vrcp.f32 %v836_v5 }
 0x1d1   :  { %v7080_v11 = vpop.eup %7079 }
 0x1d2   :  { %v7082_v54 = vpop.eup %7081  ;;  %v840_v29 = vmul.f32 %v7080_v11, %v7078_v28  ;;  %v459_v28 = vld [vmem:[%s9586_s9] sm:$0xf] }
 0x1d3   :  { %v839_v39 = vmul.f32 0.0, %v7082_v54  ;;  %v7084_v4 = vpop.eup %7083  ;;  %v8287_v54 = vrot.slane %v459_v28, %v8219_v15 }
 0x1d5   :  { %v8241_v1 = vadd.f32 %v840_v29, %v839_v39  ;;  %v8284_v39 = vrot.slane %v459_v28, %v8213_v57  ;;  %10156 = vst [vmem:[#allocation185_spill] sm:$0xff] %v8287_v54  ;;  %v10157_v29 = vsub.s32 3, %v8210_v24 }
 0x1d7   :  { %7085 = vtanh.f32 %v8241_v1  ;;  %10155 = vst [vmem:[#allocation184_spill] sm:$0xff] %v8284_v39 }
 0x1e1   :  { %v7086_v46 = vpop.eup %7085 }
 0x1e2   :  { %v8244_v7 = vmul.f32 %v7086_v46, %v7084_v4  ;;  %v8293_v4 = vrot.slane %v459_v28, %v10157_v29 }
 0x1e4   :  { %930 = vmatmul.mubr.f32.vlgmr.msra.gmra.mrb[2].mxu0 %v8244_v7  ;;  %1001 = vmatmul.mubr.f32.vlgmr.msra.gmra.mrb[2].mxu1 %v8244_v7  ;;  %10158 = vst [vmem:[#allocation186_spill] sm:$0xff] %v8293_v4 }
 0x1e5   :  { %5221 = vmatpush1.bf16.msra.mxu1 %v7726_v9 }
 0x1e6   :  { %5223 = vmatprep.subr.bf16.mxu1 %v7733_v17 }
 0x1e9   :  { %5225 = vmatpush1.bf16.msra.mxu1 %v7738_v22 }
 0x1ea   :  { %5227 = vmatprep.subr.bf16.mxu1 %v7744_v27 }
 0x1ed   :  { %5229 = vmatpush1.bf16.msra.mxu1 %v7749_v35 }
 0x1ee   :  { %5231 = vmatprep.subr.bf16.mxu1 %v7755_v40 }
 0x1f1   :  { %5233 = vmatpush1.bf16.msra.mxu1 %v7761_v51 }
 0x1f2   :  { %5235 = vmatprep.subr.bf16.mxu1 %v7767_v53 }
 0x1f5   :  { %5237 = vmatpush1.bf16.msra.mxu1 %v7773_v63 }
 0x1f6   :  { %5239 = vmatprep.subr.bf16.mxu1 %v7779_v2 }
 0x1f9   :  { %5241 = vmatpush1.bf16.msra.mxu1 %v7785_v16 }
 0x1fa   :  { %5243 = vmatprep.subr.bf16.mxu1 %v7791_v20 }
 0x1fd   :  { %5245 = vmatpush1.bf16.msra.mxu1 %v7797_v34 }
 0x1fe   :  { %5247 = vmatprep.subr.bf16.mxu1 %v7803_v37 }
 0x201   :  { %5249 = vmatpush1.bf16.msra.mxu1 %v7809_v50 }
 0x202   :  { %5251 = vmatprep.subr.bf16.mxu1 %v7815_v55  ;;  %v8402_v55 = vld [vmem:[%s9581_s4] sm:$0x3] }
 0x205   :  { %5253 = vmatpush1.bf16.msra.mxu1 %v7821_v10 }
 0x206   :  { %5255 = vmatprep.subr.bf16.mxu1 %v7827_v12 }
 0x209   :  { %5257 = vmatpush1.bf16.msra.mxu1 %v7833_v33 }
 0x20a   :  { %5259 = vmatprep.subr.bf16.mxu1 %v7839_v41 }
 0x20d   :  { %5261 = vmatpush1.bf16.msra.mxu1 %v7845_v61 }
 0x20e   :  { %5263 = vmatprep.subr.bf16.mxu1 %v7851_v3  ;;  %v475_v3 = vld [vmem:[#allocation13 + $0x78] sm:$0xff] }
 0x211   :  { %5265 = vmatpush1.bf16.msra.mxu1 %v7857_v32  ;;  %v474_v32 = vld [vmem:[#allocation13 + $0x70] sm:$0xff] }
 0x212   :  { %5267 = vmatprep.subr.bf16.mxu1 %v7863_v45 }
 0x215   :  { %5269 = vmatpush1.bf16.msra.mxu1 %v7869_v62 }
 0x216   :  { %5271 = vmatprep.subr.bf16.mxu1 %v7875_v21 }
 0x219   :  { %5273 = vmatpush1.bf16.msra.mxu1 %v7881_v42  ;;  %v471_v42 = vld [vmem:[#allocation13 + $0x58] sm:$0xff] }
 0x21a   :  { %5275 = vmatprep.subr.bf16.mxu1 %v7887_v49  ;;  %v487_v49 = vld [vmem:[#allocation13 + $0xd8] sm:$0xff] }
 0x21d   :  { %5277 = vmatpush1.bf16.msra.mxu1 %v7893_v14  ;;  %v486_v14 = vld [vmem:[#allocation13 + $0xd0] sm:$0xff] }
 0x21e   :  { %5279 = vmatprep.subr.bf16.mxu1 %v7899_v47 }
 0x221   :  { %5281 = vmatpush1.bf16.msra.mxu1 %v7905_v0 }
 0x222   :  { %5283 = vmatprep.subr.bf16.mxu1 %v7911_v23  ;;  %v8298_v23 = vrot.slane %v459_v28, %v526_v38  ;;  %v7518_v28 = vmov 1966171168  }
 0x224   :  { %10159 = vst [vmem:[#allocation187_spill] sm:$0xff] %v8298_v23 }
 0x2b7   :  { %v931_v5 = vpop.f32.mrb[2].mxu0  ;;  %v1002_v19 = vpop.f32.mrb[2].mxu1 }
 0x2b8   :  { %v932_v59 = vadd.f32 %v931_v5, %v8284_v39  ;;  %v933_v48 = vpop.f32.mrb[3].mxu0  ;;  %v1004_v44 = vpop.f32.mrb[3].mxu1  ;;  %v1003_v5 = vadd.f32 %v1002_v19, %v8298_v23  ;;  %v1033_v19 = vunpack.c.l.s4 %v7518_v28  ;;  %v467_v23 = vld [vmem:[#allocation13 + $0x38] sm:$0xff] }
 0x2b9   :  { %v934_v36 = vadd.f32 %v933_v48, %v8287_v54  ;;  %v1005_v46 = vadd.f32 %v1004_v44, %v8293_v4 }
 0x2ba   :  { %v4565_v58 = vmul.f32 -1.442695, %v932_v59 }
 0x2bb   :  { %v4566_v11 = vmul.f32 -1.442695, %v934_v36  ;;  %v4567_v0 = vmul.f32 -1.442695, %v1005_v46 }
 0x2bc   :  { %7087 = vpow2.f32 %v4565_v58 }
 0x2bd   :  { %7089 = vpow2.f32 %v4566_v11 }
 0x2be   :  { %7091 = vpow2.f32 %v4567_v0 }
 0x2bf   :  { %7093 = vtanh.f32 %v1003_v5 }
 0x2c6   :  { %v7088_v39 = vpop.eup %7087 }
 0x2c7   :  { %v7090_v47 = vpop.eup %7089  ;;  %v1010_v48 = vadd.f32 1.0, %v7088_v39  ;;  %v1034_v39 = vunpack.c.0.s8 %v1033_v19  ;;  %v10164_v19 = vlaneseq }
 0x2c8   :  { %v1016_v59 = vadd.f32 1.0, %v7090_v47  ;;  %v7092_v36 = vpop.eup %7091 }
 0x2c9   :  { %7095 = vrcp.f32 %v1010_v48  ;;  %v7094_v58 = vpop.eup %7093  ;;  %v1023_v4 = vadd.f32 1.0, %v7092_v36  ;;  %v8305_v47 = vsub.s32 %v1034_v39, %v8210_v24  ;;  %v8312_v36 = vld [vmem:[#allocation2] sm:$0xff]  ;;  %v8322_v39 = vand.u32 127, %v10164_v19 }
 0x2ca   :  { %7097 = vrcp.f32 %v1016_v59  ;;  %10162 = vst [vmem:[#allocation190_spill] sm:$0xff] %v8312_v36 }
 0x2cb   :  { %7099 = vrcp.f32 %v1023_v4  ;;  %10161 = vst [vmem:[#allocation189_spill] sm:$0xff] %v8305_v47  ;;  %10165 = vst [vmem:[#allocation192_spill] sm:$0xff] %v8322_v39 }
 0x2d3   :  { %v7096_v11 = vpop.eup %7095 }
 0x2d4   :  { %v7098_v29 = vpop.eup %7097  ;;  %v1027_v44 = vmul.f32 %v7096_v11, %v7094_v58 }
 0x2d5   :  { %v1026_v54 = vmul.f32 0.0, %v7098_v29  ;;  %v7100_v0 = vpop.eup %7099 }
 0x2d7   :  { %v8301_v38 = vadd.f32 %v1027_v44, %v1026_v54  ;;  %v8318_v44 = vld [vmem:[#allocation2 + $0x8] sm:$0xff] }
 0x2d8   :  { %10163 = vst [vmem:[#allocation191_spill] sm:$0xff] %v8318_v44 }
 0x2d9   :  { %10160 = vst [vmem:[#allocation188_spill] sm:$0xff] %v8301_v38  ;;  %7101 = vtanh.f32 %v8301_v38  ;;  %v466_v38 = vld [vmem:[#allocation13 + $0x30] sm:$0xff] }
 0x2e3   :  { %v7102_v46 = vpop.eup %7101 }
 0x2e4   :  { %v8307_v5 = vmul.f32 %v7102_v46, %v7100_v0  ;;  %v8326_v46 = vsub.s32 %v8322_v39, %v8210_v24 }
 0x2e6   :  { %v1038_v48 = vrot.slane %v8307_v5, %v8305_v47  ;;  %10166 = vst [vmem:[#allocation193_spill] sm:$0xff] %v8326_v46 }
 0x2e8   :  { %v1046_v59 = vrot.slane %v1038_v48, %v8305_v47  ;;  %v1039_v54 = vcombine.high %v1038_v48, %v1038_v48  ;;  %v8331_v48 = vld [vmem:[%s9579_s2] sm:$0x3] }
 0x2e9   :  { %10167 = vst [vmem:[#allocation194_spill] sm:$0xff] %v8331_v48  ;;  %vm1070_vm1 = vcmp.gt.f32.partialorder %v8331_v48, 0.5  ;;  %v479_v48 = vld [vmem:[#allocation13 + $0x98] sm:$0xff] }
 0x2ea   :  { %v1057_v4 = vrot.slane %v1046_v59, %v8213_v57  ;;  %v1053_v58 = vrot.slane %v1039_v54, %v8305_v47 }
 0x2ec   :  { %v1064_v11 = vmul.f32 %v1057_v4, %v8312_v36  ;;  %v1061_v29 = vrot.slane %v1053_v58, %v8213_v57 }
 0x2ee   :  { %1066 = vadd.xlane.f32.xlu0 %v1064_v11  ;;  %v1065_v28 = vmul.f32 %v1061_v29, %v8318_v44  ;;  %v460_v44 = vld [vmem:[#allocation13] sm:$0xff] }
 0x2f2   :  { %1068 = vadd.xlane.f32.xlu0 %v1065_v28 }
 0x37b   :  { %v1067_v0 = vpop.xlane.xlu0 %1066 }
 0x37c   :  { %v1078_v54 = vrot.slane %v1067_v0, %v8326_v46 }
 0x37f   :  { %v1069_v59 = vpop.xlane.xlu0 %1068 }
 0x380   :  { %v1082_v4 = vrot.slane %v1069_v59, %v8326_v46  ;;  %v476_v59 = vld [vmem:[#allocation13 + $0x80] sm:$0xff]  ;;  %v477_v46 = vld [vmem:[#allocation13 + $0x88] sm:$0xff] }
 0x381   :  { %v8341_v36 = vpack.c.bf16 %v477_v46, %v476_v59  ;;  %v465_v59 = vld [vmem:[#allocation13 + $0x28] sm:$0xff] }
 0x382   :  { %v1084_v58 = vsel %vm1083_vm0, %v1082_v4, %v1078_v54  ;;  %v461_v54 = vld [vmem:[#allocation13 + $0x8] sm:$0xff]  ;;  %v478_v4 = vld [vmem:[#allocation13 + $0x90] sm:$0xff] }
 0x383   :  { %v1086_v24 = vsel %vm1070_vm1, %v1084_v58, -1e+09  ;;  %10168 = vst [vmem:[#allocation195_spill] sm:$0xff] %v8341_v36  ;;  %v8343_v58 = vpack.c.bf16 %v461_v54, %v460_v44  ;;  %v8345_v47 = vpack.c.bf16 %v479_v48, %v478_v4  ;;  %5187 = vmatprep.subr.bf16.mxu0 %v8341_v36  ;;  %v482_v44 = vld [vmem:[#allocation13 + $0xb0] sm:$0xff]  ;;  %v483_v54 = vld [vmem:[#allocation13 + $0xb8] sm:$0xff] }
 0x384   :  { %v1088_v11 = vsel %vm1087_vm2, %v1086_v24, -inf  ;;  %v8358_v4 = vpack.c.bf16 %v483_v54, %v482_v44  ;;  %v469_v44 = vld [vmem:[#allocation13 + $0x48] sm:$0xff] }
 0x385   :  { %1089 = vmax.xlane.f32.xlu1 %v1088_v11  ;;  %v462_v11 = vld [vmem:[#allocation13 + $0x10] sm:$0xff]  ;;  %5189 = vmatpush3.bf16.msra.mxu0 %v8343_v58 }
 0x386   :  { %5191 = vmatprep.subr.bf16.mxu0 %v8345_v47 }
 0x412   :  { %v1090_v29 = vpop.xlane.xlu1 %1089 }
 0x413   :  { %v1091_v28 = vsub.f32 %v1086_v24, %v1090_v29  ;;  %v463_v24 = vld [vmem:[#allocation13 + $0x18] sm:$0xff]  ;;  %v480_v29 = vld [vmem:[#allocation13 + $0xa0] sm:$0xff] }
 0x415   :  { %v1092_v19 = vmul.f32 1.442695, %v1091_v28  ;;  %v481_v28 = vld [vmem:[#allocation13 + $0xa8] sm:$0xff] }
 0x416   :  { %v8352_v46 = vpack.c.bf16 %v481_v28, %v480_v29  ;;  %v8361_v29 = vpack.c.bf16 %v467_v23, %v466_v38  ;;  %v8371_v23 = vpack.c.bf16 %v487_v49, %v486_v14  ;;  %v470_v38 = vld [vmem:[#allocation13 + $0x50] sm:$0xff]  ;;  %v491_v49 = vld [vmem:[#allocation13 + $0xf8] sm:$0xff] }
 0x417   :  { %7103 = vpow2.f32 %v1092_v19  ;;  %v8349_v19 = vpack.c.bf16 %v463_v24, %v462_v11  ;;  %v484_v11 = vld [vmem:[#allocation13 + $0xc0] sm:$0xff]  ;;  %v485_v24 = vld [vmem:[#allocation13 + $0xc8] sm:$0xff] }
 0x418   :  { %10169 = vst [vmem:[#allocation196_spill] sm:$0xff] %v8361_v29  ;;  %v8364_v28 = vpack.c.bf16 %v485_v24, %v484_v11  ;;  %10172 = vst [vmem:[#allocation199_spill] sm:$0xff] %v8371_v23  ;;  %v8373_v11 = vpack.c.bf16 %v471_v42, %v470_v38  ;;  %v488_v24 = vld [vmem:[#allocation13 + $0xe0] sm:$0xff]  ;;  %v490_v42 = vld [vmem:[#allocation13 + $0xf0] sm:$0xff] }
 0x419   :  { %5193 = vmatpush3.bf16.msra.mxu0 %v8349_v19  ;;  %v8383_v38 = vpack.c.bf16 %v491_v49, %v490_v42 }
 0x41a   :  { %5195 = vmatprep.subr.bf16.mxu0 %v8352_v46  ;;  %10170 = vst [vmem:[#allocation197_spill] sm:$0xff] %v8364_v28  ;;  %10173 = vst [vmem:[#allocation200_spill] sm:$0xff] %v8373_v11 }
 0x41b   :  { %10176 = vst [vmem:[#allocation203_spill] sm:$0xff] %v8383_v38 }
 0x421   :  { %v7104_v39 = vpop.eup %7103 }
 0x422   :  { %v1094_v0 = vsel %vm1087_vm2, %v7104_v39, 0.0 }
 0x423   :  { %1095 = vadd.xlane.f32.xlu1 %v1094_v0  ;;  %v464_v0 = vld [vmem:[#allocation13 + $0x20] sm:$0xff] }
 0x424   :  { %v8355_v48 = vpack.c.bf16 %v465_v59, %v464_v0  ;;  %v468_v59 = vld [vmem:[#allocation13 + $0x40] sm:$0xff] }
 0x425   :  { %v8368_v54 = vpack.c.bf16 %v469_v44, %v468_v59  ;;  %v472_v59 = vld [vmem:[#allocation13 + $0x60] sm:$0xff]  ;;  %v473_v44 = vld [vmem:[#allocation13 + $0x68] sm:$0xff] }
 0x426   :  { %5197 = vmatpush3.bf16.msra.mxu0 %v8355_v48  ;;  %v8379_v62 = vpack.c.bf16 %v473_v44, %v472_v59  ;;  %v8388_v59 = vpack.c.bf16 %v475_v3, %v474_v32 }
 0x427   :  { %5199 = vmatprep.subr.bf16.mxu0 %v8358_v4  ;;  %10171 = vst [vmem:[#allocation198_spill] sm:$0xff] %v8368_v54 }
 0x428   :  { %10175 = vst [vmem:[#allocation202_spill] sm:$0xff] %v8379_v62  ;;  %10177 = vst [vmem:[#allocation204_spill] sm:$0xff] %v8388_v59 }
 0x42a   :  { %5201 = vmatpush3.bf16.msra.mxu0 %v8361_v29 }
 0x42b   :  { %5203 = vmatprep.subr.bf16.mxu0 %v8364_v28 }
 0x42e   :  { %5205 = vmatpush3.bf16.msra.mxu0 %v8368_v54 }
 0x42f   :  { %5207 = vmatprep.subr.bf16.mxu0 %v8371_v23 }
 0x432   :  { %5209 = vmatpush3.bf16.msra.mxu0 %v8373_v11 }
 0x4b0   :  { %v1096_v0 = vpop.xlane.xlu1 %1095 }
 0x4b1   :  { %7105 = vrcp.f32 %v1096_v0  ;;  %v489_v0 = vld [vmem:[#allocation13 + $0xe8] sm:$0xff] }
 0x4b2   :  { %v8377_v21 = vpack.c.bf16 %v489_v0, %v488_v24 }
 0x4b4   :  { %10174 = vst [vmem:[#allocation201_spill] sm:$0xff] %v8377_v21  ;;  %5211 = vmatprep.subr.bf16.mxu0 %v8377_v21 }
 0x4b5   :  { %5213 = vmatpush3.bf16.msra.mxu0 %v8379_v62 }
 0x4b6   :  { %5215 = vmatprep.subr.bf16.mxu0 %v8383_v38 }
 0x4b9   :  { %5217 = vmatpush3.bf16.msra.mxu0 %v8388_v59 }
 0x4ba   :  { %5315 = vmatprep.subr.bf16.mxu0 %v7724_v8 }
 0x4bb   :  { %v7106_v45 = vpop.eup %7105 }
 0x4bc   :  { %v1098_v14 = vmul.f32 %v7106_v45, %v7104_v39  ;;  %v8393_v45 = vld [vmem:[#allocation5 + $0x8] sm:$0xff]  ;;  %v8395_v39 = vld [vmem:[#allocation5] sm:$0xff] }
 0x4be   :  { %v1109_v24 = vrot.slane %v1098_v14, %v8219_v15  ;;  %1209 = vst.msk [vmem:[#allocation15] sm:$0x1] %vm1208_vm3, %v1098_v14  ;;  %v1102_v0 = vrot.slane %v1098_v14, %v8213_v57 }
 0x4c0   :  { %1111 = vbcast.lane.b32.xlu1 %v1109_v24, 256  ;;  %1104 = vbcast.lane.b32.xlu0 %v1102_v0, 256 }
 0x532   :  { %v1112_v44 = vpop.permute.xlu1 %1111  ;;  %v1105_v42 = vpop.permute.xlu0 %1104 }
 0x533   :  { %v1114_v49 = vmul.f32 %v1112_v44, %v8393_v45  ;;  %v1113_v14 = vmul.f32 %v1105_v42, %v8395_v39  ;;  %v10186_v42 = vld [vmem:[#allocation101_spill] sm:$0xff] }
 0x535   :  { %v1121_v3 = vrot.slane %v1114_v49, 4  ;;  %v1115_v32 = vrot.slane %v1113_v14, 4 }
 0x537   :  { %v1122_v15 = vadd.f32 %v1121_v3, %v1114_v49  ;;  %v1116_v57 = vadd.f32 %v1115_v32, %v1113_v14  ;;  %v10187_v49 = vld [vmem:[#allocation38_spill] sm:$0xff]  ;;  %v10188_v14 = vld [vmem:[#allocation103_spill] sm:$0xff]  ;;  %v10189_v3 = vld [vmem:[#allocation40_spill] sm:$0xff] }
 0x538   :  { %v10190_v32 = vld [vmem:[#allocation105_spill] sm:$0xff] }
 0x539   :  { %v1123_v24 = vrot.slane %v1122_v15, 2  ;;  %v1117_v0 = vrot.slane %v1116_v57, 2 }
 0x53b   :  { %v1124_v61 = vadd.f32 %v1123_v24, %v1122_v15  ;;  %v1118_v41 = vadd.f32 %v1117_v0, %v1116_v57  ;;  %v10184_v57 = vld [vmem:[#allocation99_spill] sm:$0xff]  ;;  %v10185_v15 = vld [vmem:[#allocation36_spill] sm:$0xff]  ;;  %v10191_v24 = vld [vmem:[#allocation42_spill] sm:$0xff] }
 0x53c   :  { %v10192_v0 = vld [vmem:[#allocation107_spill] sm:$0xff] }
 0x53d   :  { %v1125_v33 = vrot.slane %v1124_v61, 1  ;;  %v1119_v12 = vrot.slane %v1118_v41, 1 }
 0x53f   :  { %v1120_v10 = vadd.f32 %v1119_v12, %v1118_v41  ;;  %v1126_v8 = vadd.f32 %v1125_v33, %v1124_v61  ;;  %v10180_v12 = vld [vmem:[#allocation95_spill] sm:$0xff]  ;;  %v10181_v33 = vld [vmem:[#allocation32_spill] sm:$0xff]  ;;  %v10182_v41 = vld [vmem:[#allocation97_spill] sm:$0xff] }
 0x540   :  { %v10183_v61 = vld [vmem:[#allocation34_spill] sm:$0xff] }
 0x541   :  { %v1129_v44 = vsel %vm1083_vm0, %v1126_v8, %v1120_v10  ;;  %v10178_v8 = vld [vmem:[#allocation93_spill] sm:$0xff]  ;;  %v10179_v10 = vld [vmem:[#allocation30_spill] sm:$0xff] }
 0x542   :  { %1201 = vmatprep.mubr.f32.mxu0 %v1129_v44  ;;  %1275 = vmatprep.mubr.f32.mxu1 %v1129_v44 }
 0x543   :  { %1202 = vmatmul.mubr.f32.vlgmr.msra.gmra.mrb[4].mxu0 %v8307_v5  ;;  %1276 = vmatmul.mubr.f32.vlgmr.msra.gmra.mrb[4].mxu1 %v8402_v55 }
 0x544   :  { %5285 = vmatpush1.bf16.msra.mxu1 %v7917_v25  ;;  %5317 = vmatpush1.bf16.msra.mxu0 %v7729_v13 }
 0x545   :  { %1417 = vmatprep.mubr.f32.mxu0 %v1129_v44  ;;  %5287 = vmatprep.subr.bf16.mxu1 %v7923_v60  ;;  %v10193_v44 = vld [vmem:[#allocation44_spill] sm:$0xff] }
 0x546   :  { %5319 = vmatprep.subr.bf16.mxu0 %v7735_v18  ;;  %1346 = vmatprep.mubr.f32.mxu1 %v10063_v30 }
 0x548   :  { %5289 = vmatpush1.bf16.msra.mxu1 %v7929_v6  ;;  %5321 = vmatpush1.bf16.msra.mxu0 %v7742_v26 }
 0x549   :  { %5291 = vmatprep.subr.bf16.mxu1 %v7935_v43  ;;  %5323 = vmatprep.subr.bf16.mxu0 %v7746_v31 }
 0x54c   :  { %5293 = vmatpush1.bf16.msra.mxu1 %v10178_v8  ;;  %5325 = vmatpush1.bf16.msra.mxu0 %v10179_v10 }
 0x54d   :  { %5295 = vmatprep.subr.bf16.mxu1 %v10180_v12  ;;  %5327 = vmatprep.subr.bf16.mxu0 %v10181_v33 }
 0x550   :  { %5297 = vmatpush1.bf16.msra.mxu1 %v10182_v41  ;;  %5329 = vmatpush1.bf16.msra.mxu0 %v10183_v61  ;;  %v10194_v61 = vld [vmem:[#allocation109_spill] sm:$0xff] }
 0x551   :  { %5299 = vmatprep.subr.bf16.mxu1 %v10184_v57  ;;  %5331 = vmatprep.subr.bf16.mxu0 %v10185_v15  ;;  %v10195_v57 = vld [vmem:[#allocation46_spill] sm:$0xff]  ;;  %v10196_v15 = vld [vmem:[#allocation111_spill] sm:$0xff] }
 0x554   :  { %5301 = vmatpush1.bf16.msra.mxu1 %v10186_v42  ;;  %5333 = vmatpush1.bf16.msra.mxu0 %v10187_v49  ;;  %v10197_v42 = vld [vmem:[#allocation48_spill] sm:$0xff]  ;;  %v10198_v49 = vld [vmem:[#allocation113_spill] sm:$0xff] }
 0x555   :  { %5303 = vmatprep.subr.bf16.mxu1 %v10188_v14  ;;  %5335 = vmatprep.subr.bf16.mxu0 %v10189_v3  ;;  %v10199_v14 = vld [vmem:[#allocation50_spill] sm:$0xff]  ;;  %v10200_v3 = vld [vmem:[#allocation52_spill] sm:$0xff] }
 0x558   :  { %5305 = vmatpush1.bf16.msra.mxu1 %v10190_v32  ;;  %5337 = vmatpush1.bf16.msra.mxu0 %v10191_v24  ;;  %v10201_v32 = vld [vmem:[#allocation115_spill] sm:$0xff] }
 0x559   :  { %5307 = vmatprep.subr.bf16.mxu1 %v10192_v0  ;;  %5339 = vmatprep.subr.bf16.mxu0 %v10193_v44  ;;  %v10202_v0 = vld [vmem:[#allocation54_spill] sm:$0xff]  ;;  %v10212_v44 = vld [vmem:[#allocation127_spill] sm:$0xff] }
 0x55c   :  { %5309 = vmatpush1.bf16.msra.mxu1 %v10194_v61  ;;  %5341 = vmatpush1.bf16.msra.mxu0 %v10195_v57  ;;  %v10203_v61 = vld [vmem:[#allocation56_spill] sm:$0xff]  ;;  %v10204_v57 = vld [vmem:[#allocation117_spill] sm:$0xff] }
 0x55d   :  { %5311 = vmatprep.subr.bf16.mxu1 %v10196_v15  ;;  %5343 = vmatprep.subr.bf16.mxu0 %v10197_v42  ;;  %v10205_v15 = vld [vmem:[#allocation119_spill] sm:$0xff]  ;;  %v10206_v42 = vld [vmem:[#allocation58_spill] sm:$0xff] }
 0x560   :  { %5313 = vmatpush1.bf16.msra.mxu1 %v10198_v49  ;;  %5345 = vmatpush1.bf16.msra.mxu0 %v10199_v14  ;;  %v10207_v49 = vld [vmem:[#allocation60_spill] sm:$0xff]  ;;  %v10208_v14 = vld [vmem:[#allocation121_spill] sm:$0xff] }
 0x561   :  { %5347 = vmatprep.subr.bf16.mxu0 %v10200_v3  ;;  %5411 = vmatprep.subr.bf16.mxu1 %v10201_v32  ;;  %v10209_v32 = vld [vmem:[#allocation62_spill] sm:$0xff]  ;;  %v10210_v3 = vld [vmem:[#allocation64_spill] sm:$0xff] }
 0x563   :  { %1347 = vmatmul.mubr.f32.vlgmr.msra.gmra.mrb[4].mxu1 %v8244_v7 }
 0x564   :  { %5349 = vmatpush1.bf16.msra.mxu0 %v10202_v0  ;;  %1583 = vmatprep.mubr.f32.mxu1 %v8307_v5  ;;  %v10211_v0 = vld [vmem:[#allocation125_spill] sm:$0xff] }
 0x565   :  { %5351 = vmatprep.subr.bf16.mxu0 %v10203_v61  ;;  %5413 = vmatpush1.bf16.msra.mxu1 %v10204_v57  ;;  %v10213_v61 = vld [vmem:[#allocation66_spill] sm:$0xff]  ;;  %v10214_v57 = vld [vmem:[#allocation68_spill] sm:$0xff] }
 0x566   :  { %5415 = vmatprep.subr.bf16.mxu1 %v10205_v15  ;;  %v10215_v15 = vld [vmem:[#allocation129_spill] sm:$0xff] }
 0x568   :  { %5353 = vmatpush1.bf16.msra.mxu0 %v10206_v42  ;;  %v10216_v42 = vld [vmem:[#allocation131_spill] sm:$0xff] }
 0x569   :  { %5355 = vmatprep.subr.bf16.mxu0 %v10207_v49  ;;  %5417 = vmatpush1.bf16.msra.mxu1 %v10208_v14  ;;  %v10217_v49 = vld [vmem:[#allocation70_spill] sm:$0xff]  ;;  %v10218_v14 = vld [vmem:[#allocation72_spill] sm:$0xff] }
 0x56a   :  { %5419 = vmatprep.subr.bf16.mxu1 %v8035_v56  ;;  %v10219_v56 = vld [vmem:[#allocation133_spill] sm:$0xff] }
 0x56c   :  { %5357 = vmatpush1.bf16.msra.mxu0 %v10209_v32  ;;  %v10220_v32 = vld [vmem:[#allocation135_spill] sm:$0xff] }
 0x56d   :  { %5359 = vmatprep.subr.bf16.mxu0 %v10210_v3  ;;  %5421 = vmatpush1.bf16.msra.mxu1 %v10211_v0  ;;  %v10221_v3 = vld [vmem:[#allocation74_spill] sm:$0xff]  ;;  %v10222_v0 = vld [vmem:[#allocation76_spill] sm:$0xff] }
 0x56e   :  { %5423 = vmatprep.subr.bf16.mxu1 %v10212_v44  ;;  %v10223_v44 = vld [vmem:[#allocation137_spill] sm:$0xff] }
 0x570   :  { %5361 = vmatpush1.bf16.msra.mxu0 %v10213_v61  ;;  %v10224_v61 = vld [vmem:[#allocation139_spill] sm:$0xff] }
 0x571   :  { %5363 = vmatprep.subr.bf16.mxu0 %v10214_v57  ;;  %5425 = vmatpush1.bf16.msra.mxu1 %v10215_v15  ;;  %v10225_v57 = vld [vmem:[#allocation78_spill] sm:$0xff]  ;;  %v10226_v15 = vld [vmem:[#allocation80_spill] sm:$0xff] }
 0x572   :  { %5427 = vmatprep.subr.bf16.mxu1 %v10216_v42  ;;  %v10227_v42 = vld [vmem:[#allocation141_spill] sm:$0xff] }
 0x574   :  { %5365 = vmatpush1.bf16.msra.mxu0 %v10217_v49  ;;  %v10228_v49 = vld [vmem:[#allocation143_spill] sm:$0xff] }
 0x575   :  { %5367 = vmatprep.subr.bf16.mxu0 %v10218_v14  ;;  %5429 = vmatpush1.bf16.msra.mxu1 %v10219_v56  ;;  %v10229_v14 = vld [vmem:[#allocation82_spill] sm:$0xff]  ;;  %v10230_v56 = vld [vmem:[#allocation84_spill] sm:$0xff] }
 0x576   :  { %5431 = vmatprep.subr.bf16.mxu1 %v10220_v32  ;;  %v10231_v32 = vld [vmem:[#allocation145_spill] sm:$0xff] }
 0x578   :  { %5369 = vmatpush1.bf16.msra.mxu0 %v10221_v3  ;;  %v10232_v3 = vld [vmem:[#allocation147_spill] sm:$0xff] }
 0x579   :  { %5371 = vmatprep.subr.bf16.mxu0 %v10222_v0  ;;  %5433 = vmatpush1.bf16.msra.mxu1 %v10223_v44  ;;  %v10233_v44 = vld [vmem:[#allocation86_spill] sm:$0xff] }
 0x57a   :  { %5435 = vmatprep.subr.bf16.mxu1 %v10224_v61  ;;  %v10244_v61 = vld [vmem:[#allocation159_spill] sm:$0xff] }
 0x57c   :  { %5373 = vmatpush1.bf16.msra.mxu0 %v10225_v57  ;;  %v10234_v57 = vld [vmem:[#allocation88_spill] sm:$0xff] }
 0x57d   :  { %5375 = vmatprep.subr.bf16.mxu0 %v10226_v15  ;;  %5437 = vmatpush1.bf16.msra.mxu1 %v10227_v42  ;;  %v10235_v15 = vld [vmem:[#allocation149_spill] sm:$0xff]  ;;  %v10236_v42 = vld [vmem:[#allocation151_spill] sm:$0xff] }
 0x57e   :  { %5439 = vmatprep.subr.bf16.mxu1 %v10228_v49  ;;  %v10237_v49 = vld [vmem:[#allocation90_spill] sm:$0xff] }
 0x580   :  { %5377 = vmatpush1.bf16.msra.mxu0 %v10229_v14  ;;  %v10238_v14 = vld [vmem:[#allocation92_spill] sm:$0xff] }
 0x581   :  { %5379 = vmatprep.subr.bf16.mxu0 %v10230_v56  ;;  %5441 = vmatpush1.bf16.msra.mxu1 %v10231_v32  ;;  %v10239_v56 = vld [vmem:[#allocation153_spill] sm:$0xff]  ;;  %v10240_v32 = vld [vmem:[#allocation155_spill] sm:$0xff] }
 0x582   :  { %5443 = vmatprep.subr.bf16.mxu1 %v10232_v3  ;;  %v10241_v3 = vld [vmem:[#allocation94_spill] sm:$0xff] }
 0x583   :  { %1418 = vmatmul.mubr.f32.vlgmr.msra.gmra.mrb[6].mxu0 %v8402_v55  ;;  %v10242_v55 = vld [vmem:[#allocation96_spill] sm:$0xff] }
 0x584   :  { %5381 = vmatpush1.bf16.msra.mxu0 %v10233_v44  ;;  %1488 = vmatprep.mubr.f32.mxu0 %v10063_v30  ;;  %v10243_v44 = vld [vmem:[#allocation157_spill] sm:$0xff] }
 0x585   :  { %5383 = vmatprep.subr.bf16.mxu0 %v10234_v57  ;;  %5445 = vmatpush1.bf16.msra.mxu1 %v10235_v15  ;;  %v10245_v57 = vld [vmem:[#allocation98_spill] sm:$0xff]  ;;  %v10246_v15 = vld [vmem:[#allocation100_spill] sm:$0xff] }
 0x586   :  { %5447 = vmatprep.subr.bf16.mxu1 %v10236_v42  ;;  %v10247_v42 = vld [vmem:[#allocation161_spill] sm:$0xff] }
 0x588   :  { %5385 = vmatpush1.bf16.msra.mxu0 %v10237_v49  ;;  %v10248_v49 = vld [vmem:[#allocation163_spill] sm:$0xff] }
 0x589   :  { %5387 = vmatprep.subr.bf16.mxu0 %v10238_v14  ;;  %5449 = vmatpush1.bf16.msra.mxu1 %v10239_v56  ;;  %v10249_v14 = vld [vmem:[#allocation102_spill] sm:$0xff]  ;;  %v10250_v56 = vld [vmem:[#allocation104_spill] sm:$0xff] }
 0x58a   :  { %5451 = vmatprep.subr.bf16.mxu1 %v10240_v32  ;;  %v10251_v32 = vld [vmem:[#allocation165_spill] sm:$0xff] }
 0x58c   :  { %5389 = vmatpush1.bf16.msra.mxu0 %v10241_v3  ;;  %v10252_v3 = vld [vmem:[#allocation167_spill] sm:$0xff] }
 0x58d   :  { %5391 = vmatprep.subr.bf16.mxu0 %v10242_v55  ;;  %5453 = vmatpush1.bf16.msra.mxu1 %v10243_v44  ;;  %v10253_v55 = vld [vmem:[#allocation106_spill] sm:$0xff]  ;;  %v10254_v44 = vld [vmem:[#allocation108_spill] sm:$0xff] }
 0x58e   :  { %5455 = vmatprep.subr.bf16.mxu1 %v10244_v61  ;;  %v10255_v61 = vld [vmem:[#allocation169_spill] sm:$0xff] }
 0x590   :  { %5393 = vmatpush1.bf16.msra.mxu0 %v10245_v57  ;;  %v10256_v57 = vld [vmem:[#allocation171_spill] sm:$0xff] }
 0x591   :  { %5395 = vmatprep.subr.bf16.mxu0 %v10246_v15  ;;  %5457 = vmatpush1.bf16.msra.mxu1 %v10247_v42  ;;  %v10257_v15 = vld [vmem:[#allocation110_spill] sm:$0xff]  ;;  %v10258_v42 = vld [vmem:[#allocation112_spill] sm:$0xff] }
 0x592   :  { %5459 = vmatprep.subr.bf16.mxu1 %v10248_v49  ;;  %v10259_v49 = vld [vmem:[#allocation173_spill] sm:$0xff] }
 0x594   :  { %5397 = vmatpush1.bf16.msra.mxu0 %v10249_v14  ;;  %v10260_v14 = vld [vmem:[#allocation175_spill] sm:$0xff] }
 0x595   :  { %5399 = vmatprep.subr.bf16.mxu0 %v10250_v56  ;;  %5461 = vmatpush1.bf16.msra.mxu1 %v10251_v32  ;;  %v10261_v56 = vld [vmem:[#allocation114_spill] sm:$0xff]  ;;  %v10262_v32 = vld [vmem:[#allocation116_spill] sm:$0xff] }
 0x596   :  { %5463 = vmatprep.subr.bf16.mxu1 %v10252_v3  ;;  %v10263_v3 = vld [vmem:[#allocation177_spill] sm:$0xff] }
 0x598   :  { %5401 = vmatpush1.bf16.msra.mxu0 %v10253_v55 }
 0x599   :  { %5403 = vmatprep.subr.bf16.mxu0 %v10254_v44  ;;  %5465 = vmatpush1.bf16.msra.mxu1 %v10255_v61 }
 0x59a   :  { %5467 = vmatprep.subr.bf16.mxu1 %v10256_v57  ;;  %v10264_v57 = vld [vmem:[#allocation118_spill] sm:$0xff] }
 0x59c   :  { %5405 = vmatpush1.bf16.msra.mxu0 %v10257_v15  ;;  %v10265_v15 = vld [vmem:[#allocation120_spill] sm:$0xff] }
 0x59d   :  { %5407 = vmatprep.subr.bf16.mxu0 %v10258_v42  ;;  %5469 = vmatpush1.bf16.msra.mxu1 %v10259_v49  ;;  %v10266_v42 = vld [vmem:[#allocation122_spill] sm:$0xff]  ;;  %v10267_v49 = vld [vmem:[#allocation124_spill] sm:$0xff] }
 0x59e   :  { %5471 = vmatprep.subr.bf16.mxu1 %v10260_v14  ;;  %v10268_v14 = vld [vmem:[#allocation126_spill] sm:$0xff] }
 0x5a0   :  { %5409 = vmatpush1.bf16.msra.mxu0 %v10261_v56  ;;  %v10269_v56 = vld [vmem:[#allocation128_spill] sm:$0xff] }
 0x5a1   :  { %5475 = vmatprep.subr.bf16.mxu0 %v10262_v32  ;;  %5473 = vmatpush1.bf16.msra.mxu1 %v10263_v3  ;;  %v10270_v32 = vld [vmem:[#allocation130_spill] sm:$0xff]  ;;  %v10271_v3 = vld [vmem:[#allocation132_spill] sm:$0xff] }
 0x5a2   :  { %5539 = vmatprep.subr.bf16.mxu1 %v8341_v36  ;;  %v10272_v36 = vld [vmem:[#allocation134_spill] sm:$0xff] }
 0x5a3   :  { %1489 = vmatmul.mubr.f32.vlgmr.msra.gmra.mrb[6].mxu0 %v8244_v7  ;;  %v10273_v7 = vld [vmem:[#allocation136_spill] sm:$0xff] }
 0x5a4   :  { %1654 = vmatprep.mubr.f32.mxu0 %v8307_v5  ;;  %5477 = vmatpush1.bf16.msra.mxu0 %v10264_v57  ;;  %v10274_v5 = vld [vmem:[#allocation138_spill] sm:$0xff]  ;;  %v10275_v57 = vld [vmem:[#allocation140_spill] sm:$0xff] }
 0x5a5   :  { %5479 = vmatprep.subr.bf16.mxu0 %v10265_v15  ;;  %v10276_v15 = vld [vmem:[#allocation142_spill] sm:$0xff] }
 0x5a8   :  { %5481 = vmatpush1.bf16.msra.mxu0 %v10266_v42  ;;  %v10277_v42 = vld [vmem:[#allocation144_spill] sm:$0xff] }
 0x5a9   :  { %5483 = vmatprep.subr.bf16.mxu0 %v10267_v49  ;;  %v10278_v49 = vld [vmem:[#allocation146_spill] sm:$0xff] }
 0x5ac   :  { %5485 = vmatpush1.bf16.msra.mxu0 %v10268_v14  ;;  %v10279_v14 = vld [vmem:[#allocation148_spill] sm:$0xff] }
 0x5ad   :  { %5487 = vmatprep.subr.bf16.mxu0 %v10269_v56  ;;  %v10280_v56 = vld [vmem:[#allocation150_spill] sm:$0xff] }
 0x5b0   :  { %5489 = vmatpush1.bf16.msra.mxu0 %v10270_v32  ;;  %v10281_v32 = vld [vmem:[#allocation152_spill] sm:$0xff] }
 0x5b1   :  { %5491 = vmatprep.subr.bf16.mxu0 %v10271_v3  ;;  %v10282_v3 = vld [vmem:[#allocation154_spill] sm:$0xff] }
 0x5b4   :  { %5493 = vmatpush1.bf16.msra.mxu0 %v10272_v36  ;;  %v10283_v36 = vld [vmem:[#allocation156_spill] sm:$0xff] }
 0x5b5   :  { %5495 = vmatprep.subr.bf16.mxu0 %v10273_v7  ;;  %v10284_v7 = vld [vmem:[#allocation158_spill] sm:$0xff] }
 0x5b8   :  { %5497 = vmatpush1.bf16.msra.mxu0 %v10274_v5  ;;  %v10285_v5 = vld [vmem:[#allocation160_spill] sm:$0xff] }
 0x5b9   :  { %5499 = vmatprep.subr.bf16.mxu0 %v10275_v57  ;;  %v10286_v57 = vld [vmem:[#allocation162_spill] sm:$0xff] }
 0x5bc   :  { %5501 = vmatpush1.bf16.msra.mxu0 %v10276_v15  ;;  %v10287_v15 = vld [vmem:[#allocation164_spill] sm:$0xff] }
 0x5bd   :  { %5503 = vmatprep.subr.bf16.mxu0 %v10277_v42  ;;  %v10288_v42 = vld [vmem:[#allocation166_spill] sm:$0xff] }
 0x5c0   :  { %5505 = vmatpush1.bf16.msra.mxu0 %v10278_v49  ;;  %v10289_v49 = vld [vmem:[#allocation168_spill] sm:$0xff] }
 0x5c1   :  { %5507 = vmatprep.subr.bf16.mxu0 %v10279_v14  ;;  %v10290_v14 = vld [vmem:[#allocation170_spill] sm:$0xff] }
 0x5c4   :  { %5509 = vmatpush1.bf16.msra.mxu0 %v10280_v56  ;;  %v10291_v56 = vld [vmem:[#allocation172_spill] sm:$0xff] }
 0x5c5   :  { %5511 = vmatprep.subr.bf16.mxu0 %v10281_v32  ;;  %v10292_v32 = vld [vmem:[#allocation174_spill] sm:$0xff] }
 0x5c8   :  { %5513 = vmatpush1.bf16.msra.mxu0 %v10282_v3  ;;  %v10293_v3 = vld [vmem:[#allocation176_spill] sm:$0xff] }
 0x5c9   :  { %5515 = vmatprep.subr.bf16.mxu0 %v10283_v36  ;;  %v10294_v36 = vld [vmem:[#allocation178_spill] sm:$0xff] }
 0x5cc   :  { %5517 = vmatpush1.bf16.msra.mxu0 %v10284_v7  ;;  %v10295_v7 = vld [vmem:[#allocation23_spill] sm:$0xff] }
 0x5cd   :  { %5519 = vmatprep.subr.bf16.mxu0 %v10285_v5 }
 0x5d0   :  { %5521 = vmatpush1.bf16.msra.mxu0 %v10286_v57 }
 0x5d1   :  { %5523 = vmatprep.subr.bf16.mxu0 %v10287_v15  ;;  %v8545_v15 = vld [vmem:[%s9588_s11] ss:$0 sm:$0xff] }
 0x5d4   :  { %5525 = vmatpush1.bf16.msra.mxu0 %v10288_v42 }
 0x5d5   :  { %5527 = vmatprep.subr.bf16.mxu0 %v10289_v49 }
 0x5d8   :  { %5529 = vmatpush1.bf16.msra.mxu0 %v10290_v14 }
 0x5d9   :  { %5531 = vmatprep.subr.bf16.mxu0 %v10291_v56 }
 0x5dc   :  { %5533 = vmatpush1.bf16.msra.mxu0 %v10292_v32  ;;  %v10296_v32 = vld [vmem:[#allocation182_spill] sm:$0xff] }
 0x5dd   :  { %5535 = vmatprep.subr.bf16.mxu0 %v10293_v3  ;;  %v10297_v3 = vld [vmem:[#allocation181_spill] sm:$0xff] }
 0x5e0   :  { %5537 = vmatpush1.bf16.msra.mxu0 %v10294_v36 }
 0x5e1   :  { %5571 = vmatprep.subr.bf16.mxu0 %v10295_v7 }
 0x616   :  { %v4636_v5 = vpop.f32.mrb[4].mxu0 }
 0x617   :  { %v4637_v42 = vpop.f32.mrb[5].mxu0 }
 0x618   :  { %v4638_v49 = vadd.f32 %v4637_v42, %v4636_v5 }
 0x61a   :  { %v1204_v14 = vadd.f32 %v4638_v49, %v8545_v15 }
 0x61c   :  { %1207 = vst [vmem:[#allocation14] sm:$0x3] %v1204_v14  ;;  %v10298_v14 = vld [vmem:[#allocation183_spill] sm:$0xff] }
 0x636   :  { %v1348_v56 = vpop.f32.mrb[4].mxu1 }
 0x637   :  { %v1350_v57 = vpop.f32.mrb[5].mxu1  ;;  %v7006_v44 = vadd.f32 %v1348_v56, %v10297_v3 }
 0x638   :  { %v7007_v61 = vadd.f32 %v1350_v57, %v10296_v32 }
 0x639   :  { %v4569_v55 = vmul.f32 -1.442695, %v7006_v44 }
 0x63a   :  { %v4570_v36 = vmul.f32 -1.442695, %v7007_v61 }
 0x63c   :  { %7107 = vpow2.f32 %v4570_v36 }
 0x63d   :  { %7109 = vpow2.f32 %v4569_v55 }
 0x646   :  { %v7108_v7 = vpop.eup %7107 }
 0x647   :  { %v7110_v0 = vpop.eup %7109  ;;  %v1504_v24 = vadd.f32 1.0, %v7108_v7 }
 0x648   :  { %v1498_v41 = vadd.f32 1.0, %v7110_v0 }
 0x649   :  { %7111 = vrcp.f32 %v1504_v24 }
 0x64a   :  { %7113 = vrcp.f32 %v1498_v41 }
 0x653   :  { %v7112_v56 = vpop.eup %7111 }
 0x654   :  { %v7114_v61 = vpop.eup %7113  ;;  %v1514_v36 = vmul.f32 %v7112_v56, %v8241_v1  ;;  %v10299_v1 = vld [vmem:[#allocation51_spill] sm:$0xff]  ;;  %v10305_v56 = vld [vmem:[#allocation61_spill] sm:$0xff] }
 0x676   :  { %v1490_v33 = vpop.f32.mrb[6].mxu0 }
 0x677   :  { %v7008_v42 = vadd.f32 %v1490_v33, %v8238_v52  ;;  %v1492_v49 = vpop.f32.mrb[7].mxu0 }
 0x678   :  { %v7009_v5 = vadd.f32 %v1492_v49, %v10298_v14  ;;  %v10302_v49 = vld [vmem:[#allocation55_spill] sm:$0xff] }
 0x679   :  { %7115 = vtanh.f32 %v7008_v42  ;;  %v10301_v42 = vld [vmem:[#allocation53_spill] sm:$0xff] }
 0x67a   :  { %v4571_v57 = vmul.f32 -1.442695, %v7009_v5  ;;  %v10303_v5 = vld [vmem:[#allocation57_spill] sm:$0xff] }
 0x67c   :  { %7117 = vpow2.f32 %v4571_v57  ;;  %v10304_v57 = vld [vmem:[#allocation59_spill] sm:$0xff] }
 0x683   :  { %v7116_v44 = vpop.eup %7115 }
 0x684   :  { %v1515_v55 = vmul.f32 %v7116_v44, %v7114_v61  ;;  %v10306_v61 = vld [vmem:[#allocation63_spill] sm:$0xff]  ;;  %v10307_v44 = vld [vmem:[#allocation65_spill] sm:$0xff] }
 0x686   :  { %v7118_v3 = vpop.eup %7117  ;;  %v8553_v7 = vadd.f32 %v1515_v55, %v1514_v36  ;;  %v10308_v36 = vld [vmem:[#allocation67_spill] sm:$0xff]  ;;  %v10309_v55 = vld [vmem:[#allocation69_spill] sm:$0xff] }
 0x687   :  { %v1511_v0 = vadd.f32 1.0, %v7118_v3  ;;  %v10300_v3 = vld [vmem:[#allocation24_spill] sm:$0xff] }
 0x688   :  { %7119 = vtanh.f32 %v8553_v7 }
 0x689   :  { %7121 = vrcp.f32 %v1511_v0  ;;  %v10310_v0 = vld [vmem:[#allocation71_spill] sm:$0xff] }
 0x692   :  { %v7120_v33 = vpop.eup %7119 }
 0x693   :  { %v7122_v41 = vpop.eup %7121 }
 0x694   :  { %v8556_v24 = vmul.f32 %v7122_v41, %v7120_v33  ;;  %v10311_v33 = vld [vmem:[#allocation73_spill] sm:$0xff]  ;;  %v10312_v41 = vld [vmem:[#allocation75_spill] sm:$0xff] }
 0x696   :  { %1584 = vmatmul.mubr.f32.vlgmr.msra.gmra.mrb[6].mxu1 %v8556_v24  ;;  %1655 = vmatmul.mubr.f32.vlgmr.msra.gmra.mrb[8].mxu0 %v8556_v24 }
 0x697   :  { %5573 = vmatpush1.bf16.msra.mxu0 %v7726_v9  ;;  %5541 = vmatpush3.bf16.msra.mxu1 %v8343_v58 }
 0x698   :  { %5575 = vmatprep.subr.bf16.mxu0 %v7733_v17  ;;  %5543 = vmatprep.subr.bf16.mxu1 %v8345_v47 }
 0x69b   :  { %5577 = vmatpush1.bf16.msra.mxu0 %v7738_v22  ;;  %5545 = vmatpush3.bf16.msra.mxu1 %v8349_v19 }
 0x69c   :  { %5579 = vmatprep.subr.bf16.mxu0 %v7744_v27  ;;  %5547 = vmatprep.subr.bf16.mxu1 %v8352_v46 }
 0x69f   :  { %5581 = vmatpush1.bf16.msra.mxu0 %v7749_v35  ;;  %5549 = vmatpush3.bf16.msra.mxu1 %v8355_v48 }
 0x6a0   :  { %5583 = vmatprep.subr.bf16.mxu0 %v7755_v40  ;;  %5551 = vmatprep.subr.bf16.mxu1 %v8358_v4 }
 0x6a3   :  { %5585 = vmatpush1.bf16.msra.mxu0 %v7761_v51  ;;  %5553 = vmatpush3.bf16.msra.mxu1 %v8361_v29 }
 0x6a4   :  { %5587 = vmatprep.subr.bf16.mxu0 %v7767_v53  ;;  %5555 = vmatprep.subr.bf16.mxu1 %v8364_v28 }
 0x6a7   :  { %5589 = vmatpush1.bf16.msra.mxu0 %v7773_v63  ;;  %5557 = vmatpush3.bf16.msra.mxu1 %v8368_v54 }
 0x6a8   :  { %5591 = vmatprep.subr.bf16.mxu0 %v7779_v2  ;;  %5559 = vmatprep.subr.bf16.mxu1 %v8371_v23 }
 0x6ab   :  { %5593 = vmatpush1.bf16.msra.mxu0 %v7785_v16  ;;  %5561 = vmatpush3.bf16.msra.mxu1 %v8373_v11 }
 0x6ac   :  { %5595 = vmatprep.subr.bf16.mxu0 %v7791_v20  ;;  %5563 = vmatprep.subr.bf16.mxu1 %v8377_v21 }
 0x6af   :  { %5597 = vmatpush1.bf16.msra.mxu0 %v7797_v34  ;;  %5565 = vmatpush3.bf16.msra.mxu1 %v8379_v62 }
 0x6b0   :  { %5599 = vmatprep.subr.bf16.mxu0 %v7803_v37  ;;  %5567 = vmatprep.subr.bf16.mxu1 %v8383_v38 }
 0x6b3   :  { %5601 = vmatpush1.bf16.msra.mxu0 %v7809_v50  ;;  %5569 = vmatpush3.bf16.msra.mxu1 %v8388_v59 }
 0x6b4   :  { %5603 = vmatprep.subr.bf16.mxu0 %v10299_v1  ;;  %5667 = vmatprep.subr.bf16.mxu1 %v10300_v3  ;;  %v10313_v3 = vld [vmem:[#allocation77_spill] sm:$0xff] }
 0x6b5   :  { %v10318_v1 = vld [vmem:[#allocation185_spill] sm:$0xff] }
 0x6b7   :  { %5605 = vmatpush1.bf16.msra.mxu0 %v10301_v42 }
 0x6b8   :  { %5607 = vmatprep.subr.bf16.mxu0 %v10302_v49  ;;  %v10317_v49 = vld [vmem:[#allocation184_spill] sm:$0xff] }
 0x6bb   :  { %5609 = vmatpush1.bf16.msra.mxu0 %v10303_v5  ;;  %v10314_v5 = vld [vmem:[#allocation79_spill] sm:$0xff] }
 0x6bc   :  { %5611 = vmatprep.subr.bf16.mxu0 %v10304_v57  ;;  %v10315_v57 = vld [vmem:[#allocation81_spill] sm:$0xff] }
 0x6bf   :  { %5613 = vmatpush1.bf16.msra.mxu0 %v10305_v56  ;;  %v10316_v56 = vld [vmem:[#allocation83_spill] sm:$0xff] }
 0x6c0   :  { %5615 = vmatprep.subr.bf16.mxu0 %v10306_v61 }
 0x6c3   :  { %5617 = vmatpush1.bf16.msra.mxu0 %v10307_v44 }
 0x6c4   :  { %5619 = vmatprep.subr.bf16.mxu0 %v10308_v36 }
 0x6c7   :  { %5621 = vmatpush1.bf16.msra.mxu0 %v10309_v55 }
 0x6c8   :  { %5623 = vmatprep.subr.bf16.mxu0 %v10310_v0 }
 0x6cb   :  { %5625 = vmatpush1.bf16.msra.mxu0 %v10311_v33 }
 0x6cc   :  { %5627 = vmatprep.subr.bf16.mxu0 %v10312_v41  ;;  %v10319_v41 = vld [vmem:[#allocation186_spill] sm:$0xff] }
 0x6cf   :  { %5629 = vmatpush1.bf16.msra.mxu0 %v10313_v3 }
 0x6d0   :  { %5631 = vmatprep.subr.bf16.mxu0 %v10314_v5  ;;  %v10320_v5 = vld [vmem:[#allocation187_spill] sm:$0xff] }
 0x6d3   :  { %5633 = vmatpush1.bf16.msra.mxu0 %v10315_v57 }
 0x6d4   :  { %5635 = vmatprep.subr.bf16.mxu0 %v10316_v56 }
 0x769   :  { %v1585_v61 = vpop.f32.mrb[6].mxu1  ;;  %v1656_v44 = vpop.f32.mrb[8].mxu0 }
 0x76a   :  { %v1586_v36 = vadd.f32 %v1585_v61, %v10317_v49  ;;  %v1587_v42 = vpop.f32.mrb[7].mxu1  ;;  %v1658_v55 = vpop.f32.mrb[9].mxu0  ;;  %v1657_v34 = vadd.f32 %v1656_v44, %v10320_v5  ;;  %v10323_v44 = vld [vmem:[#allocation179_spill] sm:$0xff] }
 0x76b   :  { %v1588_v0 = vadd.f32 %v1587_v42, %v10318_v1  ;;  %v1659_v3 = vadd.f32 %v1658_v55, %v10319_v41 }
 0x76c   :  { %v4572_v50 = vmul.f32 -1.442695, %v1586_v36 }
 0x76d   :  { %v4573_v33 = vmul.f32 -1.442695, %v1588_v0  ;;  %v4574_v37 = vmul.f32 -1.442695, %v1659_v3 }
 0x76e   :  { %7123 = vpow2.f32 %v4572_v50 }
 0x76f   :  { %7125 = vpow2.f32 %v4573_v33  ;;  %v10321_v33 = vld [vmem:[#allocation188_spill] sm:$0xff] }
 0x770   :  { %7127 = vpow2.f32 %v4574_v37 }
 0x771   :  { %7129 = vtanh.f32 %v1657_v34 }
 0x778   :  { %v7124_v57 = vpop.eup %7123 }
 0x779   :  { %v7126_v20 = vpop.eup %7125  ;;  %v1664_v56 = vadd.f32 1.0, %v7124_v57 }
 0x77a   :  { %v1670_v16 = vadd.f32 1.0, %v7126_v20  ;;  %v7128_v61 = vpop.eup %7127  ;;  %v10322_v20 = vld [vmem:[#allocation189_spill] sm:$0xff] }
 0x77b   :  { %7131 = vrcp.f32 %v1664_v56  ;;  %v7130_v2 = vpop.eup %7129  ;;  %v1677_v50 = vadd.f32 1.0, %v7128_v61 }
 0x77c   :  { %7133 = vrcp.f32 %v1670_v16 }
 0x77d   :  { %7135 = vrcp.f32 %v1677_v50 }
 0x785   :  { %v7132_v42 = vpop.eup %7131 }
 0x786   :  { %v7134_v36 = vpop.eup %7133  ;;  %v1681_v0 = vmul.f32 %v7132_v42, %v7130_v2  ;;  %v10324_v42 = vld [vmem:[#allocation190_spill] sm:$0xff] }
 0x787   :  { %v1680_v63 = vmul.f32 %v7134_v36, %v10321_v33  ;;  %v7136_v3 = vpop.eup %7135 }
 0x789   :  { %v8613_v55 = vadd.f32 %v1681_v0, %v1680_v63  ;;  %v10325_v0 = vld [vmem:[#allocation191_spill] sm:$0xff] }
 0x78b   :  { %7137 = vtanh.f32 %v8613_v55 }
 0x795   :  { %v7138_v57 = vpop.eup %7137 }
 0x796   :  { %v8616_v37 = vmul.f32 %v7138_v57, %v7136_v3  ;;  %v10326_v57 = vld [vmem:[#allocation193_spill] sm:$0xff] }
 0x798   :  { %v1692_v16 = vrot.slane %v8616_v37, %v10322_v20 }
 0x79a   :  { %v1700_v34 = vrot.slane %v1692_v16, %v10322_v20  ;;  %v1693_v56 = vcombine.high %v1692_v16, %v1692_v16 }
 0x79c   :  { %v1711_v2 = vrot.slane %v1700_v34, %v10323_v44  ;;  %v1707_v61 = vrot.slane %v1693_v56, %v10322_v20 }
 0x79e   :  { %v1718_v63 = vmul.f32 %v1711_v2, %v10324_v42  ;;  %v1715_v36 = vrot.slane %v1707_v61, %v10323_v44 }
 0x7a0   :  { %1720 = vadd.xlane.f32.xlu1 %v1718_v63  ;;  %v1719_v50 = vmul.f32 %v1715_v36, %v10325_v0 }
 0x7a2   :  { %1722 = vadd.xlane.f32.xlu0 %v1719_v50 }
 0x82d   :  { %v1721_v33 = vpop.xlane.xlu1 %1720 }
 0x82e   :  { %v1729_v53 = vrot.slane %v1721_v33, %v10326_v57 }
 0x82f   :  { %v1723_v3 = vpop.xlane.xlu0 %1722 }
 0x830   :  { %v1733_v51 = vrot.slane %v1723_v3, %v10326_v57  ;;  %v10328_v3 = vld [vmem:[#allocation180_spill] sm:$0xff] }
 0x832   :  { %v1734_v16 = vsel %vm1083_vm0, %v1733_v51, %v1729_v53 }
 0x833   :  { %v1736_v34 = vsel %vm1070_vm1, %v1734_v16, -1e+09 }
 0x834   :  { %v1737_v56 = vsel %vm1087_vm2, %v1736_v34, -inf }
 0x835   :  { %1738 = vmax.xlane.f32.xlu0 %v1737_v56 }
 0x8c2   :  { %v1739_v2 = vpop.xlane.xlu0 %1738 }
 0x8c3   :  { %v1740_v61 = vsub.f32 %v1736_v34, %v1739_v2 }
 0x8c5   :  { %v1741_v42 = vmul.f32 1.442695, %v1740_v61 }
 0x8c7   :  { %7139 = vpow2.f32 %v1741_v42 }
 0x8d1   :  { %v7140_v63 = vpop.eup %7139 }
 0x8d2   :  { %v1743_v36 = vsel %vm1087_vm2, %v7140_v63, 0.0 }
 0x8d3   :  { %1744 = vadd.xlane.f32.xlu1 %v1743_v36 }
 0x960   :  { %v1745_v0 = vpop.xlane.xlu1 %1744 }
 0x961   :  { %7141 = vrcp.f32 %v1745_v0 }
 0x96b   :  { %v7142_v50 = vpop.eup %7141 }
 0x96c   :  { %v1747_v33 = vmul.f32 %v7142_v50, %v7140_v63 }
 0x96e   :  { %v1758_v51 = vrot.slane %v1747_v33, %v10328_v3  ;;  %1853 = vst.msk [vmem:[#allocation15 + $0x1] sm:$0x1] %vm1208_vm3, %v1747_v33  ;;  %v1751_v53 = vrot.slane %v1747_v33, %v10323_v44 }
 0x970   :  { %1760 = vbcast.lane.b32.xlu1 %v1758_v51, 256  ;;  %1753 = vbcast.lane.b32.xlu0 %v1751_v53, 256  ;;  %v8641_v51 = vld [vmem:[%s9581_s4 + $0x2] sm:$0x3]  ;;  %v10335_v53 = vld [vmem:[#allocation38_spill] sm:$0xff] }
 0x9e2   :  { %v1761_v16 = vpop.permute.xlu1 %1760  ;;  %v1754_v34 = vpop.permute.xlu0 %1753 }
 0x9e3   :  { %v1763_v56 = vmul.f32 %v1761_v16, %v8393_v45  ;;  %v1762_v2 = vmul.f32 %v1754_v34, %v8395_v39  ;;  %v10334_v39 = vld [vmem:[#allocation101_spill] sm:$0xff]  ;;  %v10336_v16 = vld [vmem:[#allocation103_spill] sm:$0xff]  ;;  %v10337_v34 = vld [vmem:[#allocation40_spill] sm:$0xff] }
 0x9e5   :  { %v1770_v61 = vrot.slane %v1763_v56, 4  ;;  %v1764_v42 = vrot.slane %v1762_v2, 4 }
 0x9e7   :  { %v1771_v36 = vadd.f32 %v1770_v61, %v1763_v56  ;;  %v1765_v0 = vadd.f32 %v1764_v42, %v1762_v2  ;;  %v10338_v56 = vld [vmem:[#allocation105_spill] sm:$0xff]  ;;  %v10339_v2 = vld [vmem:[#allocation42_spill] sm:$0xff]  ;;  %v10340_v61 = vld [vmem:[#allocation107_spill] sm:$0xff] }
 0x9e8   :  { %v10341_v42 = vld [vmem:[#allocation44_spill] sm:$0xff] }
 0x9e9   :  { %v1772_v35 = vrot.slane %v1771_v36, 2  ;;  %v1766_v63 = vrot.slane %v1765_v0, 2 }
 0x9eb   :  { %v1773_v50 = vadd.f32 %v1772_v35, %v1771_v36  ;;  %v1767_v27 = vadd.f32 %v1766_v63, %v1765_v0  ;;  %v10333_v35 = vld [vmem:[#allocation36_spill] sm:$0xff]  ;;  %v10342_v36 = vld [vmem:[#allocation109_spill] sm:$0xff]  ;;  %v10343_v0 = vld [vmem:[#allocation46_spill] sm:$0xff] }
 0x9ec   :  { %v10344_v63 = vld [vmem:[#allocation111_spill] sm:$0xff] }
 0x9ed   :  { %v1774_v22 = vrot.slane %v1773_v50, 1  ;;  %v1768_v17 = vrot.slane %v1767_v27, 1 }
 0x9ef   :  { %v1769_v9 = vadd.f32 %v1768_v17, %v1767_v27  ;;  %v1775_v33 = vadd.f32 %v1774_v22, %v1773_v50  ;;  %v10330_v17 = vld [vmem:[#allocation97_spill] sm:$0xff]  ;;  %v10331_v22 = vld [vmem:[#allocation34_spill] sm:$0xff]  ;;  %v10332_v27 = vld [vmem:[#allocation99_spill] sm:$0xff] }
 0x9f0   :  { %v10345_v50 = vld [vmem:[#allocation48_spill] sm:$0xff] }
 0x9f1   :  { %v1778_v45 = vsel %vm1083_vm0, %v1775_v33, %v1769_v9  ;;  %v10329_v9 = vld [vmem:[#allocation32_spill] sm:$0xff]  ;;  %v10346_v33 = vld [vmem:[#allocation113_spill] sm:$0xff] }
 0x9f2   :  { %1844 = vmatprep.mubr.f32.mxu1 %v1778_v45  ;;  %1920 = vmatprep.mubr.f32.mxu0 %v1778_v45 }
 0x9f3   :  { %1845 = vmatmul.mubr.f32.vlgmr.msra.gmra.mrb[8].mxu1 %v8616_v37  ;;  %1921 = vmatmul.mubr.f32.vlgmr.msra.gmra.mrb[10].mxu0 %v8641_v51 }
 0x9f4   :  { %5637 = vmatpush1.bf16.msra.mxu0 %v7917_v25  ;;  %5669 = vmatpush1.bf16.msra.mxu1 %v7729_v13  ;;  %v10365_v25 = vld [vmem:[#allocation131_spill] sm:$0xff] }
 0x9f5   :  { %2062 = vmatprep.mubr.f32.mxu1 %v1778_v45  ;;  %5639 = vmatprep.subr.bf16.mxu0 %v7923_v60  ;;  %v10347_v45 = vld [vmem:[#allocation50_spill] sm:$0xff] }
 0x9f6   :  { %5671 = vmatprep.subr.bf16.mxu1 %v7735_v18  ;;  %1991 = vmatprep.mubr.f32.mxu0 %v10063_v30  ;;  %v10362_v60 = vld [vmem:[#allocation66_spill] sm:$0xff] }
 0x9f8   :  { %5641 = vmatpush1.bf16.msra.mxu0 %v7929_v6  ;;  %5673 = vmatpush1.bf16.msra.mxu1 %v7742_v26  ;;  %v10361_v6 = vld [vmem:[#allocation127_spill] sm:$0xff] }
 0x9f9   :  { %5643 = vmatprep.subr.bf16.mxu0 %v7935_v43  ;;  %5675 = vmatprep.subr.bf16.mxu1 %v7746_v31  ;;  %v10360_v43 = vld [vmem:[#allocation125_spill] sm:$0xff] }
 0x9fc   :  { %5645 = vmatpush1.bf16.msra.mxu0 %v10178_v8  ;;  %5677 = vmatpush1.bf16.msra.mxu1 %v10179_v10  ;;  %v10359_v8 = vld [vmem:[#allocation64_spill] sm:$0xff] }
 0x9fd   :  { %5647 = vmatprep.subr.bf16.mxu0 %v10180_v12  ;;  %5679 = vmatprep.subr.bf16.mxu1 %v10329_v9  ;;  %v10357_v12 = vld [vmem:[#allocation123_spill] sm:$0xff] }
 0xa00   :  { %5649 = vmatpush1.bf16.msra.mxu0 %v10330_v17  ;;  %5681 = vmatpush1.bf16.msra.mxu1 %v10331_v22  ;;  %v10356_v17 = vld [vmem:[#allocation121_spill] sm:$0xff] }
 0xa01   :  { %5651 = vmatprep.subr.bf16.mxu0 %v10332_v27  ;;  %5683 = vmatprep.subr.bf16.mxu1 %v10333_v35  ;;  %v10354_v27 = vld [vmem:[#allocation58_spill] sm:$0xff] }
 0xa04   :  { %5653 = vmatpush1.bf16.msra.mxu0 %v10334_v39  ;;  %5685 = vmatpush1.bf16.msra.mxu1 %v10335_v53  ;;  %v10352_v39 = vld [vmem:[#allocation117_spill] sm:$0xff] }
 0xa05   :  { %5655 = vmatprep.subr.bf16.mxu0 %v10336_v16  ;;  %5687 = vmatprep.subr.bf16.mxu1 %v10337_v34  ;;  %v10348_v16 = vld [vmem:[#allocation52_spill] sm:$0xff] }
 0xa08   :  { %5657 = vmatpush1.bf16.msra.mxu0 %v10338_v56  ;;  %5689 = vmatpush1.bf16.msra.mxu1 %v10339_v2  ;;  %v10349_v56 = vld [vmem:[#allocation115_spill] sm:$0xff] }
 0xa09   :  { %5659 = vmatprep.subr.bf16.mxu0 %v10340_v61  ;;  %5691 = vmatprep.subr.bf16.mxu1 %v10341_v42  ;;  %v10350_v61 = vld [vmem:[#allocation54_spill] sm:$0xff] }
 0xa0c   :  { %5661 = vmatpush1.bf16.msra.mxu0 %v10342_v36  ;;  %5693 = vmatpush1.bf16.msra.mxu1 %v10343_v0  ;;  %v10351_v36 = vld [vmem:[#allocation56_spill] sm:$0xff] }
 0xa0d   :  { %5663 = vmatprep.subr.bf16.mxu0 %v10344_v63  ;;  %5695 = vmatprep.subr.bf16.mxu1 %v10345_v50  ;;  %v10353_v63 = vld [vmem:[#allocation119_spill] sm:$0xff] }
 0xa10   :  { %5665 = vmatpush1.bf16.msra.mxu0 %v10346_v33  ;;  %5697 = vmatpush1.bf16.msra.mxu1 %v10347_v45  ;;  %v10355_v33 = vld [vmem:[#allocation60_spill] sm:$0xff] }
 0xa11   :  { %5699 = vmatprep.subr.bf16.mxu1 %v10348_v16  ;;  %5763 = vmatprep.subr.bf16.mxu0 %v10349_v56  ;;  %v10358_v56 = vld [vmem:[#allocation62_spill] sm:$0xff] }
 0xa13   :  { %1992 = vmatmul.mubr.f32.vlgmr.msra.gmra.mrb[10].mxu0 %v8556_v24 }
 0xa14   :  { %5701 = vmatpush1.bf16.msra.mxu1 %v10350_v61  ;;  %2228 = vmatprep.mubr.f32.mxu0 %v8616_v37 }
 0xa15   :  { %5703 = vmatprep.subr.bf16.mxu1 %v10351_v36  ;;  %5765 = vmatpush1.bf16.msra.mxu0 %v10352_v39  ;;  %v10363_v39 = vld [vmem:[#allocation68_spill] sm:$0xff] }
 0xa16   :  { %5767 = vmatprep.subr.bf16.mxu0 %v10353_v63  ;;  %v10364_v63 = vld [vmem:[#allocation129_spill] sm:$0xff] }
 0xa18   :  { %5705 = vmatpush1.bf16.msra.mxu1 %v10354_v27 }
 0xa19   :  { %5707 = vmatprep.subr.bf16.mxu1 %v10355_v33  ;;  %5769 = vmatpush1.bf16.msra.mxu0 %v10356_v17  ;;  %v10366_v33 = vld [vmem:[#allocation70_spill] sm:$0xff]  ;;  %v10367_v17 = vld [vmem:[#allocation72_spill] sm:$0xff] }
 0xa1a   :  { %5771 = vmatprep.subr.bf16.mxu0 %v10357_v12  ;;  %v10368_v12 = vld [vmem:[#allocation133_spill] sm:$0xff] }
 0xa1c   :  { %5709 = vmatpush1.bf16.msra.mxu1 %v10358_v56  ;;  %v10369_v56 = vld [vmem:[#allocation135_spill] sm:$0xff] }
 0xa1d   :  { %5711 = vmatprep.subr.bf16.mxu1 %v10359_v8  ;;  %5773 = vmatpush1.bf16.msra.mxu0 %v10360_v43  ;;  %v10370_v8 = vld [vmem:[#allocation74_spill] sm:$0xff]  ;;  %v10371_v43 = vld [vmem:[#allocation76_spill] sm:$0xff] }
 0xa1e   :  { %5775 = vmatprep.subr.bf16.mxu0 %v10361_v6  ;;  %v10372_v6 = vld [vmem:[#allocation137_spill] sm:$0xff] }
 0xa20   :  { %5713 = vmatpush1.bf16.msra.mxu1 %v10362_v60  ;;  %v10373_v60 = vld [vmem:[#allocation139_spill] sm:$0xff] }
 0xa21   :  { %5715 = vmatprep.subr.bf16.mxu1 %v10363_v39  ;;  %5777 = vmatpush1.bf16.msra.mxu0 %v10364_v63  ;;  %v10374_v39 = vld [vmem:[#allocation78_spill] sm:$0xff]  ;;  %v10375_v63 = vld [vmem:[#allocation80_spill] sm:$0xff] }
 0xa22   :  { %5779 = vmatprep.subr.bf16.mxu0 %v10365_v25  ;;  %v10376_v25 = vld [vmem:[#allocation141_spill] sm:$0xff] }
 0xa24   :  { %5717 = vmatpush1.bf16.msra.mxu1 %v10366_v33  ;;  %v10377_v33 = vld [vmem:[#allocation143_spill] sm:$0xff] }
 0xa25   :  { %5719 = vmatprep.subr.bf16.mxu1 %v10367_v17  ;;  %5781 = vmatpush1.bf16.msra.mxu0 %v10368_v12  ;;  %v10378_v17 = vld [vmem:[#allocation82_spill] sm:$0xff]  ;;  %v10379_v12 = vld [vmem:[#allocation84_spill] sm:$0xff] }
 0xa26   :  { %5783 = vmatprep.subr.bf16.mxu0 %v10369_v56  ;;  %v10380_v56 = vld [vmem:[#allocation145_spill] sm:$0xff] }
 0xa28   :  { %5721 = vmatpush1.bf16.msra.mxu1 %v10370_v8  ;;  %v10381_v8 = vld [vmem:[#allocation147_spill] sm:$0xff] }
 0xa29   :  { %5723 = vmatprep.subr.bf16.mxu1 %v10371_v43  ;;  %5785 = vmatpush1.bf16.msra.mxu0 %v10372_v6  ;;  %v10382_v6 = vld [vmem:[#allocation86_spill] sm:$0xff] }
 0xa2a   :  { %5787 = vmatprep.subr.bf16.mxu0 %v10373_v60  ;;  %v10383_v60 = vld [vmem:[#allocation88_spill] sm:$0xff] }
 0xa2c   :  { %5725 = vmatpush1.bf16.msra.mxu1 %v10374_v39  ;;  %v10393_v39 = vld [vmem:[#allocation159_spill] sm:$0xff] }
 0xa2d   :  { %5727 = vmatprep.subr.bf16.mxu1 %v10375_v63  ;;  %5789 = vmatpush1.bf16.msra.mxu0 %v10376_v25  ;;  %v10384_v63 = vld [vmem:[#allocation149_spill] sm:$0xff]  ;;  %v10385_v25 = vld [vmem:[#allocation151_spill] sm:$0xff] }
 0xa2e   :  { %5791 = vmatprep.subr.bf16.mxu0 %v10377_v33  ;;  %v10386_v33 = vld [vmem:[#allocation90_spill] sm:$0xff] }
 0xa30   :  { %5729 = vmatpush1.bf16.msra.mxu1 %v10378_v17  ;;  %v10387_v17 = vld [vmem:[#allocation92_spill] sm:$0xff] }
 0xa31   :  { %5731 = vmatprep.subr.bf16.mxu1 %v10379_v12  ;;  %5793 = vmatpush1.bf16.msra.mxu0 %v10380_v56  ;;  %v10388_v12 = vld [vmem:[#allocation153_spill] sm:$0xff]  ;;  %v10389_v56 = vld [vmem:[#allocation155_spill] sm:$0xff] }
 0xa32   :  { %5795 = vmatprep.subr.bf16.mxu0 %v10381_v8  ;;  %v10390_v8 = vld [vmem:[#allocation94_spill] sm:$0xff] }
 0xa33   :  { %2063 = vmatmul.mubr.f32.vlgmr.msra.gmra.mrb[10].mxu1 %v8641_v51  ;;  %v10391_v51 = vld [vmem:[#allocation96_spill] sm:$0xff] }
 0xa34   :  { %5733 = vmatpush1.bf16.msra.mxu1 %v10382_v6  ;;  %2133 = vmatprep.mubr.f32.mxu1 %v10063_v30  ;;  %v10392_v6 = vld [vmem:[#allocation157_spill] sm:$0xff] }
 0xa35   :  { %5735 = vmatprep.subr.bf16.mxu1 %v10383_v60  ;;  %5797 = vmatpush1.bf16.msra.mxu0 %v10384_v63  ;;  %v10394_v60 = vld [vmem:[#allocation98_spill] sm:$0xff]  ;;  %v10395_v63 = vld [vmem:[#allocation100_spill] sm:$0xff] }
 0xa36   :  { %5799 = vmatprep.subr.bf16.mxu0 %v10385_v25  ;;  %v10396_v25 = vld [vmem:[#allocation161_spill] sm:$0xff] }
 0xa38   :  { %5737 = vmatpush1.bf16.msra.mxu1 %v10386_v33  ;;  %v10397_v33 = vld [vmem:[#allocation163_spill] sm:$0xff] }
 0xa39   :  { %5739 = vmatprep.subr.bf16.mxu1 %v10387_v17  ;;  %5801 = vmatpush1.bf16.msra.mxu0 %v10388_v12  ;;  %v10398_v17 = vld [vmem:[#allocation102_spill] sm:$0xff]  ;;  %v10399_v12 = vld [vmem:[#allocation104_spill] sm:$0xff] }
 0xa3a   :  { %5803 = vmatprep.subr.bf16.mxu0 %v10389_v56  ;;  %v10400_v56 = vld [vmem:[#allocation165_spill] sm:$0xff] }
 0xa3c   :  { %5741 = vmatpush1.bf16.msra.mxu1 %v10390_v8  ;;  %v10401_v8 = vld [vmem:[#allocation167_spill] sm:$0xff] }
 0xa3d   :  { %5743 = vmatprep.subr.bf16.mxu1 %v10391_v51  ;;  %5805 = vmatpush1.bf16.msra.mxu0 %v10392_v6  ;;  %v10402_v51 = vld [vmem:[#allocation106_spill] sm:$0xff]  ;;  %v10403_v6 = vld [vmem:[#allocation108_spill] sm:$0xff] }
 0xa3e   :  { %5807 = vmatprep.subr.bf16.mxu0 %v10393_v39  ;;  %v10404_v39 = vld [vmem:[#allocation169_spill] sm:$0xff] }
 0xa40   :  { %5745 = vmatpush1.bf16.msra.mxu1 %v10394_v60  ;;  %v10405_v60 = vld [vmem:[#allocation171_spill] sm:$0xff] }
 0xa41   :  { %5747 = vmatprep.subr.bf16.mxu1 %v10395_v63  ;;  %5809 = vmatpush1.bf16.msra.mxu0 %v10396_v25  ;;  %v10406_v63 = vld [vmem:[#allocation110_spill] sm:$0xff]  ;;  %v10407_v25 = vld [vmem:[#allocation112_spill] sm:$0xff] }
 0xa42   :  { %5811 = vmatprep.subr.bf16.mxu0 %v10397_v33  ;;  %v10408_v33 = vld [vmem:[#allocation173_spill] sm:$0xff] }
 0xa44   :  { %5749 = vmatpush1.bf16.msra.mxu1 %v10398_v17  ;;  %v10409_v17 = vld [vmem:[#allocation175_spill] sm:$0xff] }
 0xa45   :  { %5751 = vmatprep.subr.bf16.mxu1 %v10399_v12  ;;  %5813 = vmatpush1.bf16.msra.mxu0 %v10400_v56  ;;  %v10410_v12 = vld [vmem:[#allocation114_spill] sm:$0xff]  ;;  %v10411_v56 = vld [vmem:[#allocation116_spill] sm:$0xff] }
 0xa46   :  { %5815 = vmatprep.subr.bf16.mxu0 %v10401_v8  ;;  %v10412_v8 = vld [vmem:[#allocation177_spill] sm:$0xff] }
 0xa48   :  { %5753 = vmatpush1.bf16.msra.mxu1 %v10402_v51  ;;  %v10413_v51 = vld [vmem:[#allocation195_spill] sm:$0xff] }
 0xa49   :  { %5755 = vmatprep.subr.bf16.mxu1 %v10403_v6  ;;  %5817 = vmatpush1.bf16.msra.mxu0 %v10404_v39  ;;  %v10415_v39 = vld [vmem:[#allocation120_spill] sm:$0xff]  ;;  %v10445_v6 = vld [vmem:[#allocation181_spill] sm:$0xff] }
 0xa4a   :  { %5819 = vmatprep.subr.bf16.mxu0 %v10405_v60  ;;  %v10414_v60 = vld [vmem:[#allocation118_spill] sm:$0xff] }
 0xa4c   :  { %5757 = vmatpush1.bf16.msra.mxu1 %v10406_v63 }
 0xa4d   :  { %5759 = vmatprep.subr.bf16.mxu1 %v10407_v25  ;;  %5821 = vmatpush1.bf16.msra.mxu0 %v10408_v33  ;;  %v10416_v25 = vld [vmem:[#allocation122_spill] sm:$0xff]  ;;  %v10417_v33 = vld [vmem:[#allocation124_spill] sm:$0xff] }
 0xa4e   :  { %5823 = vmatprep.subr.bf16.mxu0 %v10409_v17  ;;  %v10418_v17 = vld [vmem:[#allocation126_spill] sm:$0xff] }
 0xa50   :  { %5761 = vmatpush1.bf16.msra.mxu1 %v10410_v12  ;;  %v10419_v12 = vld [vmem:[#allocation128_spill] sm:$0xff] }
 0xa51   :  { %5827 = vmatprep.subr.bf16.mxu1 %v10411_v56  ;;  %5825 = vmatpush1.bf16.msra.mxu0 %v10412_v8  ;;  %v10420_v56 = vld [vmem:[#allocation130_spill] sm:$0xff]  ;;  %v10421_v8 = vld [vmem:[#allocation132_spill] sm:$0xff] }
 0xa52   :  { %5891 = vmatprep.subr.bf16.mxu0 %v10413_v51  ;;  %v10422_v51 = vld [vmem:[#allocation134_spill] sm:$0xff] }
 0xa53   :  { %2134 = vmatmul.mubr.f32.vlgmr.msra.gmra.mrb[10].mxu1 %v8556_v24  ;;  %v10423_v24 = vld [vmem:[#allocation136_spill] sm:$0xff] }
 0xa54   :  { %2299 = vmatprep.mubr.f32.mxu1 %v8616_v37  ;;  %5829 = vmatpush1.bf16.msra.mxu1 %v10414_v60  ;;  %v10424_v37 = vld [vmem:[#allocation138_spill] sm:$0xff]  ;;  %v10425_v60 = vld [vmem:[#allocation140_spill] sm:$0xff] }
 0xa55   :  { %5831 = vmatprep.subr.bf16.mxu1 %v10415_v39  ;;  %v10426_v39 = vld [vmem:[#allocation142_spill] sm:$0xff] }
 0xa58   :  { %5833 = vmatpush1.bf16.msra.mxu1 %v10416_v25  ;;  %v10427_v25 = vld [vmem:[#allocation144_spill] sm:$0xff] }
 0xa59   :  { %5835 = vmatprep.subr.bf16.mxu1 %v10417_v33  ;;  %v10428_v33 = vld [vmem:[#allocation146_spill] sm:$0xff] }
 0xa5c   :  { %5837 = vmatpush1.bf16.msra.mxu1 %v10418_v17  ;;  %v10429_v17 = vld [vmem:[#allocation148_spill] sm:$0xff] }
 0xa5d   :  { %5839 = vmatprep.subr.bf16.mxu1 %v10419_v12  ;;  %v10430_v12 = vld [vmem:[#allocation150_spill] sm:$0xff] }
 0xa60   :  { %5841 = vmatpush1.bf16.msra.mxu1 %v10420_v56  ;;  %v10431_v56 = vld [vmem:[#allocation152_spill] sm:$0xff] }
 0xa61   :  { %5843 = vmatprep.subr.bf16.mxu1 %v10421_v8  ;;  %v10432_v8 = vld [vmem:[#allocation154_spill] sm:$0xff] }
 0xa64   :  { %5845 = vmatpush1.bf16.msra.mxu1 %v10422_v51  ;;  %v10433_v51 = vld [vmem:[#allocation156_spill] sm:$0xff] }
 0xa65   :  { %5847 = vmatprep.subr.bf16.mxu1 %v10423_v24  ;;  %v10434_v24 = vld [vmem:[#allocation158_spill] sm:$0xff] }
 0xa68   :  { %5849 = vmatpush1.bf16.msra.mxu1 %v10424_v37  ;;  %v10435_v37 = vld [vmem:[#allocation160_spill] sm:$0xff] }
 0xa69   :  { %5851 = vmatprep.subr.bf16.mxu1 %v10425_v60  ;;  %v10436_v60 = vld [vmem:[#allocation162_spill] sm:$0xff] }
 0xa6c   :  { %5853 = vmatpush1.bf16.msra.mxu1 %v10426_v39  ;;  %v10437_v39 = vld [vmem:[#allocation164_spill] sm:$0xff] }
 0xa6d   :  { %5855 = vmatprep.subr.bf16.mxu1 %v10427_v25  ;;  %v10438_v25 = vld [vmem:[#allocation166_spill] sm:$0xff] }
 0xa70   :  { %5857 = vmatpush1.bf16.msra.mxu1 %v10428_v33  ;;  %v10439_v33 = vld [vmem:[#allocation168_spill] sm:$0xff] }
 0xa71   :  { %5859 = vmatprep.subr.bf16.mxu1 %v10429_v17  ;;  %v10440_v17 = vld [vmem:[#allocation170_spill] sm:$0xff] }
 0xa74   :  { %5861 = vmatpush1.bf16.msra.mxu1 %v10430_v12  ;;  %v10441_v12 = vld [vmem:[#allocation172_spill] sm:$0xff] }
 0xa75   :  { %5863 = vmatprep.subr.bf16.mxu1 %v10431_v56  ;;  %v10442_v56 = vld [vmem:[#allocation174_spill] sm:$0xff] }
 0xa78   :  { %5865 = vmatpush1.bf16.msra.mxu1 %v10432_v8  ;;  %v10443_v8 = vld [vmem:[#allocation176_spill] sm:$0xff] }
 0xa79   :  { %5867 = vmatprep.subr.bf16.mxu1 %v10433_v51  ;;  %v10444_v51 = vld [vmem:[#allocation178_spill] sm:$0xff] }
 0xa7c   :  { %5869 = vmatpush1.bf16.msra.mxu1 %v10434_v24 }
 0xa7d   :  { %5871 = vmatprep.subr.bf16.mxu1 %v10435_v37 }
 0xa80   :  { %5873 = vmatpush1.bf16.msra.mxu1 %v10436_v60 }
 0xa81   :  { %5875 = vmatprep.subr.bf16.mxu1 %v10437_v39 }
 0xa84   :  { %5877 = vmatpush1.bf16.msra.mxu1 %v10438_v25 }
 0xa85   :  { %5879 = vmatprep.subr.bf16.mxu1 %v10439_v33 }
 0xa88   :  { %5881 = vmatpush1.bf16.msra.mxu1 %v10440_v17 }
 0xa89   :  { %5883 = vmatprep.subr.bf16.mxu1 %v10441_v12 }
 0xa8c   :  { %5885 = vmatpush1.bf16.msra.mxu1 %v10442_v56 }
 0xa8d   :  { %5887 = vmatprep.subr.bf16.mxu1 %v10443_v8 }
 0xa90   :  { %5889 = vmatpush1.bf16.msra.mxu1 %v10444_v51 }
 0xac6   :  { %v4671_v24 = vpop.f32.mrb[8].mxu1 }
 0xac7   :  { %v4672_v37 = vpop.f32.mrb[9].mxu1 }
 0xac8   :  { %v4673_v63 = vadd.f32 %v4672_v37, %v4671_v24 }
 0xaca   :  { %v1847_v60 = vadd.f32 %v4673_v63, %v8545_v15 }
 0xacc   :  { %1851 = vst [vmem:[#allocation14 + $0x2] sm:$0x3] %v1847_v60 }
 0xae6   :  { %v1993_v39 = vpop.f32.mrb[10].mxu0 }
 0xae7   :  { %v1995_v25 = vpop.f32.mrb[11].mxu0  ;;  %v7010_v17 = vadd.f32 %v1993_v39, %v10445_v6 }
 0xae8   :  { %v7011_v33 = vadd.f32 %v1995_v25, %v10296_v32 }
 0xae9   :  { %v4576_v12 = vmul.f32 -1.442695, %v7010_v17 }
 0xaea   :  { %v4577_v43 = vmul.f32 -1.442695, %v7011_v33 }
 0xaec   :  { %7143 = vpow2.f32 %v4577_v43 }
 0xaed   :  { %7145 = vpow2.f32 %v4576_v12 }
 0xaf6   :  { %v7144_v56 = vpop.eup %7143 }
 0xaf7   :  { %v7146_v8 = vpop.eup %7145  ;;  %v2149_v27 = vadd.f32 1.0, %v7144_v56 }
 0xaf8   :  { %v2143_v51 = vadd.f32 1.0, %v7146_v8 }
 0xaf9   :  { %7147 = vrcp.f32 %v2149_v27 }
 0xafa   :  { %7149 = vrcp.f32 %v2143_v51 }
 0xb03   :  { %v7148_v39 = vpop.eup %7147 }
 0xb04   :  { %v7150_v33 = vpop.eup %7149  ;;  %v2159_v43 = vmul.f32 %v7148_v39, %v8553_v7  ;;  %v10446_v7 = vld [vmem:[#allocation23_spill] sm:$0xff] }
 0xb26   :  { %v2135_v36 = vpop.f32.mrb[10].mxu1 }
 0xb27   :  { %v7012_v24 = vadd.f32 %v2135_v36, %v8238_v52  ;;  %v2137_v63 = vpop.f32.mrb[11].mxu1 }
 0xb28   :  { %v7013_v60 = vadd.f32 %v2137_v63, %v10298_v14 }
 0xb29   :  { %7151 = vtanh.f32 %v7012_v24 }
 0xb2a   :  { %v4578_v25 = vmul.f32 -1.442695, %v7013_v60 }
 0xb2c   :  { %7153 = vpow2.f32 %v4578_v25 }
 0xb33   :  { %v7152_v17 = vpop.eup %7151 }
 0xb34   :  { %v2160_v12 = vmul.f32 %v7152_v17, %v7150_v33 }
 0xb36   :  { %v7154_v37 = vpop.eup %7153  ;;  %v8786_v56 = vadd.f32 %v2160_v12, %v2159_v43 }
 0xb37   :  { %v2156_v8 = vadd.f32 1.0, %v7154_v37 }
 0xb38   :  { %7155 = vtanh.f32 %v8786_v56 }
 0xb39   :  { %7157 = vrcp.f32 %v2156_v8 }
 0xb42   :  { %v7156_v27 = vpop.eup %7155 }
 0xb43   :  { %v7158_v36 = vpop.eup %7157 }
 0xb44   :  { %v8789_v51 = vmul.f32 %v7158_v36, %v7156_v27 }
 0xb46   :  { %2229 = vmatmul.mubr.f32.vlgmr.msra.gmra.mrb[12].mxu0 %v8789_v51  ;;  %2300 = vmatmul.mubr.f32.vlgmr.msra.gmra.mrb[12].mxu1 %v8789_v51 }
 0xb47   :  { %5893 = vmatpush3.bf16.msra.mxu0 %v8343_v58  ;;  %4863 = vmatprep.mubr.msk.f32.mxu1 %vm7520_vm7, %v10063_v30 }
 0xb48   :  { %5895 = vmatprep.subr.bf16.mxu0 %v8345_v47 }
 0xb4b   :  { %5897 = vmatpush3.bf16.msra.mxu0 %v8349_v19 }
 0xb4c   :  { %5899 = vmatprep.subr.bf16.mxu0 %v8352_v46 }
 0xb4f   :  { %5901 = vmatpush3.bf16.msra.mxu0 %v8355_v48 }
 0xb50   :  { %5903 = vmatprep.subr.bf16.mxu0 %v8358_v4 }
 0xb53   :  { %5905 = vmatpush3.bf16.msra.mxu0 %v8361_v29 }
 0xb54   :  { %5907 = vmatprep.subr.bf16.mxu0 %v8364_v28 }
 0xb57   :  { %5909 = vmatpush3.bf16.msra.mxu0 %v8368_v54 }
 0xb58   :  { %5911 = vmatprep.subr.bf16.mxu0 %v8371_v23  ;;  %v507_v23 = vld [vmem:[#allocation8 + $0x48] sm:$0xff] }
 0xb5b   :  { %5913 = vmatpush3.bf16.msra.mxu0 %v8373_v11  ;;  %v7519_v11 = vmov 0.0|0.0  }
 0xb5c   :  { %5915 = vmatprep.subr.bf16.mxu0 %v8377_v21  ;;  %5922 = vmatprep.subr.bf16.mxu1 %v7519_v11 }
 0xb5f   :  { %5917 = vmatpush3.bf16.msra.mxu0 %v8379_v62  ;;  %v10475_v62 = vld [vmem:[#allocation67_spill] sm:$0xff] }
 0xb60   :  { %5919 = vmatprep.subr.bf16.mxu0 %v8383_v38 }
 0xb63   :  { %5921 = vmatpush3.bf16.msra.mxu0 %v8388_v59 }
 0xb64   :  { %5947 = vmatprep.subr.bf16.mxu0 %v10446_v7 }
 0xc19   :  { %v2230_v24 = vpop.f32.mrb[12].mxu0  ;;  %v2301_v63 = vpop.f32.mrb[12].mxu1 }
 0xc1a   :  { %v2231_v60 = vadd.f32 %v2230_v24, %v10317_v49  ;;  %v2232_v25 = vpop.f32.mrb[13].mxu0  ;;  %v2303_v39 = vpop.f32.mrb[13].mxu1  ;;  %v2302_v8 = vadd.f32 %v2301_v63, %v10320_v5  ;;  %v10472_v5 = vld [vmem:[#allocation61_spill] sm:$0xff] }
 0xc1b   :  { %v2233_v33 = vadd.f32 %v2232_v25, %v10318_v1  ;;  %v2304_v12 = vadd.f32 %v2303_v39, %v10319_v41  ;;  %v10473_v41 = vld [vmem:[#allocation63_spill] sm:$0xff]  ;;  %v10474_v1 = vld [vmem:[#allocation65_spill] sm:$0xff] }
 0xc1c   :  { %v4579_v17 = vmul.f32 -1.442695, %v2231_v60 }
 0xc1d   :  { %v4580_v43 = vmul.f32 -1.442695, %v2233_v33  ;;  %v4581_v37 = vmul.f32 -1.442695, %v2304_v12 }
 0xc1e   :  { %7159 = vpow2.f32 %v4579_v17 }
 0xc1f   :  { %7161 = vpow2.f32 %v4580_v43 }
 0xc20   :  { %7163 = vpow2.f32 %v4581_v37 }
 0xc21   :  { %7165 = vtanh.f32 %v2302_v8 }
 0xc28   :  { %v7160_v27 = vpop.eup %7159 }
 0xc29   :  { %v7162_v36 = vpop.eup %7161  ;;  %v2309_v59 = vadd.f32 1.0, %v7160_v27 }
 0xc2a   :  { %v2315_v38 = vadd.f32 1.0, %v7162_v36  ;;  %v7164_v24 = vpop.eup %7163 }
 0xc2b   :  { %7167 = vrcp.f32 %v2309_v59  ;;  %v7166_v49 = vpop.eup %7165  ;;  %v2322_v17 = vadd.f32 1.0, %v7164_v24 }
 0xc2c   :  { %7169 = vrcp.f32 %v2315_v38 }
 0xc2d   :  { %7171 = vrcp.f32 %v2322_v17 }
 0xc35   :  { %v7168_v25 = vpop.eup %7167 }
 0xc36   :  { %v7170_v60 = vpop.eup %7169  ;;  %v2326_v33 = vmul.f32 %v7168_v25, %v7166_v49  ;;  %v8828_v25 = vld [vmem:[#allocation2 + $0x8] sm:$0xff] }
 0xc37   :  { %v2325_v43 = vmul.f32 %v7170_v60, %v8613_v55  ;;  %v7172_v63 = vpop.eup %7171  ;;  %v8824_v55 = vld [vmem:[#allocation2] sm:$0xff]  ;;  %10449 = vst [vmem:[#allocation183_spill] sm:$0xff] %v8828_v25 }
 0xc38   :  { %10448 = vst [vmem:[#allocation182_spill] sm:$0xff] %v8824_v55 }
 0xc39   :  { %v8814_v39 = vadd.f32 %v2326_v33, %v2325_v43 }
 0xc3b   :  { %10447 = vst [vmem:[#allocation30_spill] sm:$0xff] %v8814_v39  ;;  %7173 = vtanh.f32 %v8814_v39  ;;  %v10471_v39 = vld [vmem:[#allocation59_spill] sm:$0xff] }
 0xc45   :  { %v7174_v12 = vpop.eup %7173 }
 0xc46   :  { %v8817_v37 = vmul.f32 %v7174_v12, %v7172_v63 }
 0xc48   :  { %v2337_v38 = vrot.slane %v8817_v37, %v10322_v20 }
 0xc4a   :  { %v2345_v59 = vrot.slane %v2337_v38, %v10322_v20  ;;  %v2338_v8 = vcombine.high %v2337_v38, %v2337_v38 }
 0xc4c   :  { %v2356_v49 = vrot.slane %v2345_v59, %v10323_v44  ;;  %v2352_v27 = vrot.slane %v2338_v8, %v10322_v20  ;;  %v10470_v20 = vld [vmem:[#allocation57_spill] sm:$0xff] }
 0xc4e   :  { %v2363_v36 = vmul.f32 %v8824_v55, %v2356_v49  ;;  %v2360_v24 = vrot.slane %v2352_v27, %v10323_v44 }
 0xc50   :  { %2365 = vadd.xlane.f32.xlu1 %v2363_v36  ;;  %v2364_v60 = vmul.f32 %v8828_v25, %v2360_v24 }
 0xc52   :  { %2367 = vadd.xlane.f32.xlu0 %v2364_v60 }
 0xcdd   :  { %v2366_v33 = vpop.xlane.xlu1 %2365 }
 0xcde   :  { %v2374_v43 = vrot.slane %v2366_v33, %v10326_v57 }
 0xcdf   :  { %v2368_v17 = vpop.xlane.xlu0 %2367 }
 0xce0   :  { %v2378_v63 = vrot.slane %v2368_v17, %v10326_v57 }
 0xce2   :  { %v2379_v12 = vsel %vm1083_vm0, %v2378_v63, %v2374_v43 }
 0xce3   :  { %v2381_v38 = vsel %vm1070_vm1, %v2379_v12, -1e+09 }
 0xce4   :  { %v2382_v59 = vsel %vm1087_vm2, %v2381_v38, -inf }
 0xce5   :  { %2383 = vmax.xlane.f32.xlu0 %v2382_v59  ;;  %v8841_v59 = vld [vmem:[#allocation5 + $0x8] sm:$0xff] }
 0xce6   :  { %10450 = vst [vmem:[#allocation188_spill] sm:$0xff] %v8841_v59 }
 0xd72   :  { %v2384_v8 = vpop.xlane.xlu0 %2383 }
 0xd73   :  { %v2385_v49 = vsub.f32 %v2381_v38, %v2384_v8 }
 0xd75   :  { %v2386_v27 = vmul.f32 1.442695, %v2385_v49  ;;  %v8844_v49 = vld [vmem:[#allocation5] sm:$0xff] }
 0xd76   :  { %10451 = vst [vmem:[#allocation190_spill] sm:$0xff] %v8844_v49 }
 0xd77   :  { %7175 = vpow2.f32 %v2386_v27 }
 0xd81   :  { %v7176_v36 = vpop.eup %7175 }
 0xd82   :  { %v2388_v24 = vsel %vm1087_vm2, %v7176_v36, 0.0 }
 0xd83   :  { %2389 = vadd.xlane.f32.xlu1 %v2388_v24 }
 0xe10   :  { %v2390_v60 = vpop.xlane.xlu1 %2389 }
 0xe11   :  { %7177 = vrcp.f32 %v2390_v60 }
 0xe1b   :  { %v7178_v33 = vpop.eup %7177 }
 0xe1c   :  { %v2392_v17 = vmul.f32 %v7178_v33, %v7176_v36 }
 0xe1e   :  { %v2403_v43 = vrot.slane %v2392_v17, %v10328_v3  ;;  %2498 = vst.msk [vmem:[#allocation15 + $0x2] sm:$0x1] %vm1208_vm3, %v2392_v17  ;;  %v2396_v63 = vrot.slane %v2392_v17, %v10323_v44 }
 0xe20   :  { %2405 = vbcast.lane.b32.xlu1 %v2403_v43, 256  ;;  %2398 = vbcast.lane.b32.xlu0 %v2396_v63, 256 }
 0xe92   :  { %v2406_v12 = vpop.permute.xlu1 %2405  ;;  %v2399_v38 = vpop.permute.xlu0 %2398 }
 0xe93   :  { %v2408_v8 = vmul.f32 %v8841_v59, %v2406_v12  ;;  %v2407_v27 = vmul.f32 %v8844_v49, %v2399_v38  ;;  %v10452_v12 = vld [vmem:[#allocation25_spill] sm:$0xff]  ;;  %v10453_v38 = vld [vmem:[#allocation26_spill] sm:$0xff]  ;;  %v10469_v59 = vld [vmem:[#allocation55_spill] sm:$0xff] }
 0xe94   :  { %v10468_v49 = vld [vmem:[#allocation53_spill] sm:$0xff] }
 0xe95   :  { %v2415_v24 = vrot.slane %v2408_v8, 4  ;;  %v2409_v36 = vrot.slane %v2407_v27, 4 }
 0xe97   :  { %v2416_v60 = vadd.f32 %v2415_v24, %v2408_v8  ;;  %v2410_v33 = vadd.f32 %v2409_v36, %v2407_v27  ;;  %v10454_v8 = vld [vmem:[#allocation27_spill] sm:$0xff]  ;;  %v10460_v27 = vld [vmem:[#allocation37_spill] sm:$0xff] }
 0xe98   :  { %v10461_v24 = vld [vmem:[#allocation39_spill] sm:$0xff]  ;;  %v10462_v36 = vld [vmem:[#allocation41_spill] sm:$0xff] }
 0xe99   :  { %v2417_v3 = vrot.slane %v2416_v60, 2  ;;  %v2411_v40 = vrot.slane %v2410_v33, 2 }
 0xe9b   :  { %v2418_v57 = vadd.f32 %v2417_v3, %v2416_v60  ;;  %v2412_v17 = vadd.f32 %v2411_v40, %v2410_v33  ;;  %v10455_v40 = vld [vmem:[#allocation28_spill] sm:$0xff]  ;;  %v10456_v3 = vld [vmem:[#allocation29_spill] sm:$0xff]  ;;  %v10463_v60 = vld [vmem:[#allocation43_spill] sm:$0xff] }
 0xe9c   :  { %v10464_v33 = vld [vmem:[#allocation45_spill] sm:$0xff] }
 0xe9d   :  { %v2419_v43 = vrot.slane %v2418_v57, 1  ;;  %v2413_v63 = vrot.slane %v2412_v17, 1 }
 0xe9f   :  { %v2414_v25 = vadd.f32 %v2413_v63, %v2412_v17  ;;  %v2420_v55 = vadd.f32 %v2419_v43, %v2418_v57  ;;  %v10457_v57 = vld [vmem:[#allocation31_spill] sm:$0xff]  ;;  %v10466_v43 = vld [vmem:[#allocation49_spill] sm:$0xff] }
 0xea0   :  { %v10465_v17 = vld [vmem:[#allocation47_spill] sm:$0xff] }
 0xea1   :  { %v8848_v44 = vsel %vm1083_vm0, %v2420_v55, %v2414_v25  ;;  %v10458_v55 = vld [vmem:[#allocation33_spill] sm:$0xff]  ;;  %v10459_v25 = vld [vmem:[#allocation35_spill] sm:$0xff] }
 0xea2   :  { %2489 = vmatprep.mubr.f32.mxu0 %v8848_v44  ;;  %v10467_v63 = vld [vmem:[#allocation51_spill] sm:$0xff] }
 0xea3   :  { %2490 = vmatmul.mubr.f32.vlgmr.msra.gmra.mrb[14].mxu0 %v8817_v37 }
 0xea4   :  { %2657 = vmatprep.mubr.f32.mxu0 %v8848_v44  ;;  %5949 = vmatpush1.bf16.msra.mxu0 %v10452_v12 }
 0xea5   :  { %5951 = vmatprep.subr.bf16.mxu0 %v10453_v38 }
 0xea8   :  { %5953 = vmatpush1.bf16.msra.mxu0 %v10454_v8 }
 0xea9   :  { %5955 = vmatprep.subr.bf16.mxu0 %v10455_v40 }
 0xeac   :  { %5957 = vmatpush1.bf16.msra.mxu0 %v10456_v3 }
 0xead   :  { %5959 = vmatprep.subr.bf16.mxu0 %v10457_v57 }
 0xeb0   :  { %5961 = vmatpush1.bf16.msra.mxu0 %v10458_v55 }
 0xeb1   :  { %5963 = vmatprep.subr.bf16.mxu0 %v10459_v25 }
 0xeb4   :  { %5965 = vmatpush1.bf16.msra.mxu0 %v10460_v27 }
 0xeb5   :  { %5967 = vmatprep.subr.bf16.mxu0 %v10461_v24 }
 0xeb8   :  { %5969 = vmatpush1.bf16.msra.mxu0 %v10462_v36  ;;  %v506_v36 = vld [vmem:[#allocation8 + $0x40] sm:$0xff] }
 0xeb9   :  { %5971 = vmatprep.subr.bf16.mxu0 %v10463_v60  ;;  %v499_v60 = vld [vmem:[#allocation8 + $0x8] sm:$0xff]  ;;  %v5935_v24 = vpack.c.bf16 %v507_v23, %v506_v36  ;;  %v512_v23 = vld [vmem:[#allocation8 + $0x70] sm:$0xff]  ;;  %v513_v36 = vld [vmem:[#allocation8 + $0x78] sm:$0xff] }
 0xebc   :  { %5973 = vmatpush1.bf16.msra.mxu0 %v10464_v33 }
 0xebd   :  { %5975 = vmatprep.subr.bf16.mxu0 %v10465_v17  ;;  %v10476_v17 = vld [vmem:[#allocation69_spill] sm:$0xff] }
 0xec0   :  { %5977 = vmatpush1.bf16.msra.mxu0 %v10466_v43  ;;  %v10477_v43 = vld [vmem:[#allocation71_spill] sm:$0xff] }
 0xec1   :  { %5979 = vmatprep.subr.bf16.mxu0 %v10467_v63  ;;  %v10478_v63 = vld [vmem:[#allocation73_spill] sm:$0xff] }
 0xec4   :  { %5981 = vmatpush1.bf16.msra.mxu0 %v10468_v49  ;;  %v10479_v49 = vld [vmem:[#allocation75_spill] sm:$0xff] }
 0xec5   :  { %5983 = vmatprep.subr.bf16.mxu0 %v10469_v59  ;;  %v10480_v59 = vld [vmem:[#allocation77_spill] sm:$0xff] }
 0xec8   :  { %5985 = vmatpush1.bf16.msra.mxu0 %v10470_v20  ;;  %v10481_v20 = vld [vmem:[#allocation79_spill] sm:$0xff] }
 0xec9   :  { %5987 = vmatprep.subr.bf16.mxu0 %v10471_v39  ;;  %v10482_v39 = vld [vmem:[#allocation81_spill] sm:$0xff] }
 0xecc   :  { %5989 = vmatpush1.bf16.msra.mxu0 %v10472_v5  ;;  %v10483_v5 = vld [vmem:[#allocation83_spill] sm:$0xff] }
 0xecd   :  { %5991 = vmatprep.subr.bf16.mxu0 %v10473_v41 }
 0xed0   :  { %5993 = vmatpush1.bf16.msra.mxu0 %v10474_v1 }
 0xed1   :  { %5995 = vmatprep.subr.bf16.mxu0 %v10475_v62 }
 0xed4   :  { %5997 = vmatpush1.bf16.msra.mxu0 %v10476_v17 }
 0xed5   :  { %5999 = vmatprep.subr.bf16.mxu0 %v10477_v43 }
 0xed8   :  { %6001 = vmatpush1.bf16.msra.mxu0 %v10478_v63 }
 0xed9   :  { %6003 = vmatprep.subr.bf16.mxu0 %v10479_v49  ;;  %v10484_v49 = vld [vmem:[#allocation192_spill] sm:$0xff] }
 0xedc   :  { %6005 = vmatpush1.bf16.msra.mxu0 %v10480_v59 }
 0xedd   :  { %6007 = vmatprep.subr.bf16.mxu0 %v10481_v20 }
 0xee0   :  { %6009 = vmatpush1.bf16.msra.mxu0 %v10482_v39  ;;  %v498_v39 = vld [vmem:[#allocation8] sm:$0xff] }
 0xee1   :  { %6011 = vmatprep.subr.bf16.mxu0 %v10483_v5  ;;  %v500_v5 = vld [vmem:[#allocation8 + $0x10] sm:$0xff] }
 0xf76   :  { %v4706_v41 = vpop.f32.mrb[14].mxu0 }
 0xf77   :  { %v4707_v1 = vpop.f32.mrb[15].mxu0 }
 0xf78   :  { %v4708_v33 = vadd.f32 %v4707_v1, %v4706_v41  ;;  %v5923_v1 = vpack.c.bf16 %v499_v60, %v498_v39  ;;  %v501_v41 = vld [vmem:[#allocation8 + $0x18] sm:$0xff]  ;;  %v508_v39 = vld [vmem:[#allocation8 + $0x50] sm:$0xff] }
 0xf79   :  { %v509_v60 = vld [vmem:[#allocation8 + $0x58] sm:$0xff] }
 0xf7a   :  { %v2492_v17 = vadd.f32 %v4708_v33, %v8545_v15  ;;  %5924 = vmatpush3.bf16.msra.mxu1 %v5923_v1  ;;  %v5926_v15 = vpack.c.bf16 %v501_v41, %v500_v5  ;;  %v502_v33 = vld [vmem:[#allocation8 + $0x20] sm:$0xff]  ;;  %v5938_v5 = vpack.c.bf16 %v509_v60, %v508_v39  ;;  %v511_v41 = vld [vmem:[#allocation8 + $0x68] sm:$0xff] }
 0xf7b   :  { %5925 = vmatprep.subr.bf16.mxu1 %v7519_v11  ;;  %v510_v1 = vld [vmem:[#allocation8 + $0x60] sm:$0xff] }
 0xf7c   :  { %2496 = vst [vmem:[#allocation14 + $0x4] sm:$0x3] %v2492_v17  ;;  %v2500_v43 = vsel %vm2499_vm4, %v2492_v17, -inf }
 0xf7d   :  { %2501 = vmax.xlane.f32.xlu1 %v2500_v43  ;;  %v503_v43 = vld [vmem:[#allocation8 + $0x28] sm:$0xff] }
 0xf7e   :  { %5927 = vmatpush3.bf16.msra.mxu1 %v5926_v15  ;;  %v5941_v15 = vpack.c.bf16 %v511_v41, %v510_v1  ;;  %v10489_v1 = vld [vmem:[#allocation62_spill] sm:$0xff]  ;;  %v10490_v41 = vld [vmem:[#allocation64_spill] sm:$0xff] }
 0xf7f   :  { %5928 = vmatprep.subr.bf16.mxu1 %v7519_v11 }
0x100a   :  { %v2502_v63 = vpop.xlane.xlu1 %2501 }
0x100b   :  { %vm2503_vm5 = vcmp.eq.f32.partialorder %v2492_v17, %v2502_v63  ;;  %v5929_v17 = vpack.c.bf16 %v503_v43, %v502_v33  ;;  %v504_v63 = vld [vmem:[#allocation8 + $0x30] sm:$0xff] }
0x100c   :  { %v2504_v62 = vsel %vm2503_vm5, %v10484_v49, 128 }
0x100d   :  { %v2505_v59 = vsel %vm2499_vm4, %v2504_v62, 2147483647  ;;  %v505_v62 = vld [vmem:[#allocation8 + $0x38] sm:$0xff]  ;;  %5930 = vmatpush3.bf16.msra.mxu1 %v5929_v17 }
0x100e   :  { %v2507_v21 = vshra.s32 %v2505_v59, 16  ;;  %5931 = vmatprep.subr.bf16.mxu1 %v7519_v11  ;;  %v2506_v33 = vand.u32 65535, %v2505_v59  ;;  %v7521_v59 = vmov 1.0  }
0x1010   :  { %v2509_v20 = vcvt.s32.f32 %v2507_v21  ;;  %v5932_v21 = vpack.c.bf16 %v505_v62, %v504_v63  ;;  %v2508_v17 = vcvt.s32.f32 %v2506_v33  ;;  %v5944_v62 = vpack.c.bf16 %v513_v36, %v512_v23  ;;  %v10492_v33 = vld [vmem:[#allocation68_spill] sm:$0xff]  ;;  %v10497_v36 = vld [vmem:[#allocation78_spill] sm:$0xff] }
0x1011   :  { %v10496_v23 = vld [vmem:[#allocation76_spill] sm:$0xff] }
0x1012   :  { %2510 = vmin.xlane.f32.xlu0 %v2509_v20  ;;  %5933 = vmatpush3.bf16.msra.mxu1 %v5932_v21 }
0x1013   :  { %5934 = vmatprep.subr.bf16.mxu1 %v7519_v11 }
0x1016   :  { %5936 = vmatpush3.bf16.msra.mxu1 %v5935_v24  ;;  %v10485_v24 = vld [vmem:[#allocation24_spill] sm:$0xff] }
0x1017   :  { %5937 = vmatprep.subr.bf16.mxu1 %v7519_v11 }
0x101a   :  { %5939 = vmatpush3.bf16.msra.mxu1 %v5938_v5 }
0x101b   :  { %5940 = vmatprep.subr.bf16.mxu1 %v7519_v11 }
0x101e   :  { %5942 = vmatpush3.bf16.msra.mxu1 %v5941_v15  ;;  %v10491_v15 = vld [vmem:[#allocation66_spill] sm:$0xff] }
0x101f   :  { %5943 = vmatprep.subr.bf16.mxu1 %v7519_v11 }
0x1022   :  { %5945 = vmatpush3.bf16.msra.mxu1 %v5944_v62  ;;  %v10498_v62 = vld [vmem:[#allocation80_spill] sm:$0xff] }
0x1023   :  { %6043 = vmatprep.subr.bf16.mxu1 %v10485_v24 }
0x109f   :  { %v2511_v43 = vpop.xlane.xlu0 %2510 }
0x10a0   :  { %vm2512_vm6 = vcmp.eq.f32.partialorder %v2509_v20, %v2511_v43  ;;  %v2517_v21 = vcvt.f32.s32 %v2511_v43  ;;  %v10486_v20 = vld [vmem:[#allocation56_spill] sm:$0xff]  ;;  %v10493_v43 = vld [vmem:[#allocation70_spill] sm:$0xff] }
0x10a1   :  { %v2513_v63 = vsel %vm2512_vm6, %v2508_v17, inf  ;;  %v10494_v17 = vld [vmem:[#allocation72_spill] sm:$0xff] }
0x10a2   :  { %2514 = vmin.xlane.f32.xlu0 %v2513_v63  ;;  %v2518_v60 = vshll.u32 %v2517_v21, 16  ;;  %v10495_v63 = vld [vmem:[#allocation74_spill] sm:$0xff] }
0x10a3   :  { %v10499_v21 = vld [vmem:[#allocation82_spill] sm:$0xff] }
0x112f   :  { %v2515_v39 = vpop.xlane.xlu0 %2514 }
0x1130   :  { %v2516_v5 = vcvt.f32.s32 %v2515_v39  ;;  %v10500_v39 = vld [vmem:[#allocation84_spill] sm:$0xff] }
0x1132   :  { %v2519_v11 = vadd.s32 %v2518_v60, %v2516_v5 }
0x1134   :  { %vm2520_vm8 = vcmp.eq.s32.totalorder %v10484_v49, %v2519_v11  ;;  %v10488_v49 = vld [vmem:[#allocation60_spill] sm:$0xff]  ;;  %v10501_v11 = vld [vmem:[#allocation85_spill] sm:$0xff] }
0x1135   :  { %4864 = vmatmul.mubr.msk.f32.vlgmr.msra.gmra.mrb[14].mxu1 %vm2520_vm8, %v7521_v59  ;;  %v10502_v59 = vld [vmem:[#allocation86_spill] sm:$0xff] }
0x1136   :  { %2799 = vmatprep.mubr.f32.mxu1 %v8848_v44  ;;  %6045 = vmatpush1.bf16.msra.mxu1 %v7729_v13  ;;  %v10487_v44 = vld [vmem:[#allocation58_spill] sm:$0xff] }
0x1137   :  { %6047 = vmatprep.subr.bf16.mxu1 %v7735_v18 }
0x113a   :  { %6049 = vmatpush1.bf16.msra.mxu1 %v7742_v26 }
0x113b   :  { %6051 = vmatprep.subr.bf16.mxu1 %v7746_v31 }
0x113e   :  { %6053 = vmatpush1.bf16.msra.mxu1 %v10179_v10 }
0x113f   :  { %6055 = vmatprep.subr.bf16.mxu1 %v10329_v9 }
0x1142   :  { %6057 = vmatpush1.bf16.msra.mxu1 %v10331_v22 }
0x1143   :  { %6059 = vmatprep.subr.bf16.mxu1 %v10333_v35 }
0x1146   :  { %6061 = vmatpush1.bf16.msra.mxu1 %v10335_v53 }
0x1147   :  { %6063 = vmatprep.subr.bf16.mxu1 %v10337_v34 }
0x114a   :  { %6065 = vmatpush1.bf16.msra.mxu1 %v10339_v2 }
0x114b   :  { %6067 = vmatprep.subr.bf16.mxu1 %v10341_v42 }
0x114e   :  { %6069 = vmatpush1.bf16.msra.mxu1 %v10343_v0 }
0x114f   :  { %6071 = vmatprep.subr.bf16.mxu1 %v10345_v50  ;;  %v10542_v50 = vld [vmem:[#allocation126_spill] sm:$0xff] }
0x1152   :  { %6073 = vmatpush1.bf16.msra.mxu1 %v10347_v45  ;;  %v10532_v45 = vld [vmem:[#allocation116_spill] sm:$0xff] }
0x1153   :  { %6075 = vmatprep.subr.bf16.mxu1 %v10348_v16  ;;  %v10530_v16 = vld [vmem:[#allocation114_spill] sm:$0xff] }
0x1156   :  { %6077 = vmatpush1.bf16.msra.mxu1 %v10350_v61  ;;  %v10528_v61 = vld [vmem:[#allocation112_spill] sm:$0xff] }
0x1157   :  { %6079 = vmatprep.subr.bf16.mxu1 %v10486_v20  ;;  %v10526_v20 = vld [vmem:[#allocation110_spill] sm:$0xff] }
0x115a   :  { %6081 = vmatpush1.bf16.msra.mxu1 %v10487_v44  ;;  %v10524_v44 = vld [vmem:[#allocation108_spill] sm:$0xff] }
0x115b   :  { %6083 = vmatprep.subr.bf16.mxu1 %v10488_v49  ;;  %v10522_v49 = vld [vmem:[#allocation106_spill] sm:$0xff] }
0x115e   :  { %6085 = vmatpush1.bf16.msra.mxu1 %v10489_v1  ;;  %v10520_v1 = vld [vmem:[#allocation104_spill] sm:$0xff] }
0x115f   :  { %6087 = vmatprep.subr.bf16.mxu1 %v10490_v41  ;;  %v10518_v41 = vld [vmem:[#allocation102_spill] sm:$0xff] }
0x1162   :  { %6089 = vmatpush1.bf16.msra.mxu1 %v10491_v15  ;;  %v10516_v15 = vld [vmem:[#allocation100_spill] sm:$0xff] }
0x1163   :  { %6091 = vmatprep.subr.bf16.mxu1 %v10492_v33  ;;  %v10515_v33 = vld [vmem:[#allocation99_spill] sm:$0xff] }
0x1166   :  { %6093 = vmatpush1.bf16.msra.mxu1 %v10493_v43  ;;  %v10514_v43 = vld [vmem:[#allocation98_spill] sm:$0xff] }
0x1167   :  { %6095 = vmatprep.subr.bf16.mxu1 %v10494_v17  ;;  %v10503_v17 = vld [vmem:[#allocation87_spill] sm:$0xff] }
0x116a   :  { %6097 = vmatpush1.bf16.msra.mxu1 %v10495_v63  ;;  %v10504_v63 = vld [vmem:[#allocation88_spill] sm:$0xff] }
0x116b   :  { %6099 = vmatprep.subr.bf16.mxu1 %v10496_v23  ;;  %v10512_v23 = vld [vmem:[#allocation96_spill] sm:$0xff] }
0x116e   :  { %6101 = vmatpush1.bf16.msra.mxu1 %v10497_v36  ;;  %v10510_v36 = vld [vmem:[#allocation94_spill] sm:$0xff] }
0x116f   :  { %6103 = vmatprep.subr.bf16.mxu1 %v10498_v62  ;;  %v10505_v62 = vld [vmem:[#allocation89_spill] sm:$0xff] }
0x1172   :  { %6105 = vmatpush1.bf16.msra.mxu1 %v10499_v21  ;;  %v10506_v21 = vld [vmem:[#allocation90_spill] sm:$0xff] }
0x1173   :  { %6107 = vmatprep.subr.bf16.mxu1 %v10500_v39  ;;  %v10507_v39 = vld [vmem:[#allocation91_spill] sm:$0xff] }
0x1208   :  { %v2589_v60 = vpop.f32.mrb[14].mxu1 }
0x1209   :  { %v4865_v5 = vpop.f32.mrb[15].mxu1  ;;  %2658 = vmatmul.mubr.f32.vlgmr.msra.gmra.mrb[16].mxu0 %v2589_v60  ;;  %2800 = vmatmul.mubr.f32.vlgmr.msra.gmra.mrb[16].mxu1 %v2589_v60  ;;  %v10509_v60 = vld [vmem:[#allocation93_spill] sm:$0xff] }
0x120a   :  { %6013 = vmatpush1.bf16.msra.mxu0 %v10501_v11  ;;  %6109 = vmatpush1.bf16.msra.mxu1 %v10502_v59  ;;  %v10508_v5 = vld [vmem:[#allocation92_spill] sm:$0xff]  ;;  %v10511_v59 = vld [vmem:[#allocation95_spill] sm:$0xff] }
0x120b   :  { %6015 = vmatprep.subr.bf16.mxu0 %v10503_v17  ;;  %6111 = vmatprep.subr.bf16.mxu1 %v10504_v63  ;;  %v10513_v63 = vld [vmem:[#allocation97_spill] sm:$0xff] }
0x120c   :  { %2728 = vmatprep.mubr.f32.mxu0 %v10063_v30  ;;  %2870 = vmatprep.mubr.f32.mxu1 %v10063_v30 }
0x120e   :  { %6017 = vmatpush1.bf16.msra.mxu0 %v10505_v62  ;;  %6113 = vmatpush1.bf16.msra.mxu1 %v10506_v21  ;;  %v10517_v21 = vld [vmem:[#allocation101_spill] sm:$0xff] }
0x120f   :  { %6019 = vmatprep.subr.bf16.mxu0 %v10507_v39  ;;  %6115 = vmatprep.subr.bf16.mxu1 %v10508_v5  ;;  %v10519_v5 = vld [vmem:[#allocation103_spill] sm:$0xff] }
0x1212   :  { %6021 = vmatpush1.bf16.msra.mxu0 %v10509_v60  ;;  %6117 = vmatpush1.bf16.msra.mxu1 %v10510_v36  ;;  %v10521_v36 = vld [vmem:[#allocation105_spill] sm:$0xff] }
0x1213   :  { %6023 = vmatprep.subr.bf16.mxu0 %v10511_v59  ;;  %6119 = vmatprep.subr.bf16.mxu1 %v10512_v23  ;;  %v10523_v23 = vld [vmem:[#allocation107_spill] sm:$0xff] }
0x1216   :  { %6025 = vmatpush1.bf16.msra.mxu0 %v10513_v63  ;;  %6121 = vmatpush1.bf16.msra.mxu1 %v10514_v43  ;;  %v10525_v43 = vld [vmem:[#allocation109_spill] sm:$0xff] }
0x1217   :  { %6027 = vmatprep.subr.bf16.mxu0 %v10515_v33  ;;  %6123 = vmatprep.subr.bf16.mxu1 %v10516_v15  ;;  %v10527_v15 = vld [vmem:[#allocation111_spill] sm:$0xff] }
0x121a   :  { %6029 = vmatpush1.bf16.msra.mxu0 %v10517_v21  ;;  %6125 = vmatpush1.bf16.msra.mxu1 %v10518_v41  ;;  %v10529_v41 = vld [vmem:[#allocation113_spill] sm:$0xff] }
0x121b   :  { %6031 = vmatprep.subr.bf16.mxu0 %v10519_v5  ;;  %6127 = vmatprep.subr.bf16.mxu1 %v10520_v1  ;;  %v10531_v1 = vld [vmem:[#allocation115_spill] sm:$0xff] }
0x121e   :  { %6033 = vmatpush1.bf16.msra.mxu0 %v10521_v36  ;;  %6129 = vmatpush1.bf16.msra.mxu1 %v10522_v49  ;;  %v10536_v49 = vld [vmem:[#allocation120_spill] sm:$0xff] }
0x121f   :  { %6035 = vmatprep.subr.bf16.mxu0 %v10523_v23  ;;  %6131 = vmatprep.subr.bf16.mxu1 %v10524_v44  ;;  %v10534_v44 = vld [vmem:[#allocation118_spill] sm:$0xff] }
0x1222   :  { %6037 = vmatpush1.bf16.msra.mxu0 %v10525_v43  ;;  %6133 = vmatpush1.bf16.msra.mxu1 %v10526_v20  ;;  %v10533_v20 = vld [vmem:[#allocation117_spill] sm:$0xff] }
0x1223   :  { %6039 = vmatprep.subr.bf16.mxu0 %v10527_v15  ;;  %6135 = vmatprep.subr.bf16.mxu1 %v10528_v61  ;;  %v10535_v61 = vld [vmem:[#allocation119_spill] sm:$0xff] }
0x1226   :  { %6041 = vmatpush1.bf16.msra.mxu0 %v10529_v41  ;;  %6137 = vmatpush1.bf16.msra.mxu1 %v10530_v16  ;;  %v10537_v16 = vld [vmem:[#allocation121_spill] sm:$0xff]  ;;  %v10540_v41 = vld [vmem:[#allocation124_spill] sm:$0xff] }
0x1227   :  { %6139 = vmatprep.subr.bf16.mxu0 %v10531_v1  ;;  %6203 = vmatprep.subr.bf16.mxu1 %v10532_v45  ;;  %v10538_v1 = vld [vmem:[#allocation122_spill] sm:$0xff]  ;;  %v10539_v45 = vld [vmem:[#allocation123_spill] sm:$0xff] }
0x1229   :  { %2729 = vmatmul.mubr.f32.vlgmr.msra.gmra.mrb[16].mxu0 %v8789_v51  ;;  %2871 = vmatmul.mubr.f32.vlgmr.msra.gmra.mrb[16].mxu1 %v8789_v51  ;;  %v10541_v51 = vld [vmem:[#allocation125_spill] sm:$0xff] }
0x122a   :  { %2965 = vmatprep.mubr.f32.mxu0 %v8817_v37  ;;  %3036 = vmatprep.mubr.f32.mxu1 %v8817_v37  ;;  %v10543_v37 = vld [vmem:[#allocation127_spill] sm:$0xff] }
0x122b   :  { %6141 = vmatpush1.bf16.msra.mxu0 %v10533_v20  ;;  %6205 = vmatpush1.bf16.msra.mxu1 %v10534_v44  ;;  %v10544_v20 = vld [vmem:[#allocation128_spill] sm:$0xff]  ;;  %v10545_v44 = vld [vmem:[#allocation129_spill] sm:$0xff] }
0x122c   :  { %6143 = vmatprep.subr.bf16.mxu0 %v10535_v61  ;;  %6207 = vmatprep.subr.bf16.mxu1 %v10536_v49  ;;  %v10546_v61 = vld [vmem:[#allocation130_spill] sm:$0xff]  ;;  %v10547_v49 = vld [vmem:[#allocation131_spill] sm:$0xff] }
0x122f   :  { %6145 = vmatpush1.bf16.msra.mxu0 %v10537_v16  ;;  %6209 = vmatpush1.bf16.msra.mxu1 %v10538_v1  ;;  %v10548_v16 = vld [vmem:[#allocation132_spill] sm:$0xff]  ;;  %v10549_v1 = vld [vmem:[#allocation133_spill] sm:$0xff] }
0x1230   :  { %6147 = vmatprep.subr.bf16.mxu0 %v10539_v45  ;;  %6211 = vmatprep.subr.bf16.mxu1 %v10540_v41  ;;  %v10550_v45 = vld [vmem:[#allocation134_spill] sm:$0xff]  ;;  %v10551_v41 = vld [vmem:[#allocation135_spill] sm:$0xff] }
0x1233   :  { %6149 = vmatpush1.bf16.msra.mxu0 %v10541_v51  ;;  %6213 = vmatpush1.bf16.msra.mxu1 %v10542_v50  ;;  %v10552_v51 = vld [vmem:[#allocation136_spill] sm:$0xff]  ;;  %v10553_v50 = vld [vmem:[#allocation137_spill] sm:$0xff] }
0x1234   :  { %6151 = vmatprep.subr.bf16.mxu0 %v10543_v37  ;;  %6215 = vmatprep.subr.bf16.mxu1 %v10544_v20  ;;  %v10554_v37 = vld [vmem:[#allocation138_spill] sm:$0xff]  ;;  %v10555_v20 = vld [vmem:[#allocation139_spill] sm:$0xff] }
0x1237   :  { %6153 = vmatpush1.bf16.msra.mxu0 %v10545_v44  ;;  %6217 = vmatpush1.bf16.msra.mxu1 %v10546_v61  ;;  %v10556_v44 = vld [vmem:[#allocation140_spill] sm:$0xff]  ;;  %v10557_v61 = vld [vmem:[#allocation141_spill] sm:$0xff] }
0x1238   :  { %6155 = vmatprep.subr.bf16.mxu0 %v10547_v49  ;;  %6219 = vmatprep.subr.bf16.mxu1 %v10548_v16  ;;  %v10558_v49 = vld [vmem:[#allocation142_spill] sm:$0xff]  ;;  %v10559_v16 = vld [vmem:[#allocation143_spill] sm:$0xff] }
0x123b   :  { %6157 = vmatpush1.bf16.msra.mxu0 %v10549_v1  ;;  %6221 = vmatpush1.bf16.msra.mxu1 %v10550_v45  ;;  %v10560_v1 = vld [vmem:[#allocation144_spill] sm:$0xff]  ;;  %v10561_v45 = vld [vmem:[#allocation145_spill] sm:$0xff] }
0x123c   :  { %6159 = vmatprep.subr.bf16.mxu0 %v10551_v41  ;;  %6223 = vmatprep.subr.bf16.mxu1 %v10552_v51  ;;  %v10562_v41 = vld [vmem:[#allocation146_spill] sm:$0xff]  ;;  %v10563_v51 = vld [vmem:[#allocation147_spill] sm:$0xff] }
0x123f   :  { %6161 = vmatpush1.bf16.msra.mxu0 %v10553_v50  ;;  %6225 = vmatpush1.bf16.msra.mxu1 %v10554_v37  ;;  %v10564_v50 = vld [vmem:[#allocation148_spill] sm:$0xff]  ;;  %v10565_v37 = vld [vmem:[#allocation149_spill] sm:$0xff] }
0x1240   :  { %6163 = vmatprep.subr.bf16.mxu0 %v10555_v20  ;;  %6227 = vmatprep.subr.bf16.mxu1 %v10556_v44  ;;  %v10566_v20 = vld [vmem:[#allocation150_spill] sm:$0xff]  ;;  %v10567_v44 = vld [vmem:[#allocation151_spill] sm:$0xff] }
0x1243   :  { %6165 = vmatpush1.bf16.msra.mxu0 %v10557_v61  ;;  %6229 = vmatpush1.bf16.msra.mxu1 %v10558_v49  ;;  %v10568_v61 = vld [vmem:[#allocation152_spill] sm:$0xff]  ;;  %v10569_v49 = vld [vmem:[#allocation153_spill] sm:$0xff] }
0x1244   :  { %6167 = vmatprep.subr.bf16.mxu0 %v10559_v16  ;;  %6231 = vmatprep.subr.bf16.mxu1 %v10560_v1  ;;  %v10570_v16 = vld [vmem:[#allocation154_spill] sm:$0xff]  ;;  %v10571_v1 = vld [vmem:[#allocation155_spill] sm:$0xff] }
0x1247   :  { %6169 = vmatpush1.bf16.msra.mxu0 %v10561_v45  ;;  %6233 = vmatpush1.bf16.msra.mxu1 %v10562_v41  ;;  %v10572_v45 = vld [vmem:[#allocation156_spill] sm:$0xff]  ;;  %v10573_v41 = vld [vmem:[#allocation157_spill] sm:$0xff] }
0x1248   :  { %6171 = vmatprep.subr.bf16.mxu0 %v10563_v51  ;;  %6235 = vmatprep.subr.bf16.mxu1 %v10564_v50  ;;  %v10574_v51 = vld [vmem:[#allocation158_spill] sm:$0xff]  ;;  %v10575_v50 = vld [vmem:[#allocation159_spill] sm:$0xff] }
0x124b   :  { %6173 = vmatpush1.bf16.msra.mxu0 %v10565_v37  ;;  %6237 = vmatpush1.bf16.msra.mxu1 %v10566_v20  ;;  %v10576_v37 = vld [vmem:[#allocation160_spill] sm:$0xff]  ;;  %v10577_v20 = vld [vmem:[#allocation161_spill] sm:$0xff] }
0x124c   :  { %6175 = vmatprep.subr.bf16.mxu0 %v10567_v44  ;;  %6239 = vmatprep.subr.bf16.mxu1 %v10568_v61  ;;  %v10578_v44 = vld [vmem:[#allocation162_spill] sm:$0xff]  ;;  %v10579_v61 = vld [vmem:[#allocation163_spill] sm:$0xff] }
0x124f   :  { %6177 = vmatpush1.bf16.msra.mxu0 %v10569_v49  ;;  %6241 = vmatpush1.bf16.msra.mxu1 %v10570_v16  ;;  %v10580_v49 = vld [vmem:[#allocation164_spill] sm:$0xff]  ;;  %v10581_v16 = vld [vmem:[#allocation165_spill] sm:$0xff] }
0x1250   :  { %6179 = vmatprep.subr.bf16.mxu0 %v10571_v1  ;;  %6243 = vmatprep.subr.bf16.mxu1 %v10572_v45  ;;  %v10582_v1 = vld [vmem:[#allocation166_spill] sm:$0xff]  ;;  %v10583_v45 = vld [vmem:[#allocation167_spill] sm:$0xff] }
0x1253   :  { %6181 = vmatpush1.bf16.msra.mxu0 %v10573_v41  ;;  %6245 = vmatpush1.bf16.msra.mxu1 %v10574_v51  ;;  %v10584_v41 = vld [vmem:[#allocation168_spill] sm:$0xff]  ;;  %v10585_v51 = vld [vmem:[#allocation169_spill] sm:$0xff] }
0x1254   :  { %6183 = vmatprep.subr.bf16.mxu0 %v10575_v50  ;;  %6247 = vmatprep.subr.bf16.mxu1 %v10576_v37  ;;  %v10586_v50 = vld [vmem:[#allocation170_spill] sm:$0xff]  ;;  %v10587_v37 = vld [vmem:[#allocation171_spill] sm:$0xff] }
0x1257   :  { %6185 = vmatpush1.bf16.msra.mxu0 %v10577_v20  ;;  %6249 = vmatpush1.bf16.msra.mxu1 %v10578_v44  ;;  %v10588_v20 = vld [vmem:[#allocation172_spill] sm:$0xff]  ;;  %v10589_v44 = vld [vmem:[#allocation173_spill] sm:$0xff] }
0x1258   :  { %6187 = vmatprep.subr.bf16.mxu0 %v10579_v61  ;;  %6251 = vmatprep.subr.bf16.mxu1 %v10580_v49  ;;  %v10590_v61 = vld [vmem:[#allocation174_spill] sm:$0xff]  ;;  %v10591_v49 = vld [vmem:[#allocation175_spill] sm:$0xff] }
0x125b   :  { %6189 = vmatpush1.bf16.msra.mxu0 %v10581_v16  ;;  %6253 = vmatpush1.bf16.msra.mxu1 %v10582_v1  ;;  %v10592_v16 = vld [vmem:[#allocation176_spill] sm:$0xff]  ;;  %v10593_v1 = vld [vmem:[#allocation177_spill] sm:$0xff] }
0x125c   :  { %6191 = vmatprep.subr.bf16.mxu0 %v10583_v45  ;;  %6255 = vmatprep.subr.bf16.mxu1 %v10584_v41  ;;  %v10594_v45 = vld [vmem:[#allocation178_spill] sm:$0xff]  ;;  %v10595_v41 = vld [vmem:[#allocation195_spill] sm:$0xff] }
0x125f   :  { %6193 = vmatpush1.bf16.msra.mxu0 %v10585_v51  ;;  %6257 = vmatpush1.bf16.msra.mxu1 %v10586_v50 }
0x1260   :  { %6195 = vmatprep.subr.bf16.mxu0 %v10587_v37  ;;  %6259 = vmatprep.subr.bf16.mxu1 %v10588_v20 }
0x1263   :  { %6197 = vmatpush1.bf16.msra.mxu0 %v10589_v44  ;;  %6261 = vmatpush1.bf16.msra.mxu1 %v10590_v61 }
0x1264   :  { %6199 = vmatprep.subr.bf16.mxu0 %v10591_v49  ;;  %6263 = vmatprep.subr.bf16.mxu1 %v10592_v16 }
0x1267   :  { %6201 = vmatpush1.bf16.msra.mxu0 %v10593_v1  ;;  %6265 = vmatpush1.bf16.msra.mxu1 %v10594_v45 }
0x1268   :  { %6299 = vmatprep.subr.bf16.mxu1 %v10446_v7  ;;  %6267 = vmatprep.subr.bf16.mxu0 %v10595_v41 }
0x12fc   :  { %v2730_v50 = vpop.f32.mrb[16].mxu0  ;;  %v2872_v37 = vpop.f32.mrb[16].mxu1 }
0x12fd   :  { %v7014_v20 = vadd.f32 %v2730_v50, %v10445_v6  ;;  %v2732_v51 = vpop.f32.mrb[17].mxu0  ;;  %v2874_v44 = vpop.f32.mrb[17].mxu1  ;;  %v7016_v45 = vadd.f32 %v2872_v37, %v8238_v52  ;;  %v10602_v37 = vld [vmem:[#allocation45_spill] sm:$0xff] }
0x12fe   :  { %v7015_v61 = vadd.f32 %v2732_v51, %v10296_v32  ;;  %v7017_v16 = vadd.f32 %v2874_v44, %v10298_v14 }
0x12ff   :  { %v4584_v15 = vmul.f32 -1.442695, %v7014_v20 }
0x1300   :  { %v4585_v49 = vmul.f32 -1.442695, %v7015_v61  ;;  %v4586_v1 = vmul.f32 -1.442695, %v7017_v16 }
0x1301   :  { %7179 = vpow2.f32 %v4584_v15 }
0x1302   :  { %7181 = vpow2.f32 %v4585_v49 }
0x1303   :  { %7183 = vpow2.f32 %v4586_v1 }
0x1304   :  { %7185 = vtanh.f32 %v7016_v45  ;;  %v10598_v45 = vld [vmem:[#allocation41_spill] sm:$0xff] }
0x130b   :  { %v7180_v7 = vpop.eup %7179 }
0x130c   :  { %v7182_v0 = vpop.eup %7181  ;;  %v2880_v41 = vadd.f32 1.0, %v7180_v7 }
0x130d   :  { %v2886_v43 = vadd.f32 1.0, %v7182_v0  ;;  %v7184_v50 = vpop.eup %7183  ;;  %v10597_v0 = vld [vmem:[#allocation199_spill] sm:$0xff] }
0x130e   :  { %7187 = vrcp.f32 %v2880_v41  ;;  %v7186_v6 = vpop.eup %7185  ;;  %v2893_v15 = vadd.f32 1.0, %v7184_v50  ;;  %v10600_v41 = vld [vmem:[#allocation43_spill] sm:$0xff]  ;;  %v10603_v50 = vld [vmem:[#allocation202_spill] sm:$0xff] }
0x130f   :  { %7189 = vrcp.f32 %v2886_v43  ;;  %v10601_v43 = vld [vmem:[#allocation201_spill] sm:$0xff] }
0x1310   :  { %7191 = vrcp.f32 %v2893_v15  ;;  %v10607_v15 = vld [vmem:[#allocation204_spill] sm:$0xff] }
0x1318   :  { %v7188_v51 = vpop.eup %7187 }
0x1319   :  { %v7190_v20 = vpop.eup %7189  ;;  %v2897_v61 = vmul.f32 %v7188_v51, %v7186_v6  ;;  %v10596_v6 = vld [vmem:[#allocation39_spill] sm:$0xff] }
0x131a   :  { %v2896_v49 = vmul.f32 %v7190_v20, %v8786_v56  ;;  %v7192_v16 = vpop.eup %7191  ;;  %v10599_v56 = vld [vmem:[#allocation200_spill] sm:$0xff]  ;;  %v10604_v51 = vld [vmem:[#allocation47_spill] sm:$0xff] }
0x131b   :  { %v10605_v20 = vld [vmem:[#allocation203_spill] sm:$0xff] }
0x131c   :  { %v9030_v44 = vadd.f32 %v2897_v61, %v2896_v49  ;;  %v10606_v61 = vld [vmem:[#allocation49_spill] sm:$0xff]  ;;  %v10608_v49 = vld [vmem:[#allocation51_spill] sm:$0xff] }
0x131e   :  { %7193 = vtanh.f32 %v9030_v44 }
0x1328   :  { %v7194_v7 = vpop.eup %7193 }
0x1329   :  { %v9033_v1 = vmul.f32 %v7194_v7, %v7192_v16  ;;  %v10609_v16 = vld [vmem:[#allocation53_spill] sm:$0xff]  ;;  %v10610_v7 = vld [vmem:[#allocation55_spill] sm:$0xff] }
0x132b   :  { %2966 = vmatmul.mubr.f32.vlgmr.msra.gmra.mrb[18].mxu0 %v9033_v1  ;;  %3037 = vmatmul.mubr.f32.vlgmr.msra.gmra.mrb[18].mxu1 %v9033_v1 }
0x132c   :  { %6301 = vmatpush1.bf16.msra.mxu1 %v10452_v12  ;;  %6269 = vmatpush3.bf16.msra.mxu0 %v8343_v58 }
0x132d   :  { %6303 = vmatprep.subr.bf16.mxu1 %v10453_v38  ;;  %6271 = vmatprep.subr.bf16.mxu0 %v8345_v47 }
0x1330   :  { %6305 = vmatpush1.bf16.msra.mxu1 %v10454_v8  ;;  %6273 = vmatpush3.bf16.msra.mxu0 %v8349_v19 }
0x1331   :  { %6307 = vmatprep.subr.bf16.mxu1 %v10455_v40  ;;  %6275 = vmatprep.subr.bf16.mxu0 %v8352_v46 }
0x1334   :  { %6309 = vmatpush1.bf16.msra.mxu1 %v10456_v3  ;;  %6277 = vmatpush3.bf16.msra.mxu0 %v8355_v48 }
0x1335   :  { %6311 = vmatprep.subr.bf16.mxu1 %v10457_v57  ;;  %6279 = vmatprep.subr.bf16.mxu0 %v8358_v4 }
0x1338   :  { %6313 = vmatpush1.bf16.msra.mxu1 %v10458_v55  ;;  %6281 = vmatpush3.bf16.msra.mxu0 %v8361_v29 }
0x1339   :  { %6315 = vmatprep.subr.bf16.mxu1 %v10459_v25  ;;  %6283 = vmatprep.subr.bf16.mxu0 %v8364_v28 }
0x133c   :  { %6317 = vmatpush1.bf16.msra.mxu1 %v10460_v27  ;;  %6285 = vmatpush3.bf16.msra.mxu0 %v8368_v54 }
0x133d   :  { %6319 = vmatprep.subr.bf16.mxu1 %v10596_v6  ;;  %6287 = vmatprep.subr.bf16.mxu0 %v10597_v0 }
0x1340   :  { %6321 = vmatpush1.bf16.msra.mxu1 %v10598_v45  ;;  %6289 = vmatpush3.bf16.msra.mxu0 %v10599_v56  ;;  %v10626_v45 = vld [vmem:[#allocation185_spill] sm:$0xff] }
0x1341   :  { %6323 = vmatprep.subr.bf16.mxu1 %v10600_v41  ;;  %6291 = vmatprep.subr.bf16.mxu0 %v10601_v43  ;;  %v10611_v43 = vld [vmem:[#allocation57_spill] sm:$0xff]  ;;  %v10625_v41 = vld [vmem:[#allocation184_spill] sm:$0xff] }
0x1344   :  { %6325 = vmatpush1.bf16.msra.mxu1 %v10602_v37  ;;  %6293 = vmatpush3.bf16.msra.mxu0 %v10603_v50  ;;  %v10612_v37 = vld [vmem:[#allocation59_spill] sm:$0xff]  ;;  %v10613_v50 = vld [vmem:[#allocation61_spill] sm:$0xff] }
0x1345   :  { %6327 = vmatprep.subr.bf16.mxu1 %v10604_v51  ;;  %6295 = vmatprep.subr.bf16.mxu0 %v10605_v20  ;;  %v10614_v51 = vld [vmem:[#allocation63_spill] sm:$0xff]  ;;  %v10615_v20 = vld [vmem:[#allocation65_spill] sm:$0xff] }
0x1348   :  { %6329 = vmatpush1.bf16.msra.mxu1 %v10606_v61  ;;  %6297 = vmatpush3.bf16.msra.mxu0 %v10607_v15  ;;  %v10616_v61 = vld [vmem:[#allocation67_spill] sm:$0xff]  ;;  %v10617_v15 = vld [vmem:[#allocation69_spill] sm:$0xff] }
0x1349   :  { %6331 = vmatprep.subr.bf16.mxu1 %v10608_v49  ;;  %6395 = vmatprep.subr.bf16.mxu0 %v10485_v24  ;;  %v10618_v49 = vld [vmem:[#allocation71_spill] sm:$0xff]  ;;  %v10619_v24 = vld [vmem:[#allocation73_spill] sm:$0xff] }
0x134c   :  { %6333 = vmatpush1.bf16.msra.mxu1 %v10609_v16  ;;  %v10620_v16 = vld [vmem:[#allocation75_spill] sm:$0xff] }
0x134d   :  { %6335 = vmatprep.subr.bf16.mxu1 %v10610_v7  ;;  %v10621_v7 = vld [vmem:[#allocation77_spill] sm:$0xff] }
0x1350   :  { %6337 = vmatpush1.bf16.msra.mxu1 %v10611_v43  ;;  %v10622_v43 = vld [vmem:[#allocation79_spill] sm:$0xff] }
0x1351   :  { %6339 = vmatprep.subr.bf16.mxu1 %v10612_v37  ;;  %v10623_v37 = vld [vmem:[#allocation81_spill] sm:$0xff] }
0x1354   :  { %6341 = vmatpush1.bf16.msra.mxu1 %v10613_v50  ;;  %v10624_v50 = vld [vmem:[#allocation83_spill] sm:$0xff] }
0x1355   :  { %6343 = vmatprep.subr.bf16.mxu1 %v10614_v51 }
0x1358   :  { %6345 = vmatpush1.bf16.msra.mxu1 %v10615_v20 }
0x1359   :  { %6347 = vmatprep.subr.bf16.mxu1 %v10616_v61 }
0x135c   :  { %6349 = vmatpush1.bf16.msra.mxu1 %v10617_v15 }
0x135d   :  { %6351 = vmatprep.subr.bf16.mxu1 %v10618_v49 }
0x1360   :  { %6353 = vmatpush1.bf16.msra.mxu1 %v10619_v24 }
0x1361   :  { %6355 = vmatprep.subr.bf16.mxu1 %v10620_v16  ;;  %v10627_v16 = vld [vmem:[#allocation186_spill] sm:$0xff] }
0x1364   :  { %6357 = vmatpush1.bf16.msra.mxu1 %v10621_v7 }
0x1365   :  { %6359 = vmatprep.subr.bf16.mxu1 %v10622_v43  ;;  %v10628_v43 = vld [vmem:[#allocation187_spill] sm:$0xff] }
0x1368   :  { %6361 = vmatpush1.bf16.msra.mxu1 %v10623_v37 }
0x1369   :  { %6363 = vmatprep.subr.bf16.mxu1 %v10624_v50 }
0x13fe   :  { %v2967_v51 = vpop.f32.mrb[18].mxu0  ;;  %v3038_v20 = vpop.f32.mrb[18].mxu1 }
0x13ff   :  { %v2968_v61 = vadd.f32 %v2967_v51, %v10625_v41  ;;  %v2969_v56 = vpop.f32.mrb[19].mxu0  ;;  %v3040_v15 = vpop.f32.mrb[19].mxu1  ;;  %v3039_v54 = vadd.f32 %v3038_v20, %v10628_v43 }
0x1400   :  { %v2970_v49 = vadd.f32 %v2969_v56, %v10626_v45  ;;  %v3041_v7 = vadd.f32 %v3040_v15, %v10627_v16 }
0x1401   :  { %v4587_v0 = vmul.f32 -1.442695, %v2968_v61 }
0x1402   :  { %v4588_v24 = vmul.f32 -1.442695, %v2970_v49  ;;  %v4589_v6 = vmul.f32 -1.442695, %v3041_v7  ;;  %v10632_v7 = vld [vmem:[#allocation179_spill] sm:$0xff] }
0x1403   :  { %7195 = vpow2.f32 %v4587_v0 }
0x1404   :  { %7197 = vpow2.f32 %v4588_v24  ;;  %v10629_v24 = vld [vmem:[#allocation30_spill] sm:$0xff] }
0x1405   :  { %7199 = vpow2.f32 %v4589_v6 }
0x1406   :  { %7201 = vtanh.f32 %v3039_v54  ;;  %v10631_v54 = vld [vmem:[#allocation189_spill] sm:$0xff] }
0x140d   :  { %v7196_v37 = vpop.eup %7195 }
0x140e   :  { %v7198_v27 = vpop.eup %7197  ;;  %v3046_v50 = vadd.f32 1.0, %v7196_v37 }
0x140f   :  { %v3052_v28 = vadd.f32 1.0, %v7198_v27  ;;  %v7200_v51 = vpop.eup %7199 }
0x1410   :  { %7203 = vrcp.f32 %v3046_v50  ;;  %v7202_v41 = vpop.eup %7201  ;;  %v3059_v0 = vadd.f32 1.0, %v7200_v51 }
0x1411   :  { %7205 = vrcp.f32 %v3052_v28 }
0x1412   :  { %7207 = vrcp.f32 %v3059_v0 }
0x141a   :  { %v7204_v56 = vpop.eup %7203 }
0x141b   :  { %v7206_v61 = vpop.eup %7205  ;;  %v3063_v49 = vmul.f32 %v7204_v56, %v7202_v41  ;;  %v10633_v56 = vld [vmem:[#allocation182_spill] sm:$0xff] }
0x141c   :  { %v3062_v45 = vmul.f32 %v7206_v61, %v10629_v24  ;;  %v7208_v20 = vpop.eup %7207 }
0x141e   :  { %v9090_v15 = vadd.f32 %v3063_v49, %v3062_v45  ;;  %v10634_v49 = vld [vmem:[#allocation183_spill] sm:$0xff] }
0x1420   :  { %10630 = vst [vmem:[#allocation191_spill] sm:$0xff] %v9090_v15  ;;  %7209 = vtanh.f32 %v9090_v15 }
0x142a   :  { %v7210_v37 = vpop.eup %7209 }
0x142b   :  { %v9093_v6 = vmul.f32 %v7210_v37, %v7208_v20  ;;  %v10635_v37 = vld [vmem:[#allocation193_spill] sm:$0xff] }
0x142d   :  { %v3074_v28 = vrot.slane %v9093_v6, %v10631_v54 }
0x142f   :  { %v3082_v27 = vrot.slane %v3074_v28, %v10631_v54  ;;  %v3075_v50 = vcombine.high %v3074_v28, %v3074_v28 }
0x1431   :  { %v3093_v41 = vrot.slane %v3082_v27, %v10632_v7  ;;  %v3089_v51 = vrot.slane %v3075_v50, %v10631_v54 }
0x1433   :  { %v3100_v45 = vmul.f32 %v10633_v56, %v3093_v41  ;;  %v3097_v61 = vrot.slane %v3089_v51, %v10632_v7 }
0x1435   :  { %3102 = vadd.xlane.f32.xlu1 %v3100_v45  ;;  %v3101_v0 = vmul.f32 %v10634_v49, %v3097_v61 }
0x1437   :  { %3104 = vadd.xlane.f32.xlu0 %v3101_v0 }
0x14c2   :  { %v3103_v24 = vpop.xlane.xlu1 %3102 }
0x14c3   :  { %v3111_v15 = vrot.slane %v3103_v24, %v10635_v37 }
0x14c4   :  { %v3105_v20 = vpop.xlane.xlu0 %3104 }
0x14c5   :  { %v3115_v43 = vrot.slane %v3105_v20, %v10635_v37  ;;  %v10637_v20 = vld [vmem:[#allocation180_spill] sm:$0xff] }
0x14c7   :  { %v3116_v28 = vsel %vm1083_vm0, %v3115_v43, %v3111_v15 }
0x14c8   :  { %v3118_v27 = vsel %vm1070_vm1, %v3116_v28, -1e+09 }
0x14c9   :  { %v3119_v50 = vsel %vm1087_vm2, %v3118_v27, -inf }
0x14ca   :  { %3120 = vmax.xlane.f32.xlu1 %v3119_v50  ;;  %v10638_v50 = vld [vmem:[#allocation188_spill] sm:$0xff] }
0x1557   :  { %v3121_v41 = vpop.xlane.xlu1 %3120 }
0x1558   :  { %v3122_v51 = vsub.f32 %v3118_v27, %v3121_v41 }
0x155a   :  { %v3123_v56 = vmul.f32 1.442695, %v3122_v51  ;;  %v10639_v51 = vld [vmem:[#allocation190_spill] sm:$0xff] }
0x155c   :  { %7211 = vpow2.f32 %v3123_v56 }
0x1566   :  { %v7212_v45 = vpop.eup %7211 }
0x1567   :  { %v3125_v61 = vsel %vm1087_vm2, %v7212_v45, 0.0 }
0x1568   :  { %3126 = vadd.xlane.f32.xlu0 %v3125_v61 }
0x15f5   :  { %v3127_v49 = vpop.xlane.xlu0 %3126 }
0x15f6   :  { %7213 = vrcp.f32 %v3127_v49 }
0x1600   :  { %v7214_v0 = vpop.eup %7213 }
0x1601   :  { %v3129_v24 = vmul.f32 %v7214_v0, %v7212_v45 }
0x1603   :  { %v3140_v43 = vrot.slane %v3129_v24, %v10637_v20  ;;  %3235 = vst.msk [vmem:[#allocation15 + $0x3] sm:$0x1] %vm1208_vm3, %v3129_v24  ;;  %v3133_v15 = vrot.slane %v3129_v24, %v10632_v7 }
0x1605   :  { %3142 = vbcast.lane.b32.xlu0 %v3140_v43, 256  ;;  %3135 = vbcast.lane.b32.xlu1 %v3133_v15, 256  ;;  %v9118_v43 = vld [vmem:[%s9581_s4 + $0x6] sm:$0x3] }
0x1677   :  { %v3143_v28 = vpop.permute.xlu0 %3142  ;;  %v3136_v27 = vpop.permute.xlu1 %3135 }
0x1678   :  { %v3145_v41 = vmul.f32 %v10638_v50, %v3143_v28  ;;  %v3144_v56 = vmul.f32 %v10639_v51, %v3136_v27  ;;  %v10647_v28 = vld [vmem:[#allocation115_spill] sm:$0xff]  ;;  %v10648_v27 = vld [vmem:[#allocation54_spill] sm:$0xff]  ;;  %v10649_v50 = vld [vmem:[#allocation56_spill] sm:$0xff] }
0x1679   :  { %v10651_v51 = vld [vmem:[#allocation119_spill] sm:$0xff] }
0x167a   :  { %v3152_v16 = vrot.slane %v3145_v41, 4  ;;  %v3146_v61 = vrot.slane %v3144_v56, 4 }
0x167c   :  { %v3153_v37 = vadd.f32 %v3152_v16, %v3145_v41  ;;  %v3147_v49 = vadd.f32 %v3146_v61, %v3144_v56  ;;  %v10643_v16 = vld [vmem:[#allocation48_spill] sm:$0xff]  ;;  %v10650_v41 = vld [vmem:[#allocation117_spill] sm:$0xff]  ;;  %v10652_v56 = vld [vmem:[#allocation58_spill] sm:$0xff] }
0x167d   :  { %v10653_v61 = vld [vmem:[#allocation60_spill] sm:$0xff] }
0x167e   :  { %v3154_v54 = vrot.slane %v3153_v37, 2  ;;  %v3148_v45 = vrot.slane %v3147_v49, 2 }
0x1680   :  { %v3155_v0 = vadd.f32 %v3154_v54, %v3153_v37  ;;  %v3149_v20 = vadd.f32 %v3148_v45, %v3147_v49  ;;  %v10644_v54 = vld [vmem:[#allocation113_spill] sm:$0xff]  ;;  %v10645_v37 = vld [vmem:[#allocation50_spill] sm:$0xff]  ;;  %v10655_v45 = vld [vmem:[#allocation123_spill] sm:$0xff] }
0x1681   :  { %v10654_v49 = vld [vmem:[#allocation121_spill] sm:$0xff] }
0x1682   :  { %v3156_v25 = vrot.slane %v3155_v0, 1  ;;  %v3150_v29 = vrot.slane %v3149_v20, 1 }
0x1684   :  { %v3151_v55 = vadd.f32 %v3150_v29, %v3149_v20  ;;  %v3157_v24 = vadd.f32 %v3156_v25, %v3155_v0  ;;  %v10640_v29 = vld [vmem:[#allocation109_spill] sm:$0xff]  ;;  %v10642_v25 = vld [vmem:[#allocation111_spill] sm:$0xff]  ;;  %v10646_v20 = vld [vmem:[#allocation52_spill] sm:$0xff] }
0x1685   :  { %v10656_v0 = vld [vmem:[#allocation62_spill] sm:$0xff] }
0x1686   :  { %v3160_v15 = vsel %vm1083_vm0, %v3157_v24, %v3151_v55  ;;  %v10641_v55 = vld [vmem:[#allocation46_spill] sm:$0xff]  ;;  %v10657_v24 = vld [vmem:[#allocation64_spill] sm:$0xff] }
0x1687   :  { %3226 = vmatprep.mubr.f32.mxu0 %v3160_v15  ;;  %3302 = vmatprep.mubr.f32.mxu1 %v3160_v15 }
0x1688   :  { %3227 = vmatmul.mubr.f32.vlgmr.msra.gmra.mrb[20].mxu0 %v9093_v6  ;;  %3303 = vmatmul.mubr.f32.vlgmr.msra.gmra.mrb[20].mxu1 %v9118_v43 }
0x1689   :  { %6365 = vmatpush1.bf16.msra.mxu1 %v10501_v11  ;;  %6397 = vmatpush1.bf16.msra.mxu0 %v7729_v13 }
0x168a   :  { %3444 = vmatprep.mubr.f32.mxu0 %v3160_v15  ;;  %6367 = vmatprep.subr.bf16.mxu1 %v10503_v17  ;;  %v10658_v15 = vld [vmem:[#allocation125_spill] sm:$0xff] }
0x168b   :  { %6399 = vmatprep.subr.bf16.mxu0 %v7735_v18  ;;  %3373 = vmatprep.mubr.f32.mxu1 %v10063_v30 }
0x168d   :  { %6369 = vmatpush1.bf16.msra.mxu1 %v10505_v62  ;;  %6401 = vmatpush1.bf16.msra.mxu0 %v7742_v26 }
0x168e   :  { %6371 = vmatprep.subr.bf16.mxu1 %v10507_v39  ;;  %6403 = vmatprep.subr.bf16.mxu0 %v7746_v31 }
0x1691   :  { %6373 = vmatpush1.bf16.msra.mxu1 %v10509_v60  ;;  %6405 = vmatpush1.bf16.msra.mxu0 %v10179_v10 }
0x1692   :  { %6375 = vmatprep.subr.bf16.mxu1 %v10511_v59  ;;  %6407 = vmatprep.subr.bf16.mxu0 %v10329_v9 }
0x1695   :  { %6377 = vmatpush1.bf16.msra.mxu1 %v10513_v63  ;;  %6409 = vmatpush1.bf16.msra.mxu0 %v10331_v22 }
0x1696   :  { %6379 = vmatprep.subr.bf16.mxu1 %v10515_v33  ;;  %6411 = vmatprep.subr.bf16.mxu0 %v10333_v35 }
0x1699   :  { %6381 = vmatpush1.bf16.msra.mxu1 %v10517_v21  ;;  %6413 = vmatpush1.bf16.msra.mxu0 %v10335_v53 }
0x169a   :  { %6383 = vmatprep.subr.bf16.mxu1 %v10519_v5  ;;  %6415 = vmatprep.subr.bf16.mxu0 %v10337_v34 }
0x169d   :  { %6385 = vmatpush1.bf16.msra.mxu1 %v10521_v36  ;;  %6417 = vmatpush1.bf16.msra.mxu0 %v10339_v2 }
0x169e   :  { %6387 = vmatprep.subr.bf16.mxu1 %v10523_v23  ;;  %6419 = vmatprep.subr.bf16.mxu0 %v10341_v42 }
0x16a1   :  { %6389 = vmatpush1.bf16.msra.mxu1 %v10640_v29  ;;  %6421 = vmatpush1.bf16.msra.mxu0 %v10641_v55 }
0x16a2   :  { %6391 = vmatprep.subr.bf16.mxu1 %v10642_v25  ;;  %6423 = vmatprep.subr.bf16.mxu0 %v10643_v16 }
0x16a5   :  { %6393 = vmatpush1.bf16.msra.mxu1 %v10644_v54  ;;  %6425 = vmatpush1.bf16.msra.mxu0 %v10645_v37 }
0x16a6   :  { %6427 = vmatprep.subr.bf16.mxu0 %v10646_v20  ;;  %6491 = vmatprep.subr.bf16.mxu1 %v10647_v28 }
0x16a8   :  { %3374 = vmatmul.mubr.f32.vlgmr.msra.gmra.mrb[20].mxu1 %v9033_v1 }
0x16a9   :  { %6429 = vmatpush1.bf16.msra.mxu0 %v10648_v27  ;;  %3610 = vmatprep.mubr.f32.mxu1 %v9093_v6  ;;  %v10659_v27 = vld [vmem:[#allocation127_spill] sm:$0xff] }
0x16aa   :  { %6431 = vmatprep.subr.bf16.mxu0 %v10649_v50  ;;  %6493 = vmatpush1.bf16.msra.mxu1 %v10650_v41  ;;  %v10660_v50 = vld [vmem:[#allocation66_spill] sm:$0xff]  ;;  %v10661_v41 = vld [vmem:[#allocation68_spill] sm:$0xff] }
0x16ab   :  { %6495 = vmatprep.subr.bf16.mxu1 %v10651_v51  ;;  %v10662_v51 = vld [vmem:[#allocation129_spill] sm:$0xff] }
0x16ad   :  { %6433 = vmatpush1.bf16.msra.mxu0 %v10652_v56  ;;  %v10663_v56 = vld [vmem:[#allocation131_spill] sm:$0xff] }
0x16ae   :  { %6435 = vmatprep.subr.bf16.mxu0 %v10653_v61  ;;  %6497 = vmatpush1.bf16.msra.mxu1 %v10654_v49  ;;  %v10664_v61 = vld [vmem:[#allocation70_spill] sm:$0xff]  ;;  %v10665_v49 = vld [vmem:[#allocation72_spill] sm:$0xff] }
0x16af   :  { %6499 = vmatprep.subr.bf16.mxu1 %v10655_v45  ;;  %v10666_v45 = vld [vmem:[#allocation133_spill] sm:$0xff] }
0x16b1   :  { %6437 = vmatpush1.bf16.msra.mxu0 %v10656_v0  ;;  %v10667_v0 = vld [vmem:[#allocation135_spill] sm:$0xff] }
0x16b2   :  { %6439 = vmatprep.subr.bf16.mxu0 %v10657_v24  ;;  %6501 = vmatpush1.bf16.msra.mxu1 %v10658_v15  ;;  %v10668_v24 = vld [vmem:[#allocation74_spill] sm:$0xff]  ;;  %v10669_v15 = vld [vmem:[#allocation76_spill] sm:$0xff] }
0x16b3   :  { %6503 = vmatprep.subr.bf16.mxu1 %v10659_v27  ;;  %v10670_v27 = vld [vmem:[#allocation137_spill] sm:$0xff] }
0x16b5   :  { %6441 = vmatpush1.bf16.msra.mxu0 %v10660_v50  ;;  %v10671_v50 = vld [vmem:[#allocation139_spill] sm:$0xff] }
0x16b6   :  { %6443 = vmatprep.subr.bf16.mxu0 %v10661_v41  ;;  %6505 = vmatpush1.bf16.msra.mxu1 %v10662_v51  ;;  %v10672_v41 = vld [vmem:[#allocation78_spill] sm:$0xff]  ;;  %v10673_v51 = vld [vmem:[#allocation80_spill] sm:$0xff] }
0x16b7   :  { %6507 = vmatprep.subr.bf16.mxu1 %v10663_v56  ;;  %v10674_v56 = vld [vmem:[#allocation141_spill] sm:$0xff] }
0x16b9   :  { %6445 = vmatpush1.bf16.msra.mxu0 %v10664_v61  ;;  %v10675_v61 = vld [vmem:[#allocation143_spill] sm:$0xff] }
0x16ba   :  { %6447 = vmatprep.subr.bf16.mxu0 %v10665_v49  ;;  %6509 = vmatpush1.bf16.msra.mxu1 %v10666_v45  ;;  %v10676_v49 = vld [vmem:[#allocation82_spill] sm:$0xff]  ;;  %v10677_v45 = vld [vmem:[#allocation84_spill] sm:$0xff] }
0x16bb   :  { %6511 = vmatprep.subr.bf16.mxu1 %v10667_v0  ;;  %v10678_v0 = vld [vmem:[#allocation145_spill] sm:$0xff] }
0x16bd   :  { %6449 = vmatpush1.bf16.msra.mxu0 %v10668_v24  ;;  %v10679_v24 = vld [vmem:[#allocation147_spill] sm:$0xff] }
0x16be   :  { %6451 = vmatprep.subr.bf16.mxu0 %v10669_v15  ;;  %6513 = vmatpush1.bf16.msra.mxu1 %v10670_v27  ;;  %v10680_v27 = vld [vmem:[#allocation86_spill] sm:$0xff] }
0x16bf   :  { %6515 = vmatprep.subr.bf16.mxu1 %v10671_v50  ;;  %v10691_v50 = vld [vmem:[#allocation159_spill] sm:$0xff] }
0x16c1   :  { %6453 = vmatpush1.bf16.msra.mxu0 %v10672_v41  ;;  %v10681_v41 = vld [vmem:[#allocation88_spill] sm:$0xff] }
0x16c2   :  { %6455 = vmatprep.subr.bf16.mxu0 %v10673_v51  ;;  %6517 = vmatpush1.bf16.msra.mxu1 %v10674_v56  ;;  %v10682_v51 = vld [vmem:[#allocation149_spill] sm:$0xff]  ;;  %v10683_v56 = vld [vmem:[#allocation151_spill] sm:$0xff] }
0x16c3   :  { %6519 = vmatprep.subr.bf16.mxu1 %v10675_v61  ;;  %v10684_v61 = vld [vmem:[#allocation90_spill] sm:$0xff] }
0x16c5   :  { %6457 = vmatpush1.bf16.msra.mxu0 %v10676_v49  ;;  %v10685_v49 = vld [vmem:[#allocation92_spill] sm:$0xff] }
0x16c6   :  { %6459 = vmatprep.subr.bf16.mxu0 %v10677_v45  ;;  %6521 = vmatpush1.bf16.msra.mxu1 %v10678_v0  ;;  %v10686_v45 = vld [vmem:[#allocation153_spill] sm:$0xff]  ;;  %v10687_v0 = vld [vmem:[#allocation155_spill] sm:$0xff] }
0x16c7   :  { %6523 = vmatprep.subr.bf16.mxu1 %v10679_v24  ;;  %v10688_v24 = vld [vmem:[#allocation94_spill] sm:$0xff] }
0x16c8   :  { %3445 = vmatmul.mubr.f32.vlgmr.msra.gmra.mrb[22].mxu0 %v9118_v43  ;;  %v10689_v43 = vld [vmem:[#allocation96_spill] sm:$0xff] }
0x16c9   :  { %6461 = vmatpush1.bf16.msra.mxu0 %v10680_v27  ;;  %3515 = vmatprep.mubr.f32.mxu0 %v10063_v30  ;;  %v10690_v27 = vld [vmem:[#allocation157_spill] sm:$0xff] }
0x16ca   :  { %6463 = vmatprep.subr.bf16.mxu0 %v10681_v41  ;;  %6525 = vmatpush1.bf16.msra.mxu1 %v10682_v51  ;;  %v10692_v41 = vld [vmem:[#allocation98_spill] sm:$0xff]  ;;  %v10693_v51 = vld [vmem:[#allocation100_spill] sm:$0xff] }
0x16cb   :  { %6527 = vmatprep.subr.bf16.mxu1 %v10683_v56  ;;  %v10694_v56 = vld [vmem:[#allocation161_spill] sm:$0xff] }
0x16cd   :  { %6465 = vmatpush1.bf16.msra.mxu0 %v10684_v61  ;;  %v10695_v61 = vld [vmem:[#allocation163_spill] sm:$0xff] }
0x16ce   :  { %6467 = vmatprep.subr.bf16.mxu0 %v10685_v49  ;;  %6529 = vmatpush1.bf16.msra.mxu1 %v10686_v45  ;;  %v10696_v49 = vld [vmem:[#allocation102_spill] sm:$0xff]  ;;  %v10697_v45 = vld [vmem:[#allocation104_spill] sm:$0xff] }
0x16cf   :  { %6531 = vmatprep.subr.bf16.mxu1 %v10687_v0  ;;  %v10698_v0 = vld [vmem:[#allocation165_spill] sm:$0xff] }
0x16d1   :  { %6469 = vmatpush1.bf16.msra.mxu0 %v10688_v24  ;;  %v10699_v24 = vld [vmem:[#allocation167_spill] sm:$0xff] }
0x16d2   :  { %6471 = vmatprep.subr.bf16.mxu0 %v10689_v43  ;;  %6533 = vmatpush1.bf16.msra.mxu1 %v10690_v27  ;;  %v10700_v43 = vld [vmem:[#allocation106_spill] sm:$0xff]  ;;  %v10701_v27 = vld [vmem:[#allocation108_spill] sm:$0xff] }
0x16d3   :  { %6535 = vmatprep.subr.bf16.mxu1 %v10691_v50  ;;  %v10702_v50 = vld [vmem:[#allocation169_spill] sm:$0xff] }
0x16d5   :  { %6473 = vmatpush1.bf16.msra.mxu0 %v10692_v41  ;;  %v10703_v41 = vld [vmem:[#allocation171_spill] sm:$0xff] }
0x16d6   :  { %6475 = vmatprep.subr.bf16.mxu0 %v10693_v51  ;;  %6537 = vmatpush1.bf16.msra.mxu1 %v10694_v56  ;;  %v10704_v51 = vld [vmem:[#allocation110_spill] sm:$0xff]  ;;  %v10705_v56 = vld [vmem:[#allocation112_spill] sm:$0xff] }
0x16d7   :  { %6539 = vmatprep.subr.bf16.mxu1 %v10695_v61  ;;  %v10706_v61 = vld [vmem:[#allocation173_spill] sm:$0xff] }
0x16d9   :  { %6477 = vmatpush1.bf16.msra.mxu0 %v10696_v49  ;;  %v10707_v49 = vld [vmem:[#allocation175_spill] sm:$0xff] }
0x16da   :  { %6479 = vmatprep.subr.bf16.mxu0 %v10697_v45  ;;  %6541 = vmatpush1.bf16.msra.mxu1 %v10698_v0  ;;  %v10708_v45 = vld [vmem:[#allocation114_spill] sm:$0xff]  ;;  %v10709_v0 = vld [vmem:[#allocation116_spill] sm:$0xff] }
0x16db   :  { %6543 = vmatprep.subr.bf16.mxu1 %v10699_v24  ;;  %v10710_v24 = vld [vmem:[#allocation177_spill] sm:$0xff] }
0x16dd   :  { %6481 = vmatpush1.bf16.msra.mxu0 %v10700_v43  ;;  %v10711_v43 = vld [vmem:[#allocation195_spill] sm:$0xff] }
0x16de   :  { %6483 = vmatprep.subr.bf16.mxu0 %v10701_v27  ;;  %6545 = vmatpush1.bf16.msra.mxu1 %v10702_v50 }
0x16df   :  { %6547 = vmatprep.subr.bf16.mxu1 %v10703_v41  ;;  %v10712_v41 = vld [vmem:[#allocation118_spill] sm:$0xff] }
0x16e1   :  { %6485 = vmatpush1.bf16.msra.mxu0 %v10704_v51  ;;  %v10713_v51 = vld [vmem:[#allocation120_spill] sm:$0xff] }
0x16e2   :  { %6487 = vmatprep.subr.bf16.mxu0 %v10705_v56  ;;  %6549 = vmatpush1.bf16.msra.mxu1 %v10706_v61  ;;  %v10714_v56 = vld [vmem:[#allocation122_spill] sm:$0xff]  ;;  %v10715_v61 = vld [vmem:[#allocation124_spill] sm:$0xff] }
0x16e3   :  { %6551 = vmatprep.subr.bf16.mxu1 %v10707_v49  ;;  %v10716_v49 = vld [vmem:[#allocation126_spill] sm:$0xff] }
0x16e5   :  { %6489 = vmatpush1.bf16.msra.mxu0 %v10708_v45  ;;  %v10717_v45 = vld [vmem:[#allocation128_spill] sm:$0xff] }
0x16e6   :  { %6555 = vmatprep.subr.bf16.mxu0 %v10709_v0  ;;  %6553 = vmatpush1.bf16.msra.mxu1 %v10710_v24  ;;  %v10718_v0 = vld [vmem:[#allocation130_spill] sm:$0xff]  ;;  %v10719_v24 = vld [vmem:[#allocation132_spill] sm:$0xff] }
0x16e7   :  { %6619 = vmatprep.subr.bf16.mxu1 %v10711_v43  ;;  %v10720_v43 = vld [vmem:[#allocation134_spill] sm:$0xff] }
0x16e8   :  { %3516 = vmatmul.mubr.f32.vlgmr.msra.gmra.mrb[22].mxu0 %v9033_v1  ;;  %v10721_v1 = vld [vmem:[#allocation136_spill] sm:$0xff] }
0x16e9   :  { %3681 = vmatprep.mubr.f32.mxu0 %v9093_v6  ;;  %6557 = vmatpush1.bf16.msra.mxu0 %v10712_v41  ;;  %v10722_v6 = vld [vmem:[#allocation138_spill] sm:$0xff]  ;;  %v10723_v41 = vld [vmem:[#allocation140_spill] sm:$0xff] }
0x16ea   :  { %6559 = vmatprep.subr.bf16.mxu0 %v10713_v51  ;;  %v10724_v51 = vld [vmem:[#allocation142_spill] sm:$0xff] }
0x16ed   :  { %6561 = vmatpush1.bf16.msra.mxu0 %v10714_v56  ;;  %v10725_v56 = vld [vmem:[#allocation144_spill] sm:$0xff] }
0x16ee   :  { %6563 = vmatprep.subr.bf16.mxu0 %v10715_v61  ;;  %v10726_v61 = vld [vmem:[#allocation146_spill] sm:$0xff] }
0x16f1   :  { %6565 = vmatpush1.bf16.msra.mxu0 %v10716_v49  ;;  %v10727_v49 = vld [vmem:[#allocation148_spill] sm:$0xff] }
0x16f2   :  { %6567 = vmatprep.subr.bf16.mxu0 %v10717_v45  ;;  %v10728_v45 = vld [vmem:[#allocation150_spill] sm:$0xff] }
0x16f5   :  { %6569 = vmatpush1.bf16.msra.mxu0 %v10718_v0  ;;  %v10729_v0 = vld [vmem:[#allocation152_spill] sm:$0xff] }
0x16f6   :  { %6571 = vmatprep.subr.bf16.mxu0 %v10719_v24  ;;  %v10730_v24 = vld [vmem:[#allocation154_spill] sm:$0xff] }
0x16f9   :  { %6573 = vmatpush1.bf16.msra.mxu0 %v10720_v43  ;;  %v10731_v43 = vld [vmem:[#allocation156_spill] sm:$0xff] }
0x16fa   :  { %6575 = vmatprep.subr.bf16.mxu0 %v10721_v1  ;;  %v10732_v1 = vld [vmem:[#allocation158_spill] sm:$0xff] }
0x16fd   :  { %6577 = vmatpush1.bf16.msra.mxu0 %v10722_v6  ;;  %v10733_v6 = vld [vmem:[#allocation160_spill] sm:$0xff] }
0x16fe   :  { %6579 = vmatprep.subr.bf16.mxu0 %v10723_v41  ;;  %v10734_v41 = vld [vmem:[#allocation162_spill] sm:$0xff] }
0x1701   :  { %6581 = vmatpush1.bf16.msra.mxu0 %v10724_v51  ;;  %v10735_v51 = vld [vmem:[#allocation164_spill] sm:$0xff] }
0x1702   :  { %6583 = vmatprep.subr.bf16.mxu0 %v10725_v56  ;;  %v10736_v56 = vld [vmem:[#allocation166_spill] sm:$0xff] }
0x1705   :  { %6585 = vmatpush1.bf16.msra.mxu0 %v10726_v61  ;;  %v10737_v61 = vld [vmem:[#allocation168_spill] sm:$0xff] }
0x1706   :  { %6587 = vmatprep.subr.bf16.mxu0 %v10727_v49  ;;  %v10738_v49 = vld [vmem:[#allocation170_spill] sm:$0xff] }
0x1709   :  { %6589 = vmatpush1.bf16.msra.mxu0 %v10728_v45  ;;  %v10739_v45 = vld [vmem:[#allocation172_spill] sm:$0xff] }
0x170a   :  { %6591 = vmatprep.subr.bf16.mxu0 %v10729_v0  ;;  %v10740_v0 = vld [vmem:[#allocation174_spill] sm:$0xff] }
0x170d   :  { %6593 = vmatpush1.bf16.msra.mxu0 %v10730_v24  ;;  %v10741_v24 = vld [vmem:[#allocation176_spill] sm:$0xff] }
0x170e   :  { %6595 = vmatprep.subr.bf16.mxu0 %v10731_v43  ;;  %v10742_v43 = vld [vmem:[#allocation178_spill] sm:$0xff] }
0x1711   :  { %6597 = vmatpush1.bf16.msra.mxu0 %v10732_v1  ;;  %v10743_v1 = vld [vmem:[#allocation23_spill] sm:$0xff] }
0x1712   :  { %6599 = vmatprep.subr.bf16.mxu0 %v10733_v6 }
0x1715   :  { %6601 = vmatpush1.bf16.msra.mxu0 %v10734_v41 }
0x1716   :  { %6603 = vmatprep.subr.bf16.mxu0 %v10735_v51 }
0x1719   :  { %6605 = vmatpush1.bf16.msra.mxu0 %v10736_v56  ;;  %v9261_v56 = vld [vmem:[%s9588_s11] ss:$0 sm:$0xff] }
0x171a   :  { %6607 = vmatprep.subr.bf16.mxu0 %v10737_v61 }
0x171d   :  { %6609 = vmatpush1.bf16.msra.mxu0 %v10738_v49 }
0x171e   :  { %6611 = vmatprep.subr.bf16.mxu0 %v10739_v45 }
0x1721   :  { %6613 = vmatpush1.bf16.msra.mxu0 %v10740_v0 }
0x1722   :  { %6615 = vmatprep.subr.bf16.mxu0 %v10741_v24  ;;  %v10744_v24 = vld [vmem:[#allocation181_spill] sm:$0xff] }
0x1725   :  { %6617 = vmatpush1.bf16.msra.mxu0 %v10742_v43 }
0x1726   :  { %6651 = vmatprep.subr.bf16.mxu0 %v10743_v1 }
0x175b   :  { %v4758_v6 = vpop.f32.mrb[20].mxu0 }
0x175c   :  { %v4759_v41 = vpop.f32.mrb[21].mxu0 }
0x175d   :  { %v4760_v50 = vadd.f32 %v4759_v41, %v4758_v6 }
0x175f   :  { %v3229_v49 = vadd.f32 %v9261_v56, %v4760_v50 }
0x1761   :  { %3233 = vst [vmem:[#allocation14 + $0x6] sm:$0x3] %v3229_v49 }
0x177b   :  { %v3375_v45 = vpop.f32.mrb[20].mxu1 }
0x177c   :  { %v3377_v61 = vpop.f32.mrb[21].mxu1  ;;  %v7018_v51 = vadd.f32 %v3375_v45, %v10744_v24 }
0x177d   :  { %v7019_v0 = vadd.f32 %v3377_v61, %v10296_v32 }
0x177e   :  { %v4591_v27 = vmul.f32 -1.442695, %v7018_v51 }
0x177f   :  { %v4592_v43 = vmul.f32 -1.442695, %v7019_v0 }
0x1781   :  { %7215 = vpow2.f32 %v4592_v43 }
0x1782   :  { %7217 = vpow2.f32 %v4591_v27 }
0x178b   :  { %v7216_v1 = vpop.eup %7215 }
0x178c   :  { %v7218_v41 = vpop.eup %7217  ;;  %v3531_v6 = vadd.f32 1.0, %v7216_v1 }
0x178d   :  { %v3525_v15 = vadd.f32 1.0, %v7218_v41 }
0x178e   :  { %7219 = vrcp.f32 %v3531_v6 }
0x178f   :  { %7221 = vrcp.f32 %v3525_v15 }
0x1798   :  { %v7220_v45 = vpop.eup %7219 }
0x1799   :  { %v7222_v0 = vpop.eup %7221  ;;  %v3541_v27 = vmul.f32 %v7220_v45, %v9030_v44  ;;  %v10747_v44 = vld [vmem:[#allocation35_spill] sm:$0xff]  ;;  %v10757_v45 = vld [vmem:[#allocation45_spill] sm:$0xff] }
0x17bb   :  { %v3517_v28 = vpop.f32.mrb[22].mxu0 }
0x17bc   :  { %v7020_v20 = vadd.f32 %v3517_v28, %v8238_v52  ;;  %v3519_v50 = vpop.f32.mrb[23].mxu0 }
0x17bd   :  { %v7021_v49 = vadd.f32 %v3519_v50, %v10298_v14  ;;  %v10753_v50 = vld [vmem:[#allocation41_spill] sm:$0xff] }
0x17be   :  { %7223 = vtanh.f32 %v7020_v20  ;;  %v10749_v20 = vld [vmem:[#allocation37_spill] sm:$0xff] }
0x17bf   :  { %v4593_v61 = vmul.f32 -1.442695, %v7021_v49  ;;  %v10755_v49 = vld [vmem:[#allocation43_spill] sm:$0xff] }
0x17c1   :  { %7225 = vpow2.f32 %v4593_v61  ;;  %v10756_v61 = vld [vmem:[#allocation201_spill] sm:$0xff] }
0x17c8   :  { %v7224_v51 = vpop.eup %7223 }
0x17c9   :  { %v3542_v43 = vmul.f32 %v7224_v51, %v7222_v0  ;;  %v10758_v0 = vld [vmem:[#allocation202_spill] sm:$0xff]  ;;  %v10759_v51 = vld [vmem:[#allocation47_spill] sm:$0xff] }
0x17cb   :  { %v7226_v24 = vpop.eup %7225  ;;  %v9269_v1 = vadd.f32 %v3542_v43, %v3541_v27  ;;  %v10760_v27 = vld [vmem:[#allocation203_spill] sm:$0xff]  ;;  %v10761_v43 = vld [vmem:[#allocation49_spill] sm:$0xff] }
0x17cc   :  { %v3538_v41 = vadd.f32 1.0, %v7226_v24  ;;  %v10751_v24 = vld [vmem:[#allocation39_spill] sm:$0xff] }
0x17cd   :  { %7227 = vtanh.f32 %v9269_v1 }
0x17ce   :  { %7229 = vrcp.f32 %v3538_v41  ;;  %v10762_v41 = vld [vmem:[#allocation204_spill] sm:$0xff] }
0x17d7   :  { %v7228_v28 = vpop.eup %7227 }
0x17d8   :  { %v7230_v15 = vpop.eup %7229 }
0x17d9   :  { %v9272_v6 = vmul.f32 %v7230_v15, %v7228_v28  ;;  %v10763_v28 = vld [vmem:[#allocation51_spill] sm:$0xff]  ;;  %v10764_v15 = vld [vmem:[#allocation24_spill] sm:$0xff] }
0x17db   :  { %3611 = vmatmul.mubr.f32.vlgmr.msra.gmra.mrb[22].mxu1 %v9272_v6  ;;  %3682 = vmatmul.mubr.f32.vlgmr.msra.gmra.mrb[24].mxu0 %v9272_v6 }
0x17dc   :  { %6653 = vmatpush1.bf16.msra.mxu0 %v10452_v12  ;;  %6621 = vmatpush3.bf16.msra.mxu1 %v8343_v58  ;;  %v10745_v12 = vld [vmem:[#allocation33_spill] sm:$0xff] }
0x17dd   :  { %6655 = vmatprep.subr.bf16.mxu0 %v10453_v38  ;;  %6623 = vmatprep.subr.bf16.mxu1 %v8345_v47  ;;  %v10746_v38 = vld [vmem:[#allocation196_spill] sm:$0xff] }
0x17e0   :  { %6657 = vmatpush1.bf16.msra.mxu0 %v10454_v8  ;;  %6625 = vmatpush3.bf16.msra.mxu1 %v8349_v19  ;;  %v10748_v8 = vld [vmem:[#allocation197_spill] sm:$0xff] }
0x17e1   :  { %6659 = vmatprep.subr.bf16.mxu0 %v10455_v40  ;;  %6627 = vmatprep.subr.bf16.mxu1 %v8352_v46  ;;  %v10750_v40 = vld [vmem:[#allocation198_spill] sm:$0xff] }
0x17e4   :  { %6661 = vmatpush1.bf16.msra.mxu0 %v10456_v3  ;;  %6629 = vmatpush3.bf16.msra.mxu1 %v8355_v48  ;;  %v10752_v3 = vld [vmem:[#allocation199_spill] sm:$0xff] }
0x17e5   :  { %6663 = vmatprep.subr.bf16.mxu0 %v10457_v57  ;;  %6631 = vmatprep.subr.bf16.mxu1 %v8358_v4  ;;  %v10754_v57 = vld [vmem:[#allocation200_spill] sm:$0xff] }
0x17e8   :  { %6665 = vmatpush1.bf16.msra.mxu0 %v10745_v12  ;;  %6633 = vmatpush3.bf16.msra.mxu1 %v10746_v38  ;;  %v10765_v12 = vld [vmem:[#allocation53_spill] sm:$0xff] }
0x17e9   :  { %6667 = vmatprep.subr.bf16.mxu0 %v10747_v44  ;;  %6635 = vmatprep.subr.bf16.mxu1 %v10748_v8  ;;  %v10766_v44 = vld [vmem:[#allocation55_spill] sm:$0xff] }
0x17ec   :  { %6669 = vmatpush1.bf16.msra.mxu0 %v10749_v20  ;;  %6637 = vmatpush3.bf16.msra.mxu1 %v10750_v40  ;;  %v10767_v20 = vld [vmem:[#allocation57_spill] sm:$0xff] }
0x17ed   :  { %6671 = vmatprep.subr.bf16.mxu0 %v10751_v24  ;;  %6639 = vmatprep.subr.bf16.mxu1 %v10752_v3  ;;  %v10768_v24 = vld [vmem:[#allocation59_spill] sm:$0xff] }
0x17f0   :  { %6673 = vmatpush1.bf16.msra.mxu0 %v10753_v50  ;;  %6641 = vmatpush3.bf16.msra.mxu1 %v10754_v57  ;;  %v10769_v50 = vld [vmem:[#allocation61_spill] sm:$0xff] }
0x17f1   :  { %6675 = vmatprep.subr.bf16.mxu0 %v10755_v49  ;;  %6643 = vmatprep.subr.bf16.mxu1 %v10756_v61  ;;  %v10770_v49 = vld [vmem:[#allocation63_spill] sm:$0xff] }
0x17f4   :  { %6677 = vmatpush1.bf16.msra.mxu0 %v10757_v45  ;;  %6645 = vmatpush3.bf16.msra.mxu1 %v10758_v0  ;;  %v10771_v45 = vld [vmem:[#allocation65_spill] sm:$0xff] }
0x17f5   :  { %6679 = vmatprep.subr.bf16.mxu0 %v10759_v51  ;;  %6647 = vmatprep.subr.bf16.mxu1 %v10760_v27  ;;  %v10772_v51 = vld [vmem:[#allocation67_spill] sm:$0xff]  ;;  %v10782_v0 = vld [vmem:[#allocation185_spill] sm:$0xff] }
0x17f8   :  { %6681 = vmatpush1.bf16.msra.mxu0 %v10761_v43  ;;  %6649 = vmatpush3.bf16.msra.mxu1 %v10762_v41  ;;  %v10773_v43 = vld [vmem:[#allocation69_spill] sm:$0xff]  ;;  %v10781_v41 = vld [vmem:[#allocation184_spill] sm:$0xff] }
0x17f9   :  { %6683 = vmatprep.subr.bf16.mxu0 %v10763_v28  ;;  %6747 = vmatprep.subr.bf16.mxu1 %v10764_v15  ;;  %v10774_v28 = vld [vmem:[#allocation71_spill] sm:$0xff]  ;;  %v10775_v15 = vld [vmem:[#allocation73_spill] sm:$0xff] }
0x17fc   :  { %6685 = vmatpush1.bf16.msra.mxu0 %v10765_v12  ;;  %v10776_v12 = vld [vmem:[#allocation75_spill] sm:$0xff] }
0x17fd   :  { %6687 = vmatprep.subr.bf16.mxu0 %v10766_v44  ;;  %v10777_v44 = vld [vmem:[#allocation77_spill] sm:$0xff] }
0x1800   :  { %6689 = vmatpush1.bf16.msra.mxu0 %v10767_v20  ;;  %v10778_v20 = vld [vmem:[#allocation79_spill] sm:$0xff] }
0x1801   :  { %6691 = vmatprep.subr.bf16.mxu0 %v10768_v24  ;;  %v10779_v24 = vld [vmem:[#allocation81_spill] sm:$0xff] }
0x1804   :  { %6693 = vmatpush1.bf16.msra.mxu0 %v10769_v50  ;;  %v10780_v50 = vld [vmem:[#allocation83_spill] sm:$0xff] }
0x1805   :  { %6695 = vmatprep.subr.bf16.mxu0 %v10770_v49 }
0x1808   :  { %6697 = vmatpush1.bf16.msra.mxu0 %v10771_v45 }
0x1809   :  { %6699 = vmatprep.subr.bf16.mxu0 %v10772_v51 }
0x180c   :  { %6701 = vmatpush1.bf16.msra.mxu0 %v10773_v43 }
0x180d   :  { %6703 = vmatprep.subr.bf16.mxu0 %v10774_v28 }
0x1810   :  { %6705 = vmatpush1.bf16.msra.mxu0 %v10775_v15 }
0x1811   :  { %6707 = vmatprep.subr.bf16.mxu0 %v10776_v12  ;;  %v10783_v12 = vld [vmem:[#allocation186_spill] sm:$0xff] }
0x1814   :  { %6709 = vmatpush1.bf16.msra.mxu0 %v10777_v44 }
0x1815   :  { %6711 = vmatprep.subr.bf16.mxu0 %v10778_v20  ;;  %v10784_v20 = vld [vmem:[#allocation187_spill] sm:$0xff] }
0x1818   :  { %6713 = vmatpush1.bf16.msra.mxu0 %v10779_v24 }
0x1819   :  { %6715 = vmatprep.subr.bf16.mxu0 %v10780_v50 }
0x18ae   :  { %v3612_v49 = vpop.f32.mrb[22].mxu1  ;;  %v3683_v45 = vpop.f32.mrb[24].mxu0 }
0x18af   :  { %v3613_v51 = vadd.f32 %v3612_v49, %v10781_v41  ;;  %v3614_v27 = vpop.f32.mrb[23].mxu1  ;;  %v3685_v43 = vpop.f32.mrb[25].mxu0  ;;  %v3684_v3 = vadd.f32 %v3683_v45, %v10784_v20 }
0x18b0   :  { %v3615_v28 = vadd.f32 %v3614_v27, %v10782_v0  ;;  %v3686_v44 = vadd.f32 %v3685_v43, %v10783_v12 }
0x18b1   :  { %v4594_v61 = vmul.f32 -1.442695, %v3613_v51 }
0x18b2   :  { %v4595_v15 = vmul.f32 -1.442695, %v3615_v28  ;;  %v4596_v57 = vmul.f32 -1.442695, %v3686_v44 }
0x18b3   :  { %7231 = vpow2.f32 %v4594_v61 }
0x18b4   :  { %7233 = vpow2.f32 %v4595_v15  ;;  %v10785_v15 = vld [vmem:[#allocation191_spill] sm:$0xff] }
0x18b5   :  { %7235 = vpow2.f32 %v4596_v57 }
0x18b6   :  { %7237 = vtanh.f32 %v3684_v3 }
0x18bd   :  { %v7232_v24 = vpop.eup %7231 }
0x18be   :  { %v7234_v40 = vpop.eup %7233  ;;  %v3691_v50 = vadd.f32 1.0, %v7232_v24 }
0x18bf   :  { %v3697_v8 = vadd.f32 1.0, %v7234_v40  ;;  %v7236_v49 = vpop.eup %7235  ;;  %v10787_v40 = vld [vmem:[#allocation189_spill] sm:$0xff] }
0x18c0   :  { %7239 = vrcp.f32 %v3691_v50  ;;  %v7238_v41 = vpop.eup %7237  ;;  %v3704_v61 = vadd.f32 1.0, %v7236_v49  ;;  %v9339_v49 = vld [vmem:[#allocation2] sm:$0xff] }
0x18c1   :  { %7241 = vrcp.f32 %v3697_v8  ;;  %10788 = vst [vmem:[#allocation34_spill] sm:$0xff] %v9339_v49 }
0x18c2   :  { %7243 = vrcp.f32 %v3704_v61 }
0x18ca   :  { %v7240_v27 = vpop.eup %7239 }
0x18cb   :  { %v7242_v51 = vpop.eup %7241  ;;  %v3708_v28 = vmul.f32 %v7240_v27, %v7238_v41 }
0x18cc   :  { %v3707_v0 = vmul.f32 %v7242_v51, %v10785_v15  ;;  %v7244_v45 = vpop.eup %7243  ;;  %v9343_v51 = vld [vmem:[#allocation2 + $0x8] sm:$0xff] }
0x18cd   :  { %10789 = vst [vmem:[#allocation36_spill] sm:$0xff] %v9343_v51 }
0x18ce   :  { %v9329_v43 = vadd.f32 %v3708_v28, %v3707_v0 }
0x18d0   :  { %10786 = vst [vmem:[#allocation32_spill] sm:$0xff] %v9329_v43  ;;  %7245 = vtanh.f32 %v9329_v43 }
0x18da   :  { %v7246_v44 = vpop.eup %7245 }
0x18db   :  { %v9332_v57 = vmul.f32 %v7246_v44, %v7244_v45  ;;  %v10790_v45 = vld [vmem:[#allocation193_spill] sm:$0xff] }
0x18dd   :  { %v3719_v8 = vrot.slane %v9332_v57, %v10787_v40 }
0x18df   :  { %v3727_v3 = vrot.slane %v3719_v8, %v10787_v40  ;;  %v3720_v24 = vcombine.high %v3719_v8, %v3719_v8 }
0x18e1   :  { %v3738_v41 = vrot.slane %v3727_v3, %v10632_v7  ;;  %v3734_v50 = vrot.slane %v3720_v24, %v10787_v40 }
0x18e3   :  { %v3745_v0 = vmul.f32 %v9339_v49, %v3738_v41  ;;  %v3742_v27 = vrot.slane %v3734_v50, %v10632_v7 }
0x18e5   :  { %3747 = vadd.xlane.f32.xlu1 %v3745_v0  ;;  %v3746_v28 = vmul.f32 %v9343_v51, %v3742_v27 }
0x18e7   :  { %3749 = vadd.xlane.f32.xlu0 %v3746_v28 }
0x1972   :  { %v3748_v61 = vpop.xlane.xlu1 %3747 }
0x1973   :  { %v3756_v44 = vrot.slane %v3748_v61, %v10790_v45 }
0x1974   :  { %v3750_v15 = vpop.xlane.xlu0 %3749 }
0x1975   :  { %v3760_v8 = vrot.slane %v3750_v15, %v10790_v45  ;;  %v10792_v45 = vld [vmem:[#allocation180_spill] sm:$0xff] }
0x1977   :  { %v3761_v3 = vsel %vm1083_vm0, %v3760_v8, %v3756_v44 }
0x1978   :  { %v3763_v40 = vsel %vm1070_vm1, %v3761_v3, -1e+09 }
0x1979   :  { %v3764_v41 = vsel %vm1087_vm2, %v3763_v40, -inf }
0x197a   :  { %3765 = vmax.xlane.f32.xlu1 %v3764_v41  ;;  %v9356_v41 = vld [vmem:[#allocation5 + $0x8] sm:$0xff] }
0x197b   :  { %10793 = vst [vmem:[#allocation38_spill] sm:$0xff] %v9356_v41 }
0x1a07   :  { %v3766_v50 = vpop.xlane.xlu1 %3765 }
0x1a08   :  { %v3767_v0 = vsub.f32 %v3763_v40, %v3766_v50  ;;  %v9359_v50 = vld [vmem:[#allocation5] sm:$0xff] }
0x1a0a   :  { %v3768_v49 = vmul.f32 1.442695, %v3767_v0 }
0x1a0c   :  { %7247 = vpow2.f32 %v3768_v49 }
0x1a16   :  { %v7248_v27 = vpop.eup %7247 }
0x1a17   :  { %v3770_v28 = vsel %vm1087_vm2, %v7248_v27, 0.0 }
0x1a18   :  { %3771 = vadd.xlane.f32.xlu0 %v3770_v28 }
0x1aa5   :  { %v3772_v51 = vpop.xlane.xlu0 %3771 }
0x1aa6   :  { %7249 = vrcp.f32 %v3772_v51 }
0x1ab0   :  { %v7250_v61 = vpop.eup %7249 }
0x1ab1   :  { %v3774_v15 = vmul.f32 %v7250_v61, %v7248_v27 }
0x1ab3   :  { %v3785_v44 = vrot.slane %v3774_v15, %v10792_v45  ;;  %3880 = vst.msk [vmem:[#allocation15 + $0x4] sm:$0x1] %vm1208_vm3, %v3774_v15  ;;  %v3778_v8 = vrot.slane %v3774_v15, %v10632_v7 }
0x1ab5   :  { %3787 = vbcast.lane.b32.xlu0 %v3785_v44, 256  ;;  %3780 = vbcast.lane.b32.xlu1 %v3778_v8, 256 }
0x1b27   :  { %v3788_v3 = vpop.permute.xlu0 %3787  ;;  %v3781_v40 = vpop.permute.xlu1 %3780 }
0x1b28   :  { %v3790_v49 = vmul.f32 %v9356_v41, %v3788_v3  ;;  %v3789_v51 = vmul.f32 %v9359_v50, %v3781_v40  ;;  %v9365_v3 = vld [vmem:[%s9581_s4 + $0x8] sm:$0x3]  ;;  %v10829_v40 = vld [vmem:[#allocation88_spill] sm:$0xff]  ;;  %s7522_s4 = smov [#allocation15]  }
0x1b29   :  { %s4543_s25 = sshll.u32 %s7522_s4, 4  ;;  %s4544_s25 = int_to_ptr.vmem [resolvable:$true] %s4543_s25 }
0x1b2a   :  { %v3797_v0 = vrot.slane %v3790_v49, 4  ;;  %v3791_v27 = vrot.slane %v3789_v51, 4  ;;  %s7450_s0 = scalar_lea.vmem %s4544_s25, 96  ;;  %p7455_p1 = scmp.lt.s32.totalorder %s4544_s25, %s4544_s25 }
0x1b2b   :  { %p7451_p0 = scmp.ne.s32.totalorder %s4544_s25, %s7450_s0  ;;  %p7456_p2 = scmp.lt.s32.totalorder %s7450_s0, %s7450_s0 }
0x1b2c   :  { %v3798_v28 = vadd.f32 %v3797_v0, %v3790_v49  ;;  %v3792_v61 = vadd.f32 %v3791_v27, %v3789_v51  ;;  %v10831_v49 = vld [vmem:[#allocation151_spill] sm:$0xff]  ;;  %v10832_v51 = vld [vmem:[#allocation90_spill] sm:$0xff]  ;;  %v10833_v0 = vld [vmem:[#allocation92_spill] sm:$0xff] }
0x1b2d   :  { %v10834_v27 = vld [vmem:[#allocation153_spill] sm:$0xff]  ;;  %p7457_p3 = por %p7456_p2, %p7455_p1 }
0x1b2e   :  { %v3799_v45 = vrot.slane %v3798_v28, 2  ;;  %v3793_v24 = vrot.slane %v3792_v61, 2 }
0x1b2f   :  { %p7458_p4 = pnand %p7457_p3, %p7451_p0 }
0x1b30   :  { %v3800_v43 = vadd.f32 %v3799_v45, %v3798_v28  ;;  %v3794_v15 = vadd.f32 %v3793_v24, %v3792_v61  ;;  %v10827_v45 = vld [vmem:[#allocation147_spill] sm:$0xff]  ;;  %v10828_v24 = vld [vmem:[#allocation86_spill] sm:$0xff] }
0x1b31   :  { %v10835_v28 = vld [vmem:[#allocation155_spill] sm:$0xff]  ;;  %v10836_v61 = vld [vmem:[#allocation94_spill] sm:$0xff] }
0x1b32   :  { %v3801_v44 = vrot.slane %v3800_v43, 1  ;;  %v3795_v8 = vrot.slane %v3794_v15, 1 }
0x1b34   :  { %v3796_v7 = vadd.f32 %v3795_v8, %v3794_v15  ;;  %v3802_v20 = vadd.f32 %v3801_v44, %v3800_v43  ;;  %v10826_v43 = vld [vmem:[#allocation145_spill] sm:$0xff]  ;;  %v10837_v15 = vld [vmem:[#allocation96_spill] sm:$0xff]  ;;  %v10840_v8 = vld [vmem:[#allocation98_spill] sm:$0xff] }
0x1b35   :  { %v10838_v44 = vld [vmem:[#allocation157_spill] sm:$0xff] }
0x1b36   :  { %v3805_v41 = vsel %vm1083_vm0, %v3802_v20, %v3796_v7  ;;  %v10818_v7 = vld [vmem:[#allocation137_spill] sm:$0xff]  ;;  %v10825_v20 = vld [vmem:[#allocation84_spill] sm:$0xff] }
0x1b37   :  { %3871 = vmatprep.mubr.f32.mxu1 %v3805_v41  ;;  %3947 = vmatprep.mubr.f32.mxu0 %v3805_v41 }
0x1b38   :  { %3872 = vmatmul.mubr.f32.vlgmr.msra.gmra.mrb[24].mxu1 %v9332_v57  ;;  %3948 = vmatmul.mubr.f32.vlgmr.msra.gmra.mrb[26].mxu0 %v9365_v3 }
0x1b39   :  { %6717 = vmatpush1.bf16.msra.mxu0 %v10501_v11  ;;  %6749 = vmatpush1.bf16.msra.mxu1 %v7729_v13  ;;  %v10794_v13 = vld [vmem:[#allocation52_spill] sm:$0xff]  ;;  %v10814_v11 = vld [vmem:[#allocation133_spill] sm:$0xff] }
0x1b3a   :  { %4089 = vmatprep.mubr.f32.mxu1 %v3805_v41  ;;  %6719 = vmatprep.subr.bf16.mxu0 %v10503_v17  ;;  %v10807_v17 = vld [vmem:[#allocation127_spill] sm:$0xff]  ;;  %v10830_v41 = vld [vmem:[#allocation149_spill] sm:$0xff] }
0x1b3b   :  { %6751 = vmatprep.subr.bf16.mxu1 %v7735_v18  ;;  %4018 = vmatprep.mubr.f32.mxu0 %v10063_v30  ;;  %v10795_v18 = vld [vmem:[#allocation115_spill] sm:$0xff] }
0x1b3d   :  { %6721 = vmatpush1.bf16.msra.mxu0 %v10505_v62  ;;  %6753 = vmatpush1.bf16.msra.mxu1 %v7742_v26  ;;  %v10796_v26 = vld [vmem:[#allocation54_spill] sm:$0xff]  ;;  %v10811_v62 = vld [vmem:[#allocation131_spill] sm:$0xff] }
0x1b3e   :  { %6723 = vmatprep.subr.bf16.mxu0 %v10507_v39  ;;  %6755 = vmatprep.subr.bf16.mxu1 %v7746_v31  ;;  %v10797_v31 = vld [vmem:[#allocation56_spill] sm:$0xff] }
0x1b3f   :  { %v10813_v39 = vld [vmem:[#allocation72_spill] sm:$0xff] }
0x1b41   :  { %6725 = vmatpush1.bf16.msra.mxu0 %v10509_v60  ;;  %6757 = vmatpush1.bf16.msra.mxu1 %v10179_v10  ;;  %v10798_v10 = vld [vmem:[#allocation117_spill] sm:$0xff]  ;;  %v10817_v60 = vld [vmem:[#allocation76_spill] sm:$0xff] }
0x1b42   :  { %6727 = vmatprep.subr.bf16.mxu0 %v10511_v59  ;;  %6759 = vmatprep.subr.bf16.mxu1 %v10329_v9  ;;  %v10799_v9 = vld [vmem:[#allocation119_spill] sm:$0xff] }
0x1b43   :  { %v10815_v59 = vld [vmem:[#allocation135_spill] sm:$0xff] }
0x1b45   :  { %6729 = vmatpush1.bf16.msra.mxu0 %v10513_v63  ;;  %6761 = vmatpush1.bf16.msra.mxu1 %v10331_v22  ;;  %v10800_v22 = vld [vmem:[#allocation58_spill] sm:$0xff] }
0x1b46   :  { %6731 = vmatprep.subr.bf16.mxu0 %v10515_v33  ;;  %6763 = vmatprep.subr.bf16.mxu1 %v10333_v35  ;;  %v10801_v35 = vld [vmem:[#allocation60_spill] sm:$0xff]  ;;  %v10806_v33 = vld [vmem:[#allocation125_spill] sm:$0xff]  ;;  %v10808_v63 = vld [vmem:[#allocation66_spill] sm:$0xff] }
0x1b49   :  { %6733 = vmatpush1.bf16.msra.mxu0 %v10517_v21  ;;  %6765 = vmatpush1.bf16.msra.mxu1 %v10335_v53  ;;  %v10802_v53 = vld [vmem:[#allocation121_spill] sm:$0xff]  ;;  %v10812_v21 = vld [vmem:[#allocation70_spill] sm:$0xff] }
0x1b4a   :  { %6735 = vmatprep.subr.bf16.mxu0 %v10519_v5  ;;  %6767 = vmatprep.subr.bf16.mxu1 %v10337_v34  ;;  %v10803_v34 = vld [vmem:[#allocation123_spill] sm:$0xff]  ;;  %v10816_v5 = vld [vmem:[#allocation74_spill] sm:$0xff] }
0x1b4d   :  { %6737 = vmatpush1.bf16.msra.mxu0 %v10521_v36  ;;  %6769 = vmatpush1.bf16.msra.mxu1 %v10339_v2  ;;  %v10804_v2 = vld [vmem:[#allocation62_spill] sm:$0xff]  ;;  %v10810_v36 = vld [vmem:[#allocation129_spill] sm:$0xff] }
0x1b4e   :  { %6739 = vmatprep.subr.bf16.mxu0 %v10523_v23  ;;  %6771 = vmatprep.subr.bf16.mxu1 %v10341_v42  ;;  %v10805_v42 = vld [vmem:[#allocation64_spill] sm:$0xff] }
0x1b4f   :  { %v10809_v23 = vld [vmem:[#allocation68_spill] sm:$0xff] }
0x1b51   :  { %6741 = vmatpush1.bf16.msra.mxu0 %v10640_v29  ;;  %6773 = vmatpush1.bf16.msra.mxu1 %v10641_v55  ;;  %v10819_v29 = vld [vmem:[#allocation139_spill] sm:$0xff]  ;;  %v10820_v55 = vld [vmem:[#allocation78_spill] sm:$0xff] }
0x1b52   :  { %6743 = vmatprep.subr.bf16.mxu0 %v10642_v25  ;;  %6775 = vmatprep.subr.bf16.mxu1 %v10643_v16  ;;  %v10821_v25 = vld [vmem:[#allocation80_spill] sm:$0xff]  ;;  %v10822_v16 = vld [vmem:[#allocation141_spill] sm:$0xff] }
0x1b55   :  { %6745 = vmatpush1.bf16.msra.mxu0 %v10644_v54  ;;  %6777 = vmatpush1.bf16.msra.mxu1 %v10645_v37  ;;  %v10823_v54 = vld [vmem:[#allocation143_spill] sm:$0xff]  ;;  %v10824_v37 = vld [vmem:[#allocation82_spill] sm:$0xff] }
0x1b56   :  { %6779 = vmatprep.subr.bf16.mxu1 %v10794_v13  ;;  %6843 = vmatprep.subr.bf16.mxu0 %v10795_v18  ;;  %v10842_v13 = vld [vmem:[#allocation161_spill] sm:$0xff]  ;;  %v10843_v18 = vld [vmem:[#allocation163_spill] sm:$0xff] }
0x1b58   :  { %4019 = vmatmul.mubr.f32.vlgmr.msra.gmra.mrb[26].mxu0 %v9272_v6 }
0x1b59   :  { %6781 = vmatpush1.bf16.msra.mxu1 %v10796_v26  ;;  %4255 = vmatprep.mubr.f32.mxu0 %v9332_v57  ;;  %v10844_v26 = vld [vmem:[#allocation102_spill] sm:$0xff] }
0x1b5a   :  { %6783 = vmatprep.subr.bf16.mxu1 %v10797_v31  ;;  %6845 = vmatpush1.bf16.msra.mxu0 %v10798_v10  ;;  %v10845_v31 = vld [vmem:[#allocation104_spill] sm:$0xff]  ;;  %v10846_v10 = vld [vmem:[#allocation165_spill] sm:$0xff] }
0x1b5b   :  { %6847 = vmatprep.subr.bf16.mxu0 %v10799_v9  ;;  %v10847_v9 = vld [vmem:[#allocation167_spill] sm:$0xff] }
0x1b5d   :  { %6785 = vmatpush1.bf16.msra.mxu1 %v10800_v22  ;;  %v10848_v22 = vld [vmem:[#allocation106_spill] sm:$0xff] }
0x1b5e   :  { %6787 = vmatprep.subr.bf16.mxu1 %v10801_v35  ;;  %6849 = vmatpush1.bf16.msra.mxu0 %v10802_v53  ;;  %v10849_v35 = vld [vmem:[#allocation108_spill] sm:$0xff]  ;;  %v10850_v53 = vld [vmem:[#allocation169_spill] sm:$0xff] }
0x1b5f   :  { %6851 = vmatprep.subr.bf16.mxu0 %v10803_v34  ;;  %v10851_v34 = vld [vmem:[#allocation171_spill] sm:$0xff] }
0x1b61   :  { %6789 = vmatpush1.bf16.msra.mxu1 %v10804_v2  ;;  %v10852_v2 = vld [vmem:[#allocation110_spill] sm:$0xff] }
0x1b62   :  { %6791 = vmatprep.subr.bf16.mxu1 %v10805_v42  ;;  %6853 = vmatpush1.bf16.msra.mxu0 %v10806_v33  ;;  %v10853_v42 = vld [vmem:[#allocation112_spill] sm:$0xff]  ;;  %v10854_v33 = vld [vmem:[#allocation173_spill] sm:$0xff] }
0x1b63   :  { %6855 = vmatprep.subr.bf16.mxu0 %v10807_v17  ;;  %v10855_v17 = vld [vmem:[#allocation175_spill] sm:$0xff] }
0x1b65   :  { %6793 = vmatpush1.bf16.msra.mxu1 %v10808_v63  ;;  %v10856_v63 = vld [vmem:[#allocation114_spill] sm:$0xff] }
0x1b66   :  { %6795 = vmatprep.subr.bf16.mxu1 %v10809_v23  ;;  %6857 = vmatpush1.bf16.msra.mxu0 %v10810_v36  ;;  %v10857_v23 = vld [vmem:[#allocation116_spill] sm:$0xff]  ;;  %v10858_v36 = vld [vmem:[#allocation177_spill] sm:$0xff] }
0x1b67   :  { %6859 = vmatprep.subr.bf16.mxu0 %v10811_v62  ;;  %v10859_v62 = vld [vmem:[#allocation195_spill] sm:$0xff] }
0x1b69   :  { %6797 = vmatpush1.bf16.msra.mxu1 %v10812_v21  ;;  %v10860_v21 = vld [vmem:[#allocation118_spill] sm:$0xff] }
0x1b6a   :  { %6799 = vmatprep.subr.bf16.mxu1 %v10813_v39  ;;  %6861 = vmatpush1.bf16.msra.mxu0 %v10814_v11  ;;  %v10861_v39 = vld [vmem:[#allocation120_spill] sm:$0xff]  ;;  %v10862_v11 = vld [vmem:[#allocation122_spill] sm:$0xff] }
0x1b6b   :  { %6863 = vmatprep.subr.bf16.mxu0 %v10815_v59  ;;  %v10863_v59 = vld [vmem:[#allocation124_spill] sm:$0xff] }
0x1b6d   :  { %6801 = vmatpush1.bf16.msra.mxu1 %v10816_v5  ;;  %v10864_v5 = vld [vmem:[#allocation126_spill] sm:$0xff] }
0x1b6e   :  { %6803 = vmatprep.subr.bf16.mxu1 %v10817_v60  ;;  %6865 = vmatpush1.bf16.msra.mxu0 %v10818_v7  ;;  %v10865_v60 = vld [vmem:[#allocation128_spill] sm:$0xff]  ;;  %v10866_v7 = vld [vmem:[#allocation130_spill] sm:$0xff] }
0x1b6f   :  { %6867 = vmatprep.subr.bf16.mxu0 %v10819_v29  ;;  %v10867_v29 = vld [vmem:[#allocation132_spill] sm:$0xff] }
0x1b71   :  { %6805 = vmatpush1.bf16.msra.mxu1 %v10820_v55  ;;  %v10868_v55 = vld [vmem:[#allocation134_spill] sm:$0xff] }
0x1b72   :  { %6807 = vmatprep.subr.bf16.mxu1 %v10821_v25  ;;  %6869 = vmatpush1.bf16.msra.mxu0 %v10822_v16  ;;  %v10871_v25 = vld [vmem:[#allocation140_spill] sm:$0xff]  ;;  %v10872_v16 = vld [vmem:[#allocation142_spill] sm:$0xff] }
0x1b73   :  { %6871 = vmatprep.subr.bf16.mxu0 %v10823_v54  ;;  %v10873_v54 = vld [vmem:[#allocation144_spill] sm:$0xff] }
0x1b75   :  { %6809 = vmatpush1.bf16.msra.mxu1 %v10824_v37  ;;  %v10874_v37 = vld [vmem:[#allocation146_spill] sm:$0xff] }
0x1b76   :  { %6811 = vmatprep.subr.bf16.mxu1 %v10825_v20  ;;  %6873 = vmatpush1.bf16.msra.mxu0 %v10826_v43  ;;  %v10875_v20 = vld [vmem:[#allocation148_spill] sm:$0xff]  ;;  %v10876_v43 = vld [vmem:[#allocation150_spill] sm:$0xff] }
0x1b77   :  { %6875 = vmatprep.subr.bf16.mxu0 %v10827_v45  ;;  %v10877_v45 = vld [vmem:[#allocation152_spill] sm:$0xff] }
0x1b78   :  { %4090 = vmatmul.mubr.f32.vlgmr.msra.gmra.mrb[26].mxu1 %v9365_v3  ;;  %v10841_v3 = vld [vmem:[#allocation100_spill] sm:$0xff] }
0x1b79   :  { %6813 = vmatpush1.bf16.msra.mxu1 %v10828_v24  ;;  %4160 = vmatprep.mubr.f32.mxu1 %v10063_v30  ;;  %v10839_v30 = vld [vmem:[#allocation159_spill] sm:$0xff]  ;;  %v10878_v24 = vld [vmem:[#allocation154_spill] sm:$0xff] }
0x1b7a   :  { %6815 = vmatprep.subr.bf16.mxu1 %v10829_v40  ;;  %6877 = vmatpush1.bf16.msra.mxu0 %v10830_v41  ;;  %v10879_v40 = vld [vmem:[#allocation156_spill] sm:$0xff]  ;;  %v10880_v41 = vld [vmem:[#allocation158_spill] sm:$0xff] }
0x1b7b   :  { %6879 = vmatprep.subr.bf16.mxu0 %v10831_v49  ;;  %v10881_v49 = vld [vmem:[#allocation160_spill] sm:$0xff] }
0x1b7d   :  { %6817 = vmatpush1.bf16.msra.mxu1 %v10832_v51  ;;  %v10882_v51 = vld [vmem:[#allocation162_spill] sm:$0xff] }
0x1b7e   :  { %6819 = vmatprep.subr.bf16.mxu1 %v10833_v0  ;;  %6881 = vmatpush1.bf16.msra.mxu0 %v10834_v27  ;;  %v10883_v0 = vld [vmem:[#allocation164_spill] sm:$0xff]  ;;  %v10884_v27 = vld [vmem:[#allocation166_spill] sm:$0xff] }
0x1b7f   :  { %6883 = vmatprep.subr.bf16.mxu0 %v10835_v28  ;;  %v10885_v28 = vld [vmem:[#allocation168_spill] sm:$0xff] }
0x1b81   :  { %6821 = vmatpush1.bf16.msra.mxu1 %v10836_v61  ;;  %v10886_v61 = vld [vmem:[#allocation170_spill] sm:$0xff] }
0x1b82   :  { %6823 = vmatprep.subr.bf16.mxu1 %v10837_v15  ;;  %6885 = vmatpush1.bf16.msra.mxu0 %v10838_v44  ;;  %v10887_v15 = vld [vmem:[#allocation172_spill] sm:$0xff]  ;;  %v10888_v44 = vld [vmem:[#allocation174_spill] sm:$0xff] }
0x1b83   :  { %6887 = vmatprep.subr.bf16.mxu0 %v10839_v30  ;;  %v10889_v30 = vld [vmem:[#allocation176_spill] sm:$0xff] }
0x1b85   :  { %6825 = vmatpush1.bf16.msra.mxu1 %v10840_v8  ;;  %v10890_v8 = vld [vmem:[#allocation178_spill] sm:$0xff] }
0x1b86   :  { %6827 = vmatprep.subr.bf16.mxu1 %v10841_v3  ;;  %6889 = vmatpush1.bf16.msra.mxu0 %v10842_v13 }
0x1b87   :  { %6891 = vmatprep.subr.bf16.mxu0 %v10843_v18 }
0x1b89   :  { %6829 = vmatpush1.bf16.msra.mxu1 %v10844_v26 }
0x1b8a   :  { %6831 = vmatprep.subr.bf16.mxu1 %v10845_v31  ;;  %6893 = vmatpush1.bf16.msra.mxu0 %v10846_v10 }
0x1b8b   :  { %6895 = vmatprep.subr.bf16.mxu0 %v10847_v9 }
0x1b8d   :  { %6833 = vmatpush1.bf16.msra.mxu1 %v10848_v22  ;;  %v10891_v22 = vld [vmem:[#allocation181_spill] sm:$0xff] }
0x1b8e   :  { %6835 = vmatprep.subr.bf16.mxu1 %v10849_v35  ;;  %6897 = vmatpush1.bf16.msra.mxu0 %v10850_v53 }
0x1b8f   :  { %6899 = vmatprep.subr.bf16.mxu0 %v10851_v34 }
0x1b91   :  { %6837 = vmatpush1.bf16.msra.mxu1 %v10852_v2 }
0x1b92   :  { %6839 = vmatprep.subr.bf16.mxu1 %v10853_v42  ;;  %6901 = vmatpush1.bf16.msra.mxu0 %v10854_v33 }
0x1b93   :  { %6903 = vmatprep.subr.bf16.mxu0 %v10855_v17 }
0x1b95   :  { %6841 = vmatpush1.bf16.msra.mxu1 %v10856_v63 }
0x1b96   :  { %6907 = vmatprep.subr.bf16.mxu1 %v10857_v23  ;;  %6905 = vmatpush1.bf16.msra.mxu0 %v10858_v36 }
0x1b97   :  { %6971 = vmatprep.subr.bf16.mxu0 %v10859_v62 }
0x1b98   :  { %4161 = vmatmul.mubr.f32.vlgmr.msra.gmra.mrb[26].mxu1 %v9272_v6  ;;  %v10869_v6 = vld [vmem:[#allocation136_spill] sm:$0xff] }
0x1b99   :  { %4326 = vmatprep.mubr.f32.mxu1 %v9332_v57  ;;  %6909 = vmatpush1.bf16.msra.mxu1 %v10860_v21  ;;  %v10870_v57 = vld [vmem:[#allocation138_spill] sm:$0xff] }
0x1b9a   :  { %6911 = vmatprep.subr.bf16.mxu1 %v10861_v39 }
0x1b9d   :  { %6913 = vmatpush1.bf16.msra.mxu1 %v10862_v11 }
0x1b9e   :  { %6915 = vmatprep.subr.bf16.mxu1 %v10863_v59 }
0x1ba1   :  { %6917 = vmatpush1.bf16.msra.mxu1 %v10864_v5 }
0x1ba2   :  { %6919 = vmatprep.subr.bf16.mxu1 %v10865_v60 }
0x1ba5   :  { %6921 = vmatpush1.bf16.msra.mxu1 %v10866_v7 }
0x1ba6   :  { %6923 = vmatprep.subr.bf16.mxu1 %v10867_v29 }
0x1ba9   :  { %6925 = vmatpush1.bf16.msra.mxu1 %v10868_v55 }
0x1baa   :  { %6927 = vmatprep.subr.bf16.mxu1 %v10869_v6 }
0x1bad   :  { %6929 = vmatpush1.bf16.msra.mxu1 %v10870_v57  ;;  %v10894_v57 = vld [vmem:[#allocation199_spill] sm:$0xff] }
0x1bae   :  { %6931 = vmatprep.subr.bf16.mxu1 %v10871_v25  ;;  %v10895_v25 = vld [vmem:[#allocation200_spill] sm:$0xff] }
0x1bb1   :  { %6933 = vmatpush1.bf16.msra.mxu1 %v10872_v16  ;;  %v10900_v16 = vld [vmem:[#allocation184_spill] sm:$0xff] }
0x1bb2   :  { %6935 = vmatprep.subr.bf16.mxu1 %v10873_v54 }
0x1bb5   :  { %6937 = vmatpush1.bf16.msra.mxu1 %v10874_v37 }
0x1bb6   :  { %6939 = vmatprep.subr.bf16.mxu1 %v10875_v20  ;;  %v10901_v20 = vld [vmem:[#allocation185_spill] sm:$0xff] }
0x1bb9   :  { %6941 = vmatpush1.bf16.msra.mxu1 %v10876_v43 }
0x1bba   :  { %6943 = vmatprep.subr.bf16.mxu1 %v10877_v45 }
0x1bbd   :  { %6945 = vmatpush1.bf16.msra.mxu1 %v10878_v24 }
0x1bbe   :  { %6947 = vmatprep.subr.bf16.mxu1 %v10879_v40 }
0x1bc1   :  { %6949 = vmatpush1.bf16.msra.mxu1 %v10880_v41 }
0x1bc2   :  { %6951 = vmatprep.subr.bf16.mxu1 %v10881_v49  ;;  %v10902_v49 = vld [vmem:[#allocation187_spill] sm:$0xff] }
0x1bc5   :  { %6953 = vmatpush1.bf16.msra.mxu1 %v10882_v51 }
0x1bc6   :  { %6955 = vmatprep.subr.bf16.mxu1 %v10883_v0 }
0x1bc9   :  { %6957 = vmatpush1.bf16.msra.mxu1 %v10884_v27 }
0x1bca   :  { %6959 = vmatprep.subr.bf16.mxu1 %v10885_v28 }
0x1bcd   :  { %6961 = vmatpush1.bf16.msra.mxu1 %v10886_v61 }
0x1bce   :  { %6963 = vmatprep.subr.bf16.mxu1 %v10887_v15 }
0x1bd1   :  { %6965 = vmatpush1.bf16.msra.mxu1 %v10888_v44 }
0x1bd2   :  { %6967 = vmatprep.subr.bf16.mxu1 %v10889_v30 }
0x1bd5   :  { %6969 = vmatpush1.bf16.msra.mxu1 %v10890_v8 }
0x1c0b   :  { %v4793_v3 = vpop.f32.mrb[24].mxu1 }
0x1c0c   :  { %v4794_v13 = vpop.f32.mrb[25].mxu1 }
0x1c0d   :  { %v4795_v18 = vadd.f32 %v4794_v13, %v4793_v3 }
0x1c0f   :  { %v3874_v26 = vadd.f32 %v9261_v56, %v4795_v18  ;;  %v10903_v18 = vld [vmem:[#allocation32_spill] sm:$0xff] }
0x1c11   :  { %3878 = vst [vmem:[#allocation14 + $0x8] sm:$0x3] %v3874_v26 }
0x1c2b   :  { %v4020_v31 = vpop.f32.mrb[26].mxu0 }
0x1c2c   :  { %v4022_v10 = vpop.f32.mrb[27].mxu0  ;;  %v7022_v35 = vadd.f32 %v4020_v31, %v10891_v22  ;;  %v10904_v22 = vld [vmem:[#allocation189_spill] sm:$0xff] }
0x1c2d   :  { %v7023_v9 = vadd.f32 %v4022_v10, %v10296_v32 }
0x1c2e   :  { %v4598_v34 = vmul.f32 -1.442695, %v7022_v35 }
0x1c2f   :  { %v4599_v53 = vmul.f32 -1.442695, %v7023_v9 }
0x1c31   :  { %7251 = vpow2.f32 %v4599_v53 }
0x1c32   :  { %7253 = vpow2.f32 %v4598_v34 }
0x1c3b   :  { %v7252_v2 = vpop.eup %7251 }
0x1c3c   :  { %v7254_v42 = vpop.eup %7253  ;;  %v4176_v33 = vadd.f32 1.0, %v7252_v2  ;;  %v10905_v2 = vld [vmem:[#allocation179_spill] sm:$0xff] }
0x1c3d   :  { %v4170_v17 = vadd.f32 1.0, %v7254_v42 }
0x1c3e   :  { %7255 = vrcp.f32 %v4176_v33 }
0x1c3f   :  { %7257 = vrcp.f32 %v4170_v17  ;;  %v10906_v17 = vld [vmem:[#allocation34_spill] sm:$0xff] }
0x1c48   :  { %v7256_v21 = vpop.eup %7255 }
0x1c49   :  { %v7258_v39 = vpop.eup %7257  ;;  %v4186_v59 = vmul.f32 %v7256_v21, %v9269_v1  ;;  %v10893_v1 = vld [vmem:[#allocation198_spill] sm:$0xff] }
0x1c6b   :  { %v4162_v63 = vpop.f32.mrb[26].mxu1 }
0x1c6c   :  { %v7024_v23 = vadd.f32 %v4162_v63, %v8238_v52  ;;  %v4164_v36 = vpop.f32.mrb[27].mxu1 }
0x1c6d   :  { %v7025_v62 = vadd.f32 %v4164_v36, %v10298_v14  ;;  %v10892_v14 = vld [vmem:[#allocation197_spill] sm:$0xff]  ;;  %v10907_v36 = vld [vmem:[#allocation36_spill] sm:$0xff] }
0x1c6e   :  { %7259 = vtanh.f32 %v7024_v23 }
0x1c6f   :  { %v4600_v32 = vmul.f32 -1.442695, %v7025_v62 }
0x1c71   :  { %7261 = vpow2.f32 %v4600_v32 }
0x1c78   :  { %v7260_v11 = vpop.eup %7259 }
0x1c79   :  { %v4187_v5 = vmul.f32 %v7260_v11, %v7258_v39  ;;  %v10908_v39 = vld [vmem:[#allocation193_spill] sm:$0xff] }
0x1c7b   :  { %v7262_v60 = vpop.eup %7261  ;;  %v4188_v7 = vadd.f32 %v4187_v5, %v4186_v59 }
0x1c7c   :  { %v4183_v29 = vadd.f32 1.0, %v7262_v60 }
0x1c7d   :  { %7263 = vtanh.f32 %v4188_v7 }
0x1c7e   :  { %7265 = vrcp.f32 %v4183_v29 }
0x1c87   :  { %v7264_v55 = vpop.eup %7263 }
0x1c88   :  { %v7266_v52 = vpop.eup %7265 }
0x1c89   :  { %v4190_v6 = vmul.f32 %v7266_v52, %v7264_v55 }
0x1c8b   :  { %4256 = vmatmul.mubr.f32.vlgmr.msra.gmra.mrb[28].mxu0 %v4190_v6  ;;  %4327 = vmatmul.mubr.f32.vlgmr.msra.gmra.mrb[28].mxu1 %v4190_v6 }
0x1c8c   :  { %6973 = vmatpush3.bf16.msra.mxu0 %v8343_v58  ;;  %v10896_v58 = vld [vmem:[#allocation201_spill] sm:$0xff] }
0x1c8d   :  { %6975 = vmatprep.subr.bf16.mxu0 %v8345_v47  ;;  %v10897_v47 = vld [vmem:[#allocation202_spill] sm:$0xff] }
0x1c90   :  { %6977 = vmatpush3.bf16.msra.mxu0 %v8349_v19  ;;  %v10898_v19 = vld [vmem:[#allocation203_spill] sm:$0xff] }
0x1c91   :  { %6979 = vmatprep.subr.bf16.mxu0 %v8352_v46  ;;  %v10899_v46 = vld [vmem:[#allocation204_spill] sm:$0xff] }
0x1c94   :  { %6981 = vmatpush3.bf16.msra.mxu0 %v8355_v48 }
0x1c95   :  { %6983 = vmatprep.subr.bf16.mxu0 %v8358_v4 }
0x1c98   :  { %6985 = vmatpush3.bf16.msra.mxu0 %v10746_v38 }
0x1c99   :  { %6987 = vmatprep.subr.bf16.mxu0 %v10892_v14 }
0x1c9c   :  { %6989 = vmatpush3.bf16.msra.mxu0 %v10893_v1 }
0x1c9d   :  { %6991 = vmatprep.subr.bf16.mxu0 %v10894_v57 }
0x1ca0   :  { %6993 = vmatpush3.bf16.msra.mxu0 %v10895_v25 }
0x1ca1   :  { %6995 = vmatprep.subr.bf16.mxu0 %v10896_v58 }
0x1ca4   :  { %6997 = vmatpush3.bf16.msra.mxu0 %v10897_v47  ;;  %v10910_v47 = vld [vmem:[#allocation180_spill] sm:$0xff] }
0x1ca5   :  { %6999 = vmatprep.subr.bf16.mxu0 %v10898_v19 }
0x1ca8   :  { %7001 = vmatpush3.bf16.msra.mxu0 %v10899_v46 }
0x1d5e   :  { %v4257_v48 = vpop.f32.mrb[28].mxu0  ;;  %v4328_v4 = vpop.f32.mrb[28].mxu1 }
0x1d5f   :  { %v4258_v38 = vadd.f32 %v4257_v48, %v10900_v16  ;;  %v4259_v54 = vpop.f32.mrb[29].mxu0  ;;  %v4330_v37 = vpop.f32.mrb[29].mxu1  ;;  %v4329_v51 = vadd.f32 %v4328_v4, %v10902_v49  ;;  %v10911_v16 = vld [vmem:[#allocation38_spill] sm:$0xff] }
0x1d60   :  { %v4260_v43 = vadd.f32 %v4259_v54, %v10901_v20  ;;  %v4331_v40 = vadd.f32 %v4330_v37, %v10783_v12 }
0x1d61   :  { %v4601_v45 = vmul.f32 -1.442695, %v4258_v38 }
0x1d62   :  { %v4602_v24 = vmul.f32 -1.442695, %v4260_v43  ;;  %v4603_v41 = vmul.f32 -1.442695, %v4331_v40 }
0x1d63   :  { %7267 = vpow2.f32 %v4601_v45 }
0x1d64   :  { %7269 = vpow2.f32 %v4602_v24 }
0x1d65   :  { %7271 = vpow2.f32 %v4603_v41 }
0x1d66   :  { %7273 = vtanh.f32 %v4329_v51 }
0x1d6d   :  { %v7268_v0 = vpop.eup %7267 }
0x1d6e   :  { %v7270_v27 = vpop.eup %7269  ;;  %v4336_v28 = vadd.f32 1.0, %v7268_v0 }
0x1d6f   :  { %v4342_v61 = vadd.f32 1.0, %v7270_v27  ;;  %v7272_v15 = vpop.eup %7271 }
0x1d70   :  { %7275 = vrcp.f32 %v4336_v28  ;;  %v7274_v44 = vpop.eup %7273  ;;  %v4349_v13 = vadd.f32 1.0, %v7272_v15 }
0x1d71   :  { %7277 = vrcp.f32 %v4342_v61 }
0x1d72   :  { %7279 = vrcp.f32 %v4349_v13 }
0x1d7a   :  { %v7276_v30 = vpop.eup %7275 }
0x1d7b   :  { %v7278_v8 = vpop.eup %7277  ;;  %v4353_v3 = vmul.f32 %v7276_v30, %v7274_v44 }
0x1d7c   :  { %v4352_v26 = vmul.f32 %v7278_v8, %v10903_v18  ;;  %v7280_v31 = vpop.eup %7279 }
0x1d7e   :  { %v4354_v12 = vadd.f32 %v4353_v3, %v4352_v26 }
0x1d80   :  { %7281 = vtanh.f32 %v4354_v12 }
0x1d8a   :  { %v7282_v10 = vpop.eup %7281 }
0x1d8b   :  { %v4356_v9 = vmul.f32 %v7282_v10, %v7280_v31 }
0x1d8d   :  { %v4364_v35 = vrot.slane %v4356_v9, %v10904_v22 }
0x1d8f   :  { %v4372_v53 = vrot.slane %v4364_v35, %v10904_v22  ;;  %v4365_v34 = vcombine.high %v4364_v35, %v4364_v35 }
0x1d91   :  { %v4383_v42 = vrot.slane %v4372_v53, %v10905_v2  ;;  %v4379_v33 = vrot.slane %v4365_v34, %v10904_v22 }
0x1d93   :  { %v4390_v63 = vmul.f32 %v10906_v17, %v4383_v42  ;;  %v4387_v23 = vrot.slane %v4379_v33, %v10905_v2 }
0x1d95   :  { %4392 = vadd.xlane.f32.xlu1 %v4390_v63  ;;  %v4391_v62 = vmul.f32 %v10907_v36, %v4387_v23 }
0x1d97   :  { %4394 = vadd.xlane.f32.xlu0 %v4391_v62 }
0x1e22   :  { %v4393_v32 = vpop.xlane.xlu1 %4392 }
0x1e23   :  { %v4401_v11 = vrot.slane %v4393_v32, %v10908_v39 }
0x1e24   :  { %v4395_v21 = vpop.xlane.xlu0 %4394 }
0x1e25   :  { %v4405_v59 = vrot.slane %v4395_v21, %v10908_v39 }
0x1e27   :  { %v4406_v5 = vsel %vm1083_vm0, %v4405_v59, %v4401_v11 }
0x1e28   :  { %v4408_v7 = vsel %vm1070_vm1, %v4406_v5, -1e+09 }
0x1e29   :  { %v4409_v29 = vsel %vm1087_vm2, %v4408_v7, -inf }
0x1e2a   :  { %4410 = vmax.xlane.f32.xlu1 %v4409_v29 }
0x1eb7   :  { %v4411_v55 = vpop.xlane.xlu1 %4410 }
0x1eb8   :  { %v4412_v52 = vsub.f32 %v4408_v7, %v4411_v55 }
0x1eba   :  { %v4413_v6 = vmul.f32 1.442695, %v4412_v52 }
0x1ebc   :  { %7283 = vpow2.f32 %v4413_v6 }
0x1ec6   :  { %v7284_v14 = vpop.eup %7283 }
0x1ec7   :  { %v4415_v1 = vsel %vm1087_vm2, %v7284_v14, 0.0 }
0x1ec8   :  { %4416 = vadd.xlane.f32.xlu0 %v4415_v1 }
0x1f55   :  { %v4417_v57 = vpop.xlane.xlu0 %4416 }
0x1f56   :  { %7285 = vrcp.f32 %v4417_v57 }
0x1f60   :  { %v7286_v25 = vpop.eup %7285 }
0x1f61   :  { %v4419_v58 = vmul.f32 %v7286_v25, %v7284_v14 }
0x1f63   :  { %v4430_v19 = vrot.slane %v4419_v58, %v10910_v47  ;;  %4525 = vst.msk [vmem:[#allocation15 + $0x5] sm:$0x1] %vm1208_vm3, %v4419_v58  ;;  %v4423_v46 = vrot.slane %v4419_v58, %v10905_v2 }
0x1f65   :  { %4432 = vbcast.lane.b32.xlu0 %v4430_v19, 256  ;;  %4425 = vbcast.lane.b32.xlu1 %v4423_v46, 256 }
0x1fd7   :  { %v4433_v48 = vpop.permute.xlu0 %4432  ;;  %v4426_v4 = vpop.permute.xlu1 %4425 }
0x1fd8   :  { %v4435_v38 = vmul.f32 %v10911_v16, %v4433_v48  ;;  %v4434_v54 = vmul.f32 %v9359_v50, %v4426_v4 }
0x1fda   :  { %v4442_v37 = vrot.slane %v4435_v38, 4  ;;  %v4436_v20 = vrot.slane %v4434_v54, 4 }
0x1fdc   :  { %v4443_v43 = vadd.f32 %v4442_v37, %v4435_v38  ;;  %v4437_v45 = vadd.f32 %v4436_v20, %v4434_v54 }
0x1fde   :  { %v4444_v24 = vrot.slane %v4443_v43, 2  ;;  %v4438_v40 = vrot.slane %v4437_v45, 2 }
0x1fe0   :  { %v4445_v41 = vadd.f32 %v4444_v24, %v4443_v43  ;;  %v4439_v49 = vadd.f32 %v4438_v40, %v4437_v45 }
0x1fe2   :  { %v4446_v51 = vrot.slane %v4445_v41, 1  ;;  %v4440_v0 = vrot.slane %v4439_v49, 1 }
0x1fe4   :  { %v4441_v27 = vadd.f32 %v4440_v0, %v4439_v49  ;;  %v4447_v28 = vadd.f32 %v4446_v51, %v4445_v41 }
0x1fe6   :  { %v4450_v61 = vsel %vm1083_vm0, %v4447_v28, %v4441_v27 }
0x1fe7   :  { %4516 = vmatprep.mubr.f32.mxu0 %v4450_v61 }
0x1fe8   :  { %4517 = vmatmul.mubr.f32.vlgmr.msra.gmra.mrb[30].mxu0 %v4356_v9 }
0x1fe9   :  { %7461 = shalt.err (!%p7458_p4)
}
0x1fea   :  { %s7462_s29 = scalar_lea.hbm %s9590_s13, 96 }
0x1feb   :  { %p7463_p5 = scmp.ne.s32.totalorder %s9590_s13, %s7462_s29  ;;  %p7466_p6 = scmp.lt.u32.totalorder %s7462_s29, %s9590_s13 }
0x1fed   :  { %p7468_p7 = pnand %p7466_p6, %p7463_p5 }
0x1fef   :  { %7471 = shalt.err (!%p7468_p7)
}
0x1ff0   :  { %s7523_s10 = smov 16   ;;  %s7524_s20 = smov 1  }
0x1ff1   :  { %4549 = dma.vmem_to_hbm [thread:$0]  %s4544_s25, 96, %s9590_s13, [#allocation16], %s7523_s10, %s7523_s10, %s7524_s20  }
0x1ff2   :  { %s7525_s9 = smov [#allocation14]  }
0x1ff3   :  { %s4531_s16 = sshll.u32 %s7525_s9, 4  ;;  %s4532_s16 = int_to_ptr.vmem [resolvable:$true] %s4531_s16 }
0x1ff4   :  { %s7472_s2 = scalar_lea.vmem %s4532_s16, 192  ;;  %p7477_p9 = scmp.lt.s32.totalorder %s4532_s16, %s4532_s16 }
0x1ff5   :  { %p7473_p8 = scmp.ne.s32.totalorder %s4532_s16, %s7472_s2  ;;  %p7478_p10 = scmp.lt.s32.totalorder %s7472_s2, %s7472_s2 }
0x1ff7   :  { %p7479_p11 = por %p7478_p10, %p7477_p9 }
0x1ff9   :  { %p7480_p12 = pnand %p7479_p11, %p7473_p8 }
0x20bb   :  { %v4828_v50 = vpop.f32.mrb[30].mxu0 }
0x20bc   :  { %v4829_v15 = vpop.f32.mrb[31].mxu0 }
0x20bd   :  { %v4830_v44 = vadd.f32 %v4829_v15, %v4828_v50 }
0x20bf   :  { %v4519_v30 = vadd.f32 %v9261_v56, %v4830_v44 }
0x20c1   :  { %4523 = vst [vmem:[#allocation14 + $0xa] sm:$0x3] %v4519_v30 }
0x20c2   :  { %7483 = shalt.err (!%p7480_p12)
}
0x20c3   :  { %s7484_s13 = scalar_lea.hbm %s9589_s12, 192 }
0x20c4   :  { %p7485_p13 = scmp.ne.s32.totalorder %s9589_s12, %s7484_s13  ;;  %p7488_p0 = scmp.lt.u32.totalorder %s7484_s13, %s9589_s12 }
0x20c6   :  { %p7490_p1 = pnand %p7488_p0, %p7485_p13 }
0x20c8   :  { %7493 = shalt.err (!%p7490_p1)
}
0x20c9   :  { %s7526_s14 = smov 2  }
0x20ca   :  { %4537 = dma.vmem_to_hbm [thread:$0]  %s4532_s16, 192, %s9589_s12, [#allocation4], %s7513_s15, %s7513_s15, %s7526_s14  }
0x20cb   :  { %7502 = dma.done.wait [#allocation4], 192  }
0x20cc   :  { %7503 = vsyncadd [#allocation4], 4294967104 }
0x20cd   :  { %7504 = dma.done.wait [#allocation16], 96  }
0x20ce   :  { %7505 = vsyncadd [#allocation16], 4294967200 }
0x20cf   :  { %4556 = vsyncpa [#allocation3], 1 }
0x20d0   :  { %4557 = vsyncpa [#allocation6], 1 }
0x20d1   :  { %4558 = vsyncpa [#allocation9], 1 }
0x20d2   :  { %4559 = vsyncpa [#allocation12], 1 }
0x20d3   :  { %4560 = vsyncpa [#allocation4], 1 }
0x20d4   :  { %4561 = vsyncpa [#allocation16], 1 }

</bundles_post_ra>
